<compile_context>
chip_gen: v7x
topology: tpu7x:2x2x1
jax: 0.10.0
libtpu: 0.0.40
codegen_flags: <defaults>
</compile_context>

<pallas_src>
import functools
import numpy as np

import jax
import jax.numpy as jnp
from jax import lax
from jax.experimental import pallas as pl
from jax.experimental.pallas import tpu as pltpu


def _round_up(x, m):
    return (x + m - 1) // m * m


# ----------------------------------------------------------------------------
# Pallas kernel: one up_block, one (batch, row-tile) block per grid step
# ----------------------------------------------------------------------------
def _up_block_kernel(*args, n_in, th, Wp8, apply_relu, apply_tanh, compute_dtype):
    """Fused ReLU -> transposed-conv (tile-level matmuls) -> BN bias -> Tanh.

    args (n_in = number of channel-concatenated inputs, concat never materialized):
      inputs : for t in range(n_in):
                 main_t  (th*Wp8, C_t)   flat padded rows of this row tile
                 halo0_t (Wp8,   C_t)    next padded image row
                 halo1_t (Wp8,   C_t)    padded image row after that
               then w_t (9, C_t, 4*Cout) for each t (tap/parity fused, BN scale
               folded, compute dtype), bias (1, 4*Cout) f32
      output : (th*Wp8, 4*Cout) parity-packed rows
      scratch: xr_t ((th+3)*Wp8, C_t) compute-dtype staging window per input
    """
    mains = [args[3 * t] for t in range(n_in)]
    halo0 = [args[3 * t + 1] for t in range(n_in)]
    halo1 = [args[3 * t + 2] for t in range(n_in)]
    w_refs = [args[3 * n_in + t] for t in range(n_in)]
    bias_ref = args[4 * n_in]
    out_ref = args[4 * n_in + 1]
    xr_refs = [args[4 * n_in + 2 + t] for t in range(n_in)]

    M = th * Wp8

    # Stage the (th+2)-image-row window of every input into one contiguous
    # flat-row scratch: ReLU + cast applied exactly once per element.
    for t in range(n_in):
        xm = mains[t][...]
        a0 = halo0[t][...]
        a1 = halo1[t][...]
        if apply_relu:
            xm = jnp.maximum(xm, 0.0)
            a0 = jnp.maximum(a0, 0.0)
            a1 = jnp.maximum(a1, 0.0)
        xr = xr_refs[t]
        xr[0:M, :] = xm.astype(compute_dtype)
        xr[M:M + Wp8, :] = a0.astype(compute_dtype)
        xr[M + Wp8:M + 2 * Wp8, :] = a1.astype(compute_dtype)
        # Tail rows are only read into the (discarded) wrap-around output
        # columns; zero them so the packed output is deterministic.
        xr[M + 2 * Wp8:M + 3 * Wp8, :] = jnp.zeros((Wp8,) + a1.shape[1:],
                                                   compute_dtype)

    # Tile-level matmuls: 9 accumulating K=C_t dots per input with M = th*Wp8.
    # No lane-axis concat of shifted views; the 9 lhs operands are just
    # sublane-offset windows of the same scratch.
    acc = None
    for t in range(n_in):
        xr = xr_refs[t]
        w = w_refs[t]
        for a in range(3):
            for b in range(3):
                off = a * Wp8 + b
                lhs = xr[off:off + M, :]                     # (M, C_t)
                part = jnp.dot(lhs, w[a * 3 + b],
                               preferred_element_type=jnp.float32)
                acc = part if acc is None else acc + part

    y = acc + bias_ref[...]                                  # f32 epilogue
    if apply_tanh:
        y = jnp.tanh(y)
    out_ref[...] = y.astype(out_ref.dtype)


# ----------------------------------------------------------------------------
# VMEM budgeting (generation aware, weight/halo/scratch/accumulator inclusive)
# ----------------------------------------------------------------------------
@functools.lru_cache(maxsize=1)
def _vmem_budget():
    try:
        cap = int(pltpu.get_tpu_info().vmem_capacity_bytes)
    except Exception:
        cap = 64 * 1024 * 1024          # conservative: v7x per-TensorCore VMEM
    limit = min(int(cap * 3 // 4), 96 * 1024 * 1024)
    budget = int(limit * 0.55)
    return budget, limit


def _pick_row_tile(N, H, Wp8, cins, cout, compute_dtype, out_dtype):
    budget, _ = _vmem_budget()
    cd = np.dtype(compute_dtype).itemsize
    od = np.dtype(out_dtype).itemsize

    def lanes(c):
        return _round_up(max(c, 1), 128)

    def est(th):
        M = th * Wp8
        b = 0
        for c in cins:
            cl = lanes(c)
            b += 2 * M * cl * cd                         # input main block x2 buf
            b += 2 * 2 * Wp8 * cl * cd                   # two halo blocks x2 buf
            b += 2 * 9 * _round_up(c, 8) * lanes(4 * cout) * cd   # fused weight x2 buf
            b += (th + 3) * Wp8 * cl * cd                # staging scratch
        b += 2 * M * lanes(4 * cout) * od                # output block x2 buf
        b += 2 * M * lanes(4 * cout) * 4                 # f32 accumulator temps
        return b

    divisors = sorted([d for d in range(1, H + 1) if H % d == 0], reverse=True)
    th = divisors[-1]
    for d in divisors:
        if est(d) <= budget:
            th = d
            break
    # Give both TensorCores work when the batch axis alone cannot (v7x / megacore).
    if N == 1 and th == H:
        smaller = [d for d in divisors if d < H]
        if smaller:
            th = smaller[0]
    return th


# ----------------------------------------------------------------------------
# up_block wrapper: pad+flatten inputs, build specs, parity re-interleave
# ----------------------------------------------------------------------------
def up_block_apply(inputs, w9_list, bias4, cout, *, apply_relu, apply_tanh,
                   out_dtype, compute_dtype=jnp.bfloat16):
    """inputs: list of NHWC arrays (the channel-concatenated up_block input,
    kept as separate tensors).  w9_list[t]: (9, C_t, 4*cout) fused weights."""
    N, H, W, _ = inputs[0].shape
    n_in = len(inputs)
    cins = [int(x.shape[-1]) for x in inputs]
    Wp8 = _round_up(W + 2, 8)            # flat-row width (keeps all blocks 8-aligned)

    # Pad (1px spatial + lane/width alignment), cast to compute dtype, flatten rows.
    flats = []
    for x in inputs:
        xc = x.astype(compute_dtype)
        xp = jnp.pad(xc, ((0, 0), (1, 1), (1, Wp8 - W - 1), (0, 0)))
        flats.append(xp.reshape(N, (H + 2) * Wp8, x.shape[-1]))

    th = _pick_row_tile(N, H, Wp8, cins, cout, compute_dtype, out_dtype)
    n_tiles = H // th
    M = th * Wp8
    _, vmem_limit = _vmem_budget()

    kernel = functools.partial(_up_block_kernel, n_in=n_in, th=th, Wp8=Wp8,
                               apply_relu=apply_relu, apply_tanh=apply_tanh,
                               compute_dtype=compute_dtype)

    in_specs = []
    operands = []
    for t in range(n_in):
        C = cins[t]
        in_specs.append(pl.BlockSpec((None, M, C), lambda n, i: (n, i, 0)))
        in_specs.append(pl.BlockSpec((None, Wp8, C),
                                     lambda n, i: (n, (i + 1) * th, 0)))
        in_specs.append(pl.BlockSpec((None, Wp8, C),
                                     lambda n, i: (n, (i + 1) * th + 1, 0)))
        operands.extend([flats[t], flats[t], flats[t]])
    for t in range(n_in):
        in_specs.append(pl.BlockSpec((9, cins[t], 4 * cout), lambda n, i: (0, 0, 0)))
        operands.append(w9_list[t])
    in_specs.append(pl.BlockSpec((1, 4 * cout), lambda n, i: (0, 0)))
    operands.append(bias4)

    out_packed = pl.pallas_call(
        kernel,
        out_shape=jax.ShapeDtypeStruct((N, H * Wp8, 4 * cout), out_dtype),
        grid=(N, n_tiles),
        in_specs=in_specs,
        out_specs=pl.BlockSpec((None, M, 4 * cout), lambda n, i: (n, i, 0)),
        scratch_shapes=[pltpu.VMEM(((th + 3) * Wp8, cins[t]), compute_dtype)
                        for t in range(n_in)],
        compiler_params=pltpu.CompilerParams(
            dimension_semantics=("parallel", "parallel"),
            vmem_limit_bytes=vmem_limit),
    )(*operands)

    # Discard the wrap-around columns and re-interleave the 4 parity classes
    # back to NHWC (one fused XLA slice+transpose pass, in `out_dtype`).
    y = out_packed.reshape(N, H, Wp8, 2, 2, cout)[:, :, :W]
    y = jnp.transpose(y, (0, 1, 3, 2, 4, 5)).reshape(N, 2 * H, 2 * W, cout)
    return y


# ----------------------------------------------------------------------------
# decoder: parameter construction (mirrors decoder.__init__), weight prep, fwd
# ----------------------------------------------------------------------------
def build_decoder_params(key, out_nc, nfg, max_n, len_n):
    if len_n <= max_n + 1:
        raise Exception('len_n must be smaller to max_n')
    cfgs = []
    cfgs.append(dict(in_nc=nfg * 2 ** max_n, out_nc=nfg * 2 ** max_n,
                     use_relu=False, use_tanh=False, use_bn=True))
    for _ in range(len_n - max_n - 2):
        cfgs.append(dict(in_nc=nfg * 2 ** (max_n + 1), out_nc=nfg * 2 ** max_n,
                         use_relu=True, use_tanh=False, use_bn=True))
    for i in range(max_n):
        now_n = max_n - i
        cfgs.append(dict(in_nc=nfg * 2 ** (now_n + 1),
                         out_nc=nfg * 2 ** (now_n - 1),
                         use_relu=True, use_tanh=False, use_bn=True))
    cfgs.append(dict(in_nc=nfg * 2, out_nc=out_nc,
                     use_relu=True, use_tanh=True, use_bn=False))

    params = []
    for cfg in cfgs:
        key, k1, k2, k3, k4, k5 = jax.random.split(key, 6)
        w = 0.1 * jax.random.normal(
            k1, (cfg['in_nc'], cfg['out_nc'], 4, 4), jnp.float32)
        gamma = 1.0 + 0.1 * jax.random.normal(k2, (cfg['out_nc'],), jnp.float32)
        beta = 0.1 * jax.random.normal(k3, (cfg['out_nc'],), jnp.float32)
        rmean = 0.1 * jax.random.normal(k4, (cfg['out_nc'],), jnp.float32)
        rvar = jax.random.uniform(k5, (cfg['out_nc'],), jnp.float32, 0.7, 1.3)
        params.append((cfg, w, gamma, beta, rmean, rvar))
    return params


def _fuse_weight_np(w_np, scale_np):
    """(Cin, Cout, 4, 4) -> (9, Cin, 4*Cout) tap/parity-fused, BN-scale folded."""
    cin, cout = w_np.shape[:2]
    w9 = np.zeros((3, 3, cin, 2, 2, cout), np.float32)
    for py in range(2):
        for px in range(2):
            for d in range(2):
                for e in range(2):
                    w9[py + d, px + e, :, py, px, :] = \
                        w_np[:, :, 3 - py - 2 * d, 3 - px - 2 * e]
    w9 = w9 * scale_np[None, None, None, None, None, :]
    return w9.reshape(9, cin, 4 * cout)


def prepare_decoder_kernel_params(params, *, compute_dtype=jnp.bfloat16, eps=1e-5):
    """Numpy precompute of fused per-input weights / BN bias (done once)."""
    prepped = []
    prev_out = None
    for k, (cfg, w, gamma, beta, rmean, rvar) in enumerate(params):
        cout = cfg['out_nc']
        w_np = np.asarray(w, np.float32)
        if cfg['use_bn']:
            scale = np.asarray(gamma, np.float32) / np.sqrt(
                np.asarray(rvar, np.float32) + eps)
            bias = np.asarray(beta, np.float32) - np.asarray(rmean, np.float32) * scale
        else:
            scale = np.ones((cout,), np.float32)
            bias = np.zeros((cout,), np.float32)
        # Channel split of the concat input: [previous activation, skip].
        splits = [cfg['in_nc']] if k == 0 else [prev_out, cfg['in_nc'] - prev_out]
        w9_list, c0 = [], 0
        for c in splits:
            w9_list.append(jnp.asarray(_fuse_weight_np(w_np[c0:c0 + c], scale),
                                       compute_dtype))
            c0 += c
        bias4 = jnp.asarray(np.tile(bias, 4).reshape(1, 4 * cout), jnp.float32)
        prepped.append(dict(cfg=cfg, w9_list=w9_list, bias4=bias4,
                            cins=splits, cout=cout))
        prev_out = cout
    return prepped


def decoder_forward(prepped, data_nchw, skips_nchw, *, compute_dtype=jnp.bfloat16):
    # TODO(synk): decoder.forward in the reference is `pass`; U-Net style skip
    # concatenation inferred from the __init__ channel widths.
    x = jnp.transpose(data_nchw, (0, 2, 3, 1))                 # NCHW -> NHWC
    skips = [jnp.transpose(s, (0, 2, 3, 1)) for s in skips_nchw]
    n_blocks = len(prepped)
    for k, p in enumerate(prepped):
        cfg = p['cfg']
        inputs = [x] if k == 0 else [x, skips[k - 1]]
        last = (k == n_blocks - 1)
        x = up_block_apply(inputs, p['w9_list'], p['bias4'], p['cout'],
                           apply_relu=cfg['use_relu'],
                           apply_tanh=cfg['use_tanh'],
                           out_dtype=(jnp.float32 if last else compute_dtype),
                           compute_dtype=compute_dtype)
    return jnp.transpose(x, (0, 3, 1, 2)).astype(jnp.float32)  # NHWC -> NCHW


# ----------------------------------------------------------------------------
# Pure-JAX reference.  compute_dtype=float32 -> full-precision reference;
# compute_dtype=bfloat16 -> emulates the kernel numerics (bf16 operands /
# inter-layer activations, f32 accumulation + epilogue).
# ----------------------------------------------------------------------------
def _ref_up_block(x_nchw, w, gamma, beta, rmean, rvar, *, apply_relu, apply_tanh,
                  apply_bn, eps=1e-5, compute_dtype=jnp.float32):
    if apply_relu:
        x_nchw = jnp.maximum(x_nchw, 0.0)
    cout = w.shape[1]
    if apply_bn:
        scale = gamma / jnp.sqrt(rvar + eps)
        bias = beta - rmean * scale
    else:
        scale = jnp.ones((cout,), jnp.float32)
        bias = jnp.zeros((cout,), jnp.float32)
    wf = (w * scale[None, :, None, None])[:, :, ::-1, ::-1]   # fold scale, flip
    wc = jnp.transpose(wf, (1, 0, 2, 3))                      # (Cout, Cin, 4, 4)
    y = lax.conv_general_dilated(
        x_nchw.astype(compute_dtype), wc.astype(compute_dtype),
        window_strides=(1, 1), padding=((2, 2), (2, 2)),
        lhs_dilation=(2, 2), dimension_numbers=('NCHW', 'OIHW', 'NCHW'),
        preferred_element_type=jnp.float32, precision=lax.Precision.HIGHEST)
    y = y + bias[None, :, None, None]
    if apply_tanh:
        y = jnp.tanh(y)
    return y


def _ref_decoder(params, data_nchw, skips_nchw, *, compute_dtype=jnp.float32):
    x = data_nchw
    for k, (cfg, w, gamma, beta, rmean, rvar) in enumerate(params):
        if k > 0:
            x = jnp.concatenate([x, skips_nchw[k - 1]], axis=1)
        x = _ref_up_block(x, w, gamma, beta, rmean, rvar,
                          apply_relu=cfg['use_relu'],
                          apply_tanh=cfg['use_tanh'],
                          apply_bn=cfg['use_bn'],
                          compute_dtype=compute_dtype)
    return x


# ----------------------------------------------------------------------------
if __name__ == "__main__":
    key = jax.random.PRNGKey(0)
    out_nc, nfg, max_n, len_n = 3, 8, 1, 3      # 3 up_blocks: 16->16, 32->8, 16->3
    N, H0, W0 = 2, 4, 4

    kp, kd, ks = jax.random.split(key, 3)
    params = build_decoder_params(kp, out_nc, nfg, max_n, len_n)
    prepped = prepare_decoder_kernel_params(params, compute_dtype=jnp.bfloat16)

    data = jax.random.normal(kd, (N, nfg * 2 ** max_n, H0, W0), jnp.float32)

    # Skip inputs for the U-Net style concat (channels = in_nc[k] - out_nc[k-1]).
    skips = []
    skip_keys = jax.random.split(ks, len(params) - 1)
    for k in range(1, len(params)):
        c = params[k][0]['in_nc'] - params[k - 1][0]['out_nc']
        s = H0 * (2 ** k)
        skips.append(jax.random.normal(skip_keys[k - 1], (N, c, s, s), jnp.float32))

    fwd = jax.jit(lambda d, s: decoder_forward(prepped, d, s,
                                               compute_dtype=jnp.bfloat16))
    out = jax.block_until_ready(fwd(data, skips))
    assert out.shape == (N, out_nc, H0 * 2 ** len(params), W0 * 2 ** len(params))

    # Tight check vs a reference using identical numerics (bf16 operands and
    # inter-layer activations, f32 accumulation / epilogue).
    ref_emu = jax.block_until_ready(
        _ref_decoder(params, data, skips, compute_dtype=jnp.bfloat16))
    np.testing.assert_allclose(np.asarray(out), np.asarray(ref_emu),
                               rtol=1e-2, atol=1e-2)

    # Drift check vs the full-f32 reference: bounds end-to-end bf16 error.
    ref_f32 = jax.block_until_ready(
        _ref_decoder(params, data, skips, compute_dtype=jnp.float32))
    np.testing.assert_allclose(np.asarray(out), np.asarray(ref_f32),
                               rtol=6e-2, atol=6e-2)

    print("KERNEL_OK")
</pallas_src>

<mosaic_0001>
module attributes {stable_mosaic.version = 11 : i64} {
  func.func @_up_block_kernel(%arg0: i32, %arg1: i32, %arg2: memref<1x32x16xbf16, #tpu.memory_space<vmem>>, %arg3: memref<1x8x16xbf16, #tpu.memory_space<vmem>>, %arg4: memref<1x8x16xbf16, #tpu.memory_space<vmem>>, %arg5: memref<9x16x64xbf16, #tpu.memory_space<vmem>>, %arg6: memref<1x64xf32, #tpu.memory_space<vmem>>, %arg7: memref<1x32x64xbf16, #tpu.memory_space<vmem>>, %arg8: memref<56x16xbf16, #tpu.memory_space<vmem>>) attributes {dimension_semantics = [#tpu.dimension_semantics<parallel>, #tpu.dimension_semantics<parallel>], iteration_bounds = array<i64: 2, 1>, scalar_prefetch = 0 : i64, scratch_operands = 1 : i64, tpu.core_type = #tpu.core_type<tc>, window_params = [{transform_indices = @transform_0, window_bounds = array<i64: 1, 32, 16>}, {transform_indices = @transform_1, window_bounds = array<i64: 1, 8, 16>}, {transform_indices = @transform_2, window_bounds = array<i64: 1, 8, 16>}, {pipeline_mode = #tpu.pipeline_mode<synchronous>, transform_indices = @transform_3, window_bounds = array<i64: 9, 16, 64>}, {pipeline_mode = #tpu.pipeline_mode<synchronous>, transform_indices = @transform_4, window_bounds = array<i64: 1, 64>}, {transform_indices = @transform_5, window_bounds = array<i64: 1, 32, 64>}]} {
    %c0 = arith.constant 0 : index
    %c0_0 = arith.constant 0 : index
    %c0_1 = arith.constant 0 : index
    %0 = vector.load %arg2[%c0, %c0_0, %c0_1] : memref<1x32x16xbf16, #tpu.memory_space<vmem>>, vector<1x32x16xbf16>
    %1 = vector.shape_cast %0 : vector<1x32x16xbf16> to vector<32x16xbf16>
    %c0_2 = arith.constant 0 : index
    %c0_3 = arith.constant 0 : index
    %c0_4 = arith.constant 0 : index
    %2 = vector.load %arg3[%c0_2, %c0_3, %c0_4] : memref<1x8x16xbf16, #tpu.memory_space<vmem>>, vector<1x8x16xbf16>
    %3 = vector.shape_cast %2 : vector<1x8x16xbf16> to vector<8x16xbf16>
    %c0_5 = arith.constant 0 : index
    %c0_6 = arith.constant 0 : index
    %c0_7 = arith.constant 0 : index
    %4 = vector.load %arg4[%c0_5, %c0_6, %c0_7] : memref<1x8x16xbf16, #tpu.memory_space<vmem>>, vector<1x8x16xbf16>
    %5 = vector.shape_cast %4 : vector<1x8x16xbf16> to vector<8x16xbf16>
    %c0_8 = arith.constant 0 : index
    %c0_9 = arith.constant 0 : index
    %6 = vector.load %arg8[%c0_8, %c0_9] : memref<56x16xbf16, #tpu.memory_space<vmem>>, vector<32x16xbf16>
    tpu.vector_store %arg8[%c0_8, %c0_9], %1 {strides = array<i32>} : memref<56x16xbf16, #tpu.memory_space<vmem>>, vector<32x16xbf16>,
    %c32 = arith.constant 32 : index
    %c0_10 = arith.constant 0 : index
    %7 = vector.load %arg8[%c32, %c0_10] : memref<56x16xbf16, #tpu.memory_space<vmem>>, vector<8x16xbf16>
    tpu.vector_store %arg8[%c32, %c0_10], %3 {strides = array<i32>} : memref<56x16xbf16, #tpu.memory_space<vmem>>, vector<8x16xbf16>,
    %c40 = arith.constant 40 : index
    %c0_11 = arith.constant 0 : index
    %8 = vector.load %arg8[%c40, %c0_11] : memref<56x16xbf16, #tpu.memory_space<vmem>>, vector<8x16xbf16>
    tpu.vector_store %arg8[%c40, %c0_11], %5 {strides = array<i32>} : memref<56x16xbf16, #tpu.memory_space<vmem>>, vector<8x16xbf16>,
    %cst = arith.constant 0.000000e+00 : bf16
    %9 = vector.broadcast %cst : bf16 to vector<8x16xbf16>
    %c48 = arith.constant 48 : index
    %c0_12 = arith.constant 0 : index
    %10 = vector.load %arg8[%c48, %c0_12] : memref<56x16xbf16, #tpu.memory_space<vmem>>, vector<8x16xbf16>
    tpu.vector_store %arg8[%c48, %c0_12], %9 {strides = array<i32>} : memref<56x16xbf16, #tpu.memory_space<vmem>>, vector<8x16xbf16>,
    %c0_13 = arith.constant 0 : index
    %c0_14 = arith.constant 0 : index
    %11 = vector.load %arg8[%c0_13, %c0_14] : memref<56x16xbf16, #tpu.memory_space<vmem>>, vector<32x16xbf16>
    %c0_15 = arith.constant 0 : index
    %c0_16 = arith.constant 0 : index
    %c0_17 = arith.constant 0 : index
    %12 = vector.load %arg5[%c0_15, %c0_16, %c0_17] : memref<9x16x64xbf16, #tpu.memory_space<vmem>>, vector<1x16x64xbf16>
    %13 = vector.shape_cast %12 : vector<1x16x64xbf16> to vector<16x64xbf16>
    %cst_18 = arith.constant dense<0.000000e+00> : vector<32x64xf32>
    %14 = tpu.matmul %11, %13, %cst_18 {dimension_numbers = #tpu.dot_dimension_numbers<[1], [0], [0], [1], [0, 0, 1, 1], [], []>} : vector<32x16xbf16>, vector<16x64xbf16>, vector<32x64xf32> -> vector<32x64xf32>
    %c1 = arith.constant 1 : index
    %c0_19 = arith.constant 0 : index
    %15 = vector.load %arg8[%c1, %c0_19] : memref<56x16xbf16, #tpu.memory_space<vmem>>, vector<32x16xbf16>
    %c1_20 = arith.constant 1 : index
    %c0_21 = arith.constant 0 : index
    %c0_22 = arith.constant 0 : index
    %16 = vector.load %arg5[%c1_20, %c0_21, %c0_22] : memref<9x16x64xbf16, #tpu.memory_space<vmem>>, vector<1x16x64xbf16>
    %17 = vector.shape_cast %16 : vector<1x16x64xbf16> to vector<16x64xbf16>
    %cst_23 = arith.constant dense<0.000000e+00> : vector<32x64xf32>
    %18 = tpu.matmul %15, %17, %cst_23 {dimension_numbers = #tpu.dot_dimension_numbers<[1], [0], [0], [1], [0, 0, 1, 1], [], []>} : vector<32x16xbf16>, vector<16x64xbf16>, vector<32x64xf32> -> vector<32x64xf32>
    %19 = arith.addf %14, %18 : vector<32x64xf32>
    %c2 = arith.constant 2 : index
    %c0_24 = arith.constant 0 : index
    %20 = vector.load %arg8[%c2, %c0_24] : memref<56x16xbf16, #tpu.memory_space<vmem>>, vector<32x16xbf16>
    %c2_25 = arith.constant 2 : index
    %c0_26 = arith.constant 0 : index
    %c0_27 = arith.constant 0 : index
    %21 = vector.load %arg5[%c2_25, %c0_26, %c0_27] : memref<9x16x64xbf16, #tpu.memory_space<vmem>>, vector<1x16x64xbf16>
    %22 = vector.shape_cast %21 : vector<1x16x64xbf16> to vector<16x64xbf16>
    %cst_28 = arith.constant dense<0.000000e+00> : vector<32x64xf32>
    %23 = tpu.matmul %20, %22, %cst_28 {dimension_numbers = #tpu.dot_dimension_numbers<[1], [0], [0], [1], [0, 0, 1, 1], [], []>} : vector<32x16xbf16>, vector<16x64xbf16>, vector<32x64xf32> -> vector<32x64xf32>
    %24 = arith.addf %19, %23 : vector<32x64xf32>
    %c8 = arith.constant 8 : index
    %c0_29 = arith.constant 0 : index
    %25 = vector.load %arg8[%c8, %c0_29] : memref<56x16xbf16, #tpu.memory_space<vmem>>, vector<32x16xbf16>
    %c3 = arith.constant 3 : index
    %c0_30 = arith.constant 0 : index
    %c0_31 = arith.constant 0 : index
    %26 = vector.load %arg5[%c3, %c0_30, %c0_31] : memref<9x16x64xbf16, #tpu.memory_space<vmem>>, vector<1x16x64xbf16>
    %27 = vector.shape_cast %26 : vector<1x16x64xbf16> to vector<16x64xbf16>
    %cst_32 = arith.constant dense<0.000000e+00> : vector<32x64xf32>
    %28 = tpu.matmul %25, %27, %cst_32 {dimension_numbers = #tpu.dot_dimension_numbers<[1], [0], [0], [1], [0, 0, 1, 1], [], []>} : vector<32x16xbf16>, vector<16x64xbf16>, vector<32x64xf32> -> vector<32x64xf32>
    %29 = arith.addf %24, %28 : vector<32x64xf32>
    %c9 = arith.constant 9 : index
    %c0_33 = arith.constant 0 : index
    %30 = vector.load %arg8[%c9, %c0_33] : memref<56x16xbf16, #tpu.memory_space<vmem>>, vector<32x16xbf16>
    %c4 = arith.constant 4 : index
    %c0_34 = arith.constant 0 : index
    %c0_35 = arith.constant 0 : index
    %31 = vector.load %arg5[%c4, %c0_34, %c0_35] : memref<9x16x64xbf16, #tpu.memory_space<vmem>>, vector<1x16x64xbf16>
    %32 = vector.shape_cast %31 : vector<1x16x64xbf16> to vector<16x64xbf16>
    %cst_36 = arith.constant dense<0.000000e+00> : vector<32x64xf32>
    %33 = tpu.matmul %30, %32, %cst_36 {dimension_numbers = #tpu.dot_dimension_numbers<[1], [0], [0], [1], [0, 0, 1, 1], [], []>} : vector<32x16xbf16>, vector<16x64xbf16>, vector<32x64xf32> -> vector<32x64xf32>
    %34 = arith.addf %29, %33 : vector<32x64xf32>
    %c10 = arith.constant 10 : index
    %c0_37 = arith.constant 0 : index
    %35 = vector.load %arg8[%c10, %c0_37] : memref<56x16xbf16, #tpu.memory_space<vmem>>, vector<32x16xbf16>
    %c5 = arith.constant 5 : index
    %c0_38 = arith.constant 0 : index
    %c0_39 = arith.constant 0 : index
    %36 = vector.load %arg5[%c5, %c0_38, %c0_39] : memref<9x16x64xbf16, #tpu.memory_space<vmem>>, vector<1x16x64xbf16>
    %37 = vector.shape_cast %36 : vector<1x16x64xbf16> to vector<16x64xbf16>
    %cst_40 = arith.constant dense<0.000000e+00> : vector<32x64xf32>
    %38 = tpu.matmul %35, %37, %cst_40 {dimension_numbers = #tpu.dot_dimension_numbers<[1], [0], [0], [1], [0, 0, 1, 1], [], []>} : vector<32x16xbf16>, vector<16x64xbf16>, vector<32x64xf32> -> vector<32x64xf32>
    %39 = arith.addf %34, %38 : vector<32x64xf32>
    %c16 = arith.constant 16 : index
    %c0_41 = arith.constant 0 : index
    %40 = vector.load %arg8[%c16, %c0_41] : memref<56x16xbf16, #tpu.memory_space<vmem>>, vector<32x16xbf16>
    %c6 = arith.constant 6 : index
    %c0_42 = arith.constant 0 : index
    %c0_43 = arith.constant 0 : index
    %41 = vector.load %arg5[%c6, %c0_42, %c0_43] : memref<9x16x64xbf16, #tpu.memory_space<vmem>>, vector<1x16x64xbf16>
    %42 = vector.shape_cast %41 : vector<1x16x64xbf16> to vector<16x64xbf16>
    %cst_44 = arith.constant dense<0.000000e+00> : vector<32x64xf32>
    %43 = tpu.matmul %40, %42, %cst_44 {dimension_numbers = #tpu.dot_dimension_numbers<[1], [0], [0], [1], [0, 0, 1, 1], [], []>} : vector<32x16xbf16>, vector<16x64xbf16>, vector<32x64xf32> -> vector<32x64xf32>
    %44 = arith.addf %39, %43 : vector<32x64xf32>
    %c17 = arith.constant 17 : index
    %c0_45 = arith.constant 0 : index
    %45 = vector.load %arg8[%c17, %c0_45] : memref<56x16xbf16, #tpu.memory_space<vmem>>, vector<32x16xbf16>
    %c7 = arith.constant 7 : index
    %c0_46 = arith.constant 0 : index
    %c0_47 = arith.constant 0 : index
    %46 = vector.load %arg5[%c7, %c0_46, %c0_47] : memref<9x16x64xbf16, #tpu.memory_space<vmem>>, vector<1x16x64xbf16>
    %47 = vector.shape_cast %46 : vector<1x16x64xbf16> to vector<16x64xbf16>
    %cst_48 = arith.constant dense<0.000000e+00> : vector<32x64xf32>
    %48 = tpu.matmul %45, %47, %cst_48 {dimension_numbers = #tpu.dot_dimension_numbers<[1], [0], [0], [1], [0, 0, 1, 1], [], []>} : vector<32x16xbf16>, vector<16x64xbf16>, vector<32x64xf32> -> vector<32x64xf32>
    %49 = arith.addf %44, %48 : vector<32x64xf32>
    %c18 = arith.constant 18 : index
    %c0_49 = arith.constant 0 : index
    %50 = vector.load %arg8[%c18, %c0_49] : memref<56x16xbf16, #tpu.memory_space<vmem>>, vector<32x16xbf16>
    %c8_50 = arith.constant 8 : index
    %c0_51 = arith.constant 0 : index
    %c0_52 = arith.constant 0 : index
    %51 = vector.load %arg5[%c8_50, %c0_51, %c0_52] : memref<9x16x64xbf16, #tpu.memory_space<vmem>>, vector<1x16x64xbf16>
    %52 = vector.shape_cast %51 : vector<1x16x64xbf16> to vector<16x64xbf16>
    %cst_53 = arith.constant dense<0.000000e+00> : vector<32x64xf32>
    %53 = tpu.matmul %50, %52, %cst_53 {dimension_numbers = #tpu.dot_dimension_numbers<[1], [0], [0], [1], [0, 0, 1, 1], [], []>} : vector<32x16xbf16>, vector<16x64xbf16>, vector<32x64xf32> -> vector<32x64xf32>
    %54 = arith.addf %49, %53 : vector<32x64xf32>
    %c0_54 = arith.constant 0 : index
    %c0_55 = arith.constant 0 : index
    %55 = vector.load %arg6[%c0_54, %c0_55] : memref<1x64xf32, #tpu.memory_space<vmem>>, vector<1x64xf32>
    %56 = vector.broadcast %55 : vector<1x64xf32> to vector<32x64xf32>
    %57 = arith.addf %54, %56 : vector<32x64xf32>
    %58 = arith.truncf %57 : vector<32x64xf32> to vector<32x64xbf16>
    %c0_56 = arith.constant 0 : index
    %c0_57 = arith.constant 0 : index
    %c0_58 = arith.constant 0 : index
    %59 = vector.load %arg7[%c0_56, %c0_57, %c0_58] : memref<1x32x64xbf16, #tpu.memory_space<vmem>>, vector<1x32x64xbf16>
    %60 = vector.shape_cast %59 : vector<1x32x64xbf16> to vector<32x64xbf16>
    %61 = vector.shape_cast %58 : vector<32x64xbf16> to vector<1x32x64xbf16>
    tpu.vector_store %arg7[%c0_56, %c0_57, %c0_58], %61 {strides = array<i32>} : memref<1x32x64xbf16, #tpu.memory_space<vmem>>, vector<1x32x64xbf16>,
    return
  }
  func.func @transform_0(%arg0: i32, %arg1: i32) -> (i32, i32, i32) {
    %c0_i32 = arith.constant 0 : i32
    %c0_i32_0 = arith.constant 0 : i32
    return %arg0, %arg1, %c0_i32 : i32, i32, i32
  }
  func.func @transform_1(%arg0: i32, %arg1: i32) -> (i32, i32, i32) {
    %c1_i32 = arith.constant 1 : i32
    %0 = arith.addi %arg1, %c1_i32 : i32
    %c4_i32 = arith.constant 4 : i32
    %1 = arith.muli %0, %c4_i32 : i32
    %c0_i32 = arith.constant 0 : i32
    %c0_i32_0 = arith.constant 0 : i32
    return %arg0, %1, %c0_i32 : i32, i32, i32
  }
  func.func @transform_2(%arg0: i32, %arg1: i32) -> (i32, i32, i32) {
    %c1_i32 = arith.constant 1 : i32
    %0 = arith.addi %arg1, %c1_i32 : i32
    %c4_i32 = arith.constant 4 : i32
    %1 = arith.muli %0, %c4_i32 : i32
    %c1_i32_0 = arith.constant 1 : i32
    %2 = arith.addi %1, %c1_i32_0 : i32
    %c0_i32 = arith.constant 0 : i32
    %c0_i32_1 = arith.constant 0 : i32
    return %arg0, %2, %c0_i32 : i32, i32, i32
  }
  func.func @transform_3(%arg0: i32, %arg1: i32) -> (i32, i32, i32) {
    %c0_i32 = arith.constant 0 : i32
    %c0_i32_0 = arith.constant 0 : i32
    %c0_i32_1 = arith.constant 0 : i32
    %c0_i32_2 = arith.constant 0 : i32
    return %c0_i32, %c0_i32_0, %c0_i32_1 : i32, i32, i32
  }
  func.func @transform_4(%arg0: i32, %arg1: i32) -> (i32, i32) {
    %c0_i32 = arith.constant 0 : i32
    %c0_i32_0 = arith.constant 0 : i32
    %c0_i32_1 = arith.constant 0 : i32
    return %c0_i32, %c0_i32_0 : i32, i32
  }
  func.func @transform_5(%arg0: i32, %arg1: i32) -> (i32, i32, i32) {
    %c0_i32 = arith.constant 0 : i32
    %c0_i32_0 = arith.constant 0 : i32
    return %arg0, %arg1, %c0_i32 : i32, i32, i32
  }
}

module attributes {stable_mosaic.version = 11 : i64} {
  func.func @_up_block_kernel(%arg0: i32, %arg1: i32, %arg2: memref<1x128x16xbf16, #tpu.memory_space<vmem>>, %arg3: memref<1x16x16xbf16, #tpu.memory_space<vmem>>, %arg4: memref<1x16x16xbf16, #tpu.memory_space<vmem>>, %arg5: memref<1x128x16xbf16, #tpu.memory_space<vmem>>, %arg6: memref<1x16x16xbf16, #tpu.memory_space<vmem>>, %arg7: memref<1x16x16xbf16, #tpu.memory_space<vmem>>, %arg8: memref<9x16x32xbf16, #tpu.memory_space<vmem>>, %arg9: memref<9x16x32xbf16, #tpu.memory_space<vmem>>, %arg10: memref<1x32xf32, #tpu.memory_space<vmem>>, %arg11: memref<1x128x32xbf16, #tpu.memory_space<vmem>>, %arg12: memref<176x16xbf16, #tpu.memory_space<vmem>>, %arg13: memref<176x16xbf16, #tpu.memory_space<vmem>>) attributes {dimension_semantics = [#tpu.dimension_semantics<parallel>, #tpu.dimension_semantics<parallel>], iteration_bounds = array<i64: 2, 1>, scalar_prefetch = 0 : i64, scratch_operands = 2 : i64, tpu.core_type = #tpu.core_type<tc>, window_params = [{transform_indices = @transform_0, window_bounds = array<i64: 1, 128, 16>}, {transform_indices = @transform_1, window_bounds = array<i64: 1, 16, 16>}, {transform_indices = @transform_2, window_bounds = array<i64: 1, 16, 16>}, {transform_indices = @transform_3, window_bounds = array<i64: 1, 128, 16>}, {transform_indices = @transform_4, window_bounds = array<i64: 1, 16, 16>}, {transform_indices = @transform_5, window_bounds = array<i64: 1, 16, 16>}, {pipeline_mode = #tpu.pipeline_mode<synchronous>, transform_indices = @transform_6, window_bounds = array<i64: 9, 16, 32>}, {pipeline_mode = #tpu.pipeline_mode<synchronous>, transform_indices = @transform_7, window_bounds = array<i64: 9, 16, 32>}, {pipeline_mode = #tpu.pipeline_mode<synchronous>, transform_indices = @transform_8, window_bounds = array<i64: 1, 32>}, {transform_indices = @transform_9, window_bounds = array<i64: 1, 128, 32>}]} {
    %c0 = arith.constant 0 : index
    %c0_0 = arith.constant 0 : index
    %c0_1 = arith.constant 0 : index
    %0 = vector.load %arg2[%c0, %c0_0, %c0_1] : memref<1x128x16xbf16, #tpu.memory_space<vmem>>, vector<1x128x16xbf16>
    %1 = vector.shape_cast %0 : vector<1x128x16xbf16> to vector<128x16xbf16>
    %c0_2 = arith.constant 0 : index
    %c0_3 = arith.constant 0 : index
    %c0_4 = arith.constant 0 : index
    %2 = vector.load %arg3[%c0_2, %c0_3, %c0_4] : memref<1x16x16xbf16, #tpu.memory_space<vmem>>, vector<1x16x16xbf16>
    %3 = vector.shape_cast %2 : vector<1x16x16xbf16> to vector<16x16xbf16>
    %c0_5 = arith.constant 0 : index
    %c0_6 = arith.constant 0 : index
    %c0_7 = arith.constant 0 : index
    %4 = vector.load %arg4[%c0_5, %c0_6, %c0_7] : memref<1x16x16xbf16, #tpu.memory_space<vmem>>, vector<1x16x16xbf16>
    %5 = vector.shape_cast %4 : vector<1x16x16xbf16> to vector<16x16xbf16>
    %cst = arith.constant 0.000000e+00 : bf16
    %6 = vector.broadcast %cst : bf16 to vector<128x16xbf16>
    %7 = arith.maximumf %1, %6 : vector<128x16xbf16>
    %cst_8 = arith.constant 0.000000e+00 : bf16
    %8 = vector.broadcast %cst_8 : bf16 to vector<16x16xbf16>
    %9 = arith.maximumf %3, %8 : vector<16x16xbf16>
    %cst_9 = arith.constant 0.000000e+00 : bf16
    %10 = vector.broadcast %cst_9 : bf16 to vector<16x16xbf16>
    %11 = arith.maximumf %5, %10 : vector<16x16xbf16>
    %c0_10 = arith.constant 0 : index
    %c0_11 = arith.constant 0 : index
    %12 = vector.load %arg12[%c0_10, %c0_11] : memref<176x16xbf16, #tpu.memory_space<vmem>>, vector<128x16xbf16>
    tpu.vector_store %arg12[%c0_10, %c0_11], %7 {strides = array<i32>} : memref<176x16xbf16, #tpu.memory_space<vmem>>, vector<128x16xbf16>,
    %c128 = arith.constant 128 : index
    %c0_12 = arith.constant 0 : index
    %13 = vector.load %arg12[%c128, %c0_12] : memref<176x16xbf16, #tpu.memory_space<vmem>>, vector<16x16xbf16>
    tpu.vector_store %arg12[%c128, %c0_12], %9 {strides = array<i32>} : memref<176x16xbf16, #tpu.memory_space<vmem>>, vector<16x16xbf16>,
    %c144 = arith.constant 144 : index
    %c0_13 = arith.constant 0 : index
    %14 = vector.load %arg12[%c144, %c0_13] : memref<176x16xbf16, #tpu.memory_space<vmem>>, vector<16x16xbf16>
    tpu.vector_store %arg12[%c144, %c0_13], %11 {strides = array<i32>} : memref<176x16xbf16, #tpu.memory_space<vmem>>, vector<16x16xbf16>,
    %cst_14 = arith.constant 0.000000e+00 : bf16
    %15 = vector.broadcast %cst_14 : bf16 to vector<16x16xbf16>
    %c160 = arith.constant 160 : index
    %c0_15 = arith.constant 0 : index
    %16 = vector.load %arg12[%c160, %c0_15] : memref<176x16xbf16, #tpu.memory_space<vmem>>, vector<16x16xbf16>
    tpu.vector_store %arg12[%c160, %c0_15], %15 {strides = array<i32>} : memref<176x16xbf16, #tpu.memory_space<vmem>>, vector<16x16xbf16>,
    %c0_16 = arith.constant 0 : index
    %c0_17 = arith.constant 0 : index
    %c0_18 = arith.constant 0 : index
    %17 = vector.load %arg5[%c0_16, %c0_17, %c0_18] : memref<1x128x16xbf16, #tpu.memory_space<vmem>>, vector<1x128x16xbf16>
    %18 = vector.shape_cast %17 : vector<1x128x16xbf16> to vector<128x16xbf16>
    %c0_19 = arith.constant 0 : index
    %c0_20 = arith.constant 0 : index
    %c0_21 = arith.constant 0 : index
    %19 = vector.load %arg6[%c0_19, %c0_20, %c0_21] : memref<1x16x16xbf16, #tpu.memory_space<vmem>>, vector<1x16x16xbf16>
    %20 = vector.shape_cast %19 : vector<1x16x16xbf16> to vector<16x16xbf16>
    %c0_22 = arith.constant 0 : index
    %c0_23 = arith.constant 0 : index
    %c0_24 = arith.constant 0 : index
    %21 = vector.load %arg7[%c0_22, %c0_23, %c0_24] : memref<1x16x16xbf16, #tpu.memory_space<vmem>>, vector<1x16x16xbf16>
    %22 = vector.shape_cast %21 : vector<1x16x16xbf16> to vector<16x16xbf16>
    %cst_25 = arith.constant 0.000000e+00 : bf16
    %23 = vector.broadcast %cst_25 : bf16 to vector<128x16xbf16>
    %24 = arith.maximumf %18, %23 : vector<128x16xbf16>
    %cst_26 = arith.constant 0.000000e+00 : bf16
    %25 = vector.broadcast %cst_26 : bf16 to vector<16x16xbf16>
    %26 = arith.maximumf %20, %25 : vector<16x16xbf16>
    %cst_27 = arith.constant 0.000000e+00 : bf16
    %27 = vector.broadcast %cst_27 : bf16 to vector<16x16xbf16>
    %28 = arith.maximumf %22, %27 : vector<16x16xbf16>
    %c0_28 = arith.constant 0 : index
    %c0_29 = arith.constant 0 : index
    %29 = vector.load %arg13[%c0_28, %c0_29] : memref<176x16xbf16, #tpu.memory_space<vmem>>, vector<128x16xbf16>
    tpu.vector_store %arg13[%c0_28, %c0_29], %24 {strides = array<i32>} : memref<176x16xbf16, #tpu.memory_space<vmem>>, vector<128x16xbf16>,
    %c128_30 = arith.constant 128 : index
    %c0_31 = arith.constant 0 : index
    %30 = vector.load %arg13[%c128_30, %c0_31] : memref<176x16xbf16, #tpu.memory_space<vmem>>, vector<16x16xbf16>
    tpu.vector_store %arg13[%c128_30, %c0_31], %26 {strides = array<i32>} : memref<176x16xbf16, #tpu.memory_space<vmem>>, vector<16x16xbf16>,
    %c144_32 = arith.constant 144 : index
    %c0_33 = arith.constant 0 : index
    %31 = vector.load %arg13[%c144_32, %c0_33] : memref<176x16xbf16, #tpu.memory_space<vmem>>, vector<16x16xbf16>
    tpu.vector_store %arg13[%c144_32, %c0_33], %28 {strides = array<i32>} : memref<176x16xbf16, #tpu.memory_space<vmem>>, vector<16x16xbf16>,
    %cst_34 = arith.constant 0.000000e+00 : bf16
    %32 = vector.broadcast %cst_34 : bf16 to vector<16x16xbf16>
    %c160_35 = arith.constant 160 : index
    %c0_36 = arith.constant 0 : index
    %33 = vector.load %arg13[%c160_35, %c0_36] : memref<176x16xbf16, #tpu.memory_space<vmem>>, vector<16x16xbf16>
    tpu.vector_store %arg13[%c160_35, %c0_36], %32 {strides = array<i32>} : memref<176x16xbf16, #tpu.memory_space<vmem>>, vector<16x16xbf16>,
    %c0_37 = arith.constant 0 : index
    %c0_38 = arith.constant 0 : index
    %34 = vector.load %arg12[%c0_37, %c0_38] : memref<176x16xbf16, #tpu.memory_space<vmem>>, vector<128x16xbf16>
    %c0_39 = arith.constant 0 : index
    %c0_40 = arith.constant 0 : index
    %c0_41 = arith.constant 0 : index
    %35 = vector.load %arg8[%c0_39, %c0_40, %c0_41] : memref<9x16x32xbf16, #tpu.memory_space<vmem>>, vector<1x16x32xbf16>
    %36 = vector.shape_cast %35 : vector<1x16x32xbf16> to vector<16x32xbf16>
    %cst_42 = arith.constant dense<0.000000e+00> : vector<128x32xf32>
    %37 = tpu.matmul %34, %36, %cst_42 {dimension_numbers = #tpu.dot_dimension_numbers<[1], [0], [0], [1], [0, 0, 1, 1], [], []>} : vector<128x16xbf16>, vector<16x32xbf16>, vector<128x32xf32> -> vector<128x32xf32>
    %c1 = arith.constant 1 : index
    %c0_43 = arith.constant 0 : index
    %38 = vector.load %arg12[%c1, %c0_43] : memref<176x16xbf16, #tpu.memory_space<vmem>>, vector<128x16xbf16>
    %c1_44 = arith.constant 1 : index
    %c0_45 = arith.constant 0 : index
    %c0_46 = arith.constant 0 : index
    %39 = vector.load %arg8[%c1_44, %c0_45, %c0_46] : memref<9x16x32xbf16, #tpu.memory_space<vmem>>, vector<1x16x32xbf16>
    %40 = vector.shape_cast %39 : vector<1x16x32xbf16> to vector<16x32xbf16>
    %cst_47 = arith.constant dense<0.000000e+00> : vector<128x32xf32>
    %41 = tpu.matmul %38, %40, %cst_47 {dimension_numbers = #tpu.dot_dimension_numbers<[1], [0], [0], [1], [0, 0, 1, 1], [], []>} : vector<128x16xbf16>, vector<16x32xbf16>, vector<128x32xf32> -> vector<128x32xf32>
    %42 = arith.addf %37, %41 : vector<128x32xf32>
    %c2 = arith.constant 2 : index
    %c0_48 = arith.constant 0 : index
    %43 = vector.load %arg12[%c2, %c0_48] : memref<176x16xbf16, #tpu.memory_space<vmem>>, vector<128x16xbf16>
    %c2_49 = arith.constant 2 : index
    %c0_50 = arith.constant 0 : index
    %c0_51 = arith.constant 0 : index
    %44 = vector.load %arg8[%c2_49, %c0_50, %c0_51] : memref<9x16x32xbf16, #tpu.memory_space<vmem>>, vector<1x16x32xbf16>
    %45 = vector.shape_cast %44 : vector<1x16x32xbf16> to vector<16x32xbf16>
    %cst_52 = arith.constant dense<0.000000e+00> : vector<128x32xf32>
    %46 = tpu.matmul %43, %45, %cst_52 {dimension_numbers = #tpu.dot_dimension_numbers<[1], [0], [0], [1], [0, 0, 1, 1], [], []>} : vector<128x16xbf16>, vector<16x32xbf16>, vector<128x32xf32> -> vector<128x32xf32>
    %47 = arith.addf %42, %46 : vector<128x32xf32>
    %c16 = arith.constant 16 : index
    %c0_53 = arith.constant 0 : index
    %48 = vector.load %arg12[%c16, %c0_53] : memref<176x16xbf16, #tpu.memory_space<vmem>>, vector<128x16xbf16>
    %c3 = arith.constant 3 : index
    %c0_54 = arith.constant 0 : index
    %c0_55 = arith.constant 0 : index
    %49 = vector.load %arg8[%c3, %c0_54, %c0_55] : memref<9x16x32xbf16, #tpu.memory_space<vmem>>, vector<1x16x32xbf16>
    %50 = vector.shape_cast %49 : vector<1x16x32xbf16> to vector<16x32xbf16>
    %cst_56 = arith.constant dense<0.000000e+00> : vector<128x32xf32>
    %51 = tpu.matmul %48, %50, %cst_56 {dimension_numbers = #tpu.dot_dimension_numbers<[1], [0], [0], [1], [0, 0, 1, 1], [], []>} : vector<128x16xbf16>, vector<16x32xbf16>, vector<128x32xf32> -> vector<128x32xf32>
    %52 = arith.addf %47, %51 : vector<128x32xf32>
    %c17 = arith.constant 17 : index
    %c0_57 = arith.constant 0 : index
    %53 = vector.load %arg12[%c17, %c0_57] : memref<176x16xbf16, #tpu.memory_space<vmem>>, vector<128x16xbf16>
    %c4 = arith.constant 4 : index
    %c0_58 = arith.constant 0 : index
    %c0_59 = arith.constant 0 : index
    %54 = vector.load %arg8[%c4, %c0_58, %c0_59] : memref<9x16x32xbf16, #tpu.memory_space<vmem>>, vector<1x16x32xbf16>
    %55 = vector.shape_cast %54 : vector<1x16x32xbf16> to vector<16x32xbf16>
    %cst_60 = arith.constant dense<0.000000e+00> : vector<128x32xf32>
    %56 = tpu.matmul %53, %55, %cst_60 {dimension_numbers = #tpu.dot_dimension_numbers<[1], [0], [0], [1], [0, 0, 1, 1], [], []>} : vector<128x16xbf16>, vector<16x32xbf16>, vector<128x32xf32> -> vector<128x32xf32>
    %57 = arith.addf %52, %56 : vector<128x32xf32>
    %c18 = arith.constant 18 : index
    %c0_61 = arith.constant 0 : index
    %58 = vector.load %arg12[%c18, %c0_61] : memref<176x16xbf16, #tpu.memory_space<vmem>>, vector<128x16xbf16>
    %c5 = arith.constant 5 : index
    %c0_62 = arith.constant 0 : index
    %c0_63 = arith.constant 0 : index
    %59 = vector.load %arg8[%c5, %c0_62, %c0_63] : memref<9x16x32xbf16, #tpu.memory_space<vmem>>, vector<1x16x32xbf16>
    %60 = vector.shape_cast %59 : vector<1x16x32xbf16> to vector<16x32xbf16>
    %cst_64 = arith.constant dense<0.000000e+00> : vector<128x32xf32>
    %61 = tpu.matmul %58, %60, %cst_64 {dimension_numbers = #tpu.dot_dimension_numbers<[1], [0], [0], [1], [0, 0, 1, 1], [], []>} : vector<128x16xbf16>, vector<16x32xbf16>, vector<128x32xf32> -> vector<128x32xf32>
    %62 = arith.addf %57, %61 : vector<128x32xf32>
    %c32 = arith.constant 32 : index
    %c0_65 = arith.constant 0 : index
    %63 = vector.load %arg12[%c32, %c0_65] : memref<176x16xbf16, #tpu.memory_space<vmem>>, vector<128x16xbf16>
    %c6 = arith.constant 6 : index
    %c0_66 = arith.constant 0 : index
    %c0_67 = arith.constant 0 : index
    %64 = vector.load %arg8[%c6, %c0_66, %c0_67] : memref<9x16x32xbf16, #tpu.memory_space<vmem>>, vector<1x16x32xbf16>
    %65 = vector.shape_cast %64 : vector<1x16x32xbf16> to vector<16x32xbf16>
    %cst_68 = arith.constant dense<0.000000e+00> : vector<128x32xf32>
    %66 = tpu.matmul %63, %65, %cst_68 {dimension_numbers = #tpu.dot_dimension_numbers<[1], [0], [0], [1], [0, 0, 1, 1], [], []>} : vector<128x16xbf16>, vector<16x32xbf16>, vector<128x32xf32> -> vector<128x32xf32>
    %67 = arith.addf %62, %66 : vector<128x32xf32>
    %c33 = arith.constant 33 : index
    %c0_69 = arith.constant 0 : index
    %68 = vector.load %arg12[%c33, %c0_69] : memref<176x16xbf16, #tpu.memory_space<vmem>>, vector<128x16xbf16>
    %c7 = arith.constant 7 : index
    %c0_70 = arith.constant 0 : index
    %c0_71 = arith.constant 0 : index
    %69 = vector.load %arg8[%c7, %c0_70, %c0_71] : memref<9x16x32xbf16, #tpu.memory_space<vmem>>, vector<1x16x32xbf16>
    %70 = vector.shape_cast %69 : vector<1x16x32xbf16> to vector<16x32xbf16>
    %cst_72 = arith.constant dense<0.000000e+00> : vector<128x32xf32>
    %71 = tpu.matmul %68, %70, %cst_72 {dimension_numbers = #tpu.dot_dimension_numbers<[1], [0], [0], [1], [0, 0, 1, 1], [], []>} : vector<128x16xbf16>, vector<16x32xbf16>, vector<128x32xf32> -> vector<128x32xf32>
    %72 = arith.addf %67, %71 : vector<128x32xf32>
    %c34 = arith.constant 34 : index
    %c0_73 = arith.constant 0 : index
    %73 = vector.load %arg12[%c34, %c0_73] : memref<176x16xbf16, #tpu.memory_space<vmem>>, vector<128x16xbf16>
    %c8 = arith.constant 8 : index
    %c0_74 = arith.constant 0 : index
    %c0_75 = arith.constant 0 : index
    %74 = vector.load %arg8[%c8, %c0_74, %c0_75] : memref<9x16x32xbf16, #tpu.memory_space<vmem>>, vector<1x16x32xbf16>
    %75 = vector.shape_cast %74 : vector<1x16x32xbf16> to vector<16x32xbf16>
    %cst_76 = arith.constant dense<0.000000e+00> : vector<128x32xf32>
    %76 = tpu.matmul %73, %75, %cst_76 {dimension_numbers = #tpu.dot_dimension_numbers<[1], [0], [0], [1], [0, 0, 1, 1], [], []>} : vector<128x16xbf16>, vector<16x32xbf16>, vector<128x32xf32> -> vector<128x32xf32>
    %77 = arith.addf %72, %76 : vector<128x32xf32>
    %c0_77 = arith.constant 0 : index
    %c0_78 = arith.constant 0 : index
    %78 = vector.load %arg13[%c0_77, %c0_78] : memref<176x16xbf16, #tpu.memory_space<vmem>>, vector<128x16xbf16>
    %c0_79 = arith.constant 0 : index
    %c0_80 = arith.constant 0 : index
    %c0_81 = arith.constant 0 : index
    %79 = vector.load %arg9[%c0_79, %c0_80, %c0_81] : memref<9x16x32xbf16, #tpu.memory_space<vmem>>, vector<1x16x32xbf16>
    %80 = vector.shape_cast %79 : vector<1x16x32xbf16> to vector<16x32xbf16>
    %cst_82 = arith.constant dense<0.000000e+00> : vector<128x32xf32>
    %81 = tpu.matmul %78, %80, %cst_82 {dimension_numbers = #tpu.dot_dimension_numbers<[1], [0], [0], [1], [0, 0, 1, 1], [], []>} : vector<128x16xbf16>, vector<16x32xbf16>, vector<128x32xf32> -> vector<128x32xf32>
    %82 = arith.addf %77, %81 : vector<128x32xf32>
    %c1_83 = arith.constant 1 : index
    %c0_84 = arith.constant 0 : index
    %83 = vector.load %arg13[%c1_83, %c0_84] : memref<176x16xbf16, #tpu.memory_space<vmem>>, vector<128x16xbf16>
    %c1_85 = arith.constant 1 : index
    %c0_86 = arith.constant 0 : index
    %c0_87 = arith.constant 0 : index
    %84 = vector.load %arg9[%c1_85, %c0_86, %c0_87] : memref<9x16x32xbf16, #tpu.memory_space<vmem>>, vector<1x16x32xbf16>
    %85 = vector.shape_cast %84 : vector<1x16x32xbf16> to vector<16x32xbf16>
    %cst_88 = arith.constant dense<0.000000e+00> : vector<128x32xf32>
    %86 = tpu.matmul %83, %85, %cst_88 {dimension_numbers = #tpu.dot_dimension_numbers<[1], [0], [0], [1], [0, 0, 1, 1], [], []>} : vector<128x16xbf16>, vector<16x32xbf16>, vector<128x32xf32> -> vector<128x32xf32>
    %87 = arith.addf %82, %86 : vector<128x32xf32>
    %c2_89 = arith.constant 2 : index
    %c0_90 = arith.constant 0 : index
    %88 = vector.load %arg13[%c2_89, %c0_90] : memref<176x16xbf16, #tpu.memory_space<vmem>>, vector<128x16xbf16>
    %c2_91 = arith.constant 2 : index
    %c0_92 = arith.constant 0 : index
    %c0_93 = arith.constant 0 : index
    %89 = vector.load %arg9[%c2_91, %c0_92, %c0_93] : memref<9x16x32xbf16, #tpu.memory_space<vmem>>, vector<1x16x32xbf16>
    %90 = vector.shape_cast %89 : vector<1x16x32xbf16> to vector<16x32xbf16>
    %cst_94 = arith.constant dense<0.000000e+00> : vector<128x32xf32>
    %91 = tpu.matmul %88, %90, %cst_94 {dimension_numbers = #tpu.dot_dimension_numbers<[1], [0], [0], [1], [0, 0, 1, 1], [], []>} : vector<128x16xbf16>, vector<16x32xbf16>, vector<128x32xf32> -> vector<128x32xf32>
    %92 = arith.addf %87, %91 : vector<128x32xf32>
    %c16_95 = arith.constant 16 : index
    %c0_96 = arith.constant 0 : index
    %93 = vector.load %arg13[%c16_95, %c0_96] : memref<176x16xbf16, #tpu.memory_space<vmem>>, vector<128x16xbf16>
    %c3_97 = arith.constant 3 : index
    %c0_98 = arith.constant 0 : index
    %c0_99 = arith.constant 0 : index
    %94 = vector.load %arg9[%c3_97, %c0_98, %c0_99] : memref<9x16x32xbf16, #tpu.memory_space<vmem>>, vector<1x16x32xbf16>
    %95 = vector.shape_cast %94 : vector<1x16x32xbf16> to vector<16x32xbf16>
    %cst_100 = arith.constant dense<0.000000e+00> : vector<128x32xf32>
    %96 = tpu.matmul %93, %95, %cst_100 {dimension_numbers = #tpu.dot_dimension_numbers<[1], [0], [0], [1], [0, 0, 1, 1], [], []>} : vector<128x16xbf16>, vector<16x32xbf16>, vector<128x32xf32> -> vector<128x32xf32>
    %97 = arith.addf %92, %96 : vector<128x32xf32>
    %c17_101 = arith.constant 17 : index
    %c0_102 = arith.constant 0 : index
    %98 = vector.load %arg13[%c17_101, %c0_102] : memref<176x16xbf16, #tpu.memory_space<vmem>>, vector<128x16xbf16>
    %c4_103 = arith.constant 4 : index
    %c0_104 = arith.constant 0 : index
    %c0_105 = arith.constant 0 : index
    %99 = vector.load %arg9[%c4_103, %c0_104, %c0_105] : memref<9x16x32xbf16, #tpu.memory_space<vmem>>, vector<1x16x32xbf16>
    %100 = vector.shape_cast %99 : vector<1x16x32xbf16> to vector<16x32xbf16>
    %cst_106 = arith.constant dense<0.000000e+00> : vector<128x32xf32>
    %101 = tpu.matmul %98, %100, %cst_106 {dimension_numbers = #tpu.dot_dimension_numbers<[1], [0], [0], [1], [0, 0, 1, 1], [], []>} : vector<128x16xbf16>, vector<16x32xbf16>, vector<128x32xf32> -> vector<128x32xf32>
    %102 = arith.addf %97, %101 : vector<128x32xf32>
    %c18_107 = arith.constant 18 : index
    %c0_108 = arith.constant 0 : index
    %103 = vector.load %arg13[%c18_107, %c0_108] : memref<176x16xbf16, #tpu.memory_space<vmem>>, vector<128x16xbf16>
    %c5_109 = arith.constant 5 : index
    %c0_110 = arith.constant 0 : index
    %c0_111 = arith.constant 0 : index
    %104 = vector.load %arg9[%c5_109, %c0_110, %c0_111] : memref<9x16x32xbf16, #tpu.memory_space<vmem>>, vector<1x16x32xbf16>
    %105 = vector.shape_cast %104 : vector<1x16x32xbf16> to vector<16x32xbf16>
    %cst_112 = arith.constant dense<0.000000e+00> : vector<128x32xf32>
    %106 = tpu.matmul %103, %105, %cst_112 {dimension_numbers = #tpu.dot_dimension_numbers<[1], [0], [0], [1], [0, 0, 1, 1], [], []>} : vector<128x16xbf16>, vector<16x32xbf16>, vector<128x32xf32> -> vector<128x32xf32>
    %107 = arith.addf %102, %106 : vector<128x32xf32>
    %c32_113 = arith.constant 32 : index
    %c0_114 = arith.constant 0 : index
    %108 = vector.load %arg13[%c32_113, %c0_114] : memref<176x16xbf16, #tpu.memory_space<vmem>>, vector<128x16xbf16>
    %c6_115 = arith.constant 6 : index
    %c0_116 = arith.constant 0 : index
    %c0_117 = arith.constant 0 : index
    %109 = vector.load %arg9[%c6_115, %c0_116, %c0_117] : memref<9x16x32xbf16, #tpu.memory_space<vmem>>, vector<1x16x32xbf16>
    %110 = vector.shape_cast %109 : vector<1x16x32xbf16> to vector<16x32xbf16>
    %cst_118 = arith.constant dense<0.000000e+00> : vector<128x32xf32>
    %111 = tpu.matmul %108, %110, %cst_118 {dimension_numbers = #tpu.dot_dimension_numbers<[1], [0], [0], [1], [0, 0, 1, 1], [], []>} : vector<128x16xbf16>, vector<16x32xbf16>, vector<128x32xf32> -> vector<128x32xf32>
    %112 = arith.addf %107, %111 : vector<128x32xf32>
    %c33_119 = arith.constant 33 : index
    %c0_120 = arith.constant 0 : index
    %113 = vector.load %arg13[%c33_119, %c0_120] : memref<176x16xbf16, #tpu.memory_space<vmem>>, vector<128x16xbf16>
    %c7_121 = arith.constant 7 : index
    %c0_122 = arith.constant 0 : index
    %c0_123 = arith.constant 0 : index
    %114 = vector.load %arg9[%c7_121, %c0_122, %c0_123] : memref<9x16x32xbf16, #tpu.memory_space<vmem>>, vector<1x16x32xbf16>
    %115 = vector.shape_cast %114 : vector<1x16x32xbf16> to vector<16x32xbf16>
    %cst_124 = arith.constant dense<0.000000e+00> : vector<128x32xf32>
    %116 = tpu.matmul %113, %115, %cst_124 {dimension_numbers = #tpu.dot_dimension_numbers<[1], [0], [0], [1], [0, 0, 1, 1], [], []>} : vector<128x16xbf16>, vector<16x32xbf16>, vector<128x32xf32> -> vector<128x32xf32>
    %117 = arith.addf %112, %116 : vector<128x32xf32>
    %c34_125 = arith.constant 34 : index
    %c0_126 = arith.constant 0 : index
    %118 = vector.load %arg13[%c34_125, %c0_126] : memref<176x16xbf16, #tpu.memory_space<vmem>>, vector<128x16xbf16>
    %c8_127 = arith.constant 8 : index
    %c0_128 = arith.constant 0 : index
    %c0_129 = arith.constant 0 : index
    %119 = vector.load %arg9[%c8_127, %c0_128, %c0_129] : memref<9x16x32xbf16, #tpu.memory_space<vmem>>, vector<1x16x32xbf16>
    %120 = vector.shape_cast %119 : vector<1x16x32xbf16> to vector<16x32xbf16>
    %cst_130 = arith.constant dense<0.000000e+00> : vector<128x32xf32>
    %121 = tpu.matmul %118, %120, %cst_130 {dimension_numbers = #tpu.dot_dimension_numbers<[1], [0], [0], [1], [0, 0, 1, 1], [], []>} : vector<128x16xbf16>, vector<16x32xbf16>, vector<128x32xf32> -> vector<128x32xf32>
    %122 = arith.addf %117, %121 : vector<128x32xf32>
    %c0_131 = arith.constant 0 : index
    %c0_132 = arith.constant 0 : index
    %123 = vector.load %arg10[%c0_131, %c0_132] : memref<1x32xf32, #tpu.memory_space<vmem>>, vector<1x32xf32>
    %124 = vector.broadcast %123 : vector<1x32xf32> to vector<128x32xf32>
    %125 = arith.addf %122, %124 : vector<128x32xf32>
    %126 = arith.truncf %125 : vector<128x32xf32> to vector<128x32xbf16>
    %c0_133 = arith.constant 0 : index
    %c0_134 = arith.constant 0 : index
    %c0_135 = arith.constant 0 : index
    %127 = vector.load %arg11[%c0_133, %c0_134, %c0_135] : memref<1x128x32xbf16, #tpu.memory_space<vmem>>, vector<1x128x32xbf16>
    %128 = vector.shape_cast %127 : vector<1x128x32xbf16> to vector<128x32xbf16>
    %129 = vector.shape_cast %126 : vector<128x32xbf16> to vector<1x128x32xbf16>
    tpu.vector_store %arg11[%c0_133, %c0_134, %c0_135], %129 {strides = array<i32>} : memref<1x128x32xbf16, #tpu.memory_space<vmem>>, vector<1x128x32xbf16>,
    return
  }
  func.func @transform_0(%arg0: i32, %arg1: i32) -> (i32, i32, i32) {
    %c0_i32 = arith.constant 0 : i32
    %c0_i32_0 = arith.constant 0 : i32
    return %arg0, %arg1, %c0_i32 : i32, i32, i32
  }
  func.func @transform_1(%arg0: i32, %arg1: i32) -> (i32, i32, i32) {
    %c1_i32 = arith.constant 1 : i32
    %0 = arith.addi %arg1, %c1_i32 : i32
    %c8_i32 = arith.constant 8 : i32
    %1 = arith.muli %0, %c8_i32 : i32
    %c0_i32 = arith.constant 0 : i32
    %c0_i32_0 = arith.constant 0 : i32
    return %arg0, %1, %c0_i32 : i32, i32, i32
  }
  func.func @transform_2(%arg0: i32, %arg1: i32) -> (i32, i32, i32) {
    %c1_i32 = arith.constant 1 : i32
    %0 = arith.addi %arg1, %c1_i32 : i32
    %c8_i32 = arith.constant 8 : i32
    %1 = arith.muli %0, %c8_i32 : i32
    %c1_i32_0 = arith.constant 1 : i32
    %2 = arith.addi %1, %c1_i32_0 : i32
    %c0_i32 = arith.constant 0 : i32
    %c0_i32_1 = arith.constant 0 : i32
    return %arg0, %2, %c0_i32 : i32, i32, i32
  }
  func.func @transform_3(%arg0: i32, %arg1: i32) -> (i32, i32, i32) {
    %c0_i32 = arith.constant 0 : i32
    %c0_i32_0 = arith.constant 0 : i32
    return %arg0, %arg1, %c0_i32 : i32, i32, i32
  }
  func.func @transform_4(%arg0: i32, %arg1: i32) -> (i32, i32, i32) {
    %c1_i32 = arith.constant 1 : i32
    %0 = arith.addi %arg1, %c1_i32 : i32
    %c8_i32 = arith.constant 8 : i32
    %1 = arith.muli %0, %c8_i32 : i32
    %c0_i32 = arith.constant 0 : i32
    %c0_i32_0 = arith.constant 0 : i32
    return %arg0, %1, %c0_i32 : i32, i32, i32
  }
  func.func @transform_5(%arg0: i32, %arg1: i32) -> (i32, i32, i32) {
    %c1_i32 = arith.constant 1 : i32
    %0 = arith.addi %arg1, %c1_i32 : i32
    %c8_i32 = arith.constant 8 : i32
    %1 = arith.muli %0, %c8_i32 : i32
    %c1_i32_0 = arith.constant 1 : i32
    %2 = arith.addi %1, %c1_i32_0 : i32
    %c0_i32 = arith.constant 0 : i32
    %c0_i32_1 = arith.constant 0 : i32
    return %arg0, %2, %c0_i32 : i32, i32, i32
  }
  func.func @transform_6(%arg0: i32, %arg1: i32) -> (i32, i32, i32) {
    %c0_i32 = arith.constant 0 : i32
    %c0_i32_0 = arith.constant 0 : i32
    %c0_i32_1 = arith.constant 0 : i32
    %c0_i32_2 = arith.constant 0 : i32
    return %c0_i32, %c0_i32_0, %c0_i32_1 : i32, i32, i32
  }
  func.func @transform_7(%arg0: i32, %arg1: i32) -> (i32, i32, i32) {
    %c0_i32 = arith.constant 0 : i32
    %c0_i32_0 = arith.constant 0 : i32
    %c0_i32_1 = arith.constant 0 : i32
    %c0_i32_2 = arith.constant 0 : i32
    return %c0_i32, %c0_i32_0, %c0_i32_1 : i32, i32, i32
  }
  func.func @transform_8(%arg0: i32, %arg1: i32) -> (i32, i32) {
    %c0_i32 = arith.constant 0 : i32
    %c0_i32_0 = arith.constant 0 : i32
    %c0_i32_1 = arith.constant 0 : i32
    return %c0_i32, %c0_i32_0 : i32, i32
  }
  func.func @transform_9(%arg0: i32, %arg1: i32) -> (i32, i32, i32) {
    %c0_i32 = arith.constant 0 : i32
    %c0_i32_0 = arith.constant 0 : i32
    return %arg0, %arg1, %c0_i32 : i32, i32, i32
  }
}

module attributes {stable_mosaic.version = 11 : i64} {
  func.func @_up_block_kernel(%arg0: i32, %arg1: i32, %arg2: memref<1x384x8xbf16, #tpu.memory_space<vmem>>, %arg3: memref<1x24x8xbf16, #tpu.memory_space<vmem>>, %arg4: memref<1x24x8xbf16, #tpu.memory_space<vmem>>, %arg5: memref<1x384x8xbf16, #tpu.memory_space<vmem>>, %arg6: memref<1x24x8xbf16, #tpu.memory_space<vmem>>, %arg7: memref<1x24x8xbf16, #tpu.memory_space<vmem>>, %arg8: memref<9x8x12xbf16, #tpu.memory_space<vmem>>, %arg9: memref<9x8x12xbf16, #tpu.memory_space<vmem>>, %arg10: memref<1x12xf32, #tpu.memory_space<vmem>>, %arg11: memref<1x384x12xf32, #tpu.memory_space<vmem>>, %arg12: memref<456x8xbf16, #tpu.memory_space<vmem>>, %arg13: memref<456x8xbf16, #tpu.memory_space<vmem>>) attributes {dimension_semantics = [#tpu.dimension_semantics<parallel>, #tpu.dimension_semantics<parallel>], iteration_bounds = array<i64: 2, 1>, scalar_prefetch = 0 : i64, scratch_operands = 2 : i64, tpu.core_type = #tpu.core_type<tc>, window_params = [{transform_indices = @transform_0, window_bounds = array<i64: 1, 384, 8>}, {transform_indices = @transform_1, window_bounds = array<i64: 1, 24, 8>}, {transform_indices = @transform_2, window_bounds = array<i64: 1, 24, 8>}, {transform_indices = @transform_3, window_bounds = array<i64: 1, 384, 8>}, {transform_indices = @transform_4, window_bounds = array<i64: 1, 24, 8>}, {transform_indices = @transform_5, window_bounds = array<i64: 1, 24, 8>}, {pipeline_mode = #tpu.pipeline_mode<synchronous>, transform_indices = @transform_6, window_bounds = array<i64: 9, 8, 12>}, {pipeline_mode = #tpu.pipeline_mode<synchronous>, transform_indices = @transform_7, window_bounds = array<i64: 9, 8, 12>}, {pipeline_mode = #tpu.pipeline_mode<synchronous>, transform_indices = @transform_8, window_bounds = array<i64: 1, 12>}, {transform_indices = @transform_9, window_bounds = array<i64: 1, 384, 12>}]} {
    %c0 = arith.constant 0 : index
    %c0_0 = arith.constant 0 : index
    %c0_1 = arith.constant 0 : index
    %0 = vector.load %arg2[%c0, %c0_0, %c0_1] : memref<1x384x8xbf16, #tpu.memory_space<vmem>>, vector<1x384x8xbf16>
    %1 = vector.shape_cast %0 : vector<1x384x8xbf16> to vector<384x8xbf16>
    %c0_2 = arith.constant 0 : index
    %c0_3 = arith.constant 0 : index
    %c0_4 = arith.constant 0 : index
    %2 = vector.load %arg3[%c0_2, %c0_3, %c0_4] : memref<1x24x8xbf16, #tpu.memory_space<vmem>>, vector<1x24x8xbf16>
    %3 = vector.shape_cast %2 : vector<1x24x8xbf16> to vector<24x8xbf16>
    %c0_5 = arith.constant 0 : index
    %c0_6 = arith.constant 0 : index
    %c0_7 = arith.constant 0 : index
    %4 = vector.load %arg4[%c0_5, %c0_6, %c0_7] : memref<1x24x8xbf16, #tpu.memory_space<vmem>>, vector<1x24x8xbf16>
    %5 = vector.shape_cast %4 : vector<1x24x8xbf16> to vector<24x8xbf16>
    %cst = arith.constant 0.000000e+00 : bf16
    %6 = vector.broadcast %cst : bf16 to vector<384x8xbf16>
    %7 = arith.maximumf %1, %6 : vector<384x8xbf16>
    %cst_8 = arith.constant 0.000000e+00 : bf16
    %8 = vector.broadcast %cst_8 : bf16 to vector<24x8xbf16>
    %9 = arith.maximumf %3, %8 : vector<24x8xbf16>
    %cst_9 = arith.constant 0.000000e+00 : bf16
    %10 = vector.broadcast %cst_9 : bf16 to vector<24x8xbf16>
    %11 = arith.maximumf %5, %10 : vector<24x8xbf16>
    %c0_10 = arith.constant 0 : index
    %c0_11 = arith.constant 0 : index
    %12 = vector.load %arg12[%c0_10, %c0_11] : memref<456x8xbf16, #tpu.memory_space<vmem>>, vector<384x8xbf16>
    tpu.vector_store %arg12[%c0_10, %c0_11], %7 {strides = array<i32>} : memref<456x8xbf16, #tpu.memory_space<vmem>>, vector<384x8xbf16>,
    %c384 = arith.constant 384 : index
    %c0_12 = arith.constant 0 : index
    %13 = vector.load %arg12[%c384, %c0_12] : memref<456x8xbf16, #tpu.memory_space<vmem>>, vector<24x8xbf16>
    tpu.vector_store %arg12[%c384, %c0_12], %9 {strides = array<i32>} : memref<456x8xbf16, #tpu.memory_space<vmem>>, vector<24x8xbf16>,
    %c408 = arith.constant 408 : index
    %c0_13 = arith.constant 0 : index
    %14 = vector.load %arg12[%c408, %c0_13] : memref<456x8xbf16, #tpu.memory_space<vmem>>, vector<24x8xbf16>
    tpu.vector_store %arg12[%c408, %c0_13], %11 {strides = array<i32>} : memref<456x8xbf16, #tpu.memory_space<vmem>>, vector<24x8xbf16>,
    %cst_14 = arith.constant 0.000000e+00 : bf16
    %15 = vector.broadcast %cst_14 : bf16 to vector<24x8xbf16>
    %c432 = arith.constant 432 : index
    %c0_15 = arith.constant 0 : index
    %16 = vector.load %arg12[%c432, %c0_15] : memref<456x8xbf16, #tpu.memory_space<vmem>>, vector<24x8xbf16>
    tpu.vector_store %arg12[%c432, %c0_15], %15 {strides = array<i32>} : memref<456x8xbf16, #tpu.memory_space<vmem>>, vector<24x8xbf16>,
    %c0_16 = arith.constant 0 : index
    %c0_17 = arith.constant 0 : index
    %c0_18 = arith.constant 0 : index
    %17 = vector.load %arg5[%c0_16, %c0_17, %c0_18] : memref<1x384x8xbf16, #tpu.memory_space<vmem>>, vector<1x384x8xbf16>
    %18 = vector.shape_cast %17 : vector<1x384x8xbf16> to vector<384x8xbf16>
    %c0_19 = arith.constant 0 : index
    %c0_20 = arith.constant 0 : index
    %c0_21 = arith.constant 0 : index
    %19 = vector.load %arg6[%c0_19, %c0_20, %c0_21] : memref<1x24x8xbf16, #tpu.memory_space<vmem>>, vector<1x24x8xbf16>
    %20 = vector.shape_cast %19 : vector<1x24x8xbf16> to vector<24x8xbf16>
    %c0_22 = arith.constant 0 : index
    %c0_23 = arith.constant 0 : index
    %c0_24 = arith.constant 0 : index
    %21 = vector.load %arg7[%c0_22, %c0_23, %c0_24] : memref<1x24x8xbf16, #tpu.memory_space<vmem>>, vector<1x24x8xbf16>
    %22 = vector.shape_cast %21 : vector<1x24x8xbf16> to vector<24x8xbf16>
    %cst_25 = arith.constant 0.000000e+00 : bf16
    %23 = vector.broadcast %cst_25 : bf16 to vector<384x8xbf16>
    %24 = arith.maximumf %18, %23 : vector<384x8xbf16>
    %cst_26 = arith.constant 0.000000e+00 : bf16
    %25 = vector.broadcast %cst_26 : bf16 to vector<24x8xbf16>
    %26 = arith.maximumf %20, %25 : vector<24x8xbf16>
    %cst_27 = arith.constant 0.000000e+00 : bf16
    %27 = vector.broadcast %cst_27 : bf16 to vector<24x8xbf16>
    %28 = arith.maximumf %22, %27 : vector<24x8xbf16>
    %c0_28 = arith.constant 0 : index
    %c0_29 = arith.constant 0 : index
    %29 = vector.load %arg13[%c0_28, %c0_29] : memref<456x8xbf16, #tpu.memory_space<vmem>>, vector<384x8xbf16>
    tpu.vector_store %arg13[%c0_28, %c0_29], %24 {strides = array<i32>} : memref<456x8xbf16, #tpu.memory_space<vmem>>, vector<384x8xbf16>,
    %c384_30 = arith.constant 384 : index
    %c0_31 = arith.constant 0 : index
    %30 = vector.load %arg13[%c384_30, %c0_31] : memref<456x8xbf16, #tpu.memory_space<vmem>>, vector<24x8xbf16>
    tpu.vector_store %arg13[%c384_30, %c0_31], %26 {strides = array<i32>} : memref<456x8xbf16, #tpu.memory_space<vmem>>, vector<24x8xbf16>,
    %c408_32 = arith.constant 408 : index
    %c0_33 = arith.constant 0 : index
    %31 = vector.load %arg13[%c408_32, %c0_33] : memref<456x8xbf16, #tpu.memory_space<vmem>>, vector<24x8xbf16>
    tpu.vector_store %arg13[%c408_32, %c0_33], %28 {strides = array<i32>} : memref<456x8xbf16, #tpu.memory_space<vmem>>, vector<24x8xbf16>,
    %cst_34 = arith.constant 0.000000e+00 : bf16
    %32 = vector.broadcast %cst_34 : bf16 to vector<24x8xbf16>
    %c432_35 = arith.constant 432 : index
    %c0_36 = arith.constant 0 : index
    %33 = vector.load %arg13[%c432_35, %c0_36] : memref<456x8xbf16, #tpu.memory_space<vmem>>, vector<24x8xbf16>
    tpu.vector_store %arg13[%c432_35, %c0_36], %32 {strides = array<i32>} : memref<456x8xbf16, #tpu.memory_space<vmem>>, vector<24x8xbf16>,
    %c0_37 = arith.constant 0 : index
    %c0_38 = arith.constant 0 : index
    %34 = vector.load %arg12[%c0_37, %c0_38] : memref<456x8xbf16, #tpu.memory_space<vmem>>, vector<384x8xbf16>
    %c0_39 = arith.constant 0 : index
    %c0_40 = arith.constant 0 : index
    %c0_41 = arith.constant 0 : index
    %35 = vector.load %arg8[%c0_39, %c0_40, %c0_41] : memref<9x8x12xbf16, #tpu.memory_space<vmem>>, vector<1x8x12xbf16>
    %36 = vector.shape_cast %35 : vector<1x8x12xbf16> to vector<8x12xbf16>
    %cst_42 = arith.constant dense<0.000000e+00> : vector<384x12xf32>
    %37 = tpu.matmul %34, %36, %cst_42 {dimension_numbers = #tpu.dot_dimension_numbers<[1], [0], [0], [1], [0, 0, 1, 1], [], []>} : vector<384x8xbf16>, vector<8x12xbf16>, vector<384x12xf32> -> vector<384x12xf32>
    %c1 = arith.constant 1 : index
    %c0_43 = arith.constant 0 : index
    %38 = vector.load %arg12[%c1, %c0_43] : memref<456x8xbf16, #tpu.memory_space<vmem>>, vector<384x8xbf16>
    %c1_44 = arith.constant 1 : index
    %c0_45 = arith.constant 0 : index
    %c0_46 = arith.constant 0 : index
    %39 = vector.load %arg8[%c1_44, %c0_45, %c0_46] : memref<9x8x12xbf16, #tpu.memory_space<vmem>>, vector<1x8x12xbf16>
    %40 = vector.shape_cast %39 : vector<1x8x12xbf16> to vector<8x12xbf16>
    %cst_47 = arith.constant dense<0.000000e+00> : vector<384x12xf32>
    %41 = tpu.matmul %38, %40, %cst_47 {dimension_numbers = #tpu.dot_dimension_numbers<[1], [0], [0], [1], [0, 0, 1, 1], [], []>} : vector<384x8xbf16>, vector<8x12xbf16>, vector<384x12xf32> -> vector<384x12xf32>
    %42 = arith.addf %37, %41 : vector<384x12xf32>
    %c2 = arith.constant 2 : index
    %c0_48 = arith.constant 0 : index
    %43 = vector.load %arg12[%c2, %c0_48] : memref<456x8xbf16, #tpu.memory_space<vmem>>, vector<384x8xbf16>
    %c2_49 = arith.constant 2 : index
    %c0_50 = arith.constant 0 : index
    %c0_51 = arith.constant 0 : index
    %44 = vector.load %arg8[%c2_49, %c0_50, %c0_51] : memref<9x8x12xbf16, #tpu.memory_space<vmem>>, vector<1x8x12xbf16>
    %45 = vector.shape_cast %44 : vector<1x8x12xbf16> to vector<8x12xbf16>
    %cst_52 = arith.constant dense<0.000000e+00> : vector<384x12xf32>
    %46 = tpu.matmul %43, %45, %cst_52 {dimension_numbers = #tpu.dot_dimension_numbers<[1], [0], [0], [1], [0, 0, 1, 1], [], []>} : vector<384x8xbf16>, vector<8x12xbf16>, vector<384x12xf32> -> vector<384x12xf32>
    %47 = arith.addf %42, %46 : vector<384x12xf32>
    %c24 = arith.constant 24 : index
    %c0_53 = arith.constant 0 : index
    %48 = vector.load %arg12[%c24, %c0_53] : memref<456x8xbf16, #tpu.memory_space<vmem>>, vector<384x8xbf16>
    %c3 = arith.constant 3 : index
    %c0_54 = arith.constant 0 : index
    %c0_55 = arith.constant 0 : index
    %49 = vector.load %arg8[%c3, %c0_54, %c0_55] : memref<9x8x12xbf16, #tpu.memory_space<vmem>>, vector<1x8x12xbf16>
    %50 = vector.shape_cast %49 : vector<1x8x12xbf16> to vector<8x12xbf16>
    %cst_56 = arith.constant dense<0.000000e+00> : vector<384x12xf32>
    %51 = tpu.matmul %48, %50, %cst_56 {dimension_numbers = #tpu.dot_dimension_numbers<[1], [0], [0], [1], [0, 0, 1, 1], [], []>} : vector<384x8xbf16>, vector<8x12xbf16>, vector<384x12xf32> -> vector<384x12xf32>
    %52 = arith.addf %47, %51 : vector<384x12xf32>
    %c25 = arith.constant 25 : index
    %c0_57 = arith.constant 0 : index
    %53 = vector.load %arg12[%c25, %c0_57] : memref<456x8xbf16, #tpu.memory_space<vmem>>, vector<384x8xbf16>
    %c4 = arith.constant 4 : index
    %c0_58 = arith.constant 0 : index
    %c0_59 = arith.constant 0 : index
    %54 = vector.load %arg8[%c4, %c0_58, %c0_59] : memref<9x8x12xbf16, #tpu.memory_space<vmem>>, vector<1x8x12xbf16>
    %55 = vector.shape_cast %54 : vector<1x8x12xbf16> to vector<8x12xbf16>
    %cst_60 = arith.constant dense<0.000000e+00> : vector<384x12xf32>
    %56 = tpu.matmul %53, %55, %cst_60 {dimension_numbers = #tpu.dot_dimension_numbers<[1], [0], [0], [1], [0, 0, 1, 1], [], []>} : vector<384x8xbf16>, vector<8x12xbf16>, vector<384x12xf32> -> vector<384x12xf32>
    %57 = arith.addf %52, %56 : vector<384x12xf32>
    %c26 = arith.constant 26 : index
    %c0_61 = arith.constant 0 : index
    %58 = vector.load %arg12[%c26, %c0_61] : memref<456x8xbf16, #tpu.memory_space<vmem>>, vector<384x8xbf16>
    %c5 = arith.constant 5 : index
    %c0_62 = arith.constant 0 : index
    %c0_63 = arith.constant 0 : index
    %59 = vector.load %arg8[%c5, %c0_62, %c0_63] : memref<9x8x12xbf16, #tpu.memory_space<vmem>>, vector<1x8x12xbf16>
    %60 = vector.shape_cast %59 : vector<1x8x12xbf16> to vector<8x12xbf16>
    %cst_64 = arith.constant dense<0.000000e+00> : vector<384x12xf32>
    %61 = tpu.matmul %58, %60, %cst_64 {dimension_numbers = #tpu.dot_dimension_numbers<[1], [0], [0], [1], [0, 0, 1, 1], [], []>} : vector<384x8xbf16>, vector<8x12xbf16>, vector<384x12xf32> -> vector<384x12xf32>
    %62 = arith.addf %57, %61 : vector<384x12xf32>
    %c48 = arith.constant 48 : index
    %c0_65 = arith.constant 0 : index
    %63 = vector.load %arg12[%c48, %c0_65] : memref<456x8xbf16, #tpu.memory_space<vmem>>, vector<384x8xbf16>
    %c6 = arith.constant 6 : index
    %c0_66 = arith.constant 0 : index
    %c0_67 = arith.constant 0 : index
    %64 = vector.load %arg8[%c6, %c0_66, %c0_67] : memref<9x8x12xbf16, #tpu.memory_space<vmem>>, vector<1x8x12xbf16>
    %65 = vector.shape_cast %64 : vector<1x8x12xbf16> to vector<8x12xbf16>
    %cst_68 = arith.constant dense<0.000000e+00> : vector<384x12xf32>
    %66 = tpu.matmul %63, %65, %cst_68 {dimension_numbers = #tpu.dot_dimension_numbers<[1], [0], [0], [1], [0, 0, 1, 1], [], []>} : vector<384x8xbf16>, vector<8x12xbf16>, vector<384x12xf32> -> vector<384x12xf32>
    %67 = arith.addf %62, %66 : vector<384x12xf32>
    %c49 = arith.constant 49 : index
    %c0_69 = arith.constant 0 : index
    %68 = vector.load %arg12[%c49, %c0_69] : memref<456x8xbf16, #tpu.memory_space<vmem>>, vector<384x8xbf16>
    %c7 = arith.constant 7 : index
    %c0_70 = arith.constant 0 : index
    %c0_71 = arith.constant 0 : index
    %69 = vector.load %arg8[%c7, %c0_70, %c0_71] : memref<9x8x12xbf16, #tpu.memory_space<vmem>>, vector<1x8x12xbf16>
    %70 = vector.shape_cast %69 : vector<1x8x12xbf16> to vector<8x12xbf16>
    %cst_72 = arith.constant dense<0.000000e+00> : vector<384x12xf32>
    %71 = tpu.matmul %68, %70, %cst_72 {dimension_numbers = #tpu.dot_dimension_numbers<[1], [0], [0], [1], [0, 0, 1, 1], [], []>} : vector<384x8xbf16>, vector<8x12xbf16>, vector<384x12xf32> -> vector<384x12xf32>
    %72 = arith.addf %67, %71 : vector<384x12xf32>
    %c50 = arith.constant 50 : index
    %c0_73 = arith.constant 0 : index
    %73 = vector.load %arg12[%c50, %c0_73] : memref<456x8xbf16, #tpu.memory_space<vmem>>, vector<384x8xbf16>
    %c8 = arith.constant 8 : index
    %c0_74 = arith.constant 0 : index
    %c0_75 = arith.constant 0 : index
    %74 = vector.load %arg8[%c8, %c0_74, %c0_75] : memref<9x8x12xbf16, #tpu.memory_space<vmem>>, vector<1x8x12xbf16>
    %75 = vector.shape_cast %74 : vector<1x8x12xbf16> to vector<8x12xbf16>
    %cst_76 = arith.constant dense<0.000000e+00> : vector<384x12xf32>
    %76 = tpu.matmul %73, %75, %cst_76 {dimension_numbers = #tpu.dot_dimension_numbers<[1], [0], [0], [1], [0, 0, 1, 1], [], []>} : vector<384x8xbf16>, vector<8x12xbf16>, vector<384x12xf32> -> vector<384x12xf32>
    %77 = arith.addf %72, %76 : vector<384x12xf32>
    %c0_77 = arith.constant 0 : index
    %c0_78 = arith.constant 0 : index
    %78 = vector.load %arg13[%c0_77, %c0_78] : memref<456x8xbf16, #tpu.memory_space<vmem>>, vector<384x8xbf16>
    %c0_79 = arith.constant 0 : index
    %c0_80 = arith.constant 0 : index
    %c0_81 = arith.constant 0 : index
    %79 = vector.load %arg9[%c0_79, %c0_80, %c0_81] : memref<9x8x12xbf16, #tpu.memory_space<vmem>>, vector<1x8x12xbf16>
    %80 = vector.shape_cast %79 : vector<1x8x12xbf16> to vector<8x12xbf16>
    %cst_82 = arith.constant dense<0.000000e+00> : vector<384x12xf32>
    %81 = tpu.matmul %78, %80, %cst_82 {dimension_numbers = #tpu.dot_dimension_numbers<[1], [0], [0], [1], [0, 0, 1, 1], [], []>} : vector<384x8xbf16>, vector<8x12xbf16>, vector<384x12xf32> -> vector<384x12xf32>
    %82 = arith.addf %77, %81 : vector<384x12xf32>
    %c1_83 = arith.constant 1 : index
    %c0_84 = arith.constant 0 : index
    %83 = vector.load %arg13[%c1_83, %c0_84] : memref<456x8xbf16, #tpu.memory_space<vmem>>, vector<384x8xbf16>
    %c1_85 = arith.constant 1 : index
    %c0_86 = arith.constant 0 : index
    %c0_87 = arith.constant 0 : index
    %84 = vector.load %arg9[%c1_85, %c0_86, %c0_87] : memref<9x8x12xbf16, #tpu.memory_space<vmem>>, vector<1x8x12xbf16>
    %85 = vector.shape_cast %84 : vector<1x8x12xbf16> to vector<8x12xbf16>
    %cst_88 = arith.constant dense<0.000000e+00> : vector<384x12xf32>
    %86 = tpu.matmul %83, %85, %cst_88 {dimension_numbers = #tpu.dot_dimension_numbers<[1], [0], [0], [1], [0, 0, 1, 1], [], []>} : vector<384x8xbf16>, vector<8x12xbf16>, vector<384x12xf32> -> vector<384x12xf32>
    %87 = arith.addf %82, %86 : vector<384x12xf32>
    %c2_89 = arith.constant 2 : index
    %c0_90 = arith.constant 0 : index
    %88 = vector.load %arg13[%c2_89, %c0_90] : memref<456x8xbf16, #tpu.memory_space<vmem>>, vector<384x8xbf16>
    %c2_91 = arith.constant 2 : index
    %c0_92 = arith.constant 0 : index
    %c0_93 = arith.constant 0 : index
    %89 = vector.load %arg9[%c2_91, %c0_92, %c0_93] : memref<9x8x12xbf16, #tpu.memory_space<vmem>>, vector<1x8x12xbf16>
    %90 = vector.shape_cast %89 : vector<1x8x12xbf16> to vector<8x12xbf16>
    %cst_94 = arith.constant dense<0.000000e+00> : vector<384x12xf32>
    %91 = tpu.matmul %88, %90, %cst_94 {dimension_numbers = #tpu.dot_dimension_numbers<[1], [0], [0], [1], [0, 0, 1, 1], [], []>} : vector<384x8xbf16>, vector<8x12xbf16>, vector<384x12xf32> -> vector<384x12xf32>
    %92 = arith.addf %87, %91 : vector<384x12xf32>
    %c24_95 = arith.constant 24 : index
    %c0_96 = arith.constant 0 : index
    %93 = vector.load %arg13[%c24_95, %c0_96] : memref<456x8xbf16, #tpu.memory_space<vmem>>, vector<384x8xbf16>
    %c3_97 = arith.constant 3 : index
    %c0_98 = arith.constant 0 : index
    %c0_99 = arith.constant 0 : index
    %94 = vector.load %arg9[%c3_97, %c0_98, %c0_99] : memref<9x8x12xbf16, #tpu.memory_space<vmem>>, vector<1x8x12xbf16>
    %95 = vector.shape_cast %94 : vector<1x8x12xbf16> to vector<8x12xbf16>
    %cst_100 = arith.constant dense<0.000000e+00> : vector<384x12xf32>
    %96 = tpu.matmul %93, %95, %cst_100 {dimension_numbers = #tpu.dot_dimension_numbers<[1], [0], [0], [1], [0, 0, 1, 1], [], []>} : vector<384x8xbf16>, vector<8x12xbf16>, vector<384x12xf32> -> vector<384x12xf32>
    %97 = arith.addf %92, %96 : vector<384x12xf32>
    %c25_101 = arith.constant 25 : index
    %c0_102 = arith.constant 0 : index
    %98 = vector.load %arg13[%c25_101, %c0_102] : memref<456x8xbf16, #tpu.memory_space<vmem>>, vector<384x8xbf16>
    %c4_103 = arith.constant 4 : index
    %c0_104 = arith.constant 0 : index
    %c0_105 = arith.constant 0 : index
    %99 = vector.load %arg9[%c4_103, %c0_104, %c0_105] : memref<9x8x12xbf16, #tpu.memory_space<vmem>>, vector<1x8x12xbf16>
    %100 = vector.shape_cast %99 : vector<1x8x12xbf16> to vector<8x12xbf16>
    %cst_106 = arith.constant dense<0.000000e+00> : vector<384x12xf32>
    %101 = tpu.matmul %98, %100, %cst_106 {dimension_numbers = #tpu.dot_dimension_numbers<[1], [0], [0], [1], [0, 0, 1, 1], [], []>} : vector<384x8xbf16>, vector<8x12xbf16>, vector<384x12xf32> -> vector<384x12xf32>
    %102 = arith.addf %97, %101 : vector<384x12xf32>
    %c26_107 = arith.constant 26 : index
    %c0_108 = arith.constant 0 : index
    %103 = vector.load %arg13[%c26_107, %c0_108] : memref<456x8xbf16, #tpu.memory_space<vmem>>, vector<384x8xbf16>
    %c5_109 = arith.constant 5 : index
    %c0_110 = arith.constant 0 : index
    %c0_111 = arith.constant 0 : index
    %104 = vector.load %arg9[%c5_109, %c0_110, %c0_111] : memref<9x8x12xbf16, #tpu.memory_space<vmem>>, vector<1x8x12xbf16>
    %105 = vector.shape_cast %104 : vector<1x8x12xbf16> to vector<8x12xbf16>
    %cst_112 = arith.constant dense<0.000000e+00> : vector<384x12xf32>
    %106 = tpu.matmul %103, %105, %cst_112 {dimension_numbers = #tpu.dot_dimension_numbers<[1], [0], [0], [1], [0, 0, 1, 1], [], []>} : vector<384x8xbf16>, vector<8x12xbf16>, vector<384x12xf32> -> vector<384x12xf32>
    %107 = arith.addf %102, %106 : vector<384x12xf32>
    %c48_113 = arith.constant 48 : index
    %c0_114 = arith.constant 0 : index
    %108 = vector.load %arg13[%c48_113, %c0_114] : memref<456x8xbf16, #tpu.memory_space<vmem>>, vector<384x8xbf16>
    %c6_115 = arith.constant 6 : index
    %c0_116 = arith.constant 0 : index
    %c0_117 = arith.constant 0 : index
    %109 = vector.load %arg9[%c6_115, %c0_116, %c0_117] : memref<9x8x12xbf16, #tpu.memory_space<vmem>>, vector<1x8x12xbf16>
    %110 = vector.shape_cast %109 : vector<1x8x12xbf16> to vector<8x12xbf16>
    %cst_118 = arith.constant dense<0.000000e+00> : vector<384x12xf32>
    %111 = tpu.matmul %108, %110, %cst_118 {dimension_numbers = #tpu.dot_dimension_numbers<[1], [0], [0], [1], [0, 0, 1, 1], [], []>} : vector<384x8xbf16>, vector<8x12xbf16>, vector<384x12xf32> -> vector<384x12xf32>
    %112 = arith.addf %107, %111 : vector<384x12xf32>
    %c49_119 = arith.constant 49 : index
    %c0_120 = arith.constant 0 : index
    %113 = vector.load %arg13[%c49_119, %c0_120] : memref<456x8xbf16, #tpu.memory_space<vmem>>, vector<384x8xbf16>
    %c7_121 = arith.constant 7 : index
    %c0_122 = arith.constant 0 : index
    %c0_123 = arith.constant 0 : index
    %114 = vector.load %arg9[%c7_121, %c0_122, %c0_123] : memref<9x8x12xbf16, #tpu.memory_space<vmem>>, vector<1x8x12xbf16>
    %115 = vector.shape_cast %114 : vector<1x8x12xbf16> to vector<8x12xbf16>
    %cst_124 = arith.constant dense<0.000000e+00> : vector<384x12xf32>
    %116 = tpu.matmul %113, %115, %cst_124 {dimension_numbers = #tpu.dot_dimension_numbers<[1], [0], [0], [1], [0, 0, 1, 1], [], []>} : vector<384x8xbf16>, vector<8x12xbf16>, vector<384x12xf32> -> vector<384x12xf32>
    %117 = arith.addf %112, %116 : vector<384x12xf32>
    %c50_125 = arith.constant 50 : index
    %c0_126 = arith.constant 0 : index
    %118 = vector.load %arg13[%c50_125, %c0_126] : memref<456x8xbf16, #tpu.memory_space<vmem>>, vector<384x8xbf16>
    %c8_127 = arith.constant 8 : index
    %c0_128 = arith.constant 0 : index
    %c0_129 = arith.constant 0 : index
    %119 = vector.load %arg9[%c8_127, %c0_128, %c0_129] : memref<9x8x12xbf16, #tpu.memory_space<vmem>>, vector<1x8x12xbf16>
    %120 = vector.shape_cast %119 : vector<1x8x12xbf16> to vector<8x12xbf16>
    %cst_130 = arith.constant dense<0.000000e+00> : vector<384x12xf32>
    %121 = tpu.matmul %118, %120, %cst_130 {dimension_numbers = #tpu.dot_dimension_numbers<[1], [0], [0], [1], [0, 0, 1, 1], [], []>} : vector<384x8xbf16>, vector<8x12xbf16>, vector<384x12xf32> -> vector<384x12xf32>
    %122 = arith.addf %117, %121 : vector<384x12xf32>
    %c0_131 = arith.constant 0 : index
    %c0_132 = arith.constant 0 : index
    %123 = vector.load %arg10[%c0_131, %c0_132] : memref<1x12xf32, #tpu.memory_space<vmem>>, vector<1x12xf32>
    %124 = vector.broadcast %123 : vector<1x12xf32> to vector<384x12xf32>
    %125 = arith.addf %122, %124 : vector<384x12xf32>
    %126 = math.tanh %125 : vector<384x12xf32>
    %c0_133 = arith.constant 0 : index
    %c0_134 = arith.constant 0 : index
    %c0_135 = arith.constant 0 : index
    %127 = vector.load %arg11[%c0_133, %c0_134, %c0_135] : memref<1x384x12xf32, #tpu.memory_space<vmem>>, vector<1x384x12xf32>
    %128 = vector.shape_cast %127 : vector<1x384x12xf32> to vector<384x12xf32>
    %129 = vector.shape_cast %126 : vector<384x12xf32> to vector<1x384x12xf32>
    tpu.vector_store %arg11[%c0_133, %c0_134, %c0_135], %129 {strides = array<i32>} : memref<1x384x12xf32, #tpu.memory_space<vmem>>, vector<1x384x12xf32>,
    return
  }
  func.func @transform_0(%arg0: i32, %arg1: i32) -> (i32, i32, i32) {
    %c0_i32 = arith.constant 0 : i32
    %c0_i32_0 = arith.constant 0 : i32
    return %arg0, %arg1, %c0_i32 : i32, i32, i32
  }
  func.func @transform_1(%arg0: i32, %arg1: i32) -> (i32, i32, i32) {
    %c1_i32 = arith.constant 1 : i32
    %0 = arith.addi %arg1, %c1_i32 : i32
    %c16_i32 = arith.constant 16 : i32
    %1 = arith.muli %0, %c16_i32 : i32
    %c0_i32 = arith.constant 0 : i32
    %c0_i32_0 = arith.constant 0 : i32
    return %arg0, %1, %c0_i32 : i32, i32, i32
  }
  func.func @transform_2(%arg0: i32, %arg1: i32) -> (i32, i32, i32) {
    %c1_i32 = arith.constant 1 : i32
    %0 = arith.addi %arg1, %c1_i32 : i32
    %c16_i32 = arith.constant 16 : i32
    %1 = arith.muli %0, %c16_i32 : i32
    %c1_i32_0 = arith.constant 1 : i32
    %2 = arith.addi %1, %c1_i32_0 : i32
    %c0_i32 = arith.constant 0 : i32
    %c0_i32_1 = arith.constant 0 : i32
    return %arg0, %2, %c0_i32 : i32, i32, i32
  }
  func.func @transform_3(%arg0: i32, %arg1: i32) -> (i32, i32, i32) {
    %c0_i32 = arith.constant 0 : i32
    %c0_i32_0 = arith.constant 0 : i32
    return %arg0, %arg1, %c0_i32 : i32, i32, i32
  }
  func.func @transform_4(%arg0: i32, %arg1: i32) -> (i32, i32, i32) {
    %c1_i32 = arith.constant 1 : i32
    %0 = arith.addi %arg1, %c1_i32 : i32
    %c16_i32 = arith.constant 16 : i32
    %1 = arith.muli %0, %c16_i32 : i32
    %c0_i32 = arith.constant 0 : i32
    %c0_i32_0 = arith.constant 0 : i32
    return %arg0, %1, %c0_i32 : i32, i32, i32
  }
  func.func @transform_5(%arg0: i32, %arg1: i32) -> (i32, i32, i32) {
    %c1_i32 = arith.constant 1 : i32
    %0 = arith.addi %arg1, %c1_i32 : i32
    %c16_i32 = arith.constant 16 : i32
    %1 = arith.muli %0, %c16_i32 : i32
    %c1_i32_0 = arith.constant 1 : i32
    %2 = arith.addi %1, %c1_i32_0 : i32
    %c0_i32 = arith.constant 0 : i32
    %c0_i32_1 = arith.constant 0 : i32
    return %arg0, %2, %c0_i32 : i32, i32, i32
  }
  func.func @transform_6(%arg0: i32, %arg1: i32) -> (i32, i32, i32) {
    %c0_i32 = arith.constant 0 : i32
    %c0_i32_0 = arith.constant 0 : i32
    %c0_i32_1 = arith.constant 0 : i32
    %c0_i32_2 = arith.constant 0 : i32
    return %c0_i32, %c0_i32_0, %c0_i32_1 : i32, i32, i32
  }
  func.func @transform_7(%arg0: i32, %arg1: i32) -> (i32, i32, i32) {
    %c0_i32 = arith.constant 0 : i32
    %c0_i32_0 = arith.constant 0 : i32
    %c0_i32_1 = arith.constant 0 : i32
    %c0_i32_2 = arith.constant 0 : i32
    return %c0_i32, %c0_i32_0, %c0_i32_1 : i32, i32, i32
  }
  func.func @transform_8(%arg0: i32, %arg1: i32) -> (i32, i32) {
    %c0_i32 = arith.constant 0 : i32
    %c0_i32_0 = arith.constant 0 : i32
    %c0_i32_1 = arith.constant 0 : i32
    return %c0_i32, %c0_i32_0 : i32, i32
  }
  func.func @transform_9(%arg0: i32, %arg1: i32) -> (i32, i32, i32) {
    %c0_i32 = arith.constant 0 : i32
    %c0_i32_0 = arith.constant 0 : i32
    return %arg0, %arg1, %c0_i32 : i32, i32, i32
  }
}

</mosaic_0001>

<bundles_post_ra>
// kernel: _lambda_.3
= control target key start
LH: loop header
LB: loop body
LE: loop exit
PB: predicated region body
PF: predicated region fallthrough
CT: control target
= control target key end

     0   :  { %10 = vsyncpa [#allocation4], 0  ;;  %s1935_s0 = inlined_call_operand.vmem [shape: bf16[2,48,16], index: 0, kind: input, shape index: {}, may-alias: {0,1,2}]   ;;  %s1936_s1 = inlined_call_operand.vmem [shape: bf16[2,48,16], index: 1, kind: input, shape index: {}, may-alias: {0,1,2}]   ;;  %s1937_s2 = inlined_call_operand.vmem [shape: bf16[2,48,16], index: 2, kind: input, shape index: {}, may-alias: {0,1,2}]   ;;  %s1938_s3 = inlined_call_operand.hbm [shape: bf16[9,16,64], index: 3, kind: input, shape index: {}]   ;;  %s1939_s4 = inlined_call_operand.hbm [shape: f32[1,64], index: 4, kind: input, shape index: {}]   ;;  %s1940_s5 = inlined_call_operand.vmem [shape: bf16[2,32,64], index: 5, kind: output, shape index: {}]  }
   0x1   :  { %11 = vsyncpa [#allocation6], 0  ;;  %s1734_s18 = smov 0   ;;  %s1736_s19 = smov 0  }
   0x2   :  { %s1738_s20 = smov 0  }
   0x3 LB: > { %s1356_s21 = sadd.s32 4294967295, %s1697_s20   ;;  %s29_s22 = sadd.s32 1, %s1693_s19  ;;  %s1697_s20 = sphi %s1738_s20, %s17_s20   ;;  %s1693_s19 = sphi %s1736_s19, %s1950_s19   ;;  %s1689_s18 = sphi %s1734_s18, %s1949_s18  }
   0x4   : > { %p31_p0 = scmp.ge.s32.totalorder %s29_s22, 2  ;;  %p1358_p1 = scmp.ge.s32.totalorder %s1697_s20, 1 }
   0x5   : > { %p198_p2 = scmp.lt.s32.totalorder %s1697_s20, 3  ;;  %p1759_p4 = scmp.eq.s32.totalorder %s1356_s21, 0 }
   0x6   : > { %s1952_s22 = smov (%p31_p0, %s29_s22), 0  ;;  %s1699_s25 = smov [#allocation3]  }
   0x7   : > { %p1755_p3 = pnand %p1358_p1, %p198_p2  ;;  %s210_s26 = sshll.u32 %s1699_s25, 4  ;;  %s211_s26 = int_to_ptr.vmem [resolvable:$true] %s210_s26 }
   0x8   : > { %s1945_s24 = scalar_select %p1759_p4, 1, 0 }
   0x9   : > { %s1944_s23 = scalar_select %p1755_p3, 1, 0 }
   0xa   : > { %p1552_p5 = pneg %p1755_p3  ;;  %s1700_s28 = smov [#allocation5]  }
   0xb   : > { %s224_s29 = sshll.u32 %s1700_s28, 4  ;;  %s1611_s7 = scalar_lea.hbm %s1938_s3, 1152  ;;  %s1771_s29 = int_to_ptr.vmem [resolvable:$true] %s224_s29 }
   0xc   : > { %p1767_p6 = pnand %p1759_p4, %p1552_p5  ;;  %p1612_p7 = scmp.ne.s32.totalorder %s1938_s3, %s1611_s7 }
   0xd   : > { %p1618_p11 = scmp.lt.u32.totalorder %s1611_s7, %s1938_s3 }
   0xe   : > { %p1613_p8 = pneg %p1767_p6 }
  0x10   : > { %p1614_p9 = pnand %p1613_p8, %p1612_p7 }
  0x12   : > { %p1615_p10 = pneg %p1614_p9 }
  0x14   : > { %p1620_p12 = pnand %p1618_p11, %p1615_p10 }
  0x16   : > { %1623 = shalt.err (!%p1620_p12)
}
  0x17   : > { %s1624_s12 = scalar_lea.vmem %s211_s26, 1152  ;;  %p1632_p2 = scmp.lt.s32.totalorder %s211_s26, %s211_s26 }
  0x18   : > { %p1625_p13 = scmp.ne.s32.totalorder %s211_s26, %s1624_s12  ;;  %p1633_p5 = scmp.lt.s32.totalorder %s1624_s12, %s1624_s12 }
  0x1a   : > { %p1627_p0 = pnand %p1625_p13, %p1613_p8  ;;  %p1634_p4 = por %p1633_p5, %p1632_p2 }
  0x1c   : > { %p1628_p1 = pneg %p1627_p0 }
  0x1e   : > { %p1635_p3 = pnand %p1634_p4, %p1628_p1 }
  0x20   : > { %1638 = shalt.err (!%p1635_p3)
}
  0x21   : > { %s1701_s13 = smov 64   ;;  %s1702_s14 = smov 4  }
  0x22   : > { %1555 = dma.hbm_to_vmem [thread:$0]  (!%p1767_p6), %s1938_s3, 1152, %s211_s26, [#allocation4], %s1701_s13, %s1701_s13, %s1702_s14  }
  0x23   : > { %s1639_s25 = scalar_lea.hbm %s1939_s4, 16 }
  0x24   : > { %p1640_p7 = scmp.ne.s32.totalorder %s1939_s4, %s1639_s25  ;;  %p1646_p9 = scmp.lt.u32.totalorder %s1639_s25, %s1939_s4 }
  0x26   : > { %p1642_p3 = pnand %p1640_p7, %p1613_p8 }
  0x28   : > { %p1643_p4 = pneg %p1642_p3 }
  0x2a   : > { %p1648_p10 = pnand %p1646_p9, %p1643_p4 }
  0x2c   : > { %1651 = shalt.err (!%p1648_p10)
}
  0x2d   : > { %s1652_s26 = scalar_lea.vmem %s1771_s29, 16  ;;  %s1659_s8 = scalar_lea.vmem %s1771_s29, 32 }
  0x2e   : > { %p1653_p11 = scmp.ne.s32.totalorder %s1771_s29, %s1652_s26  ;;  %p1660_p0 = scmp.lt.s32.totalorder %s1771_s29, %s1771_s29 }
  0x2f   : > { %p1661_p1 = scmp.lt.s32.totalorder %s1659_s8, %s1652_s26 }
  0x30   : > { %p1655_p12 = pnand %p1653_p11, %p1613_p8 }
  0x31   : > { %p1662_p2 = por %p1661_p1, %p1660_p0 }
  0x32   : > { %p1656_p13 = pneg %p1655_p12 }
  0x34   : > { %p1663_p5 = pnand %p1662_p2, %p1656_p13 }
  0x36   : > { %1666 = shalt.err (!%p1663_p5)
}
  0x37   : > { %1558 = dma.hbm_to_vmem [thread:$0]  (!%p1767_p6), %s1939_s4, 16, %s1771_s29, [#allocation6]  }
  0x38   : > { %p1947_p7 = scmp.ne.s32.totalorder %s1944_s23, 0 }
  0x39   : > { %p1948_p8 = scmp.ne.s32.totalorder (!%p1947_p7), %s1945_s24, 0 }
  0x3a   : > { %290 = sbr.rel (%p1947_p7) target bundleno = 366 (0x16e), region = 40 }
  0x41   : > { %1680 = dma.done.wait (%p1948_p8), [#allocation4], 1152  }
  0x42   : > { %1682 = vsyncadd (%p1948_p8), [#allocation4], 4294966144 }
  0x43   : > { %1684 = dma.done.wait (%p1948_p8), [#allocation6], 16  }
  0x44   : > { %1686 = vsyncadd (%p1948_p8), [#allocation6], 4294967280  ;;  %p360_p3 = scmp.lt.s32.totalorder %s1689_s18, 1  ;;  %vm416_vm0 = vcmask 125952   ;;  %v1703_v0 = vmov 0   ;;  %v1593_v1 = vld [vmem:[#allocation3 + $0x20] sm:$0xff]  }
  0x45   : > { %423 = vst.msk [vmem:[#allocation2 + $0x18] sm:$0xf] %vm416_vm0, %v1703_v0  ;;  %v1594_v2 = vld [vmem:[#allocation3 + $0x8] sm:$0xff]   ;;  %1480 = vmatprep.subr.bf16.mxu0 %v1593_v1  ;;  %v1602_v10 = vld [vmem:[#allocation3] sm:$0xff]   ;;  %vm447_vm1 = vsmask.f32 7424 }
  0x46   : > { %s1954_s18 = smov (!%p360_p3, %s1689_s18), 1  ;;  %1456 = vmatprep.subr.bf16.mxu1 %v1594_v2  ;;  %1481 = vmatpush3.bf16.msra.mxu0 %v1593_v1  ;;  %v1851_v8 = vld [vmem:[#allocation3 + $0x28] sm:$0xff]   ;;  %vm474_vm2 = vcmask 130048   ;;  %vm596_vm3 = vcmask 1046528   ;;  %v1604_v49 = vld [vmem:[#allocation3 + $0x10] sm:$0xff]   ;;  %v1606_v1 = vld [vmem:[#allocation3 + $0x18] sm:$0xff]  }
  0x47   : > { %s1542_s23 = smul.u32 24, %s1954_s18  ;;  %1457 = vmatpush3.bf16.msra.mxu1 %v1594_v2  ;;  %1486 = vmatprep.subr.bf16.mxu0 %v1851_v8  ;;  %v1603_v55 = vld [vmem:[#allocation3 + $0x30] sm:$0xff]   ;;  %s1424_s25 = sshll.u32 %s1954_s18, 4  ;;  %vm1206_vm4 = vcmask 519168  }
  0x48   : > { %1462 = vmatprep.subr.bf16.mxu1 %v1602_v10  ;;  %s407_s6 = scalar_lea.vmem %s1940_s5, %s1424_s25 }
  0x49   : > { %s367_s11 = scalar_lea.vmem %s1935_s0, %s1542_s23  ;;  %s1421_s12 = sadd.s32 16, %s1542_s23 }
  0x4a   : > { %s382_s14 = scalar_lea.vmem %s1936_s1, %s1421_s12  ;;  %s1423_s15 = sadd.s32 20, %s1542_s23  ;;  %v410_v3 = vld [vmem:[%s367_s11] sm:$0xf]  ;;  %v411_v4 = vld [vmem:[%s367_s11 + $0x4] sm:$0xf] }
  0x4b   : > { %s395_s21 = scalar_lea.vmem %s1937_s2, %s1423_s15  ;;  %v412_v5 = vld [vmem:[%s367_s11 + $0x8] sm:$0xf]  ;;  %v413_v6 = vld [vmem:[%s367_s11 + $0xc] sm:$0xf]  ;;  %417 = vst.msk [vmem:[#allocation2] sm:$0xf] %vm416_vm0, %v410_v3 }
  0x4c   : > { %418 = vst.msk [vmem:[#allocation2 + $0x4] sm:$0xf] %vm416_vm0, %v411_v4  ;;  %419 = vst.msk [vmem:[#allocation2 + $0x8] sm:$0xf] %vm416_vm0, %v412_v5  ;;  %v414_v7 = vld [vmem:[%s382_s14] sm:$0xf] }
  0x4d   : > { %420 = vst.msk [vmem:[#allocation2 + $0xc] sm:$0xf] %vm416_vm0, %v413_v6  ;;  %421 = vst.msk [vmem:[#allocation2 + $0x10] sm:$0xf] %vm416_vm0, %v414_v7  ;;  %v415_v9 = vld [vmem:[%s395_s21] sm:$0xf] }
  0x4e   : > { %422 = vst.msk [vmem:[#allocation2 + $0x14] sm:$0xf] %vm416_vm0, %v415_v9  ;;  %v1605_v4 = vld [vmem:[#allocation3 + $0x38] sm:$0xff]  }
  0x52   : > { %v424_v11 = vld [vmem:[#allocation2] sm:$0xf] }
  0x53   : > { %v1855_v12 = vld [vmem:[#allocation2 + $0x4] sm:$0xf]  ;;  %v1857_v13 = vld [vmem:[#allocation2 + $0x8] sm:$0xf]  ;;  %v589_v50 = vld [vmem:[#allocation2] sm:$0xe] }
  0x54   : > { %v1859_v14 = vld [vmem:[#allocation2 + $0xc] sm:$0xf]  ;;  %v1370_v15 = vcombine.low %v424_v11, %v1855_v12  ;;  %v740_v16 = vld [vmem:[#allocation2 + $0x4] sm:$0xf]  ;;  %v1862_v17 = vld [vmem:[#allocation2 + $0x8] sm:$0xf]  ;;  %v1379_v57 = vcombine.low %v589_v50, %v1855_v12 }
  0x55   : > { %v1866_v18 = vcombine.low %v1857_v13, %v1859_v14  ;;  %v1868_v19 = vld [vmem:[#allocation2 + $0xc] sm:$0xf]  ;;  %v1870_v20 = vld [vmem:[#allocation2 + $0x10] sm:$0xf]  ;;  %v1388_v21 = vcombine.low %v740_v16, %v1862_v17  ;;  %v846_v34 = vld [vmem:[#allocation2 + $0x4] sm:$0xe] }
  0x56   : > { %v449_v22 = vshrl.u32 %v1370_v15, 16  ;;  %v451_v23 = vshll.u32 %v1370_v15, 16  ;;  %v1389_v24 = vcombine.low %v1868_v19, %v1870_v20  ;;  %v1875_v25 = vld [vmem:[#allocation2 + $0x10] ss:$0 sps:$4 sm:$0x11]   ;;  %v1394_v38 = vcombine.low %v846_v34, %v1862_v17 }
  0x57   : > { %v456_v26 = vshll.u32 %v1866_v18, 16  ;;  %v460_v27 = vshrl.u32 %v1866_v18, 16  ;;  %v762_v28 = vshrl.u32 %v1388_v21, 16  ;;  %v764_v29 = vshll.u32 %v1388_v21, 16  ;;  %v996_v58 = vld [vmem:[#allocation2 + $0x8] sm:$0xf] }
  0x58   : > { %v453_v30 = vrot.slane %v451_v23, 1  ;;  %v769_v31 = vshll.u32 %v1389_v24, 16  ;;  %v773_v32 = vshrl.u32 %v1389_v24, 16  ;;  %v464_v33 = vshll.u32 %v1875_v25, 16  ;;  %v997_v59 = vld [vmem:[#allocation2 + $0xc] sm:$0xf] }
  0x59   : > { %v458_v35 = vrot.slane %v456_v26, 1  ;;  %v766_v36 = vrot.slane %v764_v29, 1  ;;  %v1601_v37 = vld [vmem:[#allocation2 + $0x14] ss:$0 sps:$4 sm:$0x11]   ;;  %v854_v42 = vrot.slane %v1389_v24, 1  ;;  %v1403_v63 = vcombine.low %v996_v58, %v997_v59 }
  0x5a   : > { %v454_v39 = vor.u32 %v453_v30, %v449_v22  ;;  %v771_v40 = vrot.slane %v769_v31, 1  ;;  %v466_v41 = vrot.slane %v464_v33, 1  ;;  %v777_v45 = vshll.u32 %v1601_v37, 16  ;;  %v1608_v5 = vld [vmem:[#allocation2 + $0x10] sm:$0xff]   ;;  %v1609_v23 = vld [vmem:[#allocation3 + $0x40] sm:$0xff]  }
  0x5b   : > { %v462_v43 = vor.u32 %v460_v27, %v458_v35  ;;  %v767_v44 = vor.u32 %v766_v36, %v762_v28  ;;  %v853_v46 = vrot.slane %v1394_v38, 1  ;;  %v597_v60 = vrot.slane %v1379_v57, 1  ;;  %v923_v11 = vld [vmem:[#allocation2 + $0x14] sm:$0xf]  ;;  %v1102_v24 = vld [vmem:[#allocation2 + $0x8] sm:$0xe] }
  0x5c   : > { %v459_v47 = vsel %vm447_vm1, %v454_v39, %v458_v35  ;;  %v775_v48 = vor.u32 %v773_v32, %v771_v40  ;;  %v779_v53 = vrot.slane %v777_v45, 1  ;;  %v598_v61 = vrot.slane %v1866_v18, 1  ;;  %v1610_v21 = vld [vmem:[#allocation2 + $0x18] ss:$0 sps:$4 sm:$0x11]  }
  0x5d   : > { %1458 = vmatprep.mubr.msk.bf16.mxu1 %vm474_vm2, %v459_v47  ;;  %v772_v51 = vsel %vm447_vm1, %v767_v44, %v771_v40  ;;  %v467_v52 = vsel %vm447_vm1, %v462_v43, %v466_v41  ;;  %v855_v54 = vsel %vm596_vm3, %v853_v46, %v854_v42  ;;  %v856_v62 = vrot.slane %v1601_v37, 1  ;;  %v1413_v39 = vld [vmem:[#allocation5] ss:$0 sm:$0xff] }
  0x5e   : > { %1482 = vmatprep.mubr.msk.bf16.mxu0 %vm474_vm2, %v772_v51  ;;  %1459 = vmatmul.mubr.msk.bf16.vlgmr.msra.gmra.mrb[0].mxu1 %vm474_vm2, %v467_v52  ;;  %v780_v56 = vsel %vm447_vm1, %v775_v48, %v779_v53  ;;  %v599_v0 = vsel %vm596_vm3, %v597_v60, %v598_v61  ;;  %v1398_v3 = vcombine.low %v1862_v17, %v1868_v19  ;;  %v1020_v6 = vshll.u32 %v1403_v63, 16 }
  0x5f   : > { %1463 = vmatpush3.bf16.msra.mxu1 %v1602_v10  ;;  %1464 = vmatprep.mubr.msk.bf16.mxu1 %vm474_vm2, %v1370_v15  ;;  %v857_v2 = vsel %vm596_vm3, %v854_v42, %v856_v62  ;;  %v1018_v7 = vshrl.u32 %v1403_v63, 16  ;;  %v1025_v9 = vshll.u32 %v1608_v5, 16  ;;  %v600_v10 = vrot.slane %v1875_v25, 1 }
  0x60   : > { %1483 = vmatmul.mubr.msk.bf16.vlgmr.msra.gmra.mrb[0].mxu0 %vm474_vm2, %v780_v56  ;;  %1468 = vmatprep.subr.bf16.mxu1 %v1604_v49  ;;  %v1399_v19 = vcombine.low %v1870_v20, %v923_v11  ;;  %v1029_v25 = vshrl.u32 %v1608_v5, 16  ;;  %v1033_v26 = vshll.u32 %v1610_v21, 16  ;;  %v1110_v30 = vrot.slane %v1608_v5, 1 }
  0x61   : > { %1487 = vmatpush3.bf16.msra.mxu0 %v1851_v8  ;;  %1488 = vmatprep.mubr.msk.bf16.mxu0 %vm474_vm2, %v855_v54  ;;  %v1022_v8 = vrot.slane %v1020_v6, 1  ;;  %v1027_v16 = vrot.slane %v1025_v9, 1  ;;  %v601_v17 = vsel %vm596_vm3, %v598_v61, %v600_v10  ;;  %v1112_v33 = vrot.slane %v1610_v21, 1 }
  0x62   : > { %1492 = vmatprep.subr.bf16.mxu0 %v1603_v55  ;;  %v1035_v27 = vrot.slane %v1033_v26, 1 }
  0x63   : > { %v1023_v15 = vor.u32 %v1022_v8, %v1018_v7  ;;  %v1031_v20 = vor.u32 %v1029_v25, %v1027_v16  ;;  %v1113_v34 = vsel %vm596_vm3, %v1110_v30, %v1112_v33 }
  0x65   : > { %v1028_v22 = vsel %vm447_vm1, %v1023_v15, %v1027_v16  ;;  %v1036_v31 = vsel %vm447_vm1, %v1031_v20, %v1035_v27 }
  0x6a   : > { %1465 = vmatmul.mubr.msk.bf16.vlgmr.msra.gmra.mrb[0].mxu1 %vm474_vm2, %v1866_v18  ;;  %v1383_v18 = vcombine.low %v1855_v12, %v1857_v13  ;;  %v1409_v12 = vcombine.low %v1102_v24, %v997_v59  ;;  %v667_v13 = vld [vmem:[#allocation2 + $0x10] sm:$0xf] }
  0x6b   : > { %1469 = vmatpush3.bf16.msra.mxu1 %v1604_v49  ;;  %1470 = vmatprep.mubr.msk.bf16.mxu1 %vm474_vm2, %v599_v0  ;;  %v1384_v28 = vcombine.low %v1859_v14, %v667_v13 }
  0x6c   : > { %1489 = vmatmul.mubr.msk.bf16.vlgmr.msra.gmra.mrb[0].mxu0 %vm474_vm2, %v857_v2  ;;  %1474 = vmatprep.subr.bf16.mxu1 %v1606_v1  ;;  %v1109_v29 = vrot.slane %v1409_v12, 1 }
  0x6d   : > { %1493 = vmatpush3.bf16.msra.mxu0 %v1603_v55  ;;  %1494 = vmatprep.mubr.msk.bf16.mxu0 %vm474_vm2, %v1398_v3 }
  0x6e   : > { %1498 = vmatprep.subr.bf16.mxu0 %v1605_v4  ;;  %v1111_v32 = vsel %vm596_vm3, %v1109_v29, %v1110_v30 }
  0x76   : > { %1471 = vmatmul.mubr.msk.bf16.vlgmr.msra.gmra.mrb[0].mxu1 %vm474_vm2, %v601_v17 }
  0x77   : > { %1475 = vmatpush3.bf16.msra.mxu1 %v1606_v1  ;;  %1476 = vmatprep.mubr.msk.bf16.mxu1 %vm474_vm2, %v1383_v18 }
  0x78   : > { %1495 = vmatmul.mubr.msk.bf16.vlgmr.msra.gmra.mrb[0].mxu0 %vm474_vm2, %v1399_v19 }
  0x79   : > { %1499 = vmatpush3.bf16.msra.mxu0 %v1605_v4  ;;  %1500 = vmatprep.mubr.msk.bf16.mxu0 %vm474_vm2, %v1028_v22 }
  0x7a   : > { %1504 = vmatprep.subr.bf16.mxu0 %v1609_v23 }
  0x82   : > { %1477 = vmatmul.mubr.msk.bf16.vlgmr.msra.gmra.mrb[0].mxu1 %vm474_vm2, %v1384_v28 }
  0x84   : > { %1501 = vmatmul.mubr.msk.bf16.vlgmr.msra.gmra.mrb[0].mxu0 %vm474_vm2, %v1036_v31 }
  0x85   : > { %1505 = vmatpush3.bf16.msra.mxu0 %v1609_v23  ;;  %1506 = vmatprep.mubr.msk.bf16.mxu0 %vm474_vm2, %v1111_v32 }
  0x90   : > { %1507 = vmatmul.mubr.msk.bf16.vlgmr.msra.gmra.mrb[0].mxu0 %vm474_vm2, %v1113_v34 }
 0x155   : > { %v1478_v14 = vpop.f32.mrb[0].mxu1 }
 0x156   : > { %v721_v35 = vpop.f32.mrb[1].mxu1 }
 0x157   : > { %v1479_v36 = vpop.f32.mrb[2].mxu1 }
 0x158   : > { %v724_v37 = vpop.f32.mrb[3].mxu1 }
 0x163   : > { %v1508_v38 = vpop.f32.mrb[0].mxu0 }
 0x164   : > { %v1510_v40 = vadd.f32 %v1508_v38, %v1478_v14  ;;  %v1160_v41 = vpop.f32.mrb[1].mxu0 }
 0x165   : > { %v1511_v42 = vadd.f32 %v1160_v41, %v721_v35  ;;  %v1509_v43 = vpop.f32.mrb[2].mxu0 }
 0x166   : > { %v1188_v44 = vadd.f32 %v1510_v40, %v1413_v39  ;;  %v1512_v45 = vadd.f32 %v1509_v43, %v1479_v36  ;;  %v1163_v46 = vpop.f32.mrb[3].mxu0 }
 0x167   : > { %v1186_v47 = vadd.f32 %v1511_v42, %v1413_v39  ;;  %v1513_v48 = vadd.f32 %v1163_v46, %v724_v37 }
 0x168   : > { %v1427_v49 = vpack.c.bf16 %v1188_v44, %v1188_v44  ;;  %v1189_v50 = vadd.f32 %v1512_v45, %v1413_v39 }
 0x169   : > { %v1425_v51 = vpack.c.bf16 %v1186_v47, %v1186_v47  ;;  %v1187_v52 = vadd.f32 %v1513_v48, %v1413_v39 }
 0x16a   : > { %1209 = vst.msk [vmem:[%s407_s6 + $0x8] sm:$0xf] %vm1206_vm4, %v1427_v49  ;;  %v1428_v53 = vpack.c.bf16 %v1189_v50, %v1189_v50 }
 0x16b   : > { %1207 = vst.msk [vmem:[%s407_s6] sm:$0xf] %vm1206_vm4, %v1425_v51  ;;  %v1426_v54 = vpack.c.bf16 %v1187_v52, %v1187_v52 }
 0x16c   : > { %1210 = vst.msk [vmem:[%s407_s6 + $0xc] sm:$0xf] %vm1206_vm4, %v1428_v53 }
 0x16d   : > { %1208 = vst.msk [vmem:[%s407_s6 + $0x4] sm:$0xf] %vm1206_vm4, %v1426_v54 }
 0x16e PF: > { %s17_s20 = sadd.s32 1, %s1697_s20   ;;  %s1949_s18 = smov %s1693_s19 }
 0x16f   : > { %p14_p6 = scmp.ge.s32.totalorder %s17_s20, 4   ;;  %s1950_s19 = smov %s1952_s22 }
 0x171   :  { %16 = sbr.rel (!%p14_p6) target bundleno = 3 (0x3), region = 93 }
 0x178   :  { %1241 = vsyncpa [#allocation4], 1 }
 0x179   :  { %1243 = vsyncpa [#allocation4 + $0x1], 1 }
 0x17a   :  { %1244 = vsyncpa [#allocation6], 1 }

// kernel: _lambda_.4
= control target key start
LH: loop header
LB: loop body
LE: loop exit
PB: predicated region body
PF: predicated region fallthrough
CT: control target
= control target key end

     0   :  { %14 = vsyncpa [#allocation5], 0  ;;  %s6604_s0 = inlined_call_operand.vmem [shape: bf16[2,160,16], index: 0, kind: input, shape index: {}, may-alias: {0,1,2}]   ;;  %s6605_s1 = inlined_call_operand.vmem [shape: bf16[2,160,16], index: 1, kind: input, shape index: {}, may-alias: {0,1,2}]   ;;  %s6606_s2 = inlined_call_operand.vmem [shape: bf16[2,160,16], index: 2, kind: input, shape index: {}, may-alias: {0,1,2}]   ;;  %s6607_s3 = inlined_call_operand.vmem [shape: bf16[2,160,16], index: 3, kind: input, shape index: {}, may-alias: {3,4,5}]   ;;  %s6608_s4 = inlined_call_operand.vmem [shape: bf16[2,160,16], index: 4, kind: input, shape index: {}, may-alias: {3,4,5}]   ;;  %s6609_s5 = inlined_call_operand.vmem [shape: bf16[2,160,16], index: 5, kind: input, shape index: {}, may-alias: {3,4,5}]   ;;  %s6610_s6 = inlined_call_operand.hbm [shape: bf16[9,16,32], index: 6, kind: input, shape index: {}]   ;;  %s6611_s7 = inlined_call_operand.hbm [shape: bf16[9,16,32], index: 7, kind: input, shape index: {}]   ;;  %s6612_s8 = inlined_call_operand.hbm [shape: f32[1,32], index: 8, kind: input, shape index: {}]   ;;  %s6613_s9 = inlined_call_operand.vmem [shape: bf16[2,128,32], index: 9, kind: output, shape index: {}]  }
   0x1   :  { %15 = vsyncpa [#allocation7], 0  ;;  %s5676_s30 = smov 0   ;;  %s5678_s10 = smov 0  }
   0x2   :  { %s5680_s11 = smov 0  }
   0x3 LB: > { %6618 = sst [smem:[#allocation11_spill]] %s5614_s10  ;;  %s4422_s12 = sadd.s32 4294967295, %s5618_s11   ;;  %s5618_s11 = sphi %s5680_s11, %s21_s11   ;;  %s5614_s10 = sphi %s5678_s10, %s6627_s10   ;;  %s5610_s30 = sphi %s5676_s30, %s6626_s30  }
   0x4   : > { %p4424_p0 = scmp.ge.s32.totalorder %s5618_s11, 1  ;;  %p317_p1 = scmp.lt.s32.totalorder %s5618_s11, 3 }
   0x5   : > { %p5694_p2 = scmp.eq.s32.totalorder %s4422_s12, 0  ;;  %s5620_s15 = smov [#allocation6]  }
   0x6   : > { %p5698_p3 = pnand %p4424_p0, %p317_p1  ;;  %s342_s16 = sshll.u32 %s5620_s15, 4  ;;  %s5702_s16 = int_to_ptr.vmem [resolvable:$true] %s342_s16 }
   0x7   : > { %s6619_s13 = scalar_select %p5694_p2, 1, 0 }
   0x8   : > { %s6620_s14 = scalar_select %p5698_p3, 1, 0 }
   0x9   : > { %p5439_p4 = pneg %p5698_p3  ;;  %s33_s18 = sadd.s32 1, %s5614_s10 }
   0xa   : > { %p5713_p6 = scmp.ge.s32.totalorder %s33_s18, 2  ;;  %s5621_s20 = smov [#allocation4]  }
   0xb   : > { %p5708_p5 = pnand %p5694_p2, %p5439_p4  ;;  %s329_s21 = sshll.u32 %s5621_s20, 4  ;;  %s330_s21 = int_to_ptr.vmem [resolvable:$true] %s329_s21 }
   0xc   : > { %s5504_s24 = scalar_lea.hbm %s6611_s7, 1152 }
   0xd   : > { %p5505_p7 = scmp.ne.s32.totalorder %s6611_s7, %s5504_s24  ;;  %p5725_p8 = pneg %p5708_p5 }
   0xe   : > { %p5511_p11 = scmp.lt.u32.totalorder %s5504_s24, %s6611_s7 }
   0xf   : > { %p5507_p9 = pnand %p5725_p8, %p5505_p7 }
  0x11   : > { %p5508_p10 = pneg %p5507_p9 }
  0x13   : > { %p5513_p12 = pnand %p5511_p11, %p5508_p10 }
  0x15   : > { %5516 = shalt.err (!%p5513_p12)
}
  0x16   : > { %s5517_s12 = scalar_lea.vmem %s5702_s16, 1152  ;;  %p5525_p4 = scmp.lt.s32.totalorder %s5702_s16, %s5702_s16 }
  0x17   : > { %p5518_p13 = scmp.ne.s32.totalorder %s5702_s16, %s5517_s12  ;;  %p5526_p2 = scmp.lt.s32.totalorder %s5517_s12, %s5517_s12 }
  0x19   : > { %p5520_p0 = pnand %p5518_p13, %p5725_p8  ;;  %p5527_p7 = por %p5526_p2, %p5525_p4 }
  0x1b   : > { %p5521_p1 = pneg %p5520_p0 }
  0x1d   : > { %p5528_p9 = pnand %p5527_p7, %p5521_p1 }
  0x1f   : > { %5531 = shalt.err (!%p5528_p9)
}
  0x20   : > { %s5622_s15 = smov 64   ;;  %s5623_s20 = smov 4  }
  0x21   : > { %5445 = dma.hbm_to_vmem [thread:$0]  (!%p5708_p5), %s6611_s7, 1152, %s5702_s16, [#allocation7], %s5622_s15, %s5622_s15, %s5623_s20  }
  0x22   : > { %s6629_s18 = smov (%p5713_p6, %s33_s18), 0  ;;  %s5532_s26 = scalar_lea.hbm %s6610_s6, 1152 }
  0x23   : > { %p5533_p2 = scmp.ne.s32.totalorder %s6610_s6, %s5532_s26  ;;  %p5539_p12 = scmp.lt.u32.totalorder %s5532_s26, %s6610_s6 }
  0x25   : > { %p5535_p10 = pnand %p5533_p2, %p5725_p8 }
  0x27   : > { %p5536_p11 = pneg %p5535_p10 }
  0x29   : > { %p5541_p13 = pnand %p5539_p12, %p5536_p11 }
  0x2b   : > { %5544 = shalt.err (!%p5541_p13)
}
  0x2c   : > { %s5545_s16 = scalar_lea.vmem %s330_s21, 1152  ;;  %p5553_p4 = scmp.lt.s32.totalorder %s330_s21, %s330_s21 }
  0x2d   : > { %p5546_p6 = scmp.ne.s32.totalorder %s330_s21, %s5545_s16  ;;  %p5554_p7 = scmp.lt.s32.totalorder %s5545_s16, %s5545_s16 }
  0x2f   : > { %p5548_p0 = pnand %p5546_p6, %p5725_p8  ;;  %p5555_p9 = por %p5554_p7, %p5553_p4 }
  0x31   : > { %p5549_p1 = pneg %p5548_p0 }
  0x33   : > { %p5556_p3 = pnand %p5555_p9, %p5549_p1 }
  0x35   : > { %5559 = shalt.err (!%p5556_p3)
}
  0x36   : > { %5442 = dma.hbm_to_vmem [thread:$0]  (!%p5708_p5), %s6610_s6, 1152, %s330_s21, [#allocation5], %s5622_s15, %s5622_s15, %s5623_s20  }
  0x37   : > { %s5624_s10 = smov [#allocation8]   ;;  %s5560_s26 = scalar_lea.hbm %s6612_s8, 16 }
  0x38   : > { %s356_s23 = sshll.u32 %s5624_s10, 4  ;;  %p5561_p2 = scmp.ne.s32.totalorder %s6612_s8, %s5560_s26  ;;  %s357_s23 = int_to_ptr.vmem [resolvable:$true] %s356_s23 }
  0x39   : > { %p5567_p11 = scmp.lt.u32.totalorder %s5560_s26, %s6612_s8 }
  0x3a   : > { %p5563_p3 = pnand %p5561_p2, %p5725_p8 }
  0x3c   : > { %p5564_p10 = pneg %p5563_p3 }
  0x3e   : > { %p5569_p12 = pnand %p5567_p11, %p5564_p10 }
  0x40   : > { %5572 = shalt.err (!%p5569_p12)
}
  0x41   : > { %s5573_s21 = scalar_lea.vmem %s357_s23, 16  ;;  %s5580_s15 = scalar_lea.vmem %s357_s23, 32 }
  0x42   : > { %p5574_p13 = scmp.ne.s32.totalorder %s357_s23, %s5573_s21  ;;  %p5581_p1 = scmp.lt.s32.totalorder %s357_s23, %s357_s23 }
  0x43   : > { %p5582_p4 = scmp.lt.s32.totalorder %s5580_s15, %s5573_s21 }
  0x44   : > { %p5576_p6 = pnand %p5574_p13, %p5725_p8 }
  0x45   : > { %p5583_p7 = por %p5582_p4, %p5581_p1 }
  0x46   : > { %p5577_p0 = pneg %p5576_p6 }
  0x48   : > { %p5584_p9 = pnand %p5583_p7, %p5577_p0 }
  0x4a   : > { %5587 = shalt.err (!%p5584_p9)
}
  0x4b   : > { %5448 = dma.hbm_to_vmem [thread:$0]  (!%p5708_p5), %s6612_s8, 16, %s357_s23, [#allocation7]  }
  0x4c   : > { %p6624_p2 = scmp.ne.s32.totalorder %s6620_s14, 0 }
  0x4d   : > { %p6625_p3 = scmp.ne.s32.totalorder (!%p6624_p2), %s6619_s13, 0 }
  0x4e   : > { %483 = sbr.rel (%p6624_p2) target bundleno = 620 (0x26c), region = 56 }
  0x55   : > { %5601 = dma.done.wait (%p6625_p3), [#allocation5], 1152  }
  0x56   : > { %5603 = vsyncadd (%p6625_p3), [#allocation5], 4294966144 }
  0x57   : > { %5605 = dma.done.wait (%p6625_p3), [#allocation7], 1168  }
  0x58   : > { %5607 = vsyncadd (%p6625_p3), [#allocation7], 4294966128  ;;  %p603_p8 = scmp.lt.s32.totalorder %s5610_s30, 1  ;;  %vm793_vm0 = vcmask 130048   ;;  %v5625_v0 = vmov 0   ;;  %v5486_v1 = vld [vmem:[#allocation6] sm:$0xff]  }
  0x59   : > { %816 = vst.msk [vmem:[#allocation2 + $0x50] sm:$0xff] %vm793_vm0, %v5625_v0  ;;  %927 = vst.msk [vmem:[#allocation3 + $0x50] sm:$0xff] %vm793_vm0, %v5625_v0  ;;  %4991 = vmatprep.subr.bf16.mxu0 %v5486_v1  ;;  %v5487_v10 = vld [vmem:[#allocation4 + $0x8] sm:$0xff]   ;;  %v5835_v21 = vld [vmem:[#allocation4] sm:$0xff]   ;;  %vm942_vm1 = vsmask.f32 7424 }
  0x5a   : > { %s6631_s30 = smov (!%p603_p8, %s5610_s30), 1  ;;  %4992 = vmatpush3.bf16.msra.mxu0 %v5486_v1  ;;  %4829 = vmatprep.subr.bf16.mxu1 %v5487_v10  ;;  %v5838_v23 = vld [vmem:[#allocation6 + $0x8] sm:$0xff]   ;;  %vm1270_vm2 = vcmask 1046528   ;;  %vm4197_vm3 = vcmask 257024  }
  0x5b   : > { %s5805_s14 = smul.u32 80, %s6631_s30  ;;  %4830 = vmatpush3.bf16.msra.mxu1 %v5487_v10  ;;  %5009 = vmatprep.subr.bf16.mxu0 %v5838_v23 }
  0x5c   : > { %4847 = vmatprep.subr.bf16.mxu1 %v5835_v21 }
  0x5d   : > { %s5811_s27 = scalar_lea.vmem %s6607_s3, %s5805_s14  ;;  %s5817_s23 = scalar_lea.vmem %s6604_s0, %s5805_s14 }
  0x5e   : > { %v817_v2 = vld [vmem:[%s5811_s27] sm:$0xf]  ;;  %v818_v3 = vld [vmem:[%s5811_s27 + $0x4] sm:$0xf]  ;;  %v819_v4 = vld [vmem:[%s5811_s27 + $0x8] sm:$0xf] }
  0x5f   : > { %v837_v5 = vmax.bf16 %v5625_v0, %v817_v2  ;;  %v838_v6 = vmax.bf16 %v5625_v0, %v818_v3  ;;  %v820_v7 = vld [vmem:[%s5811_s27 + $0xc] sm:$0xf]  ;;  %v839_v8 = vmax.bf16 %v5625_v0, %v819_v4  ;;  %v705_v11 = vld [vmem:[%s5817_s23] sm:$0xf]  ;;  %v706_v12 = vld [vmem:[%s5817_s23 + $0x4] sm:$0xf] }
  0x60   : > { %v840_v9 = vmax.bf16 %v5625_v0, %v820_v7  ;;  %v707_v14 = vld [vmem:[%s5817_s23 + $0x8] sm:$0xf]  ;;  %v708_v15 = vld [vmem:[%s5817_s23 + $0xc] sm:$0xf]  ;;  %v725_v16 = vmax.bf16 %v5625_v0, %v705_v11  ;;  %v726_v17 = vmax.bf16 %v5625_v0, %v706_v12  ;;  %v709_v24 = vld [vmem:[%s5817_s23 + $0x10] sm:$0xf] }
  0x61   : > { %v4451_v13 = vcombine.low %v837_v5, %v838_v6  ;;  %v727_v19 = vmax.bf16 %v5625_v0, %v707_v14  ;;  %v728_v20 = vmax.bf16 %v5625_v0, %v708_v15  ;;  %s4643_s24 = sadd.s32 64, %s5805_s14  ;;  %v710_v26 = vld [vmem:[%s5817_s23 + $0x14] sm:$0xf]  ;;  %v729_v27 = vmax.bf16 %v5625_v0, %v709_v24  ;;  %v821_v28 = vld [vmem:[%s5811_s27 + $0x10] sm:$0xf]  ;;  %s4645_s21 = sadd.s32 72, %s5805_s14 }
  0x62   : > { %v4452_v18 = vcombine.low %v839_v8, %v840_v9  ;;  %v4441_v22 = vcombine.low %v725_v16, %v726_v17  ;;  %v822_v29 = vld [vmem:[%s5811_s27 + $0x14] sm:$0xf]  ;;  %v730_v30 = vmax.bf16 %v5625_v0, %v710_v26  ;;  %v841_v31 = vmax.bf16 %v5625_v0, %v821_v28  ;;  %v823_v33 = vld [vmem:[%s5811_s27 + $0x18] sm:$0xf]  ;;  %v824_v34 = vld [vmem:[%s5811_s27 + $0x1c] sm:$0xf]  ;;  %s5887_s28 = scalar_lea.vmem %s6605_s1, %s4643_s24  ;;  %s674_s16 = scalar_lea.vmem %s6608_s4, %s4643_s24 }
  0x63   : > { %905 = vst.msk [vmem:[#allocation3] sm:$0xff] %vm793_vm0, %v4451_v13  ;;  %v4442_v25 = vcombine.low %v727_v19, %v728_v20  ;;  %v842_v32 = vmax.bf16 %v5625_v0, %v822_v29  ;;  %v711_v35 = vld [vmem:[%s5817_s23 + $0x18] sm:$0xf]  ;;  %v843_v36 = vmax.bf16 %v5625_v0, %v823_v33  ;;  %v844_v37 = vmax.bf16 %v5625_v0, %v824_v34  ;;  %v712_v38 = vld [vmem:[%s5817_s23 + $0x1c] sm:$0xf]  ;;  %s689_s19 = scalar_lea.vmem %s6609_s5, %s4645_s21  ;;  %s641_s13 = scalar_lea.vmem %s6606_s2, %s4645_s21 }
  0x64   : > { %906 = vst.msk [vmem:[#allocation3 + $0x8] sm:$0xff] %vm793_vm0, %v4452_v18  ;;  %794 = vst.msk [vmem:[#allocation2] sm:$0xff] %vm793_vm0, %v4441_v22  ;;  %v731_v39 = vmax.bf16 %v5625_v0, %v711_v35  ;;  %v713_v40 = vld [vmem:[%s5817_s23 + $0x20] sm:$0xf]  ;;  %v714_v41 = vld [vmem:[%s5817_s23 + $0x24] sm:$0xf]  ;;  %v4443_v42 = vcombine.low %v729_v27, %v730_v30  ;;  %v732_v44 = vmax.bf16 %v5625_v0, %v712_v38 }
  0x65   : > { %795 = vst.msk [vmem:[#allocation2 + $0x8] sm:$0xff] %vm793_vm0, %v4442_v25  ;;  %v4453_v43 = vcombine.low %v841_v31, %v842_v32  ;;  %v733_v45 = vmax.bf16 %v5625_v0, %v713_v40  ;;  %v825_v46 = vld [vmem:[%s5811_s27 + $0x20] sm:$0xf]  ;;  %v826_v47 = vld [vmem:[%s5811_s27 + $0x24] sm:$0xf]  ;;  %v4454_v49 = vcombine.low %v843_v36, %v844_v37  ;;  %v734_v50 = vmax.bf16 %v5625_v0, %v714_v41 }
  0x66   : > { %v827_v48 = vld [vmem:[%s5811_s27 + $0x28] sm:$0xf]  ;;  %v845_v51 = vmax.bf16 %v5625_v0, %v825_v46  ;;  %v846_v52 = vmax.bf16 %v5625_v0, %v826_v47  ;;  %v828_v53 = vld [vmem:[%s5811_s27 + $0x2c] sm:$0xf]  ;;  %796 = vst.msk [vmem:[#allocation2 + $0x10] sm:$0xff] %vm793_vm0, %v4443_v42  ;;  %v4444_v56 = vcombine.low %v731_v39, %v732_v44 }
  0x67   : > { %v715_v54 = vld [vmem:[%s5817_s23 + $0x28] sm:$0xf]  ;;  %v716_v55 = vld [vmem:[%s5817_s23 + $0x2c] sm:$0xf]  ;;  %907 = vst.msk [vmem:[#allocation3 + $0x10] sm:$0xff] %vm793_vm0, %v4453_v43  ;;  %v847_v57 = vmax.bf16 %v5625_v0, %v827_v48  ;;  %v848_v58 = vmax.bf16 %v5625_v0, %v828_v53  ;;  %908 = vst.msk [vmem:[#allocation3 + $0x18] sm:$0xff] %vm793_vm0, %v4454_v49  ;;  %v4445_v1 = vcombine.low %v733_v45, %v734_v50 }
  0x68   : > { %v735_v59 = vmax.bf16 %v5625_v0, %v715_v54  ;;  %v717_v60 = vld [vmem:[%s5817_s23 + $0x30] sm:$0xf]  ;;  %v718_v61 = vld [vmem:[%s5817_s23 + $0x34] sm:$0xf]  ;;  %v4455_v2 = vcombine.low %v845_v51, %v846_v52  ;;  %v736_v3 = vmax.bf16 %v5625_v0, %v716_v55  ;;  %v831_v6 = vld [vmem:[%s5811_s27 + $0x38] sm:$0xf] }
  0x69   : > { %v829_v62 = vld [vmem:[%s5811_s27 + $0x30] sm:$0xf]  ;;  %v737_v4 = vmax.bf16 %v5625_v0, %v717_v60  ;;  %v830_v5 = vld [vmem:[%s5811_s27 + $0x34] sm:$0xf]  ;;  %797 = vst.msk [vmem:[#allocation2 + $0x18] sm:$0xff] %vm793_vm0, %v4444_v56  ;;  %v4456_v8 = vcombine.low %v847_v57, %v848_v58  ;;  %v738_v9 = vmax.bf16 %v5625_v0, %v718_v61  ;;  %798 = vst.msk [vmem:[#allocation2 + $0x20] sm:$0xff] %vm793_vm0, %v4445_v1 }
  0x6a   : > { %v5889_v63 = vld [vmem:[#allocation3] sm:$0xff]  ;;  %v849_v10 = vmax.bf16 %v5625_v0, %v829_v62  ;;  %v850_v11 = vmax.bf16 %v5625_v0, %v830_v5  ;;  %909 = vst.msk [vmem:[#allocation3 + $0x20] sm:$0xff] %vm793_vm0, %v4455_v2  ;;  %v4446_v15 = vcombine.low %v735_v59, %v736_v3  ;;  %v851_v16 = vmax.bf16 %v5625_v0, %v831_v6  ;;  %v721_v20 = vld [vmem:[%s5887_s28] sm:$0xf]  ;;  %v722_v28 = vld [vmem:[%s5887_s28 + $0x4] sm:$0xf] }
  0x6b   : > { %4993 = vmatprep.mubr.msk.bf16.mxu0 %vm793_vm0, %v5889_v63  ;;  %v5898_v7 = vld [vmem:[#allocation3 + $0x8] sm:$0xff]  ;;  %v832_v12 = vld [vmem:[%s5811_s27 + $0x3c] sm:$0xf]  ;;  %v719_v13 = vld [vmem:[%s5817_s23 + $0x38] sm:$0xf]  ;;  %910 = vst.msk [vmem:[#allocation3 + $0x28] sm:$0xff] %vm793_vm0, %v4456_v8  ;;  %v4447_v26 = vcombine.low %v737_v4, %v738_v9  ;;  %v742_v34 = vmax.bf16 %v5625_v0, %v722_v28 }
  0x6c   : > { %4994 = vmatmul.mubr.msk.bf16.vlgmr.msra.gmra.mrb[0].mxu0 %vm793_vm0, %v5898_v7  ;;  %v5908_v14 = vld [vmem:[#allocation2] sm:$0xff]  ;;  %v852_v17 = vmax.bf16 %v5625_v0, %v832_v12  ;;  %v720_v18 = vld [vmem:[%s5817_s23 + $0x3c] sm:$0xf]  ;;  %v739_v19 = vmax.bf16 %v5625_v0, %v719_v13  ;;  %v5917_v22 = vld [vmem:[#allocation2 + $0x8] sm:$0xff]  ;;  %v4457_v27 = vcombine.low %v849_v10, %v850_v11  ;;  %799 = vst.msk [vmem:[#allocation2 + $0x28] sm:$0xff] %vm793_vm0, %v4446_v15  ;;  %v2657_v1 = vshll.u32 %v5889_v63, 16 }
  0x6d   : > { %v944_v24 = vshrl.u32 %v5908_v14, 16  ;;  %v946_v25 = vshll.u32 %v5908_v14, 16  ;;  %5010 = vmatpush3.bf16.msra.mxu0 %v5838_v23  ;;  %v951_v29 = vshll.u32 %v5917_v22, 16  ;;  %v955_v30 = vshrl.u32 %v5917_v22, 16  ;;  %800 = vst.msk [vmem:[#allocation2 + $0x30] sm:$0xff] %vm793_vm0, %v4447_v26  ;;  %v5932_v36 = vld [vmem:[#allocation2 + $0x10] sm:$0xff] }
  0x6e   : > { %v4458_v31 = vcombine.low %v851_v16, %v852_v17  ;;  %v740_v32 = vmax.bf16 %v5625_v0, %v720_v18  ;;  %911 = vst.msk [vmem:[#allocation3 + $0x30] sm:$0xff] %vm793_vm0, %v4457_v27  ;;  %v741_v23 = vmax.bf16 %v5625_v0, %v721_v20  ;;  %v5934_v37 = vld [vmem:[#allocation3 + $0x10] sm:$0xff]  ;;  %v959_v41 = vshll.u32 %v5932_v36, 16  ;;  %v5942_v42 = vld [vmem:[#allocation3 + $0x18] sm:$0xff]  ;;  %v5962_v55 = vld [vmem:[#allocation4 + $0x10] sm:$0xff]   ;;  %s4650_s27 = sshll.u32 %s6631_s30, 6 }
  0x6f   : > { %v948_v33 = vrot.slane %v946_v25, 1  ;;  %v953_v35 = vrot.slane %v951_v29, 1  ;;  %v5937_v39 = vld [vmem:[#allocation6 + $0x10] sm:$0xff]   ;;  %4997 = vmatprep.mubr.msk.bf16.mxu0 %vm793_vm0, %v5934_v37  ;;  %v963_v43 = vshrl.u32 %v5932_v36, 16  ;;  %v2662_v10 = vshll.u32 %v5898_v7, 16  ;;  %s6546_s23 = scalar_lea.vmem %s6613_s9, %s4650_s27 }
  0x70   : > { %912 = vst.msk [vmem:[#allocation3 + $0x38] sm:$0xff] %vm793_vm0, %v4458_v31  ;;  %v4448_v38 = vcombine.low %v739_v19, %v740_v32  ;;  %v4449_v44 = vcombine.low %v741_v23, %v742_v34  ;;  %v5945_v46 = vld [vmem:[#allocation2 + $0x18] sm:$0xff]  ;;  %5027 = vmatprep.subr.bf16.mxu0 %v5937_v39  ;;  %v961_v48 = vrot.slane %v959_v41, 1  ;;  %v5951_v50 = vld [vmem:[#allocation2 + $0x20] sm:$0xff]  ;;  %v2655_v11 = vshrl.u32 %v5889_v63, 16 }
  0x71   : > { %v949_v40 = vor.u32 %v948_v33, %v944_v24  ;;  %v957_v45 = vor.u32 %v955_v30, %v953_v35  ;;  %v967_v49 = vshll.u32 %v5945_v46, 16  ;;  %v971_v51 = vshrl.u32 %v5945_v46, 16  ;;  %v5954_v52 = vld [vmem:[#allocation3 + $0x20] sm:$0xff]  ;;  %v833_v19 = vld [vmem:[%s674_s16] sm:$0xf] }
  0x72   : > { %801 = vst.msk [vmem:[#allocation2 + $0x38] sm:$0xff] %vm793_vm0, %v4448_v38  ;;  %808 = vst.msk [vmem:[#allocation2 + $0x40] sm:$0xff] %vm793_vm0, %v4449_v44  ;;  %v975_v53 = vshll.u32 %v5951_v50, 16  ;;  %v979_v54 = vshrl.u32 %v5951_v50, 16  ;;  %v965_v57 = vor.u32 %v963_v43, %v961_v48  ;;  %v5984_v6 = vld [vmem:[#allocation3 + $0x28] sm:$0xff]  ;;  %v2659_v12 = vrot.slane %v2657_v1, 1 }
  0x73   : > { %v954_v47 = vsel %vm942_vm1, %v949_v40, %v953_v35  ;;  %v5965_v56 = vsel %vm942_vm1, %v957_v45, %v961_v48  ;;  %v969_v58 = vrot.slane %v967_v49, 1  ;;  %v5969_v59 = vld [vmem:[#allocation2 + $0x28] sm:$0xff]  ;;  %v2664_v63 = vrot.slane %v2662_v10, 1  ;;  %v834_v24 = vld [vmem:[%s674_s16 + $0x4] sm:$0xf] }
  0x74   : > { %4831 = vmatprep.mubr.msk.bf16.mxu1 %vm793_vm0, %v954_v47  ;;  %4998 = vmatmul.mubr.msk.bf16.gmra.mrb[4].mxu0 %vm793_vm0, %v5942_v42  ;;  %v977_v60 = vrot.slane %v975_v53, 1  ;;  %v983_v61 = vshll.u32 %v5969_v59, 16  ;;  %v5974_v62 = vld [vmem:[#allocation2 + $0x30] sm:$0xff]  ;;  %v987_v15 = vshrl.u32 %v5969_v59, 16  ;;  %v2660_v25 = vor.u32 %v2659_v12, %v2655_v11  ;;  %v836_v10 = vld [vmem:[%s689_s19 + $0x4] sm:$0xf] }
  0x75   : > { %5001 = vmatprep.mubr.msk.bf16.mxu0 %vm793_vm0, %v5954_v52  ;;  %4832 = vmatmul.mubr.msk.bf16.vlgmr.msra.gmra.mrb[0].mxu1 %vm793_vm0, %v5965_v56  ;;  %v5979_v2 = vsel %vm942_vm1, %v965_v57, %v969_v58  ;;  %v973_v3 = vor.u32 %v971_v51, %v969_v58  ;;  %v991_v8 = vshll.u32 %v5974_v62, 16  ;;  %v995_v17 = vshrl.u32 %v5974_v62, 16 }
  0x76   : > { %4848 = vmatpush3.bf16.msra.mxu1 %v5835_v21  ;;  %4835 = vmatprep.mubr.msk.bf16.mxu1 %vm793_vm0, %v5979_v2  ;;  %v981_v4 = vor.u32 %v979_v54, %v977_v60  ;;  %v985_v5 = vrot.slane %v983_v61, 1  ;;  %v5995_v21 = vld [vmem:[#allocation3 + $0x30] sm:$0xff]  ;;  %v2670_v27 = vshll.u32 %v5934_v37, 16  ;;  %v853_v31 = vmax.bf16 %v5625_v0, %v833_v19 }
  0x77   : > { %4865 = vmatprep.subr.bf16.mxu1 %v5962_v55  ;;  %v5999_v13 = vsel %vm942_vm1, %v973_v3, %v977_v60  ;;  %v993_v20 = vrot.slane %v991_v8, 1  ;;  %v854_v32 = vmax.bf16 %v5625_v0, %v834_v24  ;;  %v6020_v33 = vld [vmem:[#allocation3 + $0x38] sm:$0xff]  ;;  %v2666_v23 = vshrl.u32 %v5898_v7, 16 }
  0x78   : > { %v6005_v16 = vsel %vm942_vm1, %v981_v4, %v985_v5  ;;  %v989_v26 = vor.u32 %v987_v15, %v985_v5  ;;  %v2665_v34 = vsel %vm942_vm1, %v2660_v25, %v2664_v63  ;;  %v2674_v35 = vshrl.u32 %v5934_v37, 16  ;;  %v6061_v4 = vld [vmem:[#allocation6 + $0x18] sm:$0xff]   ;;  %v835_v5 = vld [vmem:[%s689_s19] sm:$0xf] }
  0x79   : > { %v5987_v9 = vld [vmem:[#allocation2 + $0x38] sm:$0xff]  ;;  %v997_v28 = vor.u32 %v995_v17, %v993_v20  ;;  %v6016_v30 = vld [vmem:[#allocation2 + $0x40] sm:$0x1]  ;;  %v2678_v38 = vshll.u32 %v5942_v42, 16  ;;  %v4459_v40 = vcombine.low %v853_v31, %v854_v32  ;;  %v2672_v47 = vrot.slane %v2670_v27, 1 }
  0x7a   : > { %v999_v18 = vshll.u32 %v5987_v9, 16  ;;  %v6027_v41 = vsel %vm942_vm1, %v989_v26, %v993_v20  ;;  %v1003_v43 = vshrl.u32 %v5987_v9, 16  ;;  %v1007_v44 = vshll.u32 %v6016_v30, 16  ;;  %v723_v15 = vld [vmem:[%s641_s13] sm:$0xf] }
  0x7b   : > { %919 = vst.msk [vmem:[#allocation3 + $0x40] sm:$0xff] %vm793_vm0, %v4459_v40  ;;  %v2668_v48 = vor.u32 %v2666_v23, %v2664_v63  ;;  %v2676_v49 = vor.u32 %v2674_v35, %v2672_v47  ;;  %v2680_v51 = vrot.slane %v2678_v38, 1  ;;  %v2682_v57 = vshrl.u32 %v5942_v42, 16  ;;  %v724_v17 = vld [vmem:[%s641_s13 + $0x4] sm:$0xf]  ;;  %v5492_v23 = vld [vmem:[#allocation4 + $0x18] sm:$0xff]  }
  0x7c   : > { %5002 = vmatmul.mubr.msk.bf16.gmra.mrb[8].mxu0 %vm793_vm0, %v5984_v6  ;;  %v1001_v29 = vrot.slane %v999_v18, 1  ;;  %v1009_v54 = vrot.slane %v1007_v44, 1  ;;  %v2686_v58 = vshll.u32 %v5954_v52, 16  ;;  %v2690_v1 = vshrl.u32 %v5954_v52, 16 }
  0x7d   : > { %5005 = vmatprep.mubr.msk.bf16.mxu0 %vm793_vm0, %v5995_v21  ;;  %4836 = vmatmul.mubr.msk.bf16.gmra.mrb[4].mxu1 %vm793_vm0, %v5999_v13  ;;  %v6051_v60 = vsel %vm942_vm1, %v2668_v48, %v2672_v47  ;;  %v6057_v61 = vsel %vm942_vm1, %v2676_v49, %v2680_v51  ;;  %v2694_v3 = vshll.u32 %v5984_v6, 16  ;;  %v2684_v11 = vor.u32 %v2682_v57, %v2680_v51  ;;  %v2865_v49 = vld [vmem:[#allocation3] sm:$0xfe] }
  0x7e   : > { %4839 = vmatprep.mubr.msk.bf16.mxu1 %vm793_vm0, %v6005_v16  ;;  %v6034_v45 = vsel %vm942_vm1, %v997_v28, %v1001_v29  ;;  %v6043_v53 = vor.u32 %v1003_v43, %v1001_v29  ;;  %v6067_v12 = vrot.slane %v2686_v58, 1  ;;  %v855_v18 = vmax.bf16 %v5625_v0, %v835_v5  ;;  %v1257_v5 = vld [vmem:[#allocation2] sm:$0xfe] }
  0x7f   : > { %v2696_v20 = vrot.slane %v2694_v3, 1  ;;  %v856_v63 = vmax.bf16 %v5625_v0, %v836_v10  ;;  %v743_v24 = vmax.bf16 %v5625_v0, %v723_v15  ;;  %v744_v25 = vmax.bf16 %v5625_v0, %v724_v17 }
  0x80   : > { %v1010_v8 = vsel %vm942_vm1, %v6043_v53, %v1009_v54  ;;  %v6075_v19 = vor.u32 %v2690_v1, %v6067_v12  ;;  %v6086_v27 = vsel %vm942_vm1, %v2684_v11, %v6067_v12  ;;  %v2698_v28 = vshrl.u32 %v5984_v6, 16 }
  0x81   : > { %v4460_v26 = vcombine.low %v855_v18, %v856_v63  ;;  %v4450_v29 = vcombine.low %v743_v24, %v744_v25  ;;  %v2710_v32 = vshll.u32 %v6020_v33, 16  ;;  %v2714_v44 = vshrl.u32 %v6020_v33, 16  ;;  %v5495_v18 = vld [vmem:[#allocation6 + $0x20] sm:$0xff]  }
  0x82   : > { %v6091_v31 = vsel %vm942_vm1, %v6075_v19, %v2696_v20  ;;  %v6106_v40 = vld [vmem:[#allocation3 + $0x40] sm:$0x1]  ;;  %v2878_v54 = vrot.slane %v2865_v49, 1  ;;  %v2879_v57 = vrot.slane %v5898_v7, 1  ;;  %v6137_v3 = vrot.slane %v5934_v37, 1 }
  0x83   : > { %926 = vst.msk [vmem:[#allocation3 + $0x48] sm:$0xff] %vm793_vm0, %v4460_v26  ;;  %815 = vst.msk [vmem:[#allocation2 + $0x48] sm:$0xff] %vm793_vm0, %v4450_v29  ;;  %v2712_v38 = vrot.slane %v2710_v32, 1  ;;  %v2718_v47 = vshll.u32 %v6106_v40, 16  ;;  %v1271_v10 = vrot.slane %v1257_v5, 1  ;;  %v1272_v11 = vrot.slane %v5917_v22, 1 }
  0x84   : > { %5006 = vmatmul.mubr.msk.bf16.gmra.mrb[12].mxu0 %vm793_vm0, %v6020_v33  ;;  %v2880_v1 = vsel %vm1270_vm2, %v2878_v54, %v2879_v57  ;;  %v2882_v15 = vsel %vm1270_vm2, %v2879_v57, %v6137_v3  ;;  %v6157_v63 = vrot.slane %v5954_v52, 1  ;;  %v2887_v24 = vrot.slane %v5984_v6, 1 }
  0x85   : > { %5011 = vmatprep.mubr.msk.bf16.mxu0 %vm793_vm0, %v2665_v34  ;;  %4840 = vmatmul.mubr.msk.bf16.gmra.mrb[8].mxu1 %vm793_vm0, %v6027_v41  ;;  %v2700_v34 = vor.u32 %v2698_v28, %v2696_v20  ;;  %v2720_v51 = vrot.slane %v2718_v47, 1  ;;  %v1273_v20 = vsel %vm1270_vm2, %v1271_v10, %v1272_v11  ;;  %v6164_v25 = vrot.slane %v5932_v36, 1 }
  0x86   : > { %4843 = vmatprep.mubr.msk.bf16.mxu1 %vm793_vm0, %v6034_v45  ;;  %v6186_v32 = vrot.slane %v5995_v21, 1  ;;  %v1282_v54 = vrot.slane %v5974_v62, 1  ;;  %v6222_v57 = vrot.slane %v5987_v9, 1  ;;  %v1286_v5 = vrot.slane %v6016_v30, 1  ;;  %v5499_v30 = vld [vmem:[#allocation6 + $0x30] sm:$0xff]  }
  0x87   : > { %v1275_v28 = vsel %vm1270_vm2, %v1272_v11, %v6164_v25  ;;  %v6276_v11 = vld [vmem:[#allocation2 + $0x40] sm:$0xff] }
  0x88   : > { %v1287_v10 = vsel %vm1270_vm2, %v6222_v57, %v1286_v5 }
  0x8c   : > { %5012 = vmatmul.mubr.msk.bf16.vlgmr.msra.gmra.mrb[0].mxu0 %vm793_vm0, %v6051_v60 }
  0x8d   : > { %5015 = vmatprep.mubr.msk.bf16.mxu0 %vm793_vm0, %v6057_v61  ;;  %5028 = vmatpush3.bf16.msra.mxu0 %v5937_v39  ;;  %v2702_v39 = vshll.u32 %v5995_v21, 16 }
  0x8e   : > { %4844 = vmatmul.mubr.msk.bf16.gmra.mrb[12].mxu1 %vm793_vm0, %v1010_v8  ;;  %5045 = vmatprep.subr.bf16.mxu0 %v6061_v4  ;;  %v2883_v8 = vrot.slane %v5942_v42, 1 }
  0x8f   : > { %4849 = vmatprep.mubr.msk.bf16.mxu1 %vm793_vm0, %v5908_v14  ;;  %v2706_v14 = vshrl.u32 %v5995_v21, 16  ;;  %v6099_v0 = vrot.slane %v2702_v39, 1  ;;  %v1276_v39 = vrot.slane %v5945_v46, 1 }
  0x90   : > { %v6149_v17 = vsel %vm1270_vm2, %v6137_v3, %v2883_v8  ;;  %v6169_v26 = vsel %vm1270_vm2, %v2883_v8, %v6157_v63  ;;  %v5497_v8 = vld [vmem:[#allocation6 + $0x28] sm:$0xff]  }
  0x91   : > { %v2708_v35 = vor.u32 %v2706_v14, %v6099_v0  ;;  %v6113_v43 = vsel %vm942_vm1, %v2700_v34, %v6099_v0  ;;  %v6181_v29 = vsel %vm1270_vm2, %v6164_v25, %v1276_v39  ;;  %v5494_v14 = vld [vmem:[#allocation4 + $0x20] sm:$0xff]   ;;  %v6190_v34 = vrot.slane %v6020_v33, 1 }
  0x93   : > { %v6118_v48 = vsel %vm942_vm1, %v2708_v35, %v2712_v38  ;;  %v1278_v35 = vrot.slane %v5951_v50, 1  ;;  %v6203_v47 = vsel %vm1270_vm2, %v6186_v32, %v6190_v34 }
  0x94   : > { %5016 = vmatmul.mubr.msk.bf16.gmra.mrb[4].mxu0 %vm793_vm0, %v6086_v27 }
  0x95   : > { %5019 = vmatprep.mubr.msk.bf16.mxu0 %vm793_vm0, %v6091_v31  ;;  %v6206_v49 = vsel %vm1270_vm2, %v1276_v39, %v1278_v35  ;;  %v1565_v39 = vld [vmem:[#allocation2 + $0x48] sm:$0x1] }
  0x96   : > { %4850 = vmatmul.mubr.msk.bf16.vlgmr.msra.gmra.mrb[0].mxu1 %vm793_vm0, %v5917_v22 }
  0x97   : > { %4866 = vmatpush3.bf16.msra.mxu1 %v5962_v55  ;;  %4853 = vmatprep.mubr.msk.bf16.mxu1 %vm793_vm0, %v5932_v36  ;;  %v6124_v55 = vor.u32 %v2714_v44, %v2712_v38  ;;  %v1280_v38 = vrot.slane %v5969_v59, 1  ;;  %v6198_v44 = vsel %vm1270_vm2, %v2887_v24, %v6186_v32 }
  0x98   : > { %4883 = vmatprep.subr.bf16.mxu1 %v5492_v23 }
  0x99   : > { %v2721_v58 = vsel %vm942_vm1, %v6124_v55, %v2720_v51  ;;  %v2893_v51 = vrot.slane %v6106_v40, 1  ;;  %v6232_v40 = vsel %vm1270_vm2, %v1282_v54, %v6222_v57 }
  0x9c   : > { %5020 = vmatmul.mubr.msk.bf16.gmra.mrb[8].mxu0 %vm793_vm0, %v6113_v43 }
  0x9d   : > { %5023 = vmatprep.mubr.msk.bf16.mxu0 %vm793_vm0, %v6118_v48 }
  0x9e   : > { %4854 = vmatmul.mubr.msk.bf16.gmra.mrb[4].mxu1 %vm793_vm0, %v5945_v46 }
  0x9f   : > { %4857 = vmatprep.mubr.msk.bf16.mxu1 %vm793_vm0, %v5951_v50 }
  0xa4   : > { %5024 = vmatmul.mubr.msk.bf16.gmra.mrb[12].mxu0 %vm793_vm0, %v2721_v58  ;;  %v2894_v58 = vsel %vm1270_vm2, %v6190_v34, %v2893_v51 }
  0xa5   : > { %5029 = vmatprep.mubr.msk.bf16.mxu0 %vm793_vm0, %v2880_v1  ;;  %v6227_v1 = vsel %vm1270_vm2, %v1280_v38, %v1282_v54 }
  0xa6   : > { %4858 = vmatmul.mubr.msk.bf16.gmra.mrb[8].mxu1 %vm793_vm0, %v5969_v59 }
  0xa7   : > { %4861 = vmatprep.mubr.msk.bf16.mxu1 %vm793_vm0, %v5974_v62 }
  0xac   : > { %5030 = vmatmul.mubr.msk.bf16.vlgmr.msra.gmra.mrb[0].mxu0 %vm793_vm0, %v2882_v15  ;;  %v5498_v15 = vld [vmem:[#allocation4 + $0x30] sm:$0xff]  }
  0xad   : > { %5033 = vmatprep.mubr.msk.bf16.mxu0 %vm793_vm0, %v6149_v17  ;;  %5046 = vmatpush3.bf16.msra.mxu0 %v6061_v4  ;;  %v6173_v4 = vsel %vm1270_vm2, %v6157_v63, %v2887_v24 }
  0xae   : > { %4862 = vmatmul.mubr.msk.bf16.gmra.mrb[12].mxu1 %vm793_vm0, %v5987_v9  ;;  %5063 = vmatprep.subr.bf16.mxu0 %v5495_v18 }
  0xaf   : > { %4867 = vmatprep.mubr.msk.bf16.mxu1 %vm793_vm0, %v1273_v20  ;;  %v3401_v20 = vld [vmem:[#allocation3 + $0x8] sm:$0xfe] }
  0xb0   : > { %v3414_v24 = vrot.slane %v3401_v20, 1 }
  0xb4   : > { %5034 = vmatmul.mubr.msk.bf16.gmra.mrb[4].mxu0 %vm793_vm0, %v6169_v26 }
  0xb5   : > { %5037 = vmatprep.mubr.msk.bf16.mxu0 %vm793_vm0, %v6173_v4 }
  0xb6   : > { %4868 = vmatmul.mubr.msk.bf16.vlgmr.msra.gmra.mrb[0].mxu1 %vm793_vm0, %v1275_v28 }
  0xb7   : > { %4884 = vmatpush3.bf16.msra.mxu1 %v5492_v23  ;;  %4871 = vmatprep.mubr.msk.bf16.mxu1 %vm793_vm0, %v6181_v29  ;;  %v6211_v23 = vsel %vm1270_vm2, %v1278_v35, %v1280_v38  ;;  %v1629_v35 = vshrl.u32 %v6276_v11, 16  ;;  %v1633_v38 = vshll.u32 %v1565_v39, 16 }
  0xb8   : > { %4901 = vmatprep.subr.bf16.mxu1 %v5494_v14 }
  0xbc   : > { %5038 = vmatmul.mubr.msk.bf16.gmra.mrb[8].mxu0 %vm793_vm0, %v6198_v44 }
  0xbd   : > { %5041 = vmatprep.mubr.msk.bf16.mxu0 %vm793_vm0, %v6203_v47 }
  0xbe   : > { %4872 = vmatmul.mubr.msk.bf16.gmra.mrb[4].mxu1 %vm793_vm0, %v6206_v49 }
  0xbf   : > { %4875 = vmatprep.mubr.msk.bf16.mxu1 %vm793_vm0, %v6211_v23 }
  0xc4   : > { %5042 = vmatmul.mubr.msk.bf16.gmra.mrb[12].mxu0 %vm793_vm0, %v2894_v58  ;;  %v5501_v58 = vld [vmem:[#allocation6 + $0x38] sm:$0xff]  }
  0xc5   : > { %5047 = vmatprep.mubr.msk.bf16.mxu0 %vm793_vm0, %v5898_v7  ;;  %v5496_v7 = vld [vmem:[#allocation4 + $0x28] sm:$0xff]  }
  0xc6   : > { %4876 = vmatmul.mubr.msk.bf16.gmra.mrb[8].mxu1 %vm793_vm0, %v6227_v1 }
  0xc7   : > { %4879 = vmatprep.mubr.msk.bf16.mxu1 %vm793_vm0, %v6232_v40 }
  0xcc   : > { %5048 = vmatmul.mubr.msk.bf16.vlgmr.msra.gmra.mrb[0].mxu0 %vm793_vm0, %v5934_v37 }
  0xcd   : > { %5051 = vmatprep.mubr.msk.bf16.mxu0 %vm793_vm0, %v5942_v42  ;;  %5064 = vmatpush3.bf16.msra.mxu0 %v5495_v18 }
  0xce   : > { %4880 = vmatmul.mubr.msk.bf16.gmra.mrb[12].mxu1 %vm793_vm0, %v1287_v10  ;;  %5081 = vmatprep.subr.bf16.mxu0 %v5497_v8  ;;  %v6410_v10 = vld [vmem:[#allocation3 + $0x48] sm:$0xff] }
  0xcf   : > { %4885 = vmatprep.mubr.msk.bf16.mxu1 %vm793_vm0, %v5917_v22  ;;  %v6266_v22 = vld [vmem:[#allocation3 + $0x40] sm:$0xff] }
  0xd4   : > { %5052 = vmatmul.mubr.msk.bf16.gmra.mrb[4].mxu0 %vm793_vm0, %v5954_v52 }
  0xd5   : > { %5055 = vmatprep.mubr.msk.bf16.mxu0 %vm793_vm0, %v5984_v6 }
  0xd6   : > { %4886 = vmatmul.mubr.msk.bf16.vlgmr.msra.gmra.mrb[0].mxu1 %vm793_vm0, %v5932_v36 }
  0xd7   : > { %4902 = vmatpush3.bf16.msra.mxu1 %v5494_v14  ;;  %4889 = vmatprep.mubr.msk.bf16.mxu1 %vm793_vm0, %v5945_v46  ;;  %v3416_v14 = vsel %vm1270_vm2, %v3414_v24, %v6137_v3  ;;  %v1635_v3 = vrot.slane %v1633_v38, 1 }
  0xd8   : > { %4919 = vmatprep.subr.bf16.mxu1 %v5496_v7 }
  0xdc   : > { %5056 = vmatmul.mubr.msk.bf16.gmra.mrb[8].mxu0 %vm793_vm0, %v5995_v21 }
  0xdd   : > { %5059 = vmatprep.mubr.msk.bf16.mxu0 %vm793_vm0, %v6020_v33 }
  0xde   : > { %4890 = vmatmul.mubr.msk.bf16.gmra.mrb[4].mxu1 %vm793_vm0, %v5951_v50 }
  0xdf   : > { %4893 = vmatprep.mubr.msk.bf16.mxu1 %vm793_vm0, %v5969_v59 }
  0xe4   : > { %5060 = vmatmul.mubr.msk.bf16.gmra.mrb[12].mxu0 %vm793_vm0, %v6266_v22 }
  0xe5   : > { %5065 = vmatprep.mubr.msk.bf16.mxu0 %vm793_vm0, %v6051_v60  ;;  %v3246_v60 = vshll.u32 %v6266_v22, 16 }
  0xe6   : > { %4894 = vmatmul.mubr.msk.bf16.gmra.mrb[8].mxu1 %vm793_vm0, %v5974_v62 }
  0xe7   : > { %4897 = vmatprep.mubr.msk.bf16.mxu1 %vm793_vm0, %v5987_v9 }
  0xec   : > { %5066 = vmatmul.mubr.msk.bf16.vlgmr.msra.gmra.mrb[0].mxu0 %vm793_vm0, %v6057_v61  ;;  %v3248_v61 = vrot.slane %v3246_v60, 1 }
  0xed   : > { %5069 = vmatprep.mubr.msk.bf16.mxu0 %vm793_vm0, %v6086_v27  ;;  %5082 = vmatpush3.bf16.msra.mxu0 %v5497_v8  ;;  %v3186_v27 = vld [vmem:[#allocation3 + $0x48] sm:$0x1] }
  0xee   : > { %4898 = vmatmul.mubr.msk.bf16.gmra.mrb[12].mxu1 %vm793_vm0, %v6276_v11  ;;  %5099 = vmatprep.subr.bf16.mxu0 %v5499_v30  ;;  %v3254_v18 = vshll.u32 %v3186_v27, 16 }
  0xef   : > { %4903 = vmatprep.mubr.msk.bf16.mxu1 %vm793_vm0, %v5965_v56  ;;  %v3250_v56 = vshrl.u32 %v6266_v22, 16 }
  0xf4   : > { %5070 = vmatmul.mubr.msk.bf16.gmra.mrb[4].mxu0 %vm793_vm0, %v6091_v31  ;;  %v6298_v31 = vsel %vm942_vm1, %v6124_v55, %v3248_v61 }
  0xf5   : > { %5073 = vmatprep.mubr.msk.bf16.mxu0 %vm793_vm0, %v6113_v43  ;;  %v6305_v43 = vor.u32 %v3250_v56, %v3248_v61 }
  0xf6   : > { %4904 = vmatmul.mubr.msk.bf16.vlgmr.msra.gmra.mrb[0].mxu1 %vm793_vm0, %v5979_v2  ;;  %v1625_v2 = vshll.u32 %v6276_v11, 16 }
  0xf7   : > { %4920 = vmatpush3.bf16.msra.mxu1 %v5496_v7  ;;  %4907 = vmatprep.mubr.msk.bf16.mxu1 %vm793_vm0, %v5999_v13  ;;  %v3256_v13 = vrot.slane %v3254_v18, 1 }
  0xf8   : > { %4937 = vmatprep.subr.bf16.mxu1 %v5498_v15  ;;  %v6311_v55 = vrot.slane %v1625_v2, 1 }
  0xf9   : > { %v3257_v28 = vsel %vm942_vm1, %v6305_v43, %v3256_v13  ;;  %v6430_v13 = vld [vmem:[#allocation2 + $0x28] sm:$0xff] }
  0xfa   : > { %v6327_v51 = vor.u32 %v1629_v35, %v6311_v55 }
  0xfc   : > { %5074 = vmatmul.mubr.msk.bf16.gmra.mrb[8].mxu0 %vm793_vm0, %v6118_v48  ;;  %v1636_v5 = vsel %vm942_vm1, %v6327_v51, %v1635_v3 }
  0xfd   : > { %5077 = vmatprep.mubr.msk.bf16.mxu0 %vm793_vm0, %v6298_v31 }
  0xfe   : > { %4908 = vmatmul.mubr.msk.bf16.gmra.mrb[4].mxu1 %vm793_vm0, %v6005_v16  ;;  %v1628_v16 = vsel %vm942_vm1, %v6043_v53, %v6311_v55 }
  0xff   : > { %4911 = vmatprep.mubr.msk.bf16.mxu1 %vm793_vm0, %v6027_v41  ;;  %v1780_v41 = vld [vmem:[#allocation2 + $0x8] sm:$0xfe] }
 0x100   : > { %v1793_v54 = vrot.slane %v1780_v41, 1 }
 0x102   : > { %v1795_v53 = vsel %vm1270_vm2, %v1793_v54, %v6164_v25 }
 0x104   : > { %5078 = vmatmul.mubr.msk.bf16.gmra.mrb[12].mxu0 %vm793_vm0, %v3257_v28 }
 0x105   : > { %5083 = vmatprep.mubr.msk.bf16.mxu0 %vm793_vm0, %v3416_v14 }
 0x106   : > { %4912 = vmatmul.mubr.msk.bf16.gmra.mrb[8].mxu1 %vm793_vm0, %v6034_v45  ;;  %v5500_v45 = vld [vmem:[#allocation4 + $0x38] sm:$0xff]  }
 0x107   : > { %4915 = vmatprep.mubr.msk.bf16.mxu1 %vm793_vm0, %v1628_v16  ;;  %v6446_v16 = vld [vmem:[#allocation2 + $0x30] sm:$0xff] }
 0x10c   : > { %5084 = vmatmul.mubr.msk.bf16.vlgmr.msra.gmra.mrb[0].mxu0 %vm793_vm0, %v6149_v17  ;;  %v6346_v17 = vrot.slane %v6266_v22, 1 }
 0x10d   : > { %5087 = vmatprep.mubr.msk.bf16.mxu0 %vm793_vm0, %v6169_v26  ;;  %5100 = vmatpush3.bf16.msra.mxu0 %v5499_v30  ;;  %v3429_v26 = vrot.slane %v3186_v27, 1  ;;  %v6425_v27 = vld [vmem:[#allocation2 + $0x20] sm:$0xff] }
 0x10e   : > { %4916 = vmatmul.mubr.msk.bf16.gmra.mrb[12].mxu1 %vm793_vm0, %v1636_v5  ;;  %5117 = vmatprep.subr.bf16.mxu0 %v5501_v58  ;;  %v6353_v25 = vsel %vm1270_vm2, %v6190_v34, %v6346_v17  ;;  %v2121_v24 = vshll.u32 %v6425_v27, 16  ;;  %v2125_v14 = vshrl.u32 %v6425_v27, 16  ;;  %v2137_v5 = vshll.u32 %v6446_v16, 16 }
 0x10f   : > { %4921 = vmatprep.mubr.msk.bf16.mxu1 %vm793_vm0, %v1795_v53  ;;  %v3782_v53 = vshll.u32 %v6410_v10, 16 }
 0x114   : > { %5088 = vmatmul.mubr.msk.bf16.gmra.mrb[4].mxu0 %vm793_vm0, %v6173_v4  ;;  %v6364_v4 = vrot.slane %v6276_v11, 1 }
 0x115   : > { %5091 = vmatprep.mubr.msk.bf16.mxu0 %vm793_vm0, %v6198_v44  ;;  %v1808_v44 = vrot.slane %v1565_v39, 1  ;;  %v6435_v39 = vld [vmem:[#allocation2 + $0x48] sm:$0xff] }
 0x116   : > { %4922 = vmatmul.mubr.msk.bf16.vlgmr.msra.gmra.mrb[0].mxu1 %vm793_vm0, %v6181_v29  ;;  %v3430_v29 = vsel %vm1270_vm2, %v6346_v17, %v3429_v26  ;;  %v1807_v34 = vsel %vm1270_vm2, %v6222_v57, %v6364_v4  ;;  %v6388_v57 = vld [vmem:[#allocation4 + $0x40] sm:$0xff]   ;;  %v2133_v26 = vshrl.u32 %v6430_v13, 16 }
 0x117   : > { %4938 = vmatpush3.bf16.msra.mxu1 %v5498_v15  ;;  %4925 = vmatprep.mubr.msk.bf16.mxu1 %vm793_vm0, %v6206_v49  ;;  %v5503_v49 = vld [vmem:[#allocation6 + $0x40] sm:$0xff]  }
 0x118   : > { %4955 = vmatprep.subr.bf16.mxu1 %v5500_v45 }
 0x11c   : > { %5092 = vmatmul.mubr.msk.bf16.gmra.mrb[8].mxu0 %vm793_vm0, %v6203_v47 }
 0x11d   : > { %5095 = vmatprep.mubr.msk.bf16.mxu0 %vm793_vm0, %v6353_v25 }
 0x11e   : > { %4926 = vmatmul.mubr.msk.bf16.gmra.mrb[4].mxu1 %vm793_vm0, %v6211_v23  ;;  %v1809_v23 = vsel %vm1270_vm2, %v6364_v4, %v1808_v44 }
 0x11f   : > { %4929 = vmatprep.mubr.msk.bf16.mxu1 %vm793_vm0, %v6227_v1 }
 0x124   : > { %5096 = vmatmul.mubr.msk.bf16.gmra.mrb[12].mxu0 %vm793_vm0, %v3430_v29 }
 0x125   : > { %5101 = vmatprep.mubr.msk.bf16.mxu0 %vm793_vm0, %v5934_v37  ;;  %v3714_v37 = vld [vmem:[#allocation3 + $0x10] sm:$0xff] }
 0x126   : > { %4930 = vmatmul.mubr.msk.bf16.gmra.mrb[8].mxu1 %vm793_vm0, %v6232_v40  ;;  %v6408_v40 = vld [vmem:[#allocation3 + $0x28] sm:$0xff] }
 0x127   : > { %4933 = vmatprep.mubr.msk.bf16.mxu1 %vm793_vm0, %v1807_v34  ;;  %v3750_v30 = vshll.u32 %v6408_v40, 16  ;;  %v3754_v2 = vshrl.u32 %v6408_v40, 16  ;;  %v2141_v34 = vshrl.u32 %v6446_v16, 16 }
 0x129   : > { %v3752_v61 = vrot.slane %v3750_v30, 1 }
 0x12b   : > { %v3756_v35 = vor.u32 %v3754_v2, %v3752_v61  ;;  %v3955_v2 = vrot.slane %v6408_v40, 1  ;;  %v2332_v40 = vrot.slane %v6425_v27, 1  ;;  %v2336_v27 = vrot.slane %v6446_v16, 1 }
 0x12c   : > { %5102 = vmatmul.mubr.msk.bf16.vlgmr.msra.gmra.mrb[0].mxu0 %vm793_vm0, %v5942_v42  ;;  %v3729_v42 = vshll.u32 %v3714_v37, 16  ;;  %v2342_v16 = vrot.slane %v6435_v39, 1 }
 0x12d   : > { %5105 = vmatprep.mubr.msk.bf16.mxu0 %vm793_vm0, %v5954_v52  ;;  %5118 = vmatpush3.bf16.msra.mxu0 %v5501_v58  ;;  %v6396_v52 = vld [vmem:[#allocation3 + $0x18] sm:$0xff]  ;;  %v3761_v54 = vsel %vm942_vm1, %v3756_v35, %v6099_v0  ;;  %v6450_v58 = vld [vmem:[#allocation2 + $0x38] sm:$0xff]  ;;  %v2139_v0 = vrot.slane %v2137_v5, 1  ;;  %v3958_v35 = vsel %vm1270_vm2, %v3955_v2, %v6186_v32 }
 0x12e   : > { %4934 = vmatmul.mubr.msk.bf16.gmra.mrb[12].mxu1 %vm793_vm0, %v1809_v23  ;;  %5135 = vmatprep.subr.bf16.mxu0 %v5503_v49  ;;  %v3731_v1 = vrot.slane %v3729_v42, 1  ;;  %v3738_v7 = vshrl.u32 %v6396_v52, 16  ;;  %v2145_v44 = vshll.u32 %v6450_v58, 16  ;;  %v6463_v23 = vld [vmem:[#allocation3 + $0x50] sm:$0x1] }
 0x12f   : > { %4939 = vmatprep.mubr.msk.bf16.mxu1 %vm793_vm0, %v5932_v36  ;;  %v3727_v36 = vshrl.u32 %v3714_v37, 16  ;;  %v2143_v42 = vor.u32 %v2141_v34, %v2139_v0 }
 0x134   : > { %5106 = vmatmul.mubr.msk.bf16.gmra.mrb[4].mxu0 %vm793_vm0, %v5984_v6  ;;  %v3734_v6 = vshll.u32 %v6396_v52, 16 }
 0x135   : > { %5109 = vmatprep.mubr.msk.bf16.mxu0 %vm793_vm0, %v5995_v21  ;;  %v3732_v21 = vor.u32 %v3731_v1, %v3727_v36  ;;  %v2147_v36 = vrot.slane %v2145_v44, 1  ;;  %v3786_v1 = vshrl.u32 %v6410_v10, 16  ;;  %v6539_v44 = vld [vmem:[#allocation8] ss:$0 sm:$0xff] }
 0x136   : > { %4940 = vmatmul.mubr.msk.bf16.vlgmr.msra.gmra.mrb[0].mxu1 %vm793_vm0, %v5945_v46  ;;  %v2093_v46 = vld [vmem:[#allocation2 + $0x10] sm:$0xff] }
 0x137   : > { %4956 = vmatpush3.bf16.msra.mxu1 %v5500_v45  ;;  %4943 = vmatprep.mubr.msk.bf16.mxu1 %vm793_vm0, %v5951_v50  ;;  %v3736_v50 = vrot.slane %v3734_v6, 1  ;;  %v2108_v8 = vshll.u32 %v2093_v46, 16  ;;  %v3790_v6 = vshll.u32 %v6463_v23, 16 }
 0x138   : > { %4973 = vmatprep.subr.bf16.mxu1 %v6388_v57 }
 0x139   : > { %v2110_v60 = vrot.slane %v2108_v8, 1  ;;  %v3740_v15 = vor.u32 %v3738_v7, %v3736_v50  ;;  %v2161_v8 = vshll.u32 %v6435_v39, 16 }
 0x13b   : > { %v3745_v20 = vsel %vm942_vm1, %v3740_v15, %v6067_v12  ;;  %v2129_v12 = vshll.u32 %v6430_v13, 16 }
 0x13c   : > { %5110 = vmatmul.mubr.msk.bf16.gmra.mrb[8].mxu0 %vm793_vm0, %v6020_v33  ;;  %v6413_v33 = vld [vmem:[#allocation2 + $0x18] sm:$0xff] }
 0x13d   : > { %5113 = vmatprep.mubr.msk.bf16.mxu0 %vm793_vm0, %v6266_v22  ;;  %v3737_v22 = vsel %vm942_vm1, %v3732_v21, %v3736_v50  ;;  %v2131_v3 = vrot.slane %v2129_v12, 1  ;;  %v2149_v21 = vshrl.u32 %v6450_v58, 16  ;;  %v3937_v50 = vld [vmem:[#allocation3 + $0x10] sm:$0xfe] }
 0x13e   : > { %4944 = vmatmul.mubr.msk.bf16.gmra.mrb[4].mxu1 %vm793_vm0, %v5969_v59  ;;  %v2106_v59 = vshrl.u32 %v2093_v46, 16  ;;  %v3950_v30 = vrot.slane %v3937_v50, 1 }
 0x13f   : > { %4947 = vmatprep.mubr.msk.bf16.mxu1 %vm793_vm0, %v5974_v62  ;;  %v2113_v62 = vshll.u32 %v6413_v33, 16  ;;  %v2135_v37 = vor.u32 %v2133_v26, %v2131_v3 }
 0x140   : > { %v2111_v56 = vor.u32 %v2110_v60, %v2106_v59  ;;  %v2151_v59 = vor.u32 %v2149_v21, %v2147_v36  ;;  %v2163_v60 = vrot.slane %v2161_v8, 1 }
 0x141   : > { %v2115_v18 = vrot.slane %v2113_v62, 1  ;;  %v2140_v46 = vsel %vm942_vm1, %v2135_v37, %v2139_v0  ;;  %v2101_v62 = vld [vmem:[#allocation2 + $0x50] sm:$0x1] }
 0x143   : > { %v2116_v28 = vsel %vm942_vm1, %v2111_v56, %v2115_v18  ;;  %v2165_v56 = vshrl.u32 %v6435_v39, 16 }
 0x144   : > { %5114 = vmatmul.mubr.msk.bf16.gmra.mrb[12].mxu0 %vm793_vm0, %v6410_v10 }
 0x145   : > { %5119 = vmatprep.mubr.msk.bf16.mxu0 %vm793_vm0, %v3737_v22  ;;  %v3792_v22 = vrot.slane %v3790_v6, 1 }
 0x146   : > { %4948 = vmatmul.mubr.msk.bf16.gmra.mrb[8].mxu1 %vm793_vm0, %v5987_v9  ;;  %v3753_v9 = vsel %vm942_vm1, %v6075_v19, %v3752_v61  ;;  %v2123_v19 = vrot.slane %v2121_v24, 1  ;;  %v2156_v61 = vsel %vm942_vm1, %v2151_v59, %v6311_v55  ;;  %v2167_v24 = vor.u32 %v2165_v56, %v2163_v60 }
 0x147   : > { %4951 = vmatprep.mubr.msk.bf16.mxu1 %vm793_vm0, %v6276_v11  ;;  %v2117_v11 = vshrl.u32 %v6413_v33, 16 }
 0x148   : > { %v2127_v41 = vor.u32 %v2125_v14, %v2123_v19 }
 0x149   : > { %v2119_v38 = vor.u32 %v2117_v11, %v2115_v18  ;;  %v2169_v18 = vshll.u32 %v2101_v62, 16  ;;  %v2330_v11 = vrot.slane %v6413_v33, 1  ;;  %v2334_v33 = vrot.slane %v6430_v13, 1 }
 0x14a   : > { %v2132_v29 = vsel %vm942_vm1, %v2127_v41, %v2131_v3  ;;  %v2338_v13 = vrot.slane %v6450_v58, 1 }
 0x14b   : > { %v2124_v45 = vsel %vm942_vm1, %v2119_v38, %v2123_v19  ;;  %v2335_v19 = vsel %vm1270_vm2, %v2332_v40, %v2334_v33  ;;  %v3963_v38 = vrot.slane %v6410_v10, 1  ;;  %v2337_v41 = vsel %vm1270_vm2, %v2334_v33, %v2336_v27 }
 0x14c   : > { %5120 = vmatmul.mubr.msk.bf16.vlgmr.msra.gmra.mrb[0].mxu0 %vm793_vm0, %v3745_v20  ;;  %v2316_v20 = vld [vmem:[#allocation2 + $0x10] sm:$0xfe]  ;;  %v3965_v10 = vrot.slane %v6463_v23, 1 }
 0x14d   : > { %5123 = vmatprep.mubr.msk.bf16.mxu0 %vm793_vm0, %v3753_v9  ;;  %5136 = vmatpush3.bf16.msra.mxu0 %v5503_v49  ;;  %v3784_v49 = vrot.slane %v3782_v53, 1  ;;  %v2171_v9 = vrot.slane %v2169_v18, 1  ;;  %v2329_v55 = vrot.slane %v2316_v20, 1  ;;  %v3964_v32 = vsel %vm1270_vm2, %v6346_v17, %v3963_v38 }
 0x14e   : > { %4952 = vmatmul.mubr.msk.bf16.gmra.mrb[12].mxu1 %vm793_vm0, %v6435_v39  ;;  %v3966_v3 = vsel %vm1270_vm2, %v3963_v38, %v3965_v10  ;;  %v2341_v17 = vsel %vm1270_vm2, %v2338_v13, %v6364_v4 }
 0x14f   : > { %4957 = vmatprep.mubr.msk.bf16.mxu1 %vm793_vm0, %v2116_v28  ;;  %v3788_v7 = vor.u32 %v3786_v1, %v3784_v49  ;;  %v2172_v14 = vsel %vm942_vm1, %v2167_v24, %v2171_v9  ;;  %v2331_v12 = vsel %vm1270_vm2, %v2329_v55, %v2330_v11 }
 0x154   : > { %5124 = vmatmul.mubr.msk.bf16.gmra.mrb[4].mxu0 %vm793_vm0, %v3761_v54  ;;  %v2344_v54 = vrot.slane %v2101_v62, 1 }
 0x155   : > { %5127 = vmatprep.mubr.msk.bf16.mxu0 %vm793_vm0, %v6118_v48  ;;  %v3785_v48 = vsel %vm942_vm1, %v6305_v43, %v3784_v49  ;;  %v3951_v43 = vrot.slane %v6396_v52, 1  ;;  %v2164_v52 = vsel %vm942_vm1, %v6327_v51, %v2163_v60  ;;  %v3956_v51 = vsel %vm1270_vm2, %v6157_v63, %v3955_v2 }
 0x156   : > { %4958 = vmatmul.mubr.msk.bf16.vlgmr.msra.gmra.mrb[0].mxu1 %vm793_vm0, %v2124_v45  ;;  %v2345_v58 = vsel %vm1270_vm2, %v2342_v16, %v2344_v54 }
 0x157   : > { %4974 = vmatpush3.bf16.msra.mxu1 %v6388_v57  ;;  %4961 = vmatprep.mubr.msk.bf16.mxu1 %vm793_vm0, %v2132_v29  ;;  %v2148_v57 = vsel %vm942_vm1, %v2143_v42, %v2147_v36  ;;  %v3952_v15 = vsel %vm1270_vm2, %v3950_v30, %v3951_v43  ;;  %v3954_v28 = vsel %vm1270_vm2, %v3951_v43, %v6157_v63 }
 0x158   : > { %v2333_v63 = vsel %vm1270_vm2, %v2330_v11, %v2332_v40 }
 0x15c   : > { %5128 = vmatmul.mubr.msk.bf16.gmra.mrb[8].mxu0 %vm793_vm0, %v6298_v31  ;;  %v3793_v31 = vsel %vm942_vm1, %v3788_v7, %v3792_v22 }
 0x15d   : > { %5131 = vmatprep.mubr.msk.bf16.mxu0 %vm793_vm0, %v3785_v48 }
 0x15e   : > { %4962 = vmatmul.mubr.msk.bf16.gmra.mrb[4].mxu1 %vm793_vm0, %v2140_v46 }
 0x15f   : > { %4965 = vmatprep.mubr.msk.bf16.mxu1 %vm793_vm0, %v2148_v57 }
 0x164   : > { %5132 = vmatmul.mubr.msk.bf16.gmra.mrb[12].mxu0 %vm793_vm0, %v3793_v31 }
 0x165   : > { %5137 = vmatprep.mubr.msk.bf16.mxu0 %vm793_vm0, %v3952_v15 }
 0x166   : > { %4966 = vmatmul.mubr.msk.bf16.gmra.mrb[8].mxu1 %vm793_vm0, %v2156_v61 }
 0x167   : > { %4969 = vmatprep.mubr.msk.bf16.mxu1 %vm793_vm0, %v2164_v52 }
 0x16c   : > { %5138 = vmatmul.mubr.msk.bf16.vlgmr.msra.gmra.mrb[0].mxu0 %vm793_vm0, %v3954_v28 }
 0x16d   : > { %5141 = vmatprep.mubr.msk.bf16.mxu0 %vm793_vm0, %v3956_v51 }
 0x16e   : > { %4970 = vmatmul.mubr.msk.bf16.gmra.mrb[12].mxu1 %vm793_vm0, %v2172_v14 }
 0x16f   : > { %4975 = vmatprep.mubr.msk.bf16.mxu1 %vm793_vm0, %v2331_v12 }
 0x174   : > { %5142 = vmatmul.mubr.msk.bf16.gmra.mrb[4].mxu0 %vm793_vm0, %v3958_v35 }
 0x175   : > { %5145 = vmatprep.mubr.msk.bf16.mxu0 %vm793_vm0, %v6203_v47  ;;  %v2339_v47 = vsel %vm1270_vm2, %v2336_v27, %v2338_v13 }
 0x176   : > { %4976 = vmatmul.mubr.msk.bf16.vlgmr.msra.gmra.mrb[0].mxu1 %vm793_vm0, %v2333_v63 }
 0x177   : > { %4979 = vmatprep.mubr.msk.bf16.mxu1 %vm793_vm0, %v2335_v19 }
 0x17c   : > { %5146 = vmatmul.mubr.msk.bf16.gmra.mrb[8].mxu0 %vm793_vm0, %v6353_v25  ;;  %v2343_v25 = vsel %vm1270_vm2, %v6364_v4, %v2342_v16 }
 0x17d   : > { %5149 = vmatprep.mubr.msk.bf16.mxu0 %vm793_vm0, %v3964_v32 }
 0x17e   : > { %4980 = vmatmul.mubr.msk.bf16.gmra.mrb[4].mxu1 %vm793_vm0, %v2337_v41 }
 0x17f   : > { %4983 = vmatprep.mubr.msk.bf16.mxu1 %vm793_vm0, %v2339_v47 }
 0x184   : > { %5150 = vmatmul.mubr.msk.bf16.gmra.mrb[12].mxu0 %vm793_vm0, %v3966_v3 }
 0x186   : > { %4984 = vmatmul.mubr.msk.bf16.gmra.mrb[8].mxu1 %vm793_vm0, %v2341_v17 }
 0x187   : > { %4987 = vmatprep.mubr.msk.bf16.mxu1 %vm793_vm0, %v2343_v25 }
 0x18e   : > { %4988 = vmatmul.mubr.msk.bf16.gmra.mrb[12].mxu1 %vm793_vm0, %v2345_v58 }
 0x23f   : > { %v5139_v39 = vpop.f32.mrb[0].mxu0 }
 0x240   : > { %v4031_v5 = vpop.f32.mrb[1].mxu0 }
 0x241   : > { %v5140_v53 = vpop.f32.mrb[2].mxu0 }
 0x242   : > { %v4034_v45 = vpop.f32.mrb[3].mxu0 }
 0x247   : > { %v5143_v26 = vpop.f32.mrb[4].mxu0 }
 0x248   : > { %v4047_v29 = vpop.f32.mrb[5].mxu0 }
 0x249   : > { %v4977_v34 = vpop.f32.mrb[0].mxu1  ;;  %v5144_v0 = vpop.f32.mrb[6].mxu0 }
 0x24a   : > { %v5153_v4 = vadd.f32 %v5139_v39, %v4977_v34  ;;  %v2410_v49 = vpop.f32.mrb[1].mxu1  ;;  %v4050_v23 = vpop.f32.mrb[7].mxu0 }
 0x24b   : > { %v5154_v37 = vadd.f32 %v4031_v5, %v2410_v49  ;;  %v4978_v42 = vpop.f32.mrb[2].mxu1 }
 0x24c   : > { %v4119_v36 = vadd.f32 %v5153_v4, %v6539_v44  ;;  %v5155_v1 = vadd.f32 %v5140_v53, %v4978_v42  ;;  %v2413_v6 = vpop.f32.mrb[3].mxu1 }
 0x24d   : > { %v4117_v48 = vadd.f32 %v5154_v37, %v6539_v44  ;;  %v5156_v46 = vadd.f32 %v4034_v45, %v2413_v6 }
 0x24e   : > { %v4653_v21 = vpack.c.bf16 %v4119_v36, %v4119_v36  ;;  %v4120_v50 = vadd.f32 %v5155_v1, %v6539_v44 }
 0x24f   : > { %v4651_v57 = vpack.c.bf16 %v4117_v48, %v4117_v48  ;;  %v4118_v8 = vadd.f32 %v5156_v46, %v6539_v44  ;;  %v5147_v7 = vpop.f32.mrb[8].mxu0 }
 0x250   : > { %4200 = vst.msk [vmem:[%s6546_s23 + $0x8] sm:$0xf] %vm4197_vm3, %v4653_v21  ;;  %v4654_v22 = vpack.c.bf16 %v4120_v50, %v4120_v50  ;;  %v4063_v30 = vpop.f32.mrb[9].mxu0 }
 0x251   : > { %4198 = vst.msk [vmem:[%s6546_s23] sm:$0xf] %vm4197_vm3, %v4651_v57  ;;  %v4652_v43 = vpack.c.bf16 %v4118_v8, %v4118_v8  ;;  %v4981_v59 = vpop.f32.mrb[4].mxu1  ;;  %v5148_v60 = vpop.f32.mrb[10].mxu0 }
 0x252   : > { %4201 = vst.msk [vmem:[%s6546_s23 + $0xc] sm:$0xf] %vm4197_vm3, %v4654_v22  ;;  %v5157_v62 = vadd.f32 %v5143_v26, %v4981_v59  ;;  %v2426_v31 = vpop.f32.mrb[5].mxu1  ;;  %v4066_v15 = vpop.f32.mrb[11].mxu0 }
 0x253   : > { %4199 = vst.msk [vmem:[%s6546_s23 + $0x4] sm:$0xf] %vm4197_vm3, %v4652_v43  ;;  %v5158_v61 = vadd.f32 %v4047_v29, %v2426_v31  ;;  %v4982_v56 = vpop.f32.mrb[6].mxu1 }
 0x254   : > { %v4123_v18 = vadd.f32 %v5157_v62, %v6539_v44  ;;  %v5159_v52 = vadd.f32 %v5144_v0, %v4982_v56  ;;  %v2429_v20 = vpop.f32.mrb[7].mxu1 }
 0x255   : > { %v4121_v2 = vadd.f32 %v5158_v61, %v6539_v44  ;;  %v5160_v24 = vadd.f32 %v4050_v23, %v2429_v20 }
 0x256   : > { %v4657_v9 = vpack.c.bf16 %v4123_v18, %v4123_v18  ;;  %v4124_v55 = vadd.f32 %v5159_v52, %v6539_v44 }
 0x257   : > { %v4655_v11 = vpack.c.bf16 %v4121_v2, %v4121_v2  ;;  %v4122_v28 = vadd.f32 %v5160_v24, %v6539_v44  ;;  %v5151_v51 = vpop.f32.mrb[12].mxu0 }
 0x258   : > { %4204 = vst.msk [vmem:[%s6546_s23 + $0x18] sm:$0xf] %vm4197_vm3, %v4657_v9  ;;  %v4658_v14 = vpack.c.bf16 %v4124_v55, %v4124_v55  ;;  %v4079_v12 = vpop.f32.mrb[13].mxu0 }
 0x259   : > { %4202 = vst.msk [vmem:[%s6546_s23 + $0x10] sm:$0xf] %vm4197_vm3, %v4655_v11  ;;  %v4656_v40 = vpack.c.bf16 %v4122_v28, %v4122_v28  ;;  %v4985_v33 = vpop.f32.mrb[8].mxu1  ;;  %v5152_v35 = vpop.f32.mrb[14].mxu0 }
 0x25a   : > { %4205 = vst.msk [vmem:[%s6546_s23 + $0x1c] sm:$0xf] %vm4197_vm3, %v4658_v14  ;;  %v5161_v63 = vadd.f32 %v5147_v7, %v4985_v33  ;;  %v2442_v19 = vpop.f32.mrb[9].mxu1  ;;  %v4082_v38 = vpop.f32.mrb[15].mxu0 }
 0x25b   : > { %4203 = vst.msk [vmem:[%s6546_s23 + $0x14] sm:$0xf] %vm4197_vm3, %v4656_v40  ;;  %v5162_v27 = vadd.f32 %v4063_v30, %v2442_v19  ;;  %v4986_v13 = vpop.f32.mrb[10].mxu1 }
 0x25c   : > { %v4127_v32 = vadd.f32 %v5161_v63, %v6539_v44  ;;  %v5163_v41 = vadd.f32 %v5148_v60, %v4986_v13  ;;  %v2445_v47 = vpop.f32.mrb[11].mxu1 }
 0x25d   : > { %v4125_v10 = vadd.f32 %v5162_v27, %v6539_v44  ;;  %v5164_v16 = vadd.f32 %v4066_v15, %v2445_v47 }
 0x25e   : > { %v4661_v3 = vpack.c.bf16 %v4127_v32, %v4127_v32  ;;  %v4128_v17 = vadd.f32 %v5163_v41, %v6539_v44 }
 0x25f   : > { %v4659_v25 = vpack.c.bf16 %v4125_v10, %v4125_v10  ;;  %v4126_v54 = vadd.f32 %v5164_v16, %v6539_v44 }
 0x260   : > { %4208 = vst.msk [vmem:[%s6546_s23 + $0x28] sm:$0xf] %vm4197_vm3, %v4661_v3  ;;  %v4662_v58 = vpack.c.bf16 %v4128_v17, %v4128_v17 }
 0x261   : > { %4206 = vst.msk [vmem:[%s6546_s23 + $0x20] sm:$0xf] %vm4197_vm3, %v4659_v25  ;;  %v4660_v39 = vpack.c.bf16 %v4126_v54, %v4126_v54  ;;  %v4989_v5 = vpop.f32.mrb[12].mxu1 }
 0x262   : > { %4209 = vst.msk [vmem:[%s6546_s23 + $0x2c] sm:$0xf] %vm4197_vm3, %v4662_v58  ;;  %v5165_v53 = vadd.f32 %v5151_v51, %v4989_v5  ;;  %v2458_v45 = vpop.f32.mrb[13].mxu1 }
 0x263   : > { %4207 = vst.msk [vmem:[%s6546_s23 + $0x24] sm:$0xf] %vm4197_vm3, %v4660_v39  ;;  %v5166_v26 = vadd.f32 %v4079_v12, %v2458_v45  ;;  %v4990_v29 = vpop.f32.mrb[14].mxu1 }
 0x264   : > { %v4131_v34 = vadd.f32 %v5165_v53, %v6539_v44  ;;  %v5167_v0 = vadd.f32 %v5152_v35, %v4990_v29  ;;  %v2461_v4 = vpop.f32.mrb[15].mxu1 }
 0x265   : > { %v4129_v49 = vadd.f32 %v5166_v26, %v6539_v44  ;;  %v5168_v23 = vadd.f32 %v4082_v38, %v2461_v4 }
 0x266   : > { %v4665_v37 = vpack.c.bf16 %v4131_v34, %v4131_v34  ;;  %v4132_v42 = vadd.f32 %v5167_v0, %v6539_v44 }
 0x267   : > { %v4663_v36 = vpack.c.bf16 %v4129_v49, %v4129_v49  ;;  %v4130_v1 = vadd.f32 %v5168_v23, %v6539_v44 }
 0x268   : > { %4212 = vst.msk [vmem:[%s6546_s23 + $0x38] sm:$0xf] %vm4197_vm3, %v4665_v37  ;;  %v4666_v6 = vpack.c.bf16 %v4132_v42, %v4132_v42 }
 0x269   : > { %4210 = vst.msk [vmem:[%s6546_s23 + $0x30] sm:$0xf] %vm4197_vm3, %v4663_v36  ;;  %v4664_v48 = vpack.c.bf16 %v4130_v1, %v4130_v1 }
 0x26a   : > { %4213 = vst.msk [vmem:[%s6546_s23 + $0x3c] sm:$0xf] %vm4197_vm3, %v4666_v6 }
 0x26b   : > { %4211 = vst.msk [vmem:[%s6546_s23 + $0x34] sm:$0xf] %vm4197_vm3, %v4664_v48 }
 0x26c PF: > { %s21_s11 = sadd.s32 1, %s5618_s11   ;;  %s6626_s30 = sld [smem:[#allocation11_spill]] }
 0x26d   : > { %p18_p5 = scmp.ge.s32.totalorder %s21_s11, 4   ;;  %s6627_s10 = smov %s6629_s18 }
 0x26f   :  { %20 = sbr.rel (!%p18_p5) target bundleno = 3 (0x3), region = 130 }
 0x276   :  { %4244 = vsyncpa [#allocation5], 1 }
 0x277   :  { %4246 = vsyncpa [#allocation5 + $0x1], 1 }
 0x278   :  { %4247 = vsyncpa [#allocation7], 1 }

// kernel: _lambda_.5
= control target key start
LH: loop header
LB: loop body
LE: loop exit
PB: predicated region body
PF: predicated region fallthrough
CT: control target
= control target key end

     0   :  { %s14301_s30 = smov 0   ;;  %s14303_s10 = smov 0   ;;  %s16537_s0 = inlined_call_operand.vmem [shape: bf16[2,432,8], index: 0, kind: input, shape index: {}, may-alias: {0,1,2}]   ;;  %s16538_s1 = inlined_call_operand.vmem [shape: bf16[2,432,8], index: 1, kind: input, shape index: {}, may-alias: {0,1,2}]   ;;  %s16539_s2 = inlined_call_operand.vmem [shape: bf16[2,432,8], index: 2, kind: input, shape index: {}, may-alias: {0,1,2}]   ;;  %s16540_s3 = inlined_call_operand.vmem [shape: bf16[2,432,8], index: 3, kind: input, shape index: {}, may-alias: {3,4,5}]   ;;  %s16541_s4 = inlined_call_operand.vmem [shape: bf16[2,432,8], index: 4, kind: input, shape index: {}, may-alias: {3,4,5}]   ;;  %s16542_s5 = inlined_call_operand.vmem [shape: bf16[2,432,8], index: 5, kind: input, shape index: {}, may-alias: {3,4,5}]   ;;  %s16543_s6 = inlined_call_operand.vmem [shape: bf16[9,8,12], index: 6, kind: input, shape index: {}]   ;;  %s16544_s7 = inlined_call_operand.vmem [shape: bf16[9,8,12], index: 7, kind: input, shape index: {}]   ;;  %s16545_s8 = inlined_call_operand.vmem [shape: f32[1,12], index: 8, kind: input, shape index: {}]   ;;  %s16546_s9 = inlined_call_operand.vmem [shape: f32[2,384,12], index: 9, kind: output, shape index: {}]  }
   0x1   :  { %s14305_s11 = smov 0  }
   0x2 LB: > { %s31_s12 = sadd.s32 1, %s14244_s10  ;;  %p10875_p0 = scmp.ge.s32.totalorder %s14248_s11, 1  ;;  %s14248_s11 = sphi %s14305_s11, %s19_s11   ;;  %s14244_s10 = sphi %s14303_s10, %s16599_s10   ;;  %s14240_s30 = sphi %s14301_s30, %s16598_s30  }
   0x3   : > { %p33_p1 = scmp.ge.s32.totalorder %s31_s12, 2  ;;  %p449_p2 = scmp.lt.s32.totalorder %s14248_s11, 3 }
   0x5   : > { %s16601_s12 = smov (%p33_p1, %s31_s12), 0  ;;  %p450_p3 = pnand %p10875_p0, %p449_p2 }
   0x7   : > { %453 = sbr.rel (%p450_p3) target bundleno = 1138 (0x472), region = 56 }
   0xe   : > { %vm1439_vm0 = vcmask 1043456   ;;  %v5674_v0 = vld [vmem:[%s16544_s7] sm:$0xf]  ;;  %p561_p4 = scmp.lt.s32.totalorder %s14240_s30, 1  ;;  %vm771_vm1 = vcmask 60416   ;;  %v16547_v2 = vmov 0  }
   0xf   : > { %13793 = vmatprep.subr.msk.bf16.mxu0 %vm1439_vm0, %v5674_v0  ;;  %v5868_v1 = vsel %vm1439_vm0, %v5674_v0, 0  ;;  %826 = vst.msk [vmem:[#allocation2 + $0xd8] sm:$0xf] %vm771_vm1, %v16547_v2  ;;  %991 = vst.msk [vmem:[#allocation3 + $0xd8] sm:$0xf] %vm771_vm1, %v16547_v2  ;;  %vm1366_vm2 = vcmask 64512  }
  0x10   : > { %v10883_v3 = vld [vmem:[%s16543_s6 + $0x4] sm:$0xf]  ;;  %12519 = vmatpush3.bf16.msra.mxu0 %v5868_v1  ;;  %s16603_s30 = smov (!%p561_p4, %s14240_s30), 1  ;;  %v14338_v5 = vld [vmem:[%s16543_s6] sm:$0xf]  ;;  %vm1950_vm4 = vcmask 1046528  }
  0x11   : > { %13784 = vmatprep.subr.msk.bf16.mxu1 %vm1439_vm0, %v10883_v3  ;;  %v1441_v4 = vsel %vm1439_vm0, %v10883_v3, 0  ;;  %v14343_v6 = vld [vmem:[%s16544_s7 + $0x4] sm:$0xf]  ;;  %s14348_s21 = smul.u32 216, %s16603_s30  ;;  %vm1169_vm3 = vsmask.f32 7424 }
  0x12   : > { %12069 = vmatpush3.bf16.msra.mxu1 %v1441_v4  ;;  %13794 = vmatprep.subr.msk.bf16.mxu0 %vm1439_vm0, %v14343_v6  ;;  %vm10645_vm5 = vcmask 97280  }
  0x13   : > { %13785 = vmatprep.subr.msk.bf16.mxu1 %vm1439_vm0, %v14338_v5  ;;  %s14356_s24 = scalar_lea.vmem %s16540_s3, %s14348_s21  ;;  %s14362_s27 = scalar_lea.vmem %s16537_s0, %s14348_s21 }
  0x14   : > { %v829_v7 = vld [vmem:[%s14356_s24] sm:$0xf]  ;;  %v830_v8 = vld [vmem:[%s14356_s24 + $0x4] sm:$0xf]  ;;  %v831_v9 = vld [vmem:[%s14356_s24 + $0x8] sm:$0xf] }
  0x15   : > { %v883_v10 = vmax.bf16 %v16547_v2, %v829_v7  ;;  %v884_v11 = vmax.bf16 %v16547_v2, %v830_v8  ;;  %v832_v12 = vld [vmem:[%s14356_s24 + $0xc] sm:$0xf]  ;;  %v885_v13 = vmax.bf16 %v16547_v2, %v831_v9  ;;  %v663_v14 = vld [vmem:[%s14362_s27] sm:$0xf]  ;;  %v664_v15 = vld [vmem:[%s14362_s27 + $0x4] sm:$0xf] }
  0x16   : > { %v886_v16 = vmax.bf16 %v16547_v2, %v832_v12  ;;  %v665_v17 = vld [vmem:[%s14362_s27 + $0x8] sm:$0xf]  ;;  %v666_v18 = vld [vmem:[%s14362_s27 + $0xc] sm:$0xf]  ;;  %v717_v19 = vmax.bf16 %v16547_v2, %v663_v14  ;;  %v718_v20 = vmax.bf16 %v16547_v2, %v664_v15  ;;  %v667_v21 = vld [vmem:[%s14362_s27 + $0x10] sm:$0xf] }
  0x17   : > { %937 = vst.msk [vmem:[#allocation3] sm:$0xf] %vm771_vm1, %v883_v10  ;;  %938 = vst.msk [vmem:[#allocation3 + $0x4] sm:$0xf] %vm771_vm1, %v884_v11  ;;  %v719_v22 = vmax.bf16 %v16547_v2, %v665_v17  ;;  %v720_v23 = vmax.bf16 %v16547_v2, %v666_v18  ;;  %v668_v24 = vld [vmem:[%s14362_s27 + $0x14] sm:$0xf]  ;;  %v721_v25 = vmax.bf16 %v16547_v2, %v667_v21 }
  0x18   : > { %939 = vst.msk [vmem:[#allocation3 + $0x8] sm:$0xf] %vm771_vm1, %v885_v13  ;;  %v833_v26 = vld [vmem:[%s14356_s24 + $0x10] sm:$0xf]  ;;  %v834_v27 = vld [vmem:[%s14356_s24 + $0x14] sm:$0xf]  ;;  %v722_v28 = vmax.bf16 %v16547_v2, %v668_v24 }
  0x19   : > { %940 = vst.msk [vmem:[#allocation3 + $0xc] sm:$0xf] %vm771_vm1, %v886_v16  ;;  %772 = vst.msk [vmem:[#allocation2] sm:$0xf] %vm771_vm1, %v717_v19  ;;  %v887_v29 = vmax.bf16 %v16547_v2, %v833_v26  ;;  %v888_v30 = vmax.bf16 %v16547_v2, %v834_v27  ;;  %v835_v31 = vld [vmem:[%s14356_s24 + $0x18] sm:$0xf] }
  0x1a   : > { %773 = vst.msk [vmem:[#allocation2 + $0x4] sm:$0xf] %vm771_vm1, %v718_v20  ;;  %v836_v32 = vld [vmem:[%s14356_s24 + $0x1c] sm:$0xf]  ;;  %v669_v33 = vld [vmem:[%s14362_s27 + $0x18] sm:$0xf]  ;;  %v889_v34 = vmax.bf16 %v16547_v2, %v835_v31 }
  0x1b   : > { %774 = vst.msk [vmem:[#allocation2 + $0x8] sm:$0xf] %vm771_vm1, %v719_v22  ;;  %775 = vst.msk [vmem:[#allocation2 + $0xc] sm:$0xf] %vm771_vm1, %v720_v23  ;;  %v890_v35 = vmax.bf16 %v16547_v2, %v836_v32  ;;  %v670_v36 = vld [vmem:[%s14362_s27 + $0x1c] sm:$0xf]  ;;  %v723_v37 = vmax.bf16 %v16547_v2, %v669_v33 }
  0x1c   : > { %776 = vst.msk [vmem:[#allocation2 + $0x10] sm:$0xf] %vm771_vm1, %v721_v25  ;;  %v671_v38 = vld [vmem:[%s14362_s27 + $0x20] sm:$0xf]  ;;  %v672_v39 = vld [vmem:[%s14362_s27 + $0x24] sm:$0xf]  ;;  %v724_v40 = vmax.bf16 %v16547_v2, %v670_v36 }
  0x1d   : > { %777 = vst.msk [vmem:[#allocation2 + $0x14] sm:$0xf] %vm771_vm1, %v722_v28  ;;  %941 = vst.msk [vmem:[#allocation3 + $0x10] sm:$0xf] %vm771_vm1, %v887_v29  ;;  %v725_v41 = vmax.bf16 %v16547_v2, %v671_v38  ;;  %v726_v42 = vmax.bf16 %v16547_v2, %v672_v39  ;;  %v837_v43 = vld [vmem:[%s14356_s24 + $0x20] sm:$0xf] }
  0x1e   : > { %942 = vst.msk [vmem:[#allocation3 + $0x14] sm:$0xf] %vm771_vm1, %v888_v30  ;;  %v838_v44 = vld [vmem:[%s14356_s24 + $0x24] sm:$0xf]  ;;  %v839_v45 = vld [vmem:[%s14356_s24 + $0x28] sm:$0xf]  ;;  %v891_v46 = vmax.bf16 %v16547_v2, %v837_v43 }
  0x1f   : > { %943 = vst.msk [vmem:[#allocation3 + $0x18] sm:$0xf] %vm771_vm1, %v889_v34  ;;  %944 = vst.msk [vmem:[#allocation3 + $0x1c] sm:$0xf] %vm771_vm1, %v890_v35  ;;  %v892_v47 = vmax.bf16 %v16547_v2, %v838_v44  ;;  %v840_v48 = vld [vmem:[%s14356_s24 + $0x2c] sm:$0xf]  ;;  %v893_v49 = vmax.bf16 %v16547_v2, %v839_v45 }
  0x20   : > { %778 = vst.msk [vmem:[#allocation2 + $0x18] sm:$0xf] %vm771_vm1, %v723_v37  ;;  %v673_v50 = vld [vmem:[%s14362_s27 + $0x28] sm:$0xf]  ;;  %v674_v51 = vld [vmem:[%s14362_s27 + $0x2c] sm:$0xf]  ;;  %v894_v52 = vmax.bf16 %v16547_v2, %v840_v48 }
  0x21   : > { %779 = vst.msk [vmem:[#allocation2 + $0x1c] sm:$0xf] %vm771_vm1, %v724_v40  ;;  %780 = vst.msk [vmem:[#allocation2 + $0x20] sm:$0xf] %vm771_vm1, %v725_v41  ;;  %v727_v53 = vmax.bf16 %v16547_v2, %v673_v50  ;;  %v728_v54 = vmax.bf16 %v16547_v2, %v674_v51  ;;  %v675_v55 = vld [vmem:[%s14362_s27 + $0x30] sm:$0xf] }
  0x22   : > { %781 = vst.msk [vmem:[#allocation2 + $0x24] sm:$0xf] %vm771_vm1, %v726_v42  ;;  %v676_v56 = vld [vmem:[%s14362_s27 + $0x34] sm:$0xf]  ;;  %v841_v57 = vld [vmem:[%s14356_s24 + $0x30] sm:$0xf]  ;;  %v729_v58 = vmax.bf16 %v16547_v2, %v675_v55 }
  0x23   : > { %945 = vst.msk [vmem:[#allocation3 + $0x20] sm:$0xf] %vm771_vm1, %v891_v46  ;;  %946 = vst.msk [vmem:[#allocation3 + $0x24] sm:$0xf] %vm771_vm1, %v892_v47  ;;  %v730_v59 = vmax.bf16 %v16547_v2, %v676_v56  ;;  %v842_v60 = vld [vmem:[%s14356_s24 + $0x34] sm:$0xf]  ;;  %v895_v61 = vmax.bf16 %v16547_v2, %v841_v57 }
  0x24   : > { %947 = vst.msk [vmem:[#allocation3 + $0x28] sm:$0xf] %vm771_vm1, %v893_v49  ;;  %v843_v62 = vld [vmem:[%s14356_s24 + $0x38] sm:$0xf]  ;;  %v844_v63 = vld [vmem:[%s14356_s24 + $0x3c] sm:$0xf]  ;;  %v896_v1 = vmax.bf16 %v16547_v2, %v842_v60 }
  0x25   : > { %v13831_v0 = vld [vmem:[#allocation3] sm:$0xff]   ;;  %948 = vst.msk [vmem:[#allocation3 + $0x2c] sm:$0xf] %vm771_vm1, %v894_v52  ;;  %782 = vst.msk [vmem:[#allocation2 + $0x28] sm:$0xf] %vm771_vm1, %v727_v53  ;;  %v897_v3 = vmax.bf16 %v16547_v2, %v843_v62  ;;  %v898_v4 = vmax.bf16 %v16547_v2, %v844_v63  ;;  %v13832_v8 = vld [vmem:[#allocation3 + $0x8] sm:$0xff]  }
  0x26   : > { %783 = vst.msk [vmem:[#allocation2 + $0x2c] sm:$0xf] %vm771_vm1, %v728_v54  ;;  %v11331_v7 = vld [vmem:[%s16544_s7 + $0x8] sm:$0xf]  ;;  %v6586_v9 = vsel %vm1439_vm0, %v14343_v6, 0  ;;  %12520 = vmatprep.mubr.msk.bf16.mxu0 %vm1366_vm2, %v13831_v0  ;;  %v13835_v13 = vld [vmem:[#allocation2 + $0x10] sm:$0xff]  }
  0x27   : > { %784 = vst.msk [vmem:[#allocation2 + $0x30] sm:$0xf] %vm771_vm1, %v729_v58  ;;  %785 = vst.msk [vmem:[#allocation2 + $0x34] sm:$0xf] %vm771_vm1, %v730_v59  ;;  %v994_v10 = vld [vmem:[#allocation2] sm:$0xf]  ;;  %12521 = vmatmul.mubr.msk.bf16.vlgmr.msra.gmra.mrb[0].mxu0 %vm1366_vm2, %v13832_v8 }
  0x28   : > { %949 = vst.msk [vmem:[#allocation3 + $0x30] sm:$0xf] %vm771_vm1, %v895_v61  ;;  %v995_v11 = vld [vmem:[#allocation2 + $0x4] sm:$0xf]  ;;  %950 = vst.msk [vmem:[#allocation3 + $0x34] sm:$0xf] %vm771_vm1, %v896_v1  ;;  %12569 = vmatpush3.bf16.msra.mxu0 %v6586_v9 }
  0x29   : > { %951 = vst.msk [vmem:[#allocation3 + $0x38] sm:$0xf] %vm771_vm1, %v897_v3  ;;  %952 = vst.msk [vmem:[#allocation3 + $0x3c] sm:$0xf] %vm771_vm1, %v898_v4  ;;  %v14461_v12 = vcombine.low %v994_v10, %v995_v11  ;;  %v13834_v6 = vld [vmem:[#allocation2 + $0x8] sm:$0xff]   ;;  %v1717_v14 = vsel %vm1439_vm0, %v14338_v5, 0  ;;  %13795 = vmatprep.subr.msk.bf16.mxu0 %vm1439_vm0, %v11331_v7 }
  0x2a   : > { %v1178_v17 = vshll.u32 %v13834_v6, 16  ;;  %v1182_v18 = vshrl.u32 %v13834_v6, 16  ;;  %v1186_v19 = vshll.u32 %v13835_v13, 16  ;;  %v13836_v20 = vld [vmem:[#allocation3 + $0x10] sm:$0xff]   ;;  %v13837_v23 = vld [vmem:[#allocation3 + $0x18] sm:$0xff]   ;;  %v1190_v26 = vshrl.u32 %v13835_v13, 16 }
  0x2b   : > { %v1171_v15 = vshrl.u32 %v14461_v12, 16  ;;  %v1173_v16 = vshll.u32 %v14461_v12, 16  ;;  %v13838_v24 = vld [vmem:[#allocation2 + $0x18] sm:$0xff]   ;;  %12524 = vmatprep.mubr.msk.bf16.mxu0 %vm1366_vm2, %v13836_v20  ;;  %v13839_v29 = vld [vmem:[#allocation2 + $0x20] sm:$0xff]   ;;  %v10957_v33 = vld [vmem:[%s16543_s6 + $0x8] sm:$0xf] }
  0x2c   : > { %v1180_v22 = vrot.slane %v1178_v17, 1  ;;  %v1188_v25 = vrot.slane %v1186_v19, 1  ;;  %v1194_v28 = vshll.u32 %v13838_v24, 16  ;;  %v1198_v30 = vshrl.u32 %v13838_v24, 16  ;;  %v13840_v31 = vld [vmem:[#allocation3 + $0x20] sm:$0xff]   ;;  %v13841_v45 = vld [vmem:[#allocation3 + $0x28] sm:$0xff]  }
  0x2d   : > { %v1175_v21 = vrot.slane %v1173_v16, 1  ;;  %v1202_v37 = vshll.u32 %v13839_v29, 16  ;;  %v14475_v38 = vld [vmem:[#allocation2 + $0x28] sm:$0xff]   ;;  %v1206_v39 = vshrl.u32 %v13839_v29, 16  ;;  %v677_v52 = vld [vmem:[%s14362_s27 + $0x38] sm:$0xf] }
  0x2e   : > { %v1184_v27 = vor.u32 %v1182_v18, %v1180_v22  ;;  %v1192_v32 = vor.u32 %v1190_v26, %v1188_v25  ;;  %v1196_v36 = vrot.slane %v1194_v28, 1  ;;  %v14479_v40 = vld [vmem:[#allocation2 + $0x30] sm:$0xff]   ;;  %v1210_v44 = vshll.u32 %v14475_v38, 16  ;;  %v678_v53 = vld [vmem:[%s14362_s27 + $0x3c] sm:$0xf]  ;;  %s11611_s15 = sadd.s32 192, %s14348_s21 }
  0x2f   : > { %v1176_v5 = vor.u32 %v1175_v21, %v1171_v15  ;;  %12525 = vmatmul.mubr.msk.bf16.gmra.mrb[4].mxu0 %vm1366_vm2, %v13837_v23  ;;  %v1204_v43 = vrot.slane %v1202_v37, 1  ;;  %v1218_v46 = vshll.u32 %v14479_v40, 16  ;;  %v1214_v49 = vshrl.u32 %v14475_v38, 16  ;;  %v13844_v51 = vld [vmem:[#allocation3 + $0x30] sm:$0xff]   ;;  %v679_v57 = vld [vmem:[%s14362_s27 + $0x40] sm:$0xf]  ;;  %s14731_s18 = scalar_lea.vmem %s16538_s1, %s11611_s15 }
  0x30   : > { %v1189_v35 = vsel %vm1169_vm3, %v1184_v27, %v1188_v25  ;;  %12528 = vmatprep.mubr.msk.bf16.mxu0 %vm1366_vm2, %v13840_v31  ;;  %v1197_v41 = vsel %vm1169_vm3, %v1192_v32, %v1196_v36  ;;  %v1200_v42 = vor.u32 %v1198_v30, %v1196_v36  ;;  %v1212_v48 = vrot.slane %v1210_v44, 1  ;;  %v680_v58 = vld [vmem:[%s14362_s27 + $0x44] sm:$0xf]  ;;  %v845_v59 = vld [vmem:[%s14356_s24 + $0x40] sm:$0xf]  ;;  %s11613_s23 = sadd.s32 204, %s14348_s21 }
  0x31   : > { %v1181_v34 = vsel %vm1169_vm3, %v1176_v5, %v1180_v22  ;;  %v1208_v47 = vor.u32 %v1206_v39, %v1204_v43  ;;  %v14488_v50 = vrot.slane %v1218_v46, 1  ;;  %v731_v55 = vmax.bf16 %v16547_v2, %v677_v52  ;;  %v846_v63 = vld [vmem:[%s14356_s24 + $0x44] sm:$0xf]  ;;  %v847_v1 = vld [vmem:[%s14356_s24 + $0x48] sm:$0xf]  ;;  %v13845_v17 = vld [vmem:[#allocation3 + $0x38] sm:$0xff]   ;;  %s15339_s26 = scalar_lea.vmem %s16542_s5, %s11613_s23  ;;  %s15351_s28 = scalar_lea.vmem %s16539_s2, %s11613_s23 }
  0x32   : > { %12070 = vmatprep.mubr.msk.bf16.mxu1 %vm1366_vm2, %v1181_v34  ;;  %v1205_v54 = vsel %vm1169_vm3, %v1200_v42, %v1204_v43  ;;  %v732_v56 = vmax.bf16 %v16547_v2, %v678_v53  ;;  %v1222_v60 = vshrl.u32 %v14479_v40, 16  ;;  %v733_v61 = vmax.bf16 %v16547_v2, %v679_v57  ;;  %v848_v7 = vld [vmem:[%s14356_s24 + $0x4c] sm:$0xf]  ;;  %v681_v9 = vld [vmem:[%s14362_s27 + $0x48] sm:$0xf]  ;;  %s13804_s21 = smul.u32 384, %s16603_s30 }
  0x33   : > { %12071 = vmatmul.mubr.msk.bf16.vlgmr.msra.gmra.mrb[0].mxu1 %vm1366_vm2, %v1189_v35  ;;  %v734_v62 = vmax.bf16 %v16547_v2, %v680_v58  ;;  %v899_v0 = vmax.bf16 %v16547_v2, %v845_v59  ;;  %v1213_v3 = vsel %vm1169_vm3, %v1208_v47, %v1212_v48  ;;  %786 = vst.msk [vmem:[#allocation2 + $0x38] sm:$0xf] %vm771_vm1, %v731_v55  ;;  %v682_v10 = vld [vmem:[%s14362_s27 + $0x4c] sm:$0xf]  ;;  %v684_v15 = vld [vmem:[%s14362_s27 + $0x54] sm:$0xf] }
  0x34   : > { %12119 = vmatpush3.bf16.msra.mxu1 %v1717_v14  ;;  %12074 = vmatprep.mubr.msk.bf16.mxu1 %vm1366_vm2, %v1197_v41  ;;  %787 = vst.msk [vmem:[#allocation2 + $0x3c] sm:$0xf] %vm771_vm1, %v732_v56  ;;  %v900_v4 = vmax.bf16 %v16547_v2, %v846_v63  ;;  %v901_v8 = vmax.bf16 %v16547_v2, %v847_v1  ;;  %788 = vst.msk [vmem:[#allocation2 + $0x40] sm:$0xf] %vm771_vm1, %v733_v61  ;;  %v683_v14 = vld [vmem:[%s14362_s27 + $0x50] sm:$0xf]  ;;  %s16388_s29 = scalar_lea.vmem %s16546_s9, %s13804_s21 }
  0x35   : > { %13786 = vmatprep.subr.msk.bf16.mxu1 %vm1439_vm0, %v10957_v33  ;;  %789 = vst.msk [vmem:[#allocation2 + $0x44] sm:$0xf] %vm771_vm1, %v734_v62  ;;  %953 = vst.msk [vmem:[#allocation3 + $0x40] sm:$0xf] %vm771_vm1, %v899_v0  ;;  %v902_v11 = vmax.bf16 %v16547_v2, %v848_v7  ;;  %v735_v6 = vmax.bf16 %v16547_v2, %v681_v9  ;;  %v736_v13 = vmax.bf16 %v16547_v2, %v682_v10  ;;  %v849_v16 = vld [vmem:[%s14356_s24 + $0x50] sm:$0xf] }
  0x36   : > { %954 = vst.msk [vmem:[#allocation3 + $0x44] sm:$0xf] %vm771_vm1, %v900_v4  ;;  %955 = vst.msk [vmem:[#allocation3 + $0x48] sm:$0xf] %vm771_vm1, %v901_v8  ;;  %v737_v18 = vmax.bf16 %v16547_v2, %v683_v14  ;;  %v738_v19 = vmax.bf16 %v16547_v2, %v684_v15  ;;  %v850_v20 = vld [vmem:[%s14356_s24 + $0x54] sm:$0xf]  ;;  %v903_v21 = vmax.bf16 %v16547_v2, %v849_v16 }
  0x37   : > { %12529 = vmatmul.mubr.msk.bf16.gmra.mrb[8].mxu0 %vm1366_vm2, %v13841_v45  ;;  %v851_v22 = vld [vmem:[%s14356_s24 + $0x58] sm:$0xf]  ;;  %v852_v23 = vld [vmem:[%s14356_s24 + $0x5c] sm:$0xf]  ;;  %v1216_v24 = vor.u32 %v1214_v49, %v1212_v48  ;;  %956 = vst.msk [vmem:[#allocation3 + $0x4c] sm:$0xf] %vm771_vm1, %v902_v11  ;;  %v904_v25 = vmax.bf16 %v16547_v2, %v850_v20  ;;  %v1224_v56 = vor.u32 %v1222_v60, %v14488_v50 }
  0x38   : > { %12532 = vmatprep.mubr.msk.bf16.mxu0 %vm1366_vm2, %v13844_v51  ;;  %790 = vst.msk [vmem:[#allocation2 + $0x48] sm:$0xf] %vm771_vm1, %v735_v6  ;;  %791 = vst.msk [vmem:[#allocation2 + $0x4c] sm:$0xf] %vm771_vm1, %v736_v13  ;;  %v905_v26 = vmax.bf16 %v16547_v2, %v851_v22  ;;  %v906_v5 = vmax.bf16 %v16547_v2, %v852_v23  ;;  %v685_v27 = vld [vmem:[%s14362_s27 + $0x58] sm:$0xf] }
  0x39   : > { %v686_v28 = vld [vmem:[%s14362_s27 + $0x5c] sm:$0xf]  ;;  %v687_v29 = vld [vmem:[%s14362_s27 + $0x60] sm:$0xf]  ;;  %792 = vst.msk [vmem:[#allocation2 + $0x50] sm:$0xf] %vm771_vm1, %v737_v18  ;;  %v739_v30 = vmax.bf16 %v16547_v2, %v685_v27  ;;  %v1221_v49 = vsel %vm1169_vm3, %v1216_v24, %v14488_v50 }
  0x3a   : > { %793 = vst.msk [vmem:[#allocation2 + $0x54] sm:$0xf] %vm771_vm1, %v738_v19  ;;  %957 = vst.msk [vmem:[#allocation3 + $0x50] sm:$0xf] %vm771_vm1, %v903_v21  ;;  %v740_v31 = vmax.bf16 %v16547_v2, %v686_v28  ;;  %v688_v32 = vld [vmem:[%s14362_s27 + $0x64] sm:$0xf]  ;;  %v741_v33 = vmax.bf16 %v16547_v2, %v687_v29 }
  0x3b   : > { %12075 = vmatmul.mubr.msk.bf16.gmra.mrb[4].mxu1 %vm1366_vm2, %v1205_v54  ;;  %v853_v34 = vld [vmem:[%s14356_s24 + $0x60] sm:$0xf]  ;;  %v854_v35 = vld [vmem:[%s14356_s24 + $0x64] sm:$0xf]  ;;  %958 = vst.msk [vmem:[#allocation3 + $0x54] sm:$0xf] %vm771_vm1, %v904_v25  ;;  %v742_v36 = vmax.bf16 %v16547_v2, %v688_v32 }
  0x3c   : > { %12078 = vmatprep.mubr.msk.bf16.mxu1 %vm1366_vm2, %v1213_v3  ;;  %959 = vst.msk [vmem:[#allocation3 + $0x58] sm:$0xf] %vm771_vm1, %v905_v26  ;;  %960 = vst.msk [vmem:[#allocation3 + $0x5c] sm:$0xf] %vm771_vm1, %v906_v5  ;;  %v907_v37 = vmax.bf16 %v16547_v2, %v853_v34  ;;  %v908_v38 = vmax.bf16 %v16547_v2, %v854_v35  ;;  %v855_v39 = vld [vmem:[%s14356_s24 + $0x68] sm:$0xf] }
  0x3d   : > { %v856_v41 = vld [vmem:[%s14356_s24 + $0x6c] sm:$0xf]  ;;  %v689_v42 = vld [vmem:[%s14362_s27 + $0x68] sm:$0xf]  ;;  %794 = vst.msk [vmem:[#allocation2 + $0x58] sm:$0xf] %vm771_vm1, %v739_v30  ;;  %v909_v43 = vmax.bf16 %v16547_v2, %v855_v39 }
  0x3e   : > { %795 = vst.msk [vmem:[#allocation2 + $0x5c] sm:$0xf] %vm771_vm1, %v740_v31  ;;  %796 = vst.msk [vmem:[#allocation2 + $0x60] sm:$0xf] %vm771_vm1, %v741_v33  ;;  %v910_v44 = vmax.bf16 %v16547_v2, %v856_v41  ;;  %v690_v45 = vld [vmem:[%s14362_s27 + $0x6c] sm:$0xf]  ;;  %v743_v46 = vmax.bf16 %v16547_v2, %v689_v42 }
  0x3f   : > { %v691_v47 = vld [vmem:[%s14362_s27 + $0x70] sm:$0xf]  ;;  %v692_v48 = vld [vmem:[%s14362_s27 + $0x74] sm:$0xf]  ;;  %v13846_v51 = vld [vmem:[#allocation2 + $0x38] sm:$0xff]   ;;  %v744_v52 = vmax.bf16 %v16547_v2, %v690_v45  ;;  %12533 = vmatmul.mubr.msk.bf16.gmra.mrb[12].mxu0 %vm1366_vm2, %v13845_v17 }
  0x40   : > { %797 = vst.msk [vmem:[#allocation2 + $0x64] sm:$0xf] %vm771_vm1, %v742_v36  ;;  %961 = vst.msk [vmem:[#allocation3 + $0x60] sm:$0xf] %vm771_vm1, %v907_v37  ;;  %v745_v53 = vmax.bf16 %v16547_v2, %v691_v47  ;;  %v746_v54 = vmax.bf16 %v16547_v2, %v692_v48  ;;  %v13847_v55 = vld [vmem:[#allocation2 + $0x40] sm:$0xff]   ;;  %v1226_v57 = vshll.u32 %v13846_v51, 16 }
  0x41   : > { %962 = vst.msk [vmem:[#allocation3 + $0x64] sm:$0xf] %vm771_vm1, %v908_v38  ;;  %963 = vst.msk [vmem:[#allocation3 + $0x68] sm:$0xf] %vm771_vm1, %v909_v43  ;;  %v1230_v58 = vshrl.u32 %v13846_v51, 16  ;;  %v1234_v59 = vshll.u32 %v13847_v55, 16 }
  0x42   : > { %964 = vst.msk [vmem:[#allocation3 + $0x6c] sm:$0xf] %vm771_vm1, %v910_v44  ;;  %798 = vst.msk [vmem:[#allocation2 + $0x68] sm:$0xf] %vm771_vm1, %v743_v46  ;;  %v13848_v61 = vld [vmem:[#allocation3 + $0x40] sm:$0xff]   ;;  %v1228_v62 = vrot.slane %v1226_v57, 1 }
  0x43   : > { %799 = vst.msk [vmem:[#allocation2 + $0x6c] sm:$0xf] %vm771_vm1, %v744_v52  ;;  %800 = vst.msk [vmem:[#allocation2 + $0x70] sm:$0xf] %vm771_vm1, %v745_v53  ;;  %12079 = vmatmul.mubr.msk.bf16.gmra.mrb[8].mxu1 %vm1366_vm2, %v1221_v49  ;;  %v13849_v63 = vld [vmem:[#allocation3 + $0x48] sm:$0xff]   ;;  %v1236_v0 = vrot.slane %v1234_v59, 1  ;;  %12536 = vmatprep.mubr.msk.bf16.mxu0 %vm1366_vm2, %v13848_v61 }
  0x44   : > { %801 = vst.msk [vmem:[#allocation2 + $0x74] sm:$0xf] %vm771_vm1, %v746_v54  ;;  %v13850_v1 = vld [vmem:[#allocation2 + $0x48] sm:$0xff]   ;;  %v1238_v40 = vshrl.u32 %v13847_v55, 16  ;;  %v13851_v50 = vld [vmem:[#allocation2 + $0x50] sm:$0xff]   ;;  %v1229_v60 = vsel %vm1169_vm3, %v1224_v56, %v1228_v62  ;;  %v1232_v3 = vor.u32 %v1230_v58, %v1228_v62  ;;  %v13853_v22 = vld [vmem:[#allocation3 + $0x58] sm:$0xff]  }
  0x45   : > { %12082 = vmatprep.mubr.msk.bf16.mxu1 %vm1366_vm2, %v1229_v60  ;;  %v1242_v7 = vshll.u32 %v13850_v1, 16  ;;  %v1246_v8 = vshrl.u32 %v13850_v1, 16  ;;  %v1250_v9 = vshll.u32 %v13851_v50, 16  ;;  %v13852_v10 = vld [vmem:[#allocation3 + $0x50] sm:$0xff]   ;;  %v1254_v14 = vshrl.u32 %v13851_v50, 16 }
  0x46   : > { %v1240_v4 = vor.u32 %v1238_v40, %v1236_v0  ;;  %v1237_v11 = vsel %vm1169_vm3, %v1232_v3, %v1236_v0  ;;  %v13854_v13 = vld [vmem:[#allocation2 + $0x58] sm:$0xff]   ;;  %v857_v29 = vld [vmem:[%s14356_s24 + $0x70] sm:$0xf]  ;;  %v858_v30 = vld [vmem:[%s14356_s24 + $0x74] sm:$0xf] }
  0x47   : > { %12537 = vmatmul.mubr.msk.bf16.gmra.mrb[16].mxu0 %vm1366_vm2, %v13849_v63  ;;  %v1244_v6 = vrot.slane %v1242_v7, 1  ;;  %v13855_v15 = vld [vmem:[#allocation2 + $0x60] sm:$0xff]   ;;  %v1252_v18 = vrot.slane %v1250_v9, 1  ;;  %v1258_v19 = vshll.u32 %v13854_v13, 16  ;;  %v1262_v25 = vshrl.u32 %v13854_v13, 16 }
  0x48   : > { %12540 = vmatprep.mubr.msk.bf16.mxu0 %vm1366_vm2, %v13852_v10  ;;  %v1266_v20 = vshll.u32 %v13855_v15, 16  ;;  %v13856_v26 = vld [vmem:[#allocation3 + $0x60] sm:$0xff]   ;;  %v1270_v32 = vshrl.u32 %v13855_v15, 16  ;;  %v911_v33 = vmax.bf16 %v16547_v2, %v857_v29  ;;  %v912_v34 = vmax.bf16 %v16547_v2, %v858_v30  ;;  %v859_v35 = vld [vmem:[%s14356_s24 + $0x78] sm:$0xf] }
  0x49   : > { %v1245_v16 = vsel %vm1169_vm3, %v1240_v4, %v1244_v6  ;;  %v1248_v17 = vor.u32 %v1246_v8, %v1244_v6  ;;  %v1256_v23 = vor.u32 %v1254_v14, %v1252_v18  ;;  %v1260_v24 = vrot.slane %v1258_v19, 1  ;;  %v860_v36 = vld [vmem:[%s14356_s24 + $0x7c] sm:$0xf]  ;;  %v693_v42 = vld [vmem:[%s14362_s27 + $0x78] sm:$0xf]  ;;  %v13857_v51 = vld [vmem:[#allocation3 + $0x68] sm:$0xff]  }
  0x4a   : > { %v14597_v21 = vld [vmem:[#allocation2 + $0x68] sm:$0xff]   ;;  %v1268_v31 = vrot.slane %v1266_v20, 1  ;;  %v913_v39 = vmax.bf16 %v16547_v2, %v859_v35  ;;  %v914_v41 = vmax.bf16 %v16547_v2, %v860_v36  ;;  %v694_v43 = vld [vmem:[%s14362_s27 + $0x7c] sm:$0xf]  ;;  %965 = vst.msk [vmem:[#allocation3 + $0x70] sm:$0xf] %vm771_vm1, %v911_v33  ;;  %v747_v45 = vmax.bf16 %v16547_v2, %v693_v42 }
  0x4b   : > { %12083 = vmatmul.mubr.msk.bf16.gmra.mrb[12].mxu1 %vm1366_vm2, %v1237_v11  ;;  %v1253_v5 = vsel %vm1169_vm3, %v1248_v17, %v1252_v18  ;;  %v1274_v27 = vshll.u32 %v14597_v21, 16  ;;  %v14601_v28 = vld [vmem:[#allocation2 + $0x70] sm:$0xff]   ;;  %v1261_v37 = vsel %vm1169_vm3, %v1256_v23, %v1260_v24  ;;  %v1278_v38 = vshrl.u32 %v14597_v21, 16  ;;  %966 = vst.msk [vmem:[#allocation3 + $0x74] sm:$0xf] %vm771_vm1, %v912_v34 }
  0x4c   : > { %12086 = vmatprep.mubr.msk.bf16.mxu1 %vm1366_vm2, %v1245_v16  ;;  %v1264_v44 = vor.u32 %v1262_v25, %v1260_v24  ;;  %v748_v46 = vmax.bf16 %v16547_v2, %v694_v43  ;;  %v695_v47 = vld [vmem:[%s14362_s27 + $0x80] sm:$0xf]  ;;  %v696_v48 = vld [vmem:[%s14362_s27 + $0x84] sm:$0xf]  ;;  %v1282_v53 = vshll.u32 %v14601_v28, 16  ;;  %v1272_v58 = vor.u32 %v1270_v32, %v1268_v31 }
  0x4d   : > { %v861_v49 = vld [vmem:[%s14356_s24 + $0x80] sm:$0xf]  ;;  %v14625_v52 = vrot.slane %v1274_v27, 1  ;;  %967 = vst.msk [vmem:[#allocation3 + $0x78] sm:$0xf] %vm771_vm1, %v913_v39  ;;  %v749_v54 = vmax.bf16 %v16547_v2, %v695_v47  ;;  %v750_v55 = vmax.bf16 %v16547_v2, %v696_v48  ;;  %v1286_v30 = vshrl.u32 %v14601_v28, 16 }
  0x4e   : > { %968 = vst.msk [vmem:[#allocation3 + $0x7c] sm:$0xf] %vm771_vm1, %v914_v41  ;;  %v862_v56 = vld [vmem:[%s14356_s24 + $0x84] sm:$0xf]  ;;  %v863_v57 = vld [vmem:[%s14356_s24 + $0x88] sm:$0xf]  ;;  %v915_v59 = vmax.bf16 %v16547_v2, %v861_v49  ;;  %v1269_v14 = vsel %vm1169_vm3, %v1264_v44, %v1268_v31 }
  0x4f   : > { %12541 = vmatmul.mubr.msk.bf16.gmra.mrb[20].mxu0 %vm1366_vm2, %v13853_v22  ;;  %802 = vst.msk [vmem:[#allocation2 + $0x78] sm:$0xf] %vm771_vm1, %v747_v45  ;;  %803 = vst.msk [vmem:[#allocation2 + $0x7c] sm:$0xf] %vm771_vm1, %v748_v46  ;;  %v916_v61 = vmax.bf16 %v16547_v2, %v862_v56  ;;  %v864_v62 = vld [vmem:[%s14356_s24 + $0x8c] sm:$0xf]  ;;  %v917_v63 = vmax.bf16 %v16547_v2, %v863_v57  ;;  %v1277_v22 = vsel %vm1169_vm3, %v1272_v58, %v14625_v52 }
  0x50   : > { %12544 = vmatprep.mubr.msk.bf16.mxu0 %vm1366_vm2, %v13856_v26  ;;  %v697_v0 = vld [vmem:[%s14362_s27 + $0x88] sm:$0xf]  ;;  %v698_v1 = vld [vmem:[%s14362_s27 + $0x8c] sm:$0xf]  ;;  %804 = vst.msk [vmem:[#allocation2 + $0x80] sm:$0xf] %vm771_vm1, %v749_v54  ;;  %v918_v40 = vmax.bf16 %v16547_v2, %v864_v62  ;;  %v1280_v36 = vor.u32 %v1278_v38, %v14625_v52 }
  0x51   : > { %805 = vst.msk [vmem:[#allocation2 + $0x84] sm:$0xf] %vm771_vm1, %v750_v55  ;;  %v751_v50 = vmax.bf16 %v16547_v2, %v697_v0  ;;  %v699_v60 = vld [vmem:[%s14362_s27 + $0x90] sm:$0xf]  ;;  %v700_v3 = vld [vmem:[%s14362_s27 + $0x94] sm:$0xf]  ;;  %v752_v7 = vmax.bf16 %v16547_v2, %v698_v1 }
  0x52   : > { %v865_v4 = vld [vmem:[%s14356_s24 + $0x90] sm:$0xf]  ;;  %969 = vst.msk [vmem:[#allocation3 + $0x80] sm:$0xf] %vm771_vm1, %v915_v59  ;;  %970 = vst.msk [vmem:[#allocation3 + $0x84] sm:$0xf] %vm771_vm1, %v916_v61  ;;  %v753_v8 = vmax.bf16 %v16547_v2, %v699_v60  ;;  %v754_v9 = vmax.bf16 %v16547_v2, %v700_v3 }
  0x53   : > { %12087 = vmatmul.mubr.msk.bf16.gmra.mrb[16].mxu1 %vm1366_vm2, %v1253_v5  ;;  %971 = vst.msk [vmem:[#allocation3 + $0x88] sm:$0xf] %vm771_vm1, %v917_v63  ;;  %v866_v10 = vld [vmem:[%s14356_s24 + $0x94] sm:$0xf]  ;;  %v919_v11 = vmax.bf16 %v16547_v2, %v865_v4  ;;  %v867_v6 = vld [vmem:[%s14356_s24 + $0x98] sm:$0xf] }
  0x54   : > { %12090 = vmatprep.mubr.msk.bf16.mxu1 %vm1366_vm2, %v1261_v37  ;;  %v868_v13 = vld [vmem:[%s14356_s24 + $0x9c] sm:$0xf]  ;;  %972 = vst.msk [vmem:[#allocation3 + $0x8c] sm:$0xf] %vm771_vm1, %v918_v40  ;;  %806 = vst.msk [vmem:[#allocation2 + $0x88] sm:$0xf] %vm771_vm1, %v751_v50  ;;  %v920_v15 = vmax.bf16 %v16547_v2, %v866_v10  ;;  %v921_v16 = vmax.bf16 %v16547_v2, %v867_v6 }
  0x55   : > { %v922_v17 = vmax.bf16 %v16547_v2, %v868_v13  ;;  %v701_v18 = vld [vmem:[%s14362_s27 + $0x98] sm:$0xf]  ;;  %v702_v19 = vld [vmem:[%s14362_s27 + $0x9c] sm:$0xf]  ;;  %v703_v20 = vld [vmem:[%s14362_s27 + $0xa0] sm:$0xf] }
  0x56   : > { %807 = vst.msk [vmem:[#allocation2 + $0x8c] sm:$0xf] %vm771_vm1, %v752_v7  ;;  %808 = vst.msk [vmem:[#allocation2 + $0x90] sm:$0xf] %vm771_vm1, %v753_v8  ;;  %v755_v23 = vmax.bf16 %v16547_v2, %v701_v18  ;;  %v756_v24 = vmax.bf16 %v16547_v2, %v702_v19  ;;  %v704_v25 = vld [vmem:[%s14362_s27 + $0xa4] sm:$0xf]  ;;  %v757_v26 = vmax.bf16 %v16547_v2, %v703_v20 }
  0x57   : > { %809 = vst.msk [vmem:[#allocation2 + $0x94] sm:$0xf] %vm771_vm1, %v754_v9  ;;  %973 = vst.msk [vmem:[#allocation3 + $0x90] sm:$0xf] %vm771_vm1, %v919_v11  ;;  %v869_v5 = vld [vmem:[%s14356_s24 + $0xa0] sm:$0xf]  ;;  %12545 = vmatmul.mubr.msk.bf16.gmra.mrb[24].mxu0 %vm1366_vm2, %v13857_v51  ;;  %v758_v31 = vmax.bf16 %v16547_v2, %v704_v25 }
  0x58   : > { %v870_v27 = vld [vmem:[%s14356_s24 + $0xa4] sm:$0xf]  ;;  %v13860_v29 = vld [vmem:[#allocation3 + $0x70] sm:$0xff]   ;;  %974 = vst.msk [vmem:[#allocation3 + $0x94] sm:$0xf] %vm771_vm1, %v920_v15  ;;  %v923_v32 = vmax.bf16 %v16547_v2, %v869_v5  ;;  %v1284_v34 = vrot.slane %v1282_v53, 1 }
  0x59   : > { %975 = vst.msk [vmem:[#allocation3 + $0x98] sm:$0xf] %vm771_vm1, %v921_v16  ;;  %976 = vst.msk [vmem:[#allocation3 + $0x9c] sm:$0xf] %vm771_vm1, %v922_v17  ;;  %v924_v33 = vmax.bf16 %v16547_v2, %v870_v27  ;;  %12548 = vmatprep.mubr.msk.bf16.mxu0 %vm1366_vm2, %v13860_v29  ;;  %v13862_v35 = vld [vmem:[#allocation2 + $0x78] sm:$0xff]   ;;  %v13863_v37 = vld [vmem:[#allocation2 + $0x80] sm:$0xff]  }
  0x5a   : > { %810 = vst.msk [vmem:[#allocation2 + $0x98] sm:$0xf] %vm771_vm1, %v755_v23  ;;  %811 = vst.msk [vmem:[#allocation2 + $0x9c] sm:$0xf] %vm771_vm1, %v756_v24  ;;  %v13861_v39 = vld [vmem:[#allocation3 + $0x78] sm:$0xff]   ;;  %v1288_v41 = vor.u32 %v1286_v30, %v1284_v34  ;;  %v1290_v28 = vshll.u32 %v13862_v35, 16  ;;  %v1285_v46 = vsel %vm1169_vm3, %v1280_v36, %v1284_v34 }
  0x5b   : > { %812 = vst.msk [vmem:[#allocation2 + $0xa0] sm:$0xf] %vm771_vm1, %v757_v26  ;;  %12091 = vmatmul.mubr.msk.bf16.gmra.mrb[20].mxu1 %vm1366_vm2, %v1269_v14  ;;  %813 = vst.msk [vmem:[#allocation2 + $0xa4] sm:$0xf] %vm771_vm1, %v758_v31  ;;  %v1294_v42 = vshrl.u32 %v13862_v35, 16  ;;  %v13864_v43 = vld [vmem:[#allocation3 + $0x80] sm:$0xff]  }
  0x5c   : > { %977 = vst.msk [vmem:[#allocation3 + $0xa0] sm:$0xf] %vm771_vm1, %v923_v32  ;;  %978 = vst.msk [vmem:[#allocation3 + $0xa4] sm:$0xf] %vm771_vm1, %v924_v33  ;;  %12094 = vmatprep.mubr.msk.bf16.mxu1 %vm1366_vm2, %v1277_v22  ;;  %v1292_v44 = vrot.slane %v1290_v28, 1  ;;  %v1298_v45 = vshll.u32 %v13863_v37, 16 }
  0x5d   : > { %v13866_v47 = vld [vmem:[#allocation2 + $0x88] sm:$0xff]   ;;  %v1302_v48 = vshrl.u32 %v13863_v37, 16  ;;  %v707_v8 = vld [vmem:[%s14362_s27 + $0xb0] sm:$0xf]  ;;  %v708_v13 = vld [vmem:[%s14362_s27 + $0xb4] sm:$0xf] }
  0x5e   : > { %v14704_v49 = vld [vmem:[#allocation2 + $0x90] sm:$0xff]   ;;  %v1293_v21 = vsel %vm1169_vm3, %v1288_v41, %v1292_v44  ;;  %v1306_v38 = vshll.u32 %v13866_v47, 16  ;;  %v1296_v51 = vor.u32 %v1294_v42, %v1292_v44  ;;  %v1300_v52 = vrot.slane %v1298_v45, 1  ;;  %v871_v61 = vld [vmem:[%s14356_s24 + $0xa8] sm:$0xf] }
  0x5f   : > { %12549 = vmatmul.mubr.msk.bf16.gmra.mrb[28].mxu0 %vm1366_vm2, %v13861_v39  ;;  %v13865_v53 = vld [vmem:[#allocation3 + $0x88] sm:$0xff]   ;;  %v1314_v55 = vshll.u32 %v14704_v49, 16  ;;  %v13868_v58 = vld [vmem:[#allocation3 + $0x90] sm:$0xff]   ;;  %v1310_v63 = vshrl.u32 %v13866_v47, 16  ;;  %v925_v1 = vmax.bf16 %v16547_v2, %v871_v61  ;;  %v705_v40 = vld [vmem:[%s14362_s27 + $0xa8] sm:$0xf]  ;;  %v761_v14 = vmax.bf16 %v16547_v2, %v707_v8 }
  0x60   : > { %12552 = vmatprep.mubr.msk.bf16.mxu0 %vm1366_vm2, %v13864_v43  ;;  %v1308_v54 = vrot.slane %v1306_v38, 1  ;;  %v1304_v57 = vor.u32 %v1302_v48, %v1300_v52  ;;  %v1301_v62 = vsel %vm1169_vm3, %v1296_v51, %v1300_v52  ;;  %v872_v0 = vld [vmem:[%s14356_s24 + $0xac] sm:$0xf]  ;;  %v1318_v60 = vshrl.u32 %v14704_v49, 16  ;;  %v873_v15 = vld [vmem:[%s14356_s24 + $0xb0] sm:$0xf] }
  0x61   : > { %v14713_v56 = vld [vmem:[#allocation2 + $0x98] sm:$0xff]   ;;  %v1316_v50 = vrot.slane %v1314_v55, 1  ;;  %v926_v3 = vmax.bf16 %v16547_v2, %v872_v0  ;;  %v706_v4 = vld [vmem:[%s14362_s27 + $0xac] sm:$0xf]  ;;  %v759_v7 = vmax.bf16 %v16547_v2, %v705_v40  ;;  %979 = vst.msk [vmem:[#allocation3 + $0xa8] sm:$0xf] %vm771_vm1, %v925_v1  ;;  %v762_v16 = vmax.bf16 %v16547_v2, %v708_v13 }
  0x62   : > { %v1322_v59 = vshll.u32 %v14713_v56, 16  ;;  %v1309_v9 = vsel %vm1169_vm3, %v1304_v57, %v1308_v54  ;;  %v13871_v11 = vld [vmem:[#allocation2 + $0xa0] sm:$0xff]   ;;  %v760_v6 = vmax.bf16 %v16547_v2, %v706_v4  ;;  %v874_v17 = vld [vmem:[%s14356_s24 + $0xb4] sm:$0xf]  ;;  %v927_v18 = vmax.bf16 %v16547_v2, %v873_v15  ;;  %v875_v19 = vld [vmem:[%s14356_s24 + $0xb8] sm:$0xf] }
  0x63   : > { %12095 = vmatmul.mubr.msk.bf16.gmra.mrb[24].mxu1 %vm1366_vm2, %v1285_v46  ;;  %980 = vst.msk [vmem:[#allocation3 + $0xac] sm:$0xf] %vm771_vm1, %v926_v3  ;;  %814 = vst.msk [vmem:[#allocation2 + $0xa8] sm:$0xf] %vm771_vm1, %v759_v7  ;;  %v876_v20 = vld [vmem:[%s14356_s24 + $0xbc] sm:$0xf]  ;;  %v928_v23 = vmax.bf16 %v16547_v2, %v874_v17  ;;  %v929_v24 = vmax.bf16 %v16547_v2, %v875_v19  ;;  %v1312_v29 = vor.u32 %v1310_v63, %v1308_v54  ;;  %s14833_s24 = scalar_lea.vmem %s16541_s4, %s11611_s15 }
  0x64   : > { %12098 = vmatprep.mubr.msk.bf16.mxu1 %vm1366_vm2, %v1293_v21  ;;  %v1324_v10 = vrot.slane %v1322_v59, 1  ;;  %v13869_v22 = vld [vmem:[#allocation3 + $0x98] sm:$0xff]   ;;  %815 = vst.msk [vmem:[#allocation2 + $0xac] sm:$0xf] %vm771_vm1, %v760_v6  ;;  %816 = vst.msk [vmem:[#allocation2 + $0xb0] sm:$0xf] %vm771_vm1, %v761_v14  ;;  %v930_v25 = vmax.bf16 %v16547_v2, %v876_v20  ;;  %v1320_v35 = vor.u32 %v1318_v60, %v1316_v50 }
  0x65   : > { %v709_v26 = vld [vmem:[%s14362_s27 + $0xb8] sm:$0xf]  ;;  %v710_v5 = vld [vmem:[%s14362_s27 + $0xbc] sm:$0xf]  ;;  %v711_v27 = vld [vmem:[%s14731_s18] sm:$0xf]  ;;  %v1317_v41 = vsel %vm1169_vm3, %v1312_v29, %v1316_v50 }
  0x66   : > { %817 = vst.msk [vmem:[#allocation2 + $0xb4] sm:$0xf] %vm771_vm1, %v762_v16  ;;  %981 = vst.msk [vmem:[#allocation3 + $0xb0] sm:$0xf] %vm771_vm1, %v927_v18  ;;  %v763_v30 = vmax.bf16 %v16547_v2, %v709_v26  ;;  %v764_v31 = vmax.bf16 %v16547_v2, %v710_v5  ;;  %v765_v32 = vmax.bf16 %v16547_v2, %v711_v27  ;;  %v6143_v33 = vld [vmem:[#allocation3] sm:$0xf] }
  0x67   : > { %12553 = vmatmul.mubr.msk.bf16.gmra.mrb[32].mxu0 %vm1366_vm2, %v13865_v53  ;;  %v14763_v34 = vld [vmem:[#allocation3 + $0x4] sm:$0xf]  ;;  %982 = vst.msk [vmem:[#allocation3 + $0xb4] sm:$0xf] %vm771_vm1, %v928_v23  ;;  %983 = vst.msk [vmem:[#allocation3 + $0xb8] sm:$0xf] %vm771_vm1, %v929_v24  ;;  %v1325_v42 = vsel %vm1169_vm3, %v1320_v35, %v1324_v10 }
  0x68   : > { %12556 = vmatprep.mubr.msk.bf16.mxu0 %vm1366_vm2, %v13868_v58  ;;  %984 = vst.msk [vmem:[#allocation3 + $0xbc] sm:$0xf] %vm771_vm1, %v930_v25  ;;  %v1330_v36 = vshll.u32 %v13871_v11, 16  ;;  %v13872_v37 = vld [vmem:[#allocation3 + $0xa0] sm:$0xff]   ;;  %818 = vst.msk [vmem:[#allocation2 + $0xb8] sm:$0xf] %vm771_vm1, %v763_v30  ;;  %v11282_v39 = vcombine.low %v6143_v33, %v14763_v34 }
  0x69   : > { %819 = vst.msk [vmem:[#allocation2 + $0xbc] sm:$0xf] %vm771_vm1, %v764_v31  ;;  %820 = vst.msk [vmem:[#allocation2 + $0xc0] sm:$0xf] %vm771_vm1, %v765_v32  ;;  %v1326_v28 = vshrl.u32 %v14713_v56, 16  ;;  %v1334_v43 = vshrl.u32 %v13871_v11, 16 }
  0x6a   : > { %v14776_v44 = vld [vmem:[#allocation3 + $0x8] sm:$0xff]   ;;  %v1332_v45 = vrot.slane %v1330_v36, 1  ;;  %v6320_v48 = vshll.u32 %v11282_v39, 16  ;;  %v6318_v56 = vshrl.u32 %v11282_v39, 16  ;;  %v14788_v40 = vld [vmem:[#allocation3 + $0x18] sm:$0xff]  }
  0x6b   : > { %12099 = vmatmul.mubr.msk.bf16.gmra.mrb[28].mxu1 %vm1366_vm2, %v1301_v62  ;;  %v13874_v46 = vld [vmem:[#allocation2 + $0xa8] sm:$0xff]   ;;  %v1328_v49 = vor.u32 %v1326_v28, %v1324_v10  ;;  %v6325_v58 = vshll.u32 %v14776_v44, 16  ;;  %v14783_v62 = vld [vmem:[#allocation3 + $0x10] sm:$0xff]   ;;  %v6329_v6 = vshrl.u32 %v14776_v44, 16  ;;  %v6341_v15 = vshll.u32 %v14788_v40, 16 }
  0x6c   : > { %12102 = vmatprep.mubr.msk.bf16.mxu1 %vm1366_vm2, %v1309_v9  ;;  %v13873_v21 = vld [vmem:[#allocation3 + $0xa8] sm:$0xff]   ;;  %v1338_v38 = vshll.u32 %v13874_v46, 16  ;;  %v1336_v51 = vor.u32 %v1334_v43, %v1332_v45  ;;  %v6322_v57 = vrot.slane %v6320_v48, 1  ;;  %v1342_v61 = vshrl.u32 %v13874_v46, 16  ;;  %v14199_v31 = vld [vmem:[%s16544_s7 + $0x8] sm:$0xf] }
  0x6d   : > { %v13875_v47 = vld [vmem:[#allocation2 + $0xb0] sm:$0xff]   ;;  %v1333_v59 = vsel %vm1169_vm3, %v1328_v49, %v1332_v45  ;;  %v6327_v3 = vrot.slane %v6325_v58, 1  ;;  %v6333_v8 = vshll.u32 %v14783_v62, 16  ;;  %v6337_v14 = vshrl.u32 %v14783_v62, 16  ;;  %v14823_v46 = vld [vmem:[#allocation3 + $0x38] sm:$0xff]  }
  0x6e   : > { %v1340_v53 = vrot.slane %v1338_v38, 1  ;;  %v13876_v54 = vld [vmem:[#allocation3 + $0xb0] sm:$0xff]   ;;  %v1346_v55 = vshll.u32 %v13875_v47, 16  ;;  %v1350_v0 = vshrl.u32 %v13875_v47, 16  ;;  %v6323_v60 = vor.u32 %v6322_v57, %v6318_v56  ;;  %v14804_v26 = vld [vmem:[#allocation3 + $0x28] sm:$0xff]  }
  0x6f   : > { %12557 = vmatmul.mubr.msk.bf16.gmra.mrb[36].mxu0 %vm1366_vm2, %v13869_v22  ;;  %v13877_v9 = vld [vmem:[#allocation3 + $0xb8] sm:$0xff]   ;;  %v6335_v20 = vrot.slane %v6333_v8, 1  ;;  %v14800_v22 = vld [vmem:[#allocation3 + $0x20] sm:$0xff]   ;;  %v6331_v23 = vor.u32 %v6329_v6, %v6327_v3  ;;  %v6343_v25 = vrot.slane %v6341_v15, 1  ;;  %v6989_v32 = vsel %vm1439_vm0, %v14199_v31, 0  ;;  %v14819_v28 = vld [vmem:[#allocation3 + $0x30] sm:$0xff]  }
  0x70   : > { %12560 = vmatprep.mubr.msk.bf16.mxu0 %vm1366_vm2, %v13872_v37  ;;  %v13878_v52 = vld [vmem:[#allocation2 + $0xb8] sm:$0xff]   ;;  %v1341_v63 = vsel %vm1169_vm3, %v1336_v51, %v1340_v53  ;;  %v1348_v50 = vrot.slane %v1346_v55, 1  ;;  %v1344_v4 = vor.u32 %v1342_v61, %v1340_v53  ;;  %v13879_v7 = vld [vmem:[#allocation2 + $0xc0] ss:$0 sps:$4 sm:$0x11]   ;;  %v6328_v13 = vsel %vm1169_vm3, %v6323_v60, %v6327_v3  ;;  %v14848_v56 = vld [vmem:[#allocation3 + $0x48] sm:$0xff]  }
  0x71   : > { %v1354_v1 = vshll.u32 %v13878_v52, 16  ;;  %v1358_v17 = vshrl.u32 %v13878_v52, 16  ;;  %v1362_v18 = vshll.u32 %v13879_v7, 16  ;;  %v6339_v24 = vor.u32 %v6337_v14, %v6335_v20  ;;  %v877_v52 = vld [vmem:[%s14833_s24] sm:$0xf]  ;;  %v14857_v61 = vld [vmem:[#allocation2 + $0x8] sm:$0xff]  }
  0x72   : > { %v1352_v10 = vor.u32 %v1350_v0, %v1348_v50  ;;  %v1349_v16 = vsel %vm1169_vm3, %v1344_v4, %v1348_v50  ;;  %v6349_v29 = vshll.u32 %v14800_v22, 16  ;;  %v6336_v30 = vsel %vm1169_vm3, %v6331_v23, %v6335_v20  ;;  %v14200_v53 = vld [vmem:[%s16543_s6 + $0x8] sm:$0xf]  ;;  %v14865_v50 = vld [vmem:[%s16544_s7 + $0xc] sm:$0xf]  ;;  %v14867_v60 = vld [vmem:[#allocation2 + $0x10] sm:$0xff]  }
  0x73   : > { %12103 = vmatmul.mubr.msk.bf16.gmra.mrb[32].mxu1 %vm1366_vm2, %v1317_v41  ;;  %v1356_v11 = vrot.slane %v1354_v1, 1  ;;  %v1364_v27 = vrot.slane %v1362_v18, 1  ;;  %v6345_v33 = vshrl.u32 %v14788_v40, 16  ;;  %v6344_v35 = vsel %vm1169_vm3, %v6339_v24, %v6343_v25  ;;  %v14874_v7 = vld [vmem:[#allocation3 + $0x50] sm:$0xff]   ;;  %v14886_v14 = vld [vmem:[#allocation3 + $0x60] sm:$0xff]  }
  0x74   : > { %12106 = vmatprep.mubr.msk.bf16.mxu1 %vm1366_vm2, %v1325_v42  ;;  %v6353_v36 = vshrl.u32 %v14800_v22, 16  ;;  %v6357_v37 = vshll.u32 %v14804_v26, 16  ;;  %v6351_v41 = vrot.slane %v6349_v29, 1  ;;  %v6365_v47 = vshll.u32 %v14819_v28, 16  ;;  %v14911_v31 = vld [vmem:[#allocation2 + $0x20] sm:$0xff]  }
  0x75   : > { %v1357_v19 = vsel %vm1169_vm3, %v1352_v10, %v1356_v11  ;;  %v1360_v5 = vor.u32 %v1358_v17, %v1356_v11  ;;  %v6347_v42 = vor.u32 %v6345_v33, %v6343_v25  ;;  %v6361_v49 = vshrl.u32 %v14804_v26, 16  ;;  %v14883_v11 = vld [vmem:[#allocation3 + $0x58] sm:$0xff]  }
  0x76   : > { %v6355_v43 = vor.u32 %v6353_v36, %v6351_v41  ;;  %v6359_v45 = vrot.slane %v6357_v37, 1  ;;  %v6369_v38 = vshrl.u32 %v14819_v28, 16  ;;  %v6373_v51 = vshll.u32 %v14823_v46, 16 }
  0x77   : > { %12561 = vmatmul.mubr.msk.bf16.gmra.mrb[40].mxu0 %vm1366_vm2, %v13873_v21  ;;  %v1365_v39 = vsel %vm1169_vm3, %v1360_v5, %v1364_v27  ;;  %v6352_v48 = vsel %vm1169_vm3, %v6347_v42, %v6351_v41  ;;  %v6367_v55 = vrot.slane %v6365_v47, 1  ;;  %v931_v58 = vmax.bf16 %v16547_v2, %v877_v52  ;;  %v14902_v5 = vld [vmem:[#allocation2 + $0x18] sm:$0xff]  }
  0x78   : > { %12564 = vmatprep.mubr.msk.bf16.mxu0 %vm1366_vm2, %v13876_v54  ;;  %v6360_v21 = vsel %vm1169_vm3, %v6355_v43, %v6359_v45  ;;  %v2073_v54 = vsel %vm1439_vm0, %v14200_v53, 0  ;;  %v6363_v57 = vor.u32 %v6361_v49, %v6359_v45  ;;  %v6375_v0 = vrot.slane %v6373_v51, 1 }
  0x79   : > { %v6377_v3 = vshrl.u32 %v14823_v46, 16  ;;  %985 = vst.msk [vmem:[#allocation3 + $0xc0] sm:$0xf] %vm771_vm1, %v931_v58  ;;  %v6389_v4 = vshll.u32 %v14848_v56, 16  ;;  %v6393_v10 = vshrl.u32 %v14848_v56, 16  ;;  %v6872_v17 = vrot.slane %v14788_v40, 1 }
  0x7a   : > { %v6368_v8 = vsel %vm1169_vm3, %v6363_v57, %v6367_v55  ;;  %v6874_v20 = vrot.slane %v14800_v22, 1  ;;  %v6401_v23 = vshrl.u32 %v14874_v7, 16  ;;  %v6876_v25 = vrot.slane %v14804_v26, 1  ;;  %v14915_v26 = vld [vmem:[#allocation3 + $0x68] sm:$0xff]   ;;  %v14951_v57 = vld [vmem:[#allocation3 + $0x78] sm:$0xff]   ;;  %v14953_v58 = vld [vmem:[#allocation3 + $0x80] sm:$0xff]  }
  0x7b   : > { %12107 = vmatmul.mubr.msk.bf16.gmra.mrb[36].mxu1 %vm1366_vm2, %v1333_v59  ;;  %v14855_v59 = vld [vmem:[%s16543_s6 + $0xc] sm:$0xf]  ;;  %v6379_v15 = vor.u32 %v6377_v3, %v6375_v0  ;;  %v6391_v18 = vrot.slane %v6389_v4, 1  ;;  %v6878_v40 = vrot.slane %v14819_v28, 1  ;;  %v6405_v22 = vshll.u32 %v14883_v11, 16 }
  0x7c   : > { %12110 = vmatprep.mubr.msk.bf16.mxu1 %vm1366_vm2, %v1341_v63  ;;  %v6371_v63 = vor.u32 %v6369_v38, %v6367_v55  ;;  %v6413_v29 = vshll.u32 %v14886_v14, 16  ;;  %v6417_v28 = vshrl.u32 %v14886_v14, 16  ;;  %v6884_v43 = vrot.slane %v14848_v56, 1 }
  0x7d   : > { %v14921_v33 = vsel %vm1950_vm4, %v6876_v25, %v6878_v40  ;;  %v6886_v45 = vrot.slane %v14874_v7, 1  ;;  %v6421_v38 = vshll.u32 %v14915_v26, 16  ;;  %v6888_v52 = vrot.slane %v14883_v11, 1 }
  0x7e   : > { %v6376_v6 = vsel %vm1169_vm3, %v6371_v63, %v6375_v0  ;;  %v6890_v53 = vrot.slane %v14886_v14, 1  ;;  %v6425_v56 = vshrl.u32 %v14915_v26, 16  ;;  %v6892_v63 = vrot.slane %v14915_v26, 1  ;;  %v14956_v0 = vld [vmem:[#allocation2 + $0x28] sm:$0xff]  }
  0x7f   : > { %12565 = vmatmul.mubr.msk.bf16.gmra.mrb[44].mxu0 %vm1366_vm2, %v13877_v9  ;;  %v14962_v3 = vsel %vm1950_vm4, %v6886_v45, %v6888_v52  ;;  %v6898_v14 = vrot.slane %v14953_v58, 1 }
  0x80   : > { %12570 = vmatprep.mubr.msk.bf16.mxu0 %vm1366_vm2, %v6328_v13  ;;  %v14965_v4 = vsel %vm1950_vm4, %v6888_v52, %v6890_v53  ;;  %v6449_v52 = vshrl.u32 %v14953_v58, 16 }
  0x83   : > { %12111 = vmatmul.mubr.msk.bf16.gmra.mrb[40].mxu1 %vm1366_vm2, %v1349_v16  ;;  %v6870_v16 = vrot.slane %v14783_v62, 1  ;;  %v1954_v62 = vrot.slane %v14867_v60, 1 }
  0x84   : > { %12114 = vmatprep.mubr.msk.bf16.mxu1 %vm1366_vm2, %v1357_v19  ;;  %v6397_v19 = vshll.u32 %v14874_v7, 16 }
  0x85   : > { %v14898_v24 = vsel %vm1950_vm4, %v6870_v16, %v6872_v17 }
  0x86   : > { %v6399_v37 = vrot.slane %v6397_v19, 1  ;;  %v14985_v19 = vld [vmem:[#allocation3 + $0x90] sm:$0xff]  }
  0x87   : > { %12571 = vmatmul.mubr.msk.bf16.vlgmr.msra.gmra.mrb[0].mxu0 %vm1366_vm2, %v6336_v30  ;;  %v14909_v30 = vsel %vm1950_vm4, %v6872_v17, %v6874_v20 }
  0x88   : > { %12574 = vmatprep.mubr.msk.bf16.mxu0 %vm1366_vm2, %v6344_v35  ;;  %12619 = vmatpush3.bf16.msra.mxu0 %v6989_v32  ;;  %v14918_v32 = vsel %vm1950_vm4, %v6874_v20, %v6876_v25  ;;  %v6880_v35 = vrot.slane %v14823_v46, 1  ;;  %v14934_v46 = vld [vmem:[#allocation3 + $0x70] sm:$0xff]   ;;  %v6403_v55 = vor.u32 %v6401_v23, %v6399_v37  ;;  %v6437_v20 = vshll.u32 %v14951_v57, 16 }
  0x89   : > { %13796 = vmatprep.subr.msk.bf16.mxu0 %vm1439_vm0, %v14865_v50  ;;  %v6894_v7 = vrot.slane %v14934_v46, 1 }
  0x8a   : > { %v14929_v42 = vsel %vm1950_vm4, %v6878_v40, %v6880_v35 }
  0x8b   : > { %12115 = vmatmul.mubr.msk.bf16.gmra.mrb[44].mxu1 %vm1366_vm2, %v1365_v39  ;;  %v6409_v39 = vshrl.u32 %v14883_v11, 16  ;;  %v14976_v11 = vsel %vm1950_vm4, %v6890_v53, %v6892_v63 }
  0x8c   : > { %12120 = vmatprep.mubr.msk.bf16.mxu1 %vm1366_vm2, %v14461_v12  ;;  %v14840_v12 = vld [vmem:[#allocation3 + $0x40] sm:$0xff]  }
  0x8d   : > { %v6381_v1 = vshll.u32 %v14840_v12, 16  ;;  %v6385_v9 = vshrl.u32 %v14840_v12, 16  ;;  %v6882_v41 = vrot.slane %v14840_v12, 1  ;;  %v14944_v12 = vsel %vm1950_vm4, %v6884_v43, %v6886_v45  ;;  %v15011_v45 = vld [vmem:[#allocation2 + $0x40] sm:$0xff]  }
  0x8f   : > { %12575 = vmatmul.mubr.msk.bf16.gmra.mrb[4].mxu0 %vm1366_vm2, %v6352_v48  ;;  %v6383_v13 = vrot.slane %v6381_v1, 1  ;;  %v6407_v48 = vrot.slane %v6405_v22, 1  ;;  %v14937_v49 = vsel %vm1950_vm4, %v6880_v35, %v6882_v41  ;;  %v14941_v51 = vsel %vm1950_vm4, %v6882_v41, %v6884_v43  ;;  %v15009_v43 = vld [vmem:[#allocation3 + $0x98] sm:$0xff]  }
  0x90   : > { %12578 = vmatprep.mubr.msk.bf16.mxu0 %vm1366_vm2, %v6360_v21  ;;  %v6415_v21 = vrot.slane %v6413_v29, 1  ;;  %v6429_v1 = vshll.u32 %v14934_v46, 16  ;;  %v6902_v22 = vrot.slane %v14985_v19, 1  ;;  %v6441_v41 = vshrl.u32 %v14951_v57, 16 }
  0x91   : > { %v6387_v27 = vor.u32 %v6385_v9, %v6383_v13  ;;  %v6384_v36 = vsel %vm1169_vm3, %v6379_v15, %v6383_v13  ;;  %v6433_v9 = vshrl.u32 %v14934_v46, 16  ;;  %v6896_v13 = vrot.slane %v14951_v57, 1 }
  0x92   : > { %v6408_v17 = vsel %vm1169_vm3, %v6403_v55, %v6407_v48  ;;  %v6411_v26 = vor.u32 %v6409_v39, %v6407_v48  ;;  %v6445_v39 = vshll.u32 %v14953_v58, 16 }
  0x93   : > { %12121 = vmatmul.mubr.msk.bf16.vlgmr.msra.gmra.mrb[0].mxu1 %vm1366_vm2, %v14857_v61  ;;  %v6392_v47 = vsel %vm1169_vm3, %v6387_v27, %v6391_v18  ;;  %v14989_v23 = vsel %vm1950_vm4, %v6894_v7, %v6896_v13  ;;  %v14992_v25 = vsel %vm1950_vm4, %v6896_v13, %v6898_v14  ;;  %v6431_v27 = vrot.slane %v6429_v1, 1  ;;  %v15035_v1 = vld [vmem:[#allocation3 + $0xa8] sm:$0xff]  }
  0x94   : > { %12169 = vmatpush3.bf16.msra.mxu1 %v2073_v54  ;;  %12124 = vmatprep.mubr.msk.bf16.mxu1 %vm1366_vm2, %v14867_v60  ;;  %v6395_v54 = vor.u32 %v6393_v10, %v6391_v18  ;;  %v14973_v10 = vld [vmem:[#allocation3 + $0x88] sm:$0xff]   ;;  %v6423_v18 = vrot.slane %v6421_v38, 1  ;;  %v6416_v48 = vsel %vm1169_vm3, %v6411_v26, %v6415_v21  ;;  %v6439_v38 = vrot.slane %v6437_v20, 1  ;;  %v15058_v26 = vld [vmem:[#allocation2 + $0x58] sm:$0xff]  }
  0x95   : > { %13787 = vmatprep.subr.msk.bf16.mxu1 %vm1439_vm0, %v14855_v59  ;;  %v6900_v40 = vrot.slane %v14973_v10, 1  ;;  %v6447_v58 = vrot.slane %v6445_v39, 1  ;;  %v6453_v13 = vshll.u32 %v14973_v10, 16  ;;  %v6465_v39 = vshrl.u32 %v14985_v19, 16 }
  0x96   : > { %v6400_v15 = vsel %vm1169_vm3, %v6395_v54, %v6399_v37  ;;  %v6419_v37 = vor.u32 %v6417_v28, %v6415_v21  ;;  %v6904_v28 = vrot.slane %v15009_v43, 1  ;;  %v6427_v55 = vor.u32 %v6425_v56, %v6423_v18  ;;  %v15031_v21 = vld [vmem:[#allocation2 + $0x48] sm:$0xff]   ;;  %v15042_v56 = vld [vmem:[#allocation3 + $0xb0] sm:$0xff]  }
  0x97   : > { %12579 = vmatmul.mubr.msk.bf16.gmra.mrb[8].mxu0 %vm1366_vm2, %v6368_v8  ;;  %v14968_v8 = vld [vmem:[#allocation2 + $0x30] sm:$0xff]   ;;  %v14998_v29 = vsel %vm1950_vm4, %v6898_v14, %v6900_v40  ;;  %v15002_v35 = vsel %vm1950_vm4, %v6900_v40, %v6902_v22  ;;  %v6910_v20 = vrot.slane %v15042_v56, 1  ;;  %v1960_v60 = vrot.slane %v14956_v0, 1 }
  0x98   : > { %12582 = vmatprep.mubr.msk.bf16.mxu0 %vm1366_vm2, %v6376_v6  ;;  %v14979_v6 = vsel %vm1950_vm4, %v6892_v63, %v6894_v7  ;;  %v6424_v46 = vsel %vm1169_vm3, %v6419_v37, %v6423_v18  ;;  %v15025_v54 = vsel %vm1950_vm4, %v6902_v22, %v6904_v28  ;;  %v6435_v63 = vor.u32 %v6433_v9, %v6431_v27  ;;  %v15037_v7 = vld [vmem:[#allocation2 + $0x50] sm:$0xff]  }
  0x99   : > { %v6432_v14 = vsel %vm1169_vm3, %v6427_v55, %v6431_v27  ;;  %v6908_v9 = vrot.slane %v15035_v1, 1  ;;  %v6461_v18 = vshll.u32 %v14985_v19, 16  ;;  %v6443_v22 = vor.u32 %v6441_v41, %v6439_v38  ;;  %v13903_v41 = vld [vmem:[#allocation3 + $0xb8] sm:$0xff]  }
  0x9a   : > { %v6455_v37 = vrot.slane %v6453_v13, 1 }
  0x9b   : > { %12125 = vmatmul.mubr.msk.bf16.gmra.mrb[4].mxu1 %vm1366_vm2, %v14902_v5  ;;  %v15056_v27 = vsel %vm1950_vm4, %v6908_v9, %v6910_v20  ;;  %v6463_v55 = vrot.slane %v6461_v18, 1 }
  0x9c   : > { %12128 = vmatprep.mubr.msk.bf16.mxu1 %vm1366_vm2, %v14911_v31 }
  0x9f   : > { %12583 = vmatmul.mubr.msk.bf16.gmra.mrb[12].mxu0 %vm1366_vm2, %v6384_v36  ;;  %v15004_v36 = vld [vmem:[#allocation2 + $0x38] sm:$0xff]  }
  0xa0   : > { %12586 = vmatprep.mubr.msk.bf16.mxu0 %vm1366_vm2, %v6392_v47  ;;  %v15016_v47 = vld [vmem:[#allocation3 + $0xa0] sm:$0xff]  }
  0xa1   : > { %v6906_v53 = vrot.slane %v15016_v47, 1 }
  0xa3   : > { %12129 = vmatmul.mubr.msk.bf16.gmra.mrb[8].mxu1 %vm1366_vm2, %v14956_v0  ;;  %v15029_v57 = vsel %vm1950_vm4, %v6904_v28, %v6906_v53  ;;  %v15052_v40 = vsel %vm1950_vm4, %v6906_v53, %v6908_v9  ;;  %v6448_v28 = vsel %vm1169_vm3, %v6443_v22, %v6447_v58  ;;  %v15079_v9 = vld [vmem:[#allocation2 + $0x68] sm:$0xff]   ;;  %v15084_v22 = vld [vmem:[#allocation2 + $0x70] sm:$0xff]  }
  0xa4   : > { %12132 = vmatprep.mubr.msk.bf16.mxu1 %vm1366_vm2, %v14968_v8 }
  0xa7   : > { %12587 = vmatmul.mubr.msk.bf16.gmra.mrb[16].mxu0 %vm1366_vm2, %v6400_v15  ;;  %v6440_v15 = vsel %vm1169_vm3, %v6435_v63, %v6439_v38  ;;  %v13904_v38 = vld [vmem:[#allocation3 + $0xc0] ss:$0 sps:$4 sm:$0x11]   ;;  %v6912_v63 = vrot.slane %v13903_v41, 1 }
  0xa8   : > { %12590 = vmatprep.mubr.msk.bf16.mxu0 %vm1366_vm2, %v6408_v17  ;;  %v6457_v17 = vshrl.u32 %v14973_v10, 16  ;;  %v6451_v10 = vor.u32 %v6449_v52, %v6447_v58  ;;  %v6473_v52 = vshrl.u32 %v15009_v43, 16  ;;  %v6914_v13 = vrot.slane %v13904_v38, 1 }
  0xa9   : > { %v15073_v19 = vsel %vm1950_vm4, %v6910_v20, %v6912_v63  ;;  %v6467_v58 = vor.u32 %v6465_v39, %v6463_v55  ;;  %v6481_v20 = vshrl.u32 %v15016_v47, 16 }
  0xaa   : > { %v6456_v53 = vsel %vm1169_vm3, %v6451_v10, %v6455_v37 }
  0xab   : > { %12133 = vmatmul.mubr.msk.bf16.gmra.mrb[12].mxu1 %vm1366_vm2, %v15004_v36 }
  0xac   : > { %12136 = vmatprep.mubr.msk.bf16.mxu1 %vm1366_vm2, %v15011_v45 }
  0xaf   : > { %12591 = vmatmul.mubr.msk.bf16.gmra.mrb[20].mxu0 %vm1366_vm2, %v6416_v48  ;;  %v15063_v48 = vld [vmem:[#allocation2 + $0x60] sm:$0xff]  }
  0xb0   : > { %12594 = vmatprep.mubr.msk.bf16.mxu0 %vm1366_vm2, %v6424_v46  ;;  %v6469_v46 = vshll.u32 %v15009_v43, 16  ;;  %v6477_v43 = vshll.u32 %v15016_v47, 16  ;;  %v15098_v47 = vld [vmem:[#allocation2 + $0x80] sm:$0xff]  }
  0xb2   : > { %v6471_v18 = vrot.slane %v6469_v46, 1  ;;  %v15094_v46 = vld [vmem:[#allocation2 + $0x78] sm:$0xff]  }
  0xb3   : > { %12137 = vmatmul.mubr.msk.bf16.gmra.mrb[16].mxu1 %vm1366_vm2, %v15031_v21 }
  0xb4   : > { %12140 = vmatprep.mubr.msk.bf16.mxu1 %vm1366_vm2, %v15037_v7  ;;  %v6475_v39 = vor.u32 %v6473_v52, %v6471_v18 }
  0xb7   : > { %12595 = vmatmul.mubr.msk.bf16.gmra.mrb[24].mxu0 %vm1366_vm2, %v6432_v14  ;;  %v6459_v14 = vor.u32 %v6457_v17, %v6455_v37  ;;  %v6485_v17 = vshll.u32 %v15035_v1, 16  ;;  %v6472_v37 = vsel %vm1169_vm3, %v6467_v58, %v6471_v18  ;;  %v6501_v58 = vshll.u32 %v13903_v41, 16 }
  0xb8   : > { %12598 = vmatprep.mubr.msk.bf16.mxu0 %vm1366_vm2, %v6440_v15  ;;  %v15077_v15 = vsel %vm1950_vm4, %v6912_v63, %v6914_v13  ;;  %v6493_v13 = vshll.u32 %v15042_v56, 16 }
  0xb9   : > { %v6464_v10 = vsel %vm1169_vm3, %v6459_v14, %v6463_v55  ;;  %v6487_v63 = vrot.slane %v6485_v17, 1  ;;  %v6489_v55 = vshrl.u32 %v15035_v1, 16  ;;  %v6497_v14 = vshrl.u32 %v15042_v56, 16  ;;  %v15109_v17 = vld [vmem:[#allocation2 + $0x88] sm:$0xff]  }
  0xba   : > { %v6505_v56 = vshrl.u32 %v13903_v41, 16 }
  0xbb   : > { %12141 = vmatmul.mubr.msk.bf16.gmra.mrb[20].mxu1 %vm1366_vm2, %v15058_v26 }
  0xbc   : > { %12144 = vmatprep.mubr.msk.bf16.mxu1 %vm1366_vm2, %v15063_v48 }
  0xbf   : > { %12599 = vmatmul.mubr.msk.bf16.gmra.mrb[28].mxu0 %vm1366_vm2, %v6448_v28  ;;  %v6479_v28 = vrot.slane %v6477_v43, 1  ;;  %v6495_v43 = vrot.slane %v6493_v13, 1 }
  0xc0   : > { %12602 = vmatprep.mubr.msk.bf16.mxu0 %vm1366_vm2, %v6456_v53 }
  0xc1   : > { %v6483_v53 = vor.u32 %v6481_v20, %v6479_v28  ;;  %v6480_v52 = vsel %vm1169_vm3, %v6475_v39, %v6479_v28  ;;  %v6491_v20 = vor.u32 %v6489_v55, %v6487_v63  ;;  %v6499_v1 = vor.u32 %v6497_v14, %v6495_v43  ;;  %v6861_v39 = vld [vmem:[#allocation3] sm:$0xe] }
  0xc2   : > { %v6509_v28 = vshll.u32 %v13904_v38, 16  ;;  %v6868_v38 = vrot.slane %v14776_v44, 1  ;;  %v1952_v44 = vrot.slane %v14857_v61, 1 }
  0xc3   : > { %12145 = vmatmul.mubr.msk.bf16.gmra.mrb[24].mxu1 %vm1366_vm2, %v15079_v9  ;;  %v6488_v18 = vsel %vm1169_vm3, %v6483_v53, %v6487_v63  ;;  %v6496_v53 = vsel %vm1169_vm3, %v6491_v20, %v6495_v43  ;;  %v11332_v63 = vcombine.low %v6861_v39, %v14763_v34  ;;  %v1944_v34 = vld [vmem:[#allocation2] sm:$0xe]  ;;  %v14221_v20 = vld [vmem:[#allocation2 + $0x4] sm:$0xf]  ;;  %v7507_v39 = vsel %vm1439_vm0, %v14865_v50, 0 }
  0xc4   : > { %12148 = vmatprep.mubr.msk.bf16.mxu1 %vm1366_vm2, %v15084_v22  ;;  %v6511_v55 = vrot.slane %v6509_v28, 1  ;;  %v1956_v50 = vrot.slane %v14902_v5, 1 }
  0xc5   : > { %v6867_v41 = vrot.slane %v11332_v63, 1  ;;  %v15158_v63 = vld [vmem:[#allocation2 + $0xb8] sm:$0xff]  }
  0xc7   : > { %12603 = vmatmul.mubr.msk.bf16.gmra.mrb[32].mxu0 %vm1366_vm2, %v6464_v10  ;;  %v6503_v10 = vrot.slane %v6501_v58, 1  ;;  %v15122_v58 = vld [vmem:[#allocation2 + $0x98] sm:$0xff]   ;;  %v6869_v43 = vsel %vm1950_vm4, %v6867_v41, %v6868_v38  ;;  %v879_v41 = vld [vmem:[%s14833_s24 + $0x8] sm:$0xf] }
  0xc8   : > { %12606 = vmatprep.mubr.msk.bf16.mxu0 %vm1366_vm2, %v6472_v37  ;;  %v15113_v37 = vld [vmem:[#allocation2 + $0x90] sm:$0xff]  }
  0xc9   : > { %v6504_v13 = vsel %vm1169_vm3, %v6499_v1, %v6503_v10  ;;  %v6507_v14 = vor.u32 %v6505_v56, %v6503_v10  ;;  %v10958_v1 = vcombine.low %v1944_v34, %v14221_v20  ;;  %v15135_v10 = vld [vmem:[#allocation2 + $0xa8] sm:$0xff]   ;;  %v15140_v56 = vld [vmem:[#allocation2 + $0xb0] sm:$0xff]   ;;  %v933_v34 = vmax.bf16 %v16547_v2, %v879_v41  ;;  %v13933_v41 = vld [vmem:[#allocation3 + $0x7c] sm:$0xff]  }
  0xcb   : > { %12149 = vmatmul.mubr.msk.bf16.gmra.mrb[28].mxu1 %vm1366_vm2, %v15094_v46  ;;  %v1951_v28 = vrot.slane %v10958_v1, 1  ;;  %987 = vst.msk [vmem:[#allocation3 + $0xc8] sm:$0xf] %vm771_vm1, %v933_v34  ;;  %v714_v34 = vld [vmem:[%s15351_s28] sm:$0xf] }
  0xcc   : > { %12152 = vmatprep.mubr.msk.bf16.mxu1 %vm1366_vm2, %v15098_v47 }
  0xcd   : > { %v1953_v61 = vsel %vm1950_vm4, %v1951_v28, %v1952_v44  ;;  %v13905_v28 = vld [vmem:[#allocation3 + $0xc] sm:$0xff]  }
  0xcf   : > { %12607 = vmatmul.mubr.msk.bf16.gmra.mrb[36].mxu0 %vm1366_vm2, %v6480_v52  ;;  %v15127_v52 = vld [vmem:[#allocation2 + $0xa0] sm:$0xff]  }
  0xd0   : > { %12610 = vmatprep.mubr.msk.bf16.mxu0 %vm1366_vm2, %v6488_v18  ;;  %v6512_v18 = vsel %vm1169_vm3, %v6507_v14, %v6511_v55  ;;  %v1957_v55 = vsel %vm1950_vm4, %v1954_v62, %v1956_v50  ;;  %v15176_v14 = vld [vmem:[%s16543_s6 + $0x10] sm:$0xf] }
  0xd3   : > { %12153 = vmatmul.mubr.msk.bf16.gmra.mrb[32].mxu1 %vm1366_vm2, %v15109_v17 }
  0xd4   : > { %12156 = vmatprep.mubr.msk.bf16.mxu1 %vm1366_vm2, %v15113_v37 }
  0xd7   : > { %12611 = vmatmul.mubr.msk.bf16.gmra.mrb[40].mxu0 %vm1366_vm2, %v6496_v53  ;;  %v6871_v53 = vsel %vm1950_vm4, %v6868_v38, %v6870_v16  ;;  %v1955_v16 = vsel %vm1950_vm4, %v1952_v44, %v1954_v62  ;;  %v13907_v62 = vld [vmem:[#allocation2 + $0xc] sm:$0xff]  }
  0xd8   : > { %12614 = vmatprep.mubr.msk.bf16.mxu0 %vm1366_vm2, %v6504_v13  ;;  %v15152_v13 = vld [vmem:[%s16544_s7 + $0x10] sm:$0xf] }
  0xdb   : > { %12157 = vmatmul.mubr.msk.bf16.gmra.mrb[36].mxu1 %vm1366_vm2, %v15122_v58 }
  0xdc   : > { %12160 = vmatprep.mubr.msk.bf16.mxu1 %vm1366_vm2, %v15127_v52 }
  0xdf   : > { %12615 = vmatmul.mubr.msk.bf16.gmra.mrb[44].mxu0 %vm1366_vm2, %v6512_v18  ;;  %v712_v18 = vld [vmem:[%s14731_s18 + $0x4] sm:$0xf] }
  0xe0   : > { %12620 = vmatprep.mubr.msk.bf16.mxu0 %vm1366_vm2, %v6869_v43  ;;  %v713_v43 = vld [vmem:[%s14731_s18 + $0x8] sm:$0xf]  ;;  %v766_v20 = vmax.bf16 %v16547_v2, %v712_v18  ;;  %v13932_v18 = vld [vmem:[#allocation2 + $0x74] sm:$0xff]  }
  0xe2   : > { %821 = vst.msk [vmem:[#allocation2 + $0xc4] sm:$0xf] %vm771_vm1, %v766_v20  ;;  %v13941_v20 = vld [vmem:[#allocation3 + $0x9c] sm:$0xff]  }
  0xe3   : > { %12161 = vmatmul.mubr.msk.bf16.gmra.mrb[40].mxu1 %vm1366_vm2, %v15135_v10 }
  0xe4   : > { %12164 = vmatprep.mubr.msk.bf16.mxu1 %vm1366_vm2, %v15140_v56 }
  0xe7   : > { %12621 = vmatmul.mubr.msk.bf16.vlgmr.msra.gmra.mrb[0].mxu0 %vm1366_vm2, %v6871_v53  ;;  %v13906_v53 = vld [vmem:[#allocation3 + $0x14] sm:$0xff]  }
  0xe8   : > { %12624 = vmatprep.mubr.msk.bf16.mxu0 %vm1366_vm2, %v14898_v24  ;;  %12669 = vmatpush3.bf16.msra.mxu0 %v7507_v39  ;;  %v2591_v24 = vsel %vm1439_vm0, %v14855_v59, 0  ;;  %v1958_v59 = vrot.slane %v14911_v31, 1  ;;  %v1962_v31 = vrot.slane %v14968_v8, 1  ;;  %v1968_v8 = vrot.slane %v15031_v21, 1 }
  0xe9   : > { %13797 = vmatprep.subr.msk.bf16.mxu0 %vm1439_vm0, %v15152_v13 }
  0xea   : > { %v1959_v5 = vsel %vm1950_vm4, %v1956_v50, %v1958_v59  ;;  %v1963_v0 = vsel %vm1950_vm4, %v1960_v60, %v1962_v31  ;;  %v13913_v50 = vld [vmem:[#allocation3 + $0x2c] sm:$0xff]  }
  0xeb   : > { %12165 = vmatmul.mubr.msk.bf16.gmra.mrb[44].mxu1 %vm1366_vm2, %v15158_v63 }
  0xec   : > { %12170 = vmatprep.mubr.msk.bf16.mxu1 %vm1366_vm2, %v1953_v61  ;;  %v8225_v61 = vsel %vm1439_vm0, %v15152_v13, 0  ;;  %v13910_v13 = vld [vmem:[#allocation3 + $0x24] sm:$0xff]  }
  0xef   : > { %12625 = vmatmul.mubr.msk.bf16.gmra.mrb[4].mxu0 %vm1366_vm2, %v14909_v30  ;;  %v1961_v30 = vsel %vm1950_vm4, %v1958_v59, %v1960_v60  ;;  %v15316_v59 = vld [vmem:[%s16543_s6 + $0x14] sm:$0xf]  ;;  %v13914_v60 = vld [vmem:[#allocation3 + $0x34] sm:$0xff]  }
  0xf0   : > { %12628 = vmatprep.mubr.msk.bf16.mxu0 %vm1366_vm2, %v14918_v32  ;;  %v1964_v32 = vrot.slane %v15004_v36, 1 }
  0xf3   : > { %12171 = vmatmul.mubr.msk.bf16.vlgmr.msra.gmra.mrb[0].mxu1 %vm1366_vm2, %v1955_v16  ;;  %v13908_v16 = vld [vmem:[#allocation2 + $0x14] sm:$0xff]  }
  0xf4   : > { %12219 = vmatpush3.bf16.msra.mxu1 %v2591_v24  ;;  %12174 = vmatprep.mubr.msk.bf16.mxu1 %vm1366_vm2, %v1957_v55  ;;  %v13911_v24 = vld [vmem:[#allocation2 + $0x1c] sm:$0xff]   ;;  %v3309_v55 = vsel %vm1439_vm0, %v15176_v14, 0 }
  0xf5   : > { %13788 = vmatprep.subr.msk.bf16.mxu1 %vm1439_vm0, %v15176_v14  ;;  %v13912_v14 = vld [vmem:[#allocation2 + $0x24] sm:$0xff]  }
  0xf7   : > { %12629 = vmatmul.mubr.msk.bf16.gmra.mrb[8].mxu0 %vm1366_vm2, %v14921_v33  ;;  %v1965_v33 = vsel %vm1950_vm4, %v1962_v31, %v1964_v32  ;;  %v13918_v31 = vld [vmem:[#allocation3 + $0x44] sm:$0xff]  }
  0xf8   : > { %12632 = vmatprep.mubr.msk.bf16.mxu0 %vm1366_vm2, %v14929_v42  ;;  %v1966_v42 = vrot.slane %v15011_v45, 1  ;;  %v1972_v45 = vrot.slane %v15058_v26, 1  ;;  %v878_v26 = vld [vmem:[%s14833_s24 + $0x4] sm:$0xf] }
  0xfa   : > { %v1967_v36 = vsel %vm1950_vm4, %v1964_v32, %v1966_v42  ;;  %v13921_v32 = vld [vmem:[#allocation3 + $0x4c] sm:$0xff]  }
  0xfb   : > { %12175 = vmatmul.mubr.msk.bf16.gmra.mrb[4].mxu1 %vm1366_vm2, %v1959_v5  ;;  %v13917_v5 = vld [vmem:[#allocation3 + $0x3c] sm:$0xff]  }
  0xfc   : > { %12178 = vmatprep.mubr.msk.bf16.mxu1 %vm1366_vm2, %v1961_v30  ;;  %v13915_v30 = vld [vmem:[#allocation2 + $0x2c] sm:$0xff]  }
  0xff   : > { %12633 = vmatmul.mubr.msk.bf16.gmra.mrb[12].mxu0 %vm1366_vm2, %v14937_v49  ;;  %v1969_v49 = vsel %vm1950_vm4, %v1966_v42, %v1968_v8  ;;  %v13922_v42 = vld [vmem:[#allocation3 + $0x54] sm:$0xff]  }
 0x100   : > { %12636 = vmatprep.mubr.msk.bf16.mxu0 %vm1366_vm2, %v14941_v51  ;;  %v1970_v51 = vrot.slane %v15037_v7, 1  ;;  %v1976_v7 = vrot.slane %v15079_v9, 1  ;;  %v1980_v9 = vrot.slane %v15094_v46, 1  ;;  %v1984_v46 = vrot.slane %v15109_v17, 1 }
 0x102   : > { %v1971_v21 = vsel %vm1950_vm4, %v1968_v8, %v1970_v51  ;;  %v13925_v8 = vld [vmem:[#allocation3 + $0x5c] sm:$0xff]  }
 0x103   : > { %12179 = vmatmul.mubr.msk.bf16.gmra.mrb[8].mxu1 %vm1366_vm2, %v1963_v0  ;;  %v13916_v0 = vld [vmem:[#allocation2 + $0x34] sm:$0xff]  }
 0x104   : > { %12182 = vmatprep.mubr.msk.bf16.mxu1 %vm1366_vm2, %v1965_v33  ;;  %v13919_v33 = vld [vmem:[#allocation2 + $0x3c] sm:$0xff]  }
 0x107   : > { %12637 = vmatmul.mubr.msk.bf16.gmra.mrb[16].mxu0 %vm1366_vm2, %v14944_v12  ;;  %v1973_v12 = vsel %vm1950_vm4, %v1970_v51, %v1972_v45  ;;  %v13926_v51 = vld [vmem:[#allocation3 + $0x64] sm:$0xff]  }
 0x108   : > { %12640 = vmatprep.mubr.msk.bf16.mxu0 %vm1366_vm2, %v14962_v3  ;;  %v1974_v3 = vrot.slane %v15063_v48, 1  ;;  %v1978_v48 = vrot.slane %v15084_v22, 1  ;;  %v1982_v22 = vrot.slane %v15098_v47, 1  ;;  %v1988_v47 = vrot.slane %v15122_v58, 1 }
 0x10a   : > { %v1975_v38 = vsel %vm1950_vm4, %v1972_v45, %v1974_v3  ;;  %v1981_v1 = vsel %vm1950_vm4, %v1978_v48, %v1980_v9  ;;  %v1983_v44 = vsel %vm1950_vm4, %v1980_v9, %v1982_v22  ;;  %v13929_v45 = vld [vmem:[#allocation3 + $0x6c] sm:$0xff]  }
 0x10b   : > { %12183 = vmatmul.mubr.msk.bf16.gmra.mrb[12].mxu1 %vm1366_vm2, %v1967_v36  ;;  %v13920_v36 = vld [vmem:[#allocation2 + $0x44] sm:$0xff]   ;;  %v13937_v9 = vld [vmem:[#allocation3 + $0x8c] sm:$0xff]  }
 0x10c   : > { %12186 = vmatprep.mubr.msk.bf16.mxu1 %vm1366_vm2, %v1969_v49  ;;  %v13923_v49 = vld [vmem:[#allocation2 + $0x4c] sm:$0xff]  }
 0x10f   : > { %12641 = vmatmul.mubr.msk.bf16.gmra.mrb[20].mxu0 %vm1366_vm2, %v14965_v4  ;;  %v932_v4 = vmax.bf16 %v16547_v2, %v878_v26  ;;  %v13930_v26 = vld [vmem:[#allocation3 + $0x74] sm:$0xff]  }
 0x110   : > { %12644 = vmatprep.mubr.msk.bf16.mxu0 %vm1366_vm2, %v14976_v11  ;;  %v1977_v11 = vsel %vm1950_vm4, %v1974_v3, %v1976_v7  ;;  %v880_v3 = vld [vmem:[%s15339_s26] sm:$0xf] }
 0x111   : > { %986 = vst.msk [vmem:[#allocation3 + $0xc4] sm:$0xf] %vm771_vm1, %v932_v4  ;;  %v13931_v4 = vld [vmem:[#allocation2 + $0x6c] sm:$0xff]  }
 0x113   : > { %12187 = vmatmul.mubr.msk.bf16.gmra.mrb[16].mxu1 %vm1366_vm2, %v1971_v21  ;;  %v13924_v21 = vld [vmem:[#allocation2 + $0x54] sm:$0xff]  }
 0x114   : > { %12190 = vmatprep.mubr.msk.bf16.mxu1 %vm1366_vm2, %v1973_v12  ;;  %v13927_v12 = vld [vmem:[#allocation2 + $0x5c] sm:$0xff]  }
 0x117   : > { %12645 = vmatmul.mubr.msk.bf16.gmra.mrb[24].mxu0 %vm1366_vm2, %v14979_v6  ;;  %v1979_v6 = vsel %vm1950_vm4, %v1976_v7, %v1978_v48  ;;  %v934_v7 = vmax.bf16 %v16547_v2, %v880_v3  ;;  %v13934_v48 = vld [vmem:[#allocation3 + $0x84] sm:$0xff]  }
 0x118   : > { %12648 = vmatprep.mubr.msk.bf16.mxu0 %vm1366_vm2, %v14989_v23  ;;  %v767_v23 = vmax.bf16 %v16547_v2, %v713_v43  ;;  %v13935_v43 = vld [vmem:[#allocation2 + $0x7c] sm:$0xff]  }
 0x119   : > { %988 = vst.msk [vmem:[#allocation3 + $0xcc] sm:$0xf] %vm771_vm1, %v934_v7  ;;  %v15407_v7 = vld [vmem:[#allocation2 + $0x24] sm:$0xff]  }
 0x11a   : > { %822 = vst.msk [vmem:[#allocation2 + $0xc8] sm:$0xf] %vm771_vm1, %v767_v23  ;;  %v13936_v23 = vld [vmem:[#allocation2 + $0x84] sm:$0xff]  }
 0x11b   : > { %12191 = vmatmul.mubr.msk.bf16.gmra.mrb[20].mxu1 %vm1366_vm2, %v1975_v38  ;;  %v13928_v38 = vld [vmem:[#allocation2 + $0x64] sm:$0xff]  }
 0x11c   : > { %12194 = vmatprep.mubr.msk.bf16.mxu1 %vm1366_vm2, %v1977_v11  ;;  %v768_v11 = vmax.bf16 %v16547_v2, %v714_v34 }
 0x11e   : > { %823 = vst.msk [vmem:[#allocation2 + $0xcc] sm:$0xf] %vm771_vm1, %v768_v11 }
 0x11f   : > { %12649 = vmatmul.mubr.msk.bf16.gmra.mrb[28].mxu0 %vm1366_vm2, %v14992_v25  ;;  %v1985_v25 = vsel %vm1950_vm4, %v1982_v22, %v1984_v46  ;;  %v7782_v22 = vld [vmem:[#allocation3 + $0xc] sm:$0xf] }
 0x120   : > { %12652 = vmatprep.mubr.msk.bf16.mxu0 %vm1366_vm2, %v14998_v29  ;;  %v1986_v29 = vrot.slane %v15113_v37, 1  ;;  %v1992_v37 = vrot.slane %v15135_v10, 1 }
 0x122   : > { %v1987_v17 = vsel %vm1950_vm4, %v1984_v46, %v1986_v29  ;;  %v15367_v46 = vld [vmem:[#allocation3 + $0x10] sm:$0xf] }
 0x123   : > { %12195 = vmatmul.mubr.msk.bf16.gmra.mrb[24].mxu1 %vm1366_vm2, %v1979_v6  ;;  %v13938_v6 = vld [vmem:[#allocation3 + $0x94] sm:$0xff]  }
 0x124   : > { %12198 = vmatprep.mubr.msk.bf16.mxu1 %vm1366_vm2, %v1981_v1  ;;  %v13939_v1 = vld [vmem:[#allocation2 + $0x8c] sm:$0xff]  }
 0x127   : > { %12653 = vmatmul.mubr.msk.bf16.gmra.mrb[32].mxu0 %vm1366_vm2, %v15002_v35  ;;  %v1989_v35 = vsel %vm1950_vm4, %v1986_v29, %v1988_v47  ;;  %v13940_v29 = vld [vmem:[#allocation2 + $0x94] sm:$0xff]  }
 0x128   : > { %12656 = vmatprep.mubr.msk.bf16.mxu0 %vm1366_vm2, %v15025_v54  ;;  %v1990_v54 = vrot.slane %v15127_v52, 1  ;;  %v1996_v52 = vrot.slane %v15158_v63, 1 }
 0x12a   : > { %v1991_v58 = vsel %vm1950_vm4, %v1988_v47, %v1990_v54  ;;  %v11407_v47 = vcombine.low %v7782_v22, %v15367_v46 }
 0x12b   : > { %12199 = vmatmul.mubr.msk.bf16.gmra.mrb[28].mxu1 %vm1366_vm2, %v1983_v44  ;;  %v13942_v44 = vld [vmem:[#allocation3 + $0xa4] sm:$0xff]  }
 0x12c   : > { %12202 = vmatprep.mubr.msk.bf16.mxu1 %vm1366_vm2, %v1985_v25  ;;  %v13945_v25 = vld [vmem:[#allocation3 + $0xac] sm:$0xff]  }
 0x12f   : > { %12657 = vmatmul.mubr.msk.bf16.gmra.mrb[36].mxu0 %vm1366_vm2, %v15029_v57  ;;  %v1993_v57 = vsel %vm1950_vm4, %v1990_v54, %v1992_v37  ;;  %v7959_v54 = vshll.u32 %v11407_v47, 16 }
 0x130   : > { %12660 = vmatprep.mubr.msk.bf16.mxu0 %vm1366_vm2, %v15052_v40  ;;  %v1994_v40 = vrot.slane %v15140_v56, 1  ;;  %v13909_v56 = vld [vmem:[#allocation3 + $0x1c] sm:$0xff]  }
 0x132   : > { %v1995_v10 = vsel %vm1950_vm4, %v1992_v37, %v1994_v40  ;;  %v13946_v37 = vld [vmem:[#allocation3 + $0xb4] sm:$0xff]  }
 0x133   : > { %12203 = vmatmul.mubr.msk.bf16.gmra.mrb[32].mxu1 %vm1366_vm2, %v1987_v17  ;;  %v13943_v17 = vld [vmem:[#allocation2 + $0x9c] sm:$0xff]  }
 0x134   : > { %12206 = vmatprep.mubr.msk.bf16.mxu1 %vm1366_vm2, %v1989_v35  ;;  %v15373_v35 = vld [vmem:[#allocation3 + $0x14] sm:$0xff]  }
 0x137   : > { %12661 = vmatmul.mubr.msk.bf16.gmra.mrb[40].mxu0 %vm1366_vm2, %v15056_v27  ;;  %v1997_v27 = vsel %vm1950_vm4, %v1994_v40, %v1996_v52  ;;  %v15376_v40 = vld [vmem:[#allocation2 + $0x10] sm:$0xf] }
 0x138   : > { %12664 = vmatprep.mubr.msk.bf16.mxu0 %vm1366_vm2, %v15073_v19  ;;  %v14225_v19 = vld [vmem:[#allocation2 + $0xc0] ss:$0 sps:$4 sm:$0x11]  }
 0x139   : > { %v1998_v39 = vrot.slane %v14225_v19, 1  ;;  %v13947_v19 = vld [vmem:[#allocation2 + $0xac] sm:$0xff]  }
 0x13b   : > { %12207 = vmatmul.mubr.msk.bf16.gmra.mrb[36].mxu1 %vm1366_vm2, %v1991_v58  ;;  %v1999_v63 = vsel %vm1950_vm4, %v1996_v52, %v1998_v39  ;;  %v13949_v58 = vld [vmem:[#allocation3 + $0xbc] sm:$0xff]  }
 0x13c   : > { %12210 = vmatprep.mubr.msk.bf16.mxu1 %vm1366_vm2, %v1993_v57  ;;  %v2866_v57 = vld [vmem:[#allocation2 + $0xc] sm:$0xf]  ;;  %v13944_v52 = vld [vmem:[#allocation2 + $0xa4] sm:$0xff]  }
 0x13d   : > { %v15380_v39 = vld [vmem:[#allocation3 + $0x1c] sm:$0xff]  }
 0x13f   : > { %12665 = vmatmul.mubr.msk.bf16.gmra.mrb[44].mxu0 %vm1366_vm2, %v15077_v15  ;;  %v15301_v15 = vld [vmem:[%s16544_s7 + $0x14] sm:$0xf] }
 0x140   : > { %12670 = vmatprep.mubr.msk.bf16.mxu0 %vm1366_vm2, %v13905_v28  ;;  %v7957_v28 = vshrl.u32 %v11407_v47, 16  ;;  %v8628_v11 = vsel %vm1439_vm0, %v15301_v15, 0 }
 0x143   : > { %12211 = vmatmul.mubr.msk.bf16.gmra.mrb[40].mxu1 %vm1366_vm2, %v1995_v10  ;;  %v7961_v10 = vrot.slane %v7959_v54, 1 }
 0x144   : > { %12214 = vmatprep.mubr.msk.bf16.mxu1 %vm1366_vm2, %v1997_v27  ;;  %v7964_v27 = vshll.u32 %v15373_v35, 16 }
 0x147   : > { %12671 = vmatmul.mubr.msk.bf16.vlgmr.msra.gmra.mrb[0].mxu0 %vm1366_vm2, %v13906_v53  ;;  %v11033_v53 = vcombine.low %v2866_v57, %v15376_v40 }
 0x148   : > { %12674 = vmatprep.mubr.msk.bf16.mxu0 %vm1366_vm2, %v13909_v56  ;;  %12719 = vmatpush3.bf16.msra.mxu0 %v8225_v61  ;;  %v7962_v56 = vor.u32 %v7961_v10, %v7957_v28  ;;  %v7966_v61 = vrot.slane %v7964_v27, 1 }
 0x149   : > { %13798 = vmatprep.subr.msk.bf16.mxu0 %vm1439_vm0, %v15301_v15  ;;  %v3064_v15 = vshll.u32 %v15407_v7, 16 }
 0x14b   : > { %12215 = vmatmul.mubr.msk.bf16.gmra.mrb[44].mxu1 %vm1366_vm2, %v1999_v63  ;;  %v15385_v63 = vld [vmem:[#allocation3 + $0x24] sm:$0xff]  }
 0x14c   : > { %12220 = vmatprep.mubr.msk.bf16.mxu1 %vm1366_vm2, %v13907_v62  ;;  %v13950_v62 = vld [vmem:[#allocation3 + $0xc4] sm:$0xff]  }
 0x14f   : > { %12675 = vmatmul.mubr.msk.bf16.gmra.mrb[4].mxu0 %vm1366_vm2, %v13910_v13  ;;  %v7972_v13 = vshll.u32 %v15380_v39, 16 }
 0x150   : > { %12678 = vmatprep.mubr.msk.bf16.mxu0 %vm1366_vm2, %v13913_v50  ;;  %v15389_v50 = vld [vmem:[#allocation2 + $0x14] sm:$0xff]  }
 0x153   : > { %12221 = vmatmul.mubr.msk.bf16.vlgmr.msra.gmra.mrb[0].mxu1 %vm1366_vm2, %v13908_v16  ;;  %v3043_v16 = vshll.u32 %v11033_v53, 16 }
 0x154   : > { %12269 = vmatpush3.bf16.msra.mxu1 %v3309_v55  ;;  %12224 = vmatprep.mubr.msk.bf16.mxu1 %vm1366_vm2, %v13911_v24  ;;  %v7968_v24 = vshrl.u32 %v15373_v35, 16  ;;  %v13948_v55 = vld [vmem:[#allocation2 + $0xb4] sm:$0xff]  }
 0x155   : > { %13789 = vmatprep.subr.msk.bf16.mxu1 %vm1439_vm0, %v15316_v59 }
 0x157   : > { %12679 = vmatmul.mubr.msk.bf16.gmra.mrb[8].mxu0 %vm1366_vm2, %v13914_v60  ;;  %v7967_v60 = vsel %vm1169_vm3, %v7962_v56, %v7966_v61 }
 0x158   : > { %12682 = vmatprep.mubr.msk.bf16.mxu0 %vm1366_vm2, %v13917_v5  ;;  %v7976_v5 = vshrl.u32 %v15380_v39, 16 }
 0x15b   : > { %12225 = vmatmul.mubr.msk.bf16.gmra.mrb[4].mxu1 %vm1366_vm2, %v13912_v14  ;;  %v7980_v14 = vshll.u32 %v15385_v63, 16 }
 0x15c   : > { %12228 = vmatprep.mubr.msk.bf16.mxu1 %vm1366_vm2, %v13915_v30  ;;  %v13951_v30 = vld [vmem:[#allocation2 + $0xbc] sm:$0xff]  }
 0x15f   : > { %12683 = vmatmul.mubr.msk.bf16.gmra.mrb[12].mxu0 %vm1366_vm2, %v13918_v31  ;;  %v7974_v31 = vrot.slane %v7972_v13, 1  ;;  %v3068_v13 = vshrl.u32 %v15407_v7, 16 }
 0x160   : > { %12686 = vmatprep.mubr.msk.bf16.mxu0 %vm1366_vm2, %v13921_v32  ;;  %v3041_v32 = vshrl.u32 %v11033_v53, 16 }
 0x163   : > { %12229 = vmatmul.mubr.msk.bf16.gmra.mrb[8].mxu1 %vm1366_vm2, %v13916_v0  ;;  %v3045_v0 = vrot.slane %v3043_v16, 1 }
 0x164   : > { %12232 = vmatprep.mubr.msk.bf16.mxu1 %vm1366_vm2, %v13919_v33  ;;  %v3048_v33 = vshll.u32 %v15389_v50, 16 }
 0x167   : > { %12687 = vmatmul.mubr.msk.bf16.gmra.mrb[16].mxu0 %vm1366_vm2, %v13922_v42  ;;  %v15397_v42 = vld [vmem:[#allocation3 + $0x2c] sm:$0xff]  }
 0x168   : > { %12690 = vmatprep.mubr.msk.bf16.mxu0 %vm1366_vm2, %v13925_v8  ;;  %v7970_v8 = vor.u32 %v7968_v24, %v7966_v61  ;;  %v7988_v3 = vshll.u32 %v15397_v42, 16 }
 0x16b   : > { %12233 = vmatmul.mubr.msk.bf16.gmra.mrb[12].mxu1 %vm1366_vm2, %v13920_v36  ;;  %v15400_v36 = vld [vmem:[#allocation2 + $0x1c] sm:$0xff]  }
 0x16c   : > { %12236 = vmatprep.mubr.msk.bf16.mxu1 %vm1366_vm2, %v13923_v49  ;;  %v7978_v49 = vor.u32 %v7976_v5, %v7974_v31  ;;  %v15455_v5 = vld [vmem:[#allocation3 + $0x4c] sm:$0xff]  }
 0x16f   : > { %12691 = vmatmul.mubr.msk.bf16.gmra.mrb[20].mxu0 %vm1366_vm2, %v13926_v51  ;;  %v7982_v51 = vrot.slane %v7980_v14, 1 }
 0x170   : > { %12694 = vmatprep.mubr.msk.bf16.mxu0 %vm1366_vm2, %v13929_v45  ;;  %v15403_v45 = vld [vmem:[#allocation3 + $0x34] sm:$0xff]  }
 0x171   : > { %v7983_v34 = vsel %vm1169_vm3, %v7978_v49, %v7982_v51  ;;  %v8000_v10 = vshrl.u32 %v15403_v45, 16 }
 0x173   : > { %12237 = vmatmul.mubr.msk.bf16.gmra.mrb[16].mxu1 %vm1366_vm2, %v13924_v21  ;;  %v3046_v21 = vor.u32 %v3045_v0, %v3041_v32 }
 0x174   : > { %12240 = vmatprep.mubr.msk.bf16.mxu1 %vm1366_vm2, %v13927_v12  ;;  %v3050_v12 = vrot.slane %v3048_v33, 1  ;;  %v15466_v33 = vld [vmem:[#allocation3 + $0x54] sm:$0xff]  }
 0x177   : > { %12695 = vmatmul.mubr.msk.bf16.gmra.mrb[24].mxu0 %vm1366_vm2, %v13930_v26  ;;  %v7975_v26 = vsel %vm1169_vm3, %v7970_v8, %v7974_v31  ;;  %v15464_v31 = vld [vmem:[#allocation2 + $0x3c] sm:$0xff]  }
 0x178   : > { %12698 = vmatprep.mubr.msk.bf16.mxu0 %vm1366_vm2, %v13933_v41  ;;  %v3056_v41 = vshll.u32 %v15400_v36, 16 }
 0x17b   : > { %12241 = vmatmul.mubr.msk.bf16.gmra.mrb[20].mxu1 %vm1366_vm2, %v13928_v38  ;;  %v7984_v38 = vshrl.u32 %v15385_v63, 16 }
 0x17c   : > { %12244 = vmatprep.mubr.msk.bf16.mxu1 %vm1366_vm2, %v13931_v4  ;;  %v13952_v4 = vld [vmem:[#allocation2 + $0xc4] sm:$0xff]  }
 0x17d   : > { %v7986_v22 = vor.u32 %v7984_v38, %v7982_v51 }
 0x17f   : > { %12699 = vmatmul.mubr.msk.bf16.gmra.mrb[28].mxu0 %vm1366_vm2, %v13934_v48  ;;  %v7992_v48 = vshrl.u32 %v15397_v42, 16 }
 0x180   : > { %12702 = vmatprep.mubr.msk.bf16.mxu0 %vm1366_vm2, %v13937_v9  ;;  %v7996_v9 = vshll.u32 %v15403_v45, 16 }
 0x182   : > { %v7998_v47 = vrot.slane %v7996_v9, 1 }
 0x183   : > { %12245 = vmatmul.mubr.msk.bf16.gmra.mrb[24].mxu1 %vm1366_vm2, %v13932_v18  ;;  %v3052_v18 = vshrl.u32 %v15389_v50, 16 }
 0x184   : > { %12248 = vmatprep.mubr.msk.bf16.mxu1 %vm1366_vm2, %v13935_v43  ;;  %v15421_v43 = vld [vmem:[%s16544_s7 + $0x18] sm:$0xf]  ;;  %v8002_v14 = vor.u32 %v8000_v10, %v7998_v47 }
 0x185   : > { %v3054_v54 = vor.u32 %v3052_v18, %v3050_v12  ;;  %v15496_v10 = vld [vmem:[#allocation2 + $0x54] sm:$0xff]  }
 0x187   : > { %12703 = vmatmul.mubr.msk.bf16.gmra.mrb[32].mxu0 %vm1366_vm2, %v13938_v6  ;;  %v3051_v6 = vsel %vm1169_vm3, %v3046_v21, %v3050_v12  ;;  %v8020_v21 = vshll.u32 %v15455_v5, 16  ;;  %v15470_v12 = vld [vmem:[#allocation2 + $0x44] sm:$0xff]  }
 0x188   : > { %12706 = vmatprep.mubr.msk.bf16.mxu0 %vm1366_vm2, %v13941_v20  ;;  %v7990_v20 = vrot.slane %v7988_v3, 1 }
 0x189   : > { %v8022_v18 = vrot.slane %v8020_v21, 1  ;;  %v15516_v21 = vld [vmem:[#allocation3 + $0x74] sm:$0xff]  }
 0x18a   : > { %v7991_v28 = vsel %vm1169_vm3, %v7986_v22, %v7990_v20 }
 0x18b   : > { %12249 = vmatmul.mubr.msk.bf16.gmra.mrb[28].mxu1 %vm1366_vm2, %v13936_v23  ;;  %v3060_v23 = vshrl.u32 %v15400_v36, 16 }
 0x18c   : > { %12252 = vmatprep.mubr.msk.bf16.mxu1 %vm1366_vm2, %v13939_v1  ;;  %v15427_v1 = vld [vmem:[#allocation3 + $0x3c] sm:$0xff]  }
 0x18d   : > { %v8004_v57 = vshll.u32 %v15427_v1, 16  ;;  %v8008_v53 = vshrl.u32 %v15427_v1, 16 }
 0x18f   : > { %12707 = vmatmul.mubr.msk.bf16.gmra.mrb[36].mxu0 %vm1366_vm2, %v13942_v44  ;;  %v3058_v44 = vrot.slane %v3056_v41, 1  ;;  %v8006_v24 = vrot.slane %v8004_v57, 1  ;;  %v3088_v41 = vshll.u32 %v15464_v31, 16 }
 0x190   : > { %12710 = vmatprep.mubr.msk.bf16.mxu0 %vm1366_vm2, %v13945_v25  ;;  %v15431_v25 = vld [vmem:[#allocation2 + $0x2c] sm:$0xff]  }
 0x191   : > { %v3072_v27 = vshll.u32 %v15431_v25, 16  ;;  %v3059_v61 = vsel %vm1169_vm3, %v3054_v54, %v3058_v44  ;;  %v8010_v32 = vor.u32 %v8008_v53, %v8006_v24  ;;  %v8007_v3 = vsel %vm1169_vm3, %v8002_v14, %v8006_v24  ;;  %v15492_v54 = vld [vmem:[#allocation3 + $0x64] sm:$0xff]  }
 0x192   : > { %v3090_v22 = vrot.slane %v3088_v41, 1  ;;  %v3112_v14 = vshll.u32 %v15496_v10, 16 }
 0x193   : > { %12253 = vmatmul.mubr.msk.bf16.gmra.mrb[32].mxu1 %vm1366_vm2, %v13940_v29  ;;  %v7994_v29 = vor.u32 %v7992_v48, %v7990_v20  ;;  %v3096_v20 = vshll.u32 %v15470_v12, 16 }
 0x194   : > { %12256 = vmatprep.mubr.msk.bf16.mxu1 %vm1366_vm2, %v13943_v17  ;;  %v15433_v17 = vld [vmem:[#allocation3 + $0x44] sm:$0xff]   ;;  %v3114_v41 = vrot.slane %v3112_v14, 1 }
 0x195   : > { %v8012_v56 = vshll.u32 %v15433_v17, 16  ;;  %v3098_v57 = vrot.slane %v3096_v20, 1 }
 0x197   : > { %12711 = vmatmul.mubr.msk.bf16.gmra.mrb[40].mxu0 %vm1366_vm2, %v13946_v37  ;;  %v3062_v37 = vor.u32 %v3060_v23, %v3058_v44  ;;  %v8014_v0 = vrot.slane %v8012_v56, 1  ;;  %v15486_v23 = vld [vmem:[#allocation3 + $0x5c] sm:$0xff]   ;;  %v15490_v44 = vld [vmem:[#allocation2 + $0x4c] sm:$0xff]  }
 0x198   : > { %12714 = vmatprep.mubr.msk.bf16.mxu0 %vm1366_vm2, %v13949_v58  ;;  %v3066_v58 = vrot.slane %v3064_v15, 1  ;;  %v3104_v53 = vshll.u32 %v15490_v44, 16 }
 0x199   : > { %v8015_v38 = vsel %vm1169_vm3, %v8010_v32, %v8014_v0 }
 0x19a   : > { %v3067_v16 = vsel %vm1169_vm3, %v3062_v37, %v3066_v58  ;;  %v3070_v8 = vor.u32 %v3068_v13, %v3066_v58 }
 0x19b   : > { %12257 = vmatmul.mubr.msk.bf16.gmra.mrb[36].mxu1 %vm1366_vm2, %v13944_v52  ;;  %v15439_v52 = vld [vmem:[#allocation2 + $0x34] sm:$0xff]  }
 0x19c   : > { %12260 = vmatprep.mubr.msk.bf16.mxu1 %vm1366_vm2, %v13947_v19  ;;  %v7999_v19 = vsel %vm1169_vm3, %v7994_v29, %v7998_v47  ;;  %v3084_v48 = vshrl.u32 %v15439_v52, 16 }
 0x19f   : > { %12715 = vmatmul.mubr.msk.bf16.gmra.mrb[44].mxu0 %vm1366_vm2, %v13950_v62  ;;  %v3712_v62 = vsel %vm1439_vm0, %v15316_v59, 0  ;;  %v15461_v59 = vld [vmem:[%s16543_s6 + $0x18] sm:$0xf] }
 0x1a0   : > { %12720 = vmatprep.mubr.msk.bf16.mxu0 %vm1366_vm2, %v7967_v60  ;;  %v3080_v60 = vshll.u32 %v15439_v52, 16 }
 0x1a2   : > { %v3082_v51 = vrot.slane %v3080_v60, 1  ;;  %v3108_v60 = vshrl.u32 %v15490_v44, 16 }
 0x1a3   : > { %12261 = vmatmul.mubr.msk.bf16.gmra.mrb[40].mxu1 %vm1366_vm2, %v13948_v55  ;;  %v3076_v55 = vshrl.u32 %v15431_v25, 16 }
 0x1a4   : > { %12264 = vmatprep.mubr.msk.bf16.mxu1 %vm1366_vm2, %v13951_v30  ;;  %v3074_v30 = vrot.slane %v3072_v27, 1  ;;  %v3086_v37 = vor.u32 %v3084_v48, %v3082_v51 }
 0x1a6   : > { %v3078_v49 = vor.u32 %v3076_v55, %v3074_v30  ;;  %v3091_v13 = vsel %vm1169_vm3, %v3086_v37, %v3090_v22 }
 0x1a7   : > { %12721 = vmatmul.mubr.msk.bf16.vlgmr.msra.gmra.mrb[0].mxu0 %vm1366_vm2, %v7975_v26  ;;  %v8016_v26 = vshrl.u32 %v15433_v17, 16 }
 0x1a8   : > { %12724 = vmatprep.mubr.msk.bf16.mxu0 %vm1366_vm2, %v7983_v34  ;;  %12769 = vmatpush3.bf16.msra.mxu0 %v8628_v11  ;;  %v8028_v34 = vshll.u32 %v15466_v33, 16  ;;  %v3075_v11 = vsel %vm1169_vm3, %v3070_v8, %v3074_v30  ;;  %v3083_v9 = vsel %vm1169_vm3, %v3078_v49, %v3082_v51  ;;  %v15510_v30 = vld [vmem:[#allocation3 + $0x6c] sm:$0xff]   ;;  %v15514_v8 = vld [vmem:[#allocation2 + $0x5c] sm:$0xff]  }
 0x1a9   : > { %13799 = vmatprep.subr.msk.bf16.mxu0 %vm1439_vm0, %v15421_v43  ;;  %v8018_v15 = vor.u32 %v8016_v26, %v8014_v0  ;;  %v3106_v0 = vrot.slane %v3104_v53, 1  ;;  %v3120_v48 = vshll.u32 %v15514_v8, 16 }
 0x1aa   : > { %v8030_v47 = vrot.slane %v8028_v34, 1 }
 0x1ab   : > { %12265 = vmatmul.mubr.msk.bf16.gmra.mrb[44].mxu1 %vm1366_vm2, %v13952_v4  ;;  %v8024_v4 = vshrl.u32 %v15455_v5, 16  ;;  %v8023_v27 = vsel %vm1169_vm3, %v8018_v15, %v8022_v18  ;;  %v3110_v26 = vor.u32 %v3108_v60, %v3106_v0  ;;  %v3116_v15 = vshrl.u32 %v15496_v10, 16 }
 0x1ac   : > { %12270 = vmatprep.mubr.msk.bf16.mxu1 %vm1366_vm2, %v3051_v6  ;;  %v3092_v6 = vshrl.u32 %v15464_v31, 16  ;;  %v8064_v60 = vshrl.u32 %v15516_v21, 16 }
 0x1ad   : > { %v8026_v29 = vor.u32 %v8024_v4, %v8022_v18  ;;  %v15520_v4 = vld [vmem:[#allocation2 + $0x64] sm:$0xff]   ;;  %v8056_v18 = vshrl.u32 %v15510_v30, 16 }
 0x1ae   : > { %v3094_v58 = vor.u32 %v3092_v6, %v3090_v22  ;;  %v8060_v6 = vshll.u32 %v15516_v21, 16  ;;  %v3115_v22 = vsel %vm1169_vm3, %v3110_v26, %v3114_v41  ;;  %v3128_v37 = vshll.u32 %v15520_v4, 16 }
 0x1af   : > { %12725 = vmatmul.mubr.msk.bf16.gmra.mrb[4].mxu0 %vm1366_vm2, %v7991_v28  ;;  %v8036_v28 = vshll.u32 %v15486_v23, 16  ;;  %v8031_v56 = vsel %vm1169_vm3, %v8026_v29, %v8030_v47 }
 0x1b0   : > { %12728 = vmatprep.mubr.msk.bf16.mxu0 %vm1366_vm2, %v7999_v19  ;;  %v8032_v19 = vshrl.u32 %v15466_v33, 16  ;;  %v3099_v24 = vsel %vm1169_vm3, %v3094_v58, %v3098_v57  ;;  %v15534_v58 = vld [vmem:[#allocation3 + $0x7c] sm:$0xff]   ;;  %v8062_v53 = vrot.slane %v8060_v6, 1 }
 0x1b1   : > { %v8038_v55 = vrot.slane %v8036_v28, 1  ;;  %v3122_v28 = vrot.slane %v3120_v48, 1 }
 0x1b2   : > { %v8034_v32 = vor.u32 %v8032_v19, %v8030_v47  ;;  %v3124_v47 = vshrl.u32 %v15514_v8, 16  ;;  %v8066_v48 = vor.u32 %v8064_v60, %v8062_v53 }
 0x1b3   : > { %12271 = vmatmul.mubr.msk.bf16.vlgmr.msra.gmra.mrb[0].mxu1 %vm1366_vm2, %v3059_v61  ;;  %v8040_v61 = vshrl.u32 %v15486_v23, 16 }
 0x1b4   : > { %12319 = vmatpush3.bf16.msra.mxu1 %v3712_v62  ;;  %12274 = vmatprep.mubr.msk.bf16.mxu1 %vm1366_vm2, %v3067_v16  ;;  %v8044_v62 = vshll.u32 %v15492_v54, 16  ;;  %v3100_v16 = vshrl.u32 %v15470_v12, 16  ;;  %v8039_v34 = vsel %vm1169_vm3, %v8034_v32, %v8038_v55 }
 0x1b5   : > { %13790 = vmatprep.subr.msk.bf16.mxu1 %vm1439_vm0, %v15461_v59  ;;  %v8042_v49 = vor.u32 %v8040_v61, %v8038_v55  ;;  %v3118_v61 = vor.u32 %v3116_v15, %v3114_v41  ;;  %v15564_v15 = vld [vmem:[#allocation3 + $0x94] sm:$0xff]  }
 0x1b6   : > { %v8046_v51 = vrot.slane %v8044_v62, 1  ;;  %v3126_v62 = vor.u32 %v3124_v47, %v3122_v28 }
 0x1b7   : > { %12729 = vmatmul.mubr.msk.bf16.gmra.mrb[8].mxu0 %vm1366_vm2, %v8007_v3  ;;  %v3102_v3 = vor.u32 %v3100_v16, %v3098_v57  ;;  %v8068_v16 = vshll.u32 %v15534_v58, 16 }
 0x1b8   : > { %12732 = vmatprep.mubr.msk.bf16.mxu0 %vm1366_vm2, %v8015_v38  ;;  %v8052_v38 = vshll.u32 %v15510_v30, 16 }
 0x1b9   : > { %v3107_v20 = vsel %vm1169_vm3, %v3102_v3, %v3106_v0  ;;  %v8072_v0 = vshrl.u32 %v15534_v58, 16  ;;  %v3132_v3 = vshrl.u32 %v15520_v4, 16  ;;  %v8070_v41 = vrot.slane %v8068_v16, 1 }
 0x1ba   : > { %v8054_v29 = vrot.slane %v8052_v38, 1  ;;  %v8092_v16 = vshll.u32 %v15564_v15, 16 }
 0x1bb   : > { %12275 = vmatmul.mubr.msk.bf16.gmra.mrb[4].mxu1 %vm1366_vm2, %v3075_v11  ;;  %v8048_v11 = vshrl.u32 %v15492_v54, 16  ;;  %v8074_v6 = vor.u32 %v8072_v0, %v8070_v41 }
 0x1bc   : > { %12278 = vmatprep.mubr.msk.bf16.mxu1 %vm1366_vm2, %v3083_v9  ;;  %v8047_v9 = vsel %vm1169_vm3, %v8042_v49, %v8046_v51  ;;  %v8058_v19 = vor.u32 %v8056_v18, %v8054_v29  ;;  %v15562_v18 = vld [vmem:[#allocation2 + $0x7c] sm:$0xff]  }
 0x1bd   : > { %v8050_v57 = vor.u32 %v8048_v11, %v8046_v51  ;;  %v3123_v51 = vsel %vm1169_vm3, %v3118_v61, %v3122_v28  ;;  %v15558_v11 = vld [vmem:[#allocation3 + $0x8c] sm:$0xff]   ;;  %v8071_v28 = vsel %vm1169_vm3, %v8066_v48, %v8070_v41 }
 0x1be   : > { %v8063_v32 = vsel %vm1169_vm3, %v8058_v19, %v8062_v53  ;;  %v3152_v53 = vshll.u32 %v15562_v18, 16 }
 0x1bf   : > { %12733 = vmatmul.mubr.msk.bf16.gmra.mrb[12].mxu0 %vm1366_vm2, %v8023_v27  ;;  %v15538_v27 = vld [vmem:[#allocation2 + $0x6c] sm:$0xff]   ;;  %v8055_v55 = vsel %vm1169_vm3, %v8050_v57, %v8054_v29  ;;  %v15568_v57 = vld [vmem:[#allocation2 + $0x84] sm:$0xff]  }
 0x1c0   : > { %12736 = vmatprep.mubr.msk.bf16.mxu0 %vm1366_vm2, %v8031_v56  ;;  %v15540_v56 = vld [vmem:[#allocation3 + $0x84] sm:$0xff]   ;;  %v3136_v14 = vshll.u32 %v15538_v27, 16  ;;  %v3140_v38 = vshrl.u32 %v15538_v27, 16  ;;  %v3160_v0 = vshll.u32 %v15568_v57, 16 }
 0x1c1   : > { %v8076_v49 = vshll.u32 %v15540_v56, 16  ;;  %v8080_v19 = vshrl.u32 %v15540_v56, 16 }
 0x1c3   : > { %12279 = vmatmul.mubr.msk.bf16.gmra.mrb[8].mxu1 %vm1366_vm2, %v3091_v13  ;;  %v3130_v13 = vrot.slane %v3128_v37, 1  ;;  %v8084_v37 = vshll.u32 %v15558_v11, 16 }
 0x1c4   : > { %12282 = vmatprep.mubr.msk.bf16.mxu1 %vm1366_vm2, %v3099_v24  ;;  %v15544_v24 = vld [vmem:[#allocation2 + $0x74] sm:$0xff]  }
 0x1c5   : > { %v3131_v26 = vsel %vm1169_vm3, %v3126_v62, %v3130_v13  ;;  %v8088_v62 = vshrl.u32 %v15558_v11, 16 }
 0x1c7   : > { %12737 = vmatmul.mubr.msk.bf16.gmra.mrb[16].mxu0 %vm1366_vm2, %v8039_v34  ;;  %v3144_v34 = vshll.u32 %v15544_v24, 16 }
 0x1c8   : > { %12740 = vmatprep.mubr.msk.bf16.mxu0 %vm1366_vm2, %v8047_v9  ;;  %v3138_v9 = vrot.slane %v3136_v14, 1  ;;  %v8086_v14 = vrot.slane %v8084_v37, 1  ;;  %v8096_v37 = vshrl.u32 %v15564_v15, 16 }
 0x1c9   : > { %v3146_v47 = vrot.slane %v3144_v34, 1  ;;  %v15588_v34 = vld [vmem:[#allocation3 + $0xa4] sm:$0xff]  }
 0x1ca   : > { %v3142_v29 = vor.u32 %v3140_v38, %v3138_v9  ;;  %v8090_v41 = vor.u32 %v8088_v62, %v8086_v14  ;;  %v8094_v38 = vrot.slane %v8092_v16, 1  ;;  %16566 = vst [vmem:[#allocation5_spill] sm:$0xff] %v15588_v34  ;;  %v3164_v62 = vshrl.u32 %v15568_v57, 16 }
 0x1cb   : > { %12283 = vmatmul.mubr.msk.bf16.gmra.mrb[12].mxu1 %vm1366_vm2, %v3107_v20  ;;  %v8078_v20 = vrot.slane %v8076_v49, 1  ;;  %v15582_v49 = vld [vmem:[#allocation3 + $0x9c] sm:$0xff]  }
 0x1cc   : > { %12286 = vmatprep.mubr.msk.bf16.mxu1 %vm1366_vm2, %v3115_v22  ;;  %v3134_v22 = vor.u32 %v3132_v3, %v3130_v13  ;;  %v3147_v60 = vsel %vm1169_vm3, %v3142_v29, %v3146_v47  ;;  %v3154_v3 = vrot.slane %v3152_v53, 1  ;;  %v15592_v29 = vld [vmem:[#allocation2 + $0x94] sm:$0xff]   ;;  %v8104_v53 = vshrl.u32 %v15582_v49, 16 }
 0x1cd   : > { %v8079_v61 = vsel %vm1169_vm3, %v8074_v6, %v8078_v20  ;;  %v3162_v6 = vrot.slane %v3160_v0, 1  ;;  %16567 = vst [vmem:[#allocation6_spill] sm:$0xff] %v15592_v29 }
 0x1ce   : > { %v3139_v13 = vsel %vm1169_vm3, %v3134_v22, %v3138_v9  ;;  %v8100_v22 = vshll.u32 %v15582_v49, 16 }
 0x1cf   : > { %12741 = vmatmul.mubr.msk.bf16.gmra.mrb[20].mxu0 %vm1366_vm2, %v8055_v55  ;;  %v3148_v55 = vshrl.u32 %v15544_v24, 16 }
 0x1d0   : > { %12744 = vmatprep.mubr.msk.bf16.mxu0 %vm1366_vm2, %v8063_v32  ;;  %v3156_v32 = vshrl.u32 %v15562_v18, 16 }
 0x1d1   : > { %v3150_v48 = vor.u32 %v3148_v55, %v3146_v47 }
 0x1d2   : > { %v3158_v9 = vor.u32 %v3156_v32, %v3154_v3  ;;  %v8098_v32 = vor.u32 %v8096_v37, %v8094_v38  ;;  %v8112_v37 = vshrl.u32 %v15588_v34, 16 }
 0x1d3   : > { %12287 = vmatmul.mubr.msk.bf16.gmra.mrb[16].mxu1 %vm1366_vm2, %v3123_v51  ;;  %v8082_v51 = vor.u32 %v8080_v19, %v8078_v20  ;;  %v8095_v19 = vsel %vm1169_vm3, %v8090_v41, %v8094_v38  ;;  %v3155_v47 = vsel %vm1169_vm3, %v3150_v48, %v3154_v3  ;;  %v15612_v48 = vld [vmem:[#allocation3 + $0xb4] sm:$0xff]  }
 0x1d4   : > { %12290 = vmatprep.mubr.msk.bf16.mxu1 %vm1366_vm2, %v3131_v26  ;;  %v15586_v26 = vld [vmem:[#allocation2 + $0x8c] sm:$0xff]   ;;  %v3163_v16 = vsel %vm1169_vm3, %v3158_v9, %v3162_v6  ;;  %v3166_v9 = vor.u32 %v3164_v62, %v3162_v6 }
 0x1d5   : > { %16565 = vst [vmem:[#allocation4_spill] sm:$0xff] %v15586_v26  ;;  %v8087_v20 = vsel %vm1169_vm3, %v8082_v51, %v8086_v14  ;;  %v3172_v55 = vshrl.u32 %v15586_v26, 16  ;;  %v15606_v14 = vld [vmem:[#allocation3 + $0xac] sm:$0xff]   ;;  %v15610_v51 = vld [vmem:[#allocation2 + $0x9c] sm:$0xff]  }
 0x1d6   : > { %16568 = vst [vmem:[#allocation7_spill] sm:$0xff] %v15606_v14  ;;  %16569 = vst [vmem:[#allocation8_spill] sm:$0xff] %v15610_v51  ;;  %v8116_v2 = vshll.u32 %v15606_v14, 16 }
 0x1d7   : > { %12745 = vmatmul.mubr.msk.bf16.gmra.mrb[24].mxu0 %vm1366_vm2, %v8071_v28  ;;  %v3168_v28 = vshll.u32 %v15586_v26, 16  ;;  %v15616_v26 = vld [vmem:[#allocation2 + $0xa4] sm:$0xff]  }
 0x1d8   : > { %12748 = vmatprep.mubr.msk.bf16.mxu0 %vm1366_vm2, %v8079_v61  ;;  %v8108_v61 = vshll.u32 %v15588_v34, 16  ;;  %16570 = vst [vmem:[#allocation9_spill] sm:$0xff] %v15616_v26  ;;  %v15640_v34 = vld [vmem:[#allocation2 + $0xb4] sm:$0xff]  }
 0x1d9   : > { %v3170_v0 = vrot.slane %v3168_v28, 1  ;;  %v3184_v28 = vshll.u32 %v15610_v51, 16 }
 0x1da   : > { %v8110_v41 = vrot.slane %v8108_v61, 1  ;;  %v8124_v61 = vshll.u32 %v15612_v48, 16 }
 0x1db   : > { %12291 = vmatmul.mubr.msk.bf16.gmra.mrb[20].mxu1 %vm1366_vm2, %v3139_v13  ;;  %v8102_v13 = vrot.slane %v8100_v22, 1  ;;  %v3174_v22 = vor.u32 %v3172_v55, %v3170_v0  ;;  %v3171_v6 = vsel %vm1169_vm3, %v3166_v9, %v3170_v0  ;;  %v3192_v55 = vshll.u32 %v15616_v26, 16  ;;  %v15634_v0 = vld [vmem:[#allocation2 + $0xac] sm:$0xff]  }
 0x1dc   : > { %12294 = vmatprep.mubr.msk.bf16.mxu1 %vm1366_vm2, %v3147_v60  ;;  %v3176_v60 = vshll.u32 %v15592_v29, 16  ;;  %16572 = vst [vmem:[#allocation11_spill] sm:$0xff] %v15634_v0 }
 0x1dd   : > { %v8106_v3 = vor.u32 %v8104_v53, %v8102_v13  ;;  %v8103_v38 = vsel %vm1169_vm3, %v8098_v32, %v8102_v13  ;;  %v8120_v53 = vshrl.u32 %v15606_v14, 16  ;;  %v3188_v13 = vshrl.u32 %v15610_v51, 16 }
 0x1de   : > { %v8114_v32 = vor.u32 %v8112_v37, %v8110_v41  ;;  %v8126_v14 = vrot.slane %v8124_v61, 1  ;;  %v3194_v51 = vrot.slane %v3192_v55, 1  ;;  %v8128_v37 = vshrl.u32 %v15612_v48, 16 }
 0x1df   : > { %12749 = vmatmul.mubr.msk.bf16.gmra.mrb[28].mxu0 %vm1366_vm2, %v8087_v20  ;;  %v3178_v20 = vrot.slane %v3176_v60, 1  ;;  %v15630_v60 = vld [vmem:[#allocation3 + $0xbc] sm:$0xff]  }
 0x1e0   : > { %12752 = vmatprep.mubr.msk.bf16.mxu0 %vm1366_vm2, %v8095_v19  ;;  %v8111_v19 = vsel %vm1169_vm3, %v8106_v3, %v8110_v41  ;;  %16571 = vst [vmem:[#allocation10_spill] sm:$0xff] %v15630_v60  ;;  %v3186_v3 = vrot.slane %v3184_v28, 1  ;;  %v3200_v28 = vshll.u32 %v15634_v0, 16  ;;  %v8130_v55 = vor.u32 %v8128_v37, %v8126_v14 }
 0x1e1   : > { %v3179_v62 = vsel %vm1169_vm3, %v3174_v22, %v3178_v20 }
 0x1e2   : > { %v3190_v22 = vor.u32 %v3188_v13, %v3186_v3  ;;  %v3208_v13 = vshll.u32 %v15640_v34, 16 }
 0x1e3   : > { %12295 = vmatmul.mubr.msk.bf16.gmra.mrb[24].mxu1 %vm1366_vm2, %v3155_v47  ;;  %v3180_v47 = vshrl.u32 %v15592_v29, 16  ;;  %v8132_v29 = vshll.u32 %v15630_v60, 16 }
 0x1e4   : > { %12298 = vmatprep.mubr.msk.bf16.mxu1 %vm1366_vm2, %v3163_v16  ;;  %v8118_v16 = vrot.slane %v8116_v2, 1 }
 0x1e5   : > { %v3182_v2 = vor.u32 %v3180_v47, %v3178_v20  ;;  %v3195_v47 = vsel %vm1169_vm3, %v3190_v22, %v3194_v51 }
 0x1e6   : > { %v8122_v9 = vor.u32 %v8120_v53, %v8118_v16  ;;  %v8119_v41 = vsel %vm1169_vm3, %v8114_v32, %v8118_v16  ;;  %v8136_v53 = vshrl.u32 %v15630_v60, 16  ;;  %v3204_v16 = vshrl.u32 %v15634_v0, 16  ;;  %v15655_v32 = vld [vmem:[#allocation3 + $0xcc] ss:$0 sps:$4 sm:$0x11]  }
 0x1e7   : > { %12753 = vmatmul.mubr.msk.bf16.gmra.mrb[32].mxu0 %vm1366_vm2, %v8103_v38  ;;  %v15636_v38 = vld [vmem:[#allocation3 + $0xc4] sm:$0xff]   ;;  %v3187_v20 = vsel %vm1169_vm3, %v3182_v2, %v3186_v3  ;;  %v15658_v3 = vld [vmem:[#allocation2 + $0xbc] sm:$0xff]   ;;  %v3210_v0 = vrot.slane %v3208_v13, 1  ;;  %v8148_v37 = vshll.u32 %v15655_v32, 16 }
 0x1e8   : > { %12756 = vmatprep.mubr.msk.bf16.mxu0 %vm1366_vm2, %v8111_v19  ;;  %v8127_v19 = vsel %vm1169_vm3, %v8122_v9, %v8126_v14  ;;  %v8140_v61 = vshll.u32 %v15636_v38, 16  ;;  %v3202_v9 = vrot.slane %v3200_v28, 1  ;;  %16573 = vst [vmem:[#allocation12_spill] sm:$0xff] %v15658_v3  ;;  %v8144_v14 = vshrl.u32 %v15636_v38, 16 }
 0x1e9   : > { %v3216_v28 = vshll.u32 %v15658_v3, 16  ;;  %v8150_v13 = vrot.slane %v8148_v37, 1 }
 0x1ea   : > { %v8142_v60 = vrot.slane %v8140_v61, 1 }
 0x1eb   : > { %12299 = vmatmul.mubr.msk.bf16.gmra.mrb[28].mxu1 %vm1366_vm2, %v3171_v6  ;;  %v3196_v6 = vshrl.u32 %v15616_v26, 16  ;;  %v15661_v26 = vld [vmem:[#allocation2 + $0xc4] sm:$0xff]  }
 0x1ec   : > { %12302 = vmatprep.mubr.msk.bf16.mxu1 %vm1366_vm2, %v3179_v62  ;;  %v8134_v62 = vrot.slane %v8132_v29, 1  ;;  %v8500_v29 = vld [vmem:[#allocation3 + $0xc] sm:$0xe] }
 0x1ed   : > { %v3198_v22 = vor.u32 %v3196_v6, %v3194_v51  ;;  %v3212_v51 = vshrl.u32 %v15640_v34, 16 }
 0x1ee   : > { %v8138_v2 = vor.u32 %v8136_v53, %v8134_v62  ;;  %v11457_v53 = vcombine.low %v8500_v29, %v15367_v46 }
 0x1ef   : > { %12757 = vmatmul.mubr.msk.bf16.gmra.mrb[36].mxu0 %vm1366_vm2, %v8119_v41  ;;  %v3206_v41 = vor.u32 %v3204_v16, %v3202_v9  ;;  %v3203_v61 = vsel %vm1169_vm3, %v3198_v22, %v3202_v9  ;;  %v8146_v16 = vor.u32 %v8144_v14, %v8142_v60  ;;  %v8507_v9 = vrot.slane %v15373_v35, 1  ;;  %v15679_v22 = vld [vmem:[#allocation2 + $0xcc] ss:$0 sps:$4 sm:$0x11]  }
 0x1f0   : > { %12760 = vmatprep.mubr.msk.bf16.mxu0 %vm1366_vm2, %v8127_v19  ;;  %v8135_v19 = vsel %vm1169_vm3, %v8130_v55, %v8134_v62  ;;  %v3224_v62 = vshll.u32 %v15661_v26, 16  ;;  %v3218_v55 = vrot.slane %v3216_v28, 1  ;;  %v8506_v46 = vrot.slane %v11457_v53, 1 }
 0x1f1   : > { %v3211_v6 = vsel %vm1169_vm3, %v3206_v41, %v3210_v0  ;;  %v3228_v14 = vshrl.u32 %v15661_v26, 16  ;;  %v3232_v37 = vshll.u32 %v15679_v22, 16  ;;  %v8509_v28 = vrot.slane %v15380_v39, 1 }
 0x1f2   : > { %v3226_v41 = vrot.slane %v3224_v62, 1  ;;  %v8511_v53 = vrot.slane %v15385_v63, 1  ;;  %v15703_v63 = vld [vmem:[%s16544_s7 + $0x1c] sm:$0xf] }
 0x1f3   : > { %12303 = vmatmul.mubr.msk.bf16.gmra.mrb[32].mxu1 %vm1366_vm2, %v3187_v20  ;;  %v8143_v20 = vsel %vm1169_vm3, %v8138_v2, %v8142_v60  ;;  %v3214_v2 = vor.u32 %v3212_v51, %v3210_v0  ;;  %v3234_v51 = vrot.slane %v3232_v37, 1  ;;  %v8510_v62 = vsel %vm1950_vm4, %v8507_v9, %v8509_v28 }
 0x1f4   : > { %12306 = vmatprep.mubr.msk.bf16.mxu1 %vm1366_vm2, %v3195_v47  ;;  %v3220_v47 = vshrl.u32 %v15658_v3, 16  ;;  %v3584_v3 = vld [vmem:[#allocation2 + $0xc] sm:$0xe] }
 0x1f5   : > { %v3219_v60 = vsel %vm1169_vm3, %v3214_v2, %v3218_v55  ;;  %v11083_v0 = vcombine.low %v3584_v3, %v15376_v40  ;;  %v9146_v40 = vsel %vm1439_vm0, %v15421_v43, 0  ;;  %v8515_v43 = vrot.slane %v15403_v45, 1 }
 0x1f6   : > { %v3222_v29 = vor.u32 %v3220_v47, %v3218_v55  ;;  %v3591_v47 = vrot.slane %v15389_v50, 1  ;;  %v8513_v50 = vrot.slane %v15397_v42, 1  ;;  %v3595_v55 = vrot.slane %v15407_v7, 1 }
 0x1f7   : > { %12761 = vmatmul.mubr.msk.bf16.gmra.mrb[40].mxu0 %vm1366_vm2, %v8135_v19  ;;  %v8151_v19 = vsel %vm1169_vm3, %v8146_v16, %v8150_v13  ;;  %v8512_v16 = vsel %vm1950_vm4, %v8509_v28, %v8511_v53  ;;  %v3593_v13 = vrot.slane %v15400_v36, 1  ;;  %v4230_v42 = vsel %vm1439_vm0, %v15461_v59, 0  ;;  %v15728_v36 = vld [vmem:[%s16543_s6 + $0x1c] sm:$0xf] }
 0x1f8   : > { %12764 = vmatprep.mubr.msk.bf16.mxu0 %vm1366_vm2, %v8143_v20  ;;  %v8508_v20 = vsel %vm1950_vm4, %v8506_v46, %v8507_v9  ;;  %v3227_v35 = vsel %vm1169_vm3, %v3222_v29, %v3226_v41  ;;  %v8514_v46 = vsel %vm1950_vm4, %v8511_v53, %v8513_v50  ;;  %v8516_v9 = vsel %vm1950_vm4, %v8513_v50, %v8515_v43  ;;  %v881_v50 = vld [vmem:[%s15339_s26 + $0x4] sm:$0xf] }
 0x1f9   : > { %v3594_v2 = vsel %vm1950_vm4, %v3591_v47, %v3593_v13  ;;  %v3596_v45 = vsel %vm1950_vm4, %v3593_v13, %v3595_v55  ;;  %v8517_v29 = vrot.slane %v15427_v1, 1  ;;  %v8519_v7 = vrot.slane %v15433_v17, 1 }
 0x1fa   : > { %v3597_v59 = vrot.slane %v15431_v25, 1  ;;  %v8523_v25 = vrot.slane %v15466_v33, 1  ;;  %v8525_v33 = vrot.slane %v15486_v23, 1  ;;  %v3607_v28 = vrot.slane %v15496_v10, 1 }
 0x1fb   : > { %12307 = vmatmul.mubr.msk.bf16.gmra.mrb[36].mxu1 %vm1366_vm2, %v3203_v61  ;;  %v3230_v61 = vor.u32 %v3228_v14, %v3226_v41  ;;  %v3599_v41 = vrot.slane %v15439_v52, 1  ;;  %v8518_v1 = vsel %vm1950_vm4, %v8515_v43, %v8517_v29  ;;  %v3601_v52 = vrot.slane %v15464_v31, 1  ;;  %v882_v43 = vld [vmem:[%s15339_s26 + $0x8] sm:$0xf] }
 0x1fc   : > { %12310 = vmatprep.mubr.msk.bf16.mxu1 %vm1366_vm2, %v3211_v6  ;;  %v3590_v6 = vrot.slane %v11083_v0, 1  ;;  %v3603_v14 = vrot.slane %v15470_v12, 1  ;;  %v8527_v31 = vrot.slane %v15492_v54, 1  ;;  %v3605_v12 = vrot.slane %v15490_v44, 1 }
 0x1fd   : > { %v3235_v39 = vsel %vm1169_vm3, %v3230_v61, %v3234_v51  ;;  %v3600_v17 = vsel %vm1950_vm4, %v3597_v59, %v3599_v41  ;;  %v3602_v0 = vsel %vm1950_vm4, %v3599_v41, %v3601_v52  ;;  %v8526_v53 = vsel %vm1950_vm4, %v8523_v25, %v8525_v33 }
 0x1fe   : > { %v3592_v3 = vsel %vm1950_vm4, %v3590_v6, %v3591_v47  ;;  %v8528_v61 = vsel %vm1950_vm4, %v8525_v33, %v8527_v31  ;;  %v3606_v51 = vsel %vm1950_vm4, %v3603_v14, %v3605_v12  ;;  %v3608_v23 = vsel %vm1950_vm4, %v3605_v12, %v3607_v28 }
 0x1ff   : > { %12765 = vmatmul.mubr.msk.bf16.gmra.mrb[44].mxu0 %vm1366_vm2, %v8151_v19  ;;  %v8520_v19 = vsel %vm1950_vm4, %v8517_v29, %v8519_v7  ;;  %v8529_v54 = vrot.slane %v15510_v30, 1  ;;  %v8531_v44 = vrot.slane %v15516_v21, 1  ;;  %v3609_v10 = vrot.slane %v15514_v8, 1  ;;  %v715_v29 = vld [vmem:[%s15351_s28 + $0x4] sm:$0xf] }
 0x200   : > { %12770 = vmatprep.mubr.msk.bf16.mxu0 %vm1366_vm2, %v8508_v20  ;;  %v3598_v20 = vsel %vm1950_vm4, %v3595_v55, %v3597_v59  ;;  %v3611_v6 = vrot.slane %v15520_v4, 1  ;;  %v8533_v21 = vrot.slane %v15534_v58, 1  ;;  %v8535_v8 = vrot.slane %v15540_v56, 1 }
 0x201   : > { %v8530_v47 = vsel %vm1950_vm4, %v8527_v31, %v8529_v54  ;;  %v3613_v4 = vrot.slane %v15538_v27, 1  ;;  %v16574_v55 = vmov 0   ;;  %v16580_v31 = vld [vmem:[#allocation9_spill] sm:$0xff] }
 0x202   : > { %v3612_v30 = vsel %vm1950_vm4, %v3609_v10, %v3611_v6  ;;  %v935_v58 = vmax.bf16 %v16574_v55, %v881_v50  ;;  %v936_v56 = vmax.bf16 %v16574_v55, %v882_v43  ;;  %v769_v59 = vmax.bf16 %v16574_v55, %v715_v29  ;;  %v14004_v50 = vld [vmem:[#allocation3 + $0x20] sm:$0xff]   ;;  %v14007_v43 = vld [vmem:[#allocation3 + $0x28] sm:$0xff]   ;;  %v14019_v29 = vld [vmem:[#allocation3 + $0x58] sm:$0xff]  }
 0x203   : > { %12311 = vmatmul.mubr.msk.bf16.gmra.mrb[40].mxu1 %vm1366_vm2, %v3219_v60  ;;  %v8521_v60 = vrot.slane %v15455_v5, 1  ;;  %v3604_v5 = vsel %vm1950_vm4, %v3601_v52, %v3603_v14  ;;  %v3614_v13 = vsel %vm1950_vm4, %v3611_v6, %v3613_v4  ;;  %v3627_v12 = vrot.slane %v16580_v31, 1  ;;  %v14037_v31 = vld [vmem:[#allocation2 + $0x98] sm:$0xff]  }
 0x204   : > { %12314 = vmatprep.mubr.msk.bf16.mxu1 %vm1366_vm2, %v3227_v35  ;;  %989 = vst.msk [vmem:[#allocation3 + $0xd0] sm:$0xf] %vm771_vm1, %v935_v58  ;;  %990 = vst.msk [vmem:[#allocation3 + $0xd4] sm:$0xf] %vm771_vm1, %v936_v56  ;;  %v3631_v6 = vrot.slane %v15640_v34, 1  ;;  %v14006_v56 = vld [vmem:[#allocation2 + $0x20] sm:$0xff]  }
 0x205   : > { %v8522_v37 = vsel %vm1950_vm4, %v8519_v7, %v8521_v60  ;;  %v8524_v35 = vsel %vm1950_vm4, %v8521_v60, %v8523_v25  ;;  %824 = vst.msk [vmem:[#allocation2 + $0xd0] sm:$0xf] %vm771_vm1, %v769_v59  ;;  %v15870_v58 = vld [vmem:[%s16544_s7 + $0x20] sm:$0xf]  ;;  %v14020_v59 = vld [vmem:[#allocation3 + $0x60] sm:$0xff]  }
 0x207   : > { %12771 = vmatmul.mubr.msk.bf16.vlgmr.msra.gmra.mrb[0].mxu0 %vm1366_vm2, %v8510_v62  ;;  %v8532_v62 = vsel %vm1950_vm4, %v8529_v54, %v8531_v44  ;;  %v8551_v54 = vrot.slane %v15636_v38, 1  ;;  %v8553_v38 = vrot.slane %v15655_v32, 1  ;;  %v3637_v32 = vrot.slane %v15679_v22, 1  ;;  %v14008_v22 = vld [vmem:[#allocation3 + $0x30] sm:$0xff]  }
 0x208   : > { %12774 = vmatprep.mubr.msk.bf16.mxu0 %vm1366_vm2, %v8512_v16  ;;  %12819 = vmatpush3.bf16.msra.mxu0 %v9146_v40  ;;  %v3610_v16 = vsel %vm1950_vm4, %v3607_v28, %v3609_v10  ;;  %v3615_v40 = vrot.slane %v15544_v24, 1  ;;  %v8537_v24 = vrot.slane %v15558_v11, 1  ;;  %v716_v11 = vld [vmem:[%s15351_s28 + $0x8] sm:$0xf] }
 0x209   : > { %13800 = vmatprep.subr.msk.bf16.mxu0 %vm1439_vm0, %v15703_v63  ;;  %v770_v41 = vmax.bf16 %v16574_v55, %v716_v11  ;;  %v14005_v55 = vld [vmem:[#allocation2 + $0x18] sm:$0xff]   ;;  %v14014_v11 = vld [vmem:[#allocation2 + $0x40] sm:$0xff]  }
 0x20a   : > { %v3616_v27 = vsel %vm1950_vm4, %v3613_v4, %v3615_v40  ;;  %v8554_v4 = vsel %vm1950_vm4, %v8551_v54, %v8553_v38 }
 0x20b   : > { %12315 = vmatmul.mubr.msk.bf16.gmra.mrb[44].mxu1 %vm1366_vm2, %v3235_v39  ;;  %v8534_v39 = vsel %vm1950_vm4, %v8531_v44, %v8533_v21  ;;  %825 = vst.msk [vmem:[#allocation2 + $0xd4] sm:$0xf] %vm771_vm1, %v770_v41  ;;  %v16582_v44 = vld [vmem:[#allocation11_spill] sm:$0xff]  ;;  %v14023_v41 = vld [vmem:[#allocation3 + $0x68] sm:$0xff]  }
 0x20c   : > { %12320 = vmatprep.mubr.msk.bf16.mxu1 %vm1366_vm2, %v3592_v3  ;;  %v8536_v3 = vsel %vm1950_vm4, %v8533_v21, %v8535_v8  ;;  %v3629_v10 = vrot.slane %v16582_v44, 1  ;;  %v16583_v21 = vld [vmem:[#allocation12_spill] sm:$0xff] }
 0x20d   : > { %v3633_v34 = vrot.slane %v16583_v21, 1 }
 0x20f   : > { %12775 = vmatmul.mubr.msk.bf16.gmra.mrb[4].mxu0 %vm1366_vm2, %v8514_v46  ;;  %v8539_v46 = vrot.slane %v15564_v15, 1 }
 0x210   : > { %12778 = vmatprep.mubr.msk.bf16.mxu0 %vm1366_vm2, %v8516_v9  ;;  %v3617_v9 = vrot.slane %v15562_v18, 1  ;;  %v8541_v18 = vrot.slane %v15582_v49, 1 }
 0x212   : > { %v3618_v7 = vsel %vm1950_vm4, %v3615_v40, %v3617_v9  ;;  %v8542_v25 = vsel %vm1950_vm4, %v8539_v46, %v8541_v18  ;;  %v14003_v40 = vld [vmem:[#allocation3 + $0x18] sm:$0xff]  }
 0x213   : > { %12321 = vmatmul.mubr.msk.bf16.vlgmr.msra.gmra.mrb[0].mxu1 %vm1366_vm2, %v3594_v2  ;;  %v3619_v2 = vrot.slane %v15568_v57, 1  ;;  %v16575_v57 = vld [vmem:[#allocation5_spill] sm:$0xff] }
 0x214   : > { %12369 = vmatpush3.bf16.msra.mxu1 %v4230_v42  ;;  %12324 = vmatprep.mubr.msk.bf16.mxu1 %vm1366_vm2, %v3596_v45  ;;  %v8538_v42 = vsel %vm1950_vm4, %v8535_v8, %v8537_v24  ;;  %v8540_v45 = vsel %vm1950_vm4, %v8537_v24, %v8539_v46  ;;  %v3635_v8 = vrot.slane %v15661_v26, 1  ;;  %v9864_v26 = vsel %vm1439_vm0, %v15703_v63, 0  ;;  %v14011_v63 = vld [vmem:[#allocation3 + $0x38] sm:$0xff]  }
 0x215   : > { %13791 = vmatprep.subr.msk.bf16.mxu1 %vm1439_vm0, %v15728_v36  ;;  %v3620_v15 = vsel %vm1950_vm4, %v3617_v9, %v3619_v2  ;;  %v4948_v24 = vsel %vm1439_vm0, %v15728_v36, 0  ;;  %v15885_v46 = vld [vmem:[%s16543_s6 + $0x20] sm:$0xf]  ;;  %v14012_v9 = vld [vmem:[#allocation3 + $0x40] sm:$0xff]   ;;  %v14010_v36 = vld [vmem:[#allocation2 + $0x30] sm:$0xff]  }
 0x217   : > { %12779 = vmatmul.mubr.msk.bf16.gmra.mrb[8].mxu0 %vm1366_vm2, %v8518_v1  ;;  %v8543_v1 = vrot.slane %v16575_v57, 1  ;;  %v14024_v57 = vld [vmem:[#allocation3 + $0x70] sm:$0xff]  }
 0x218   : > { %12782 = vmatprep.mubr.msk.bf16.mxu0 %vm1366_vm2, %v8520_v19  ;;  %v16576_v19 = vld [vmem:[#allocation4_spill] sm:$0xff] }
 0x219   : > { %v8544_v52 = vsel %vm1950_vm4, %v8541_v18, %v8543_v1  ;;  %v14021_v18 = vld [vmem:[#allocation2 + $0x58] sm:$0xff]  }
 0x21b   : > { %12325 = vmatmul.mubr.msk.bf16.gmra.mrb[4].mxu1 %vm1366_vm2, %v3598_v20  ;;  %v3621_v20 = vrot.slane %v16576_v19, 1  ;;  %v14022_v19 = vld [vmem:[#allocation2 + $0x60] sm:$0xff]  }
 0x21c   : > { %12328 = vmatprep.mubr.msk.bf16.mxu1 %vm1366_vm2, %v3600_v17  ;;  %v16577_v17 = vld [vmem:[#allocation6_spill] sm:$0xff] }
 0x21d   : > { %v3623_v60 = vrot.slane %v16577_v17, 1  ;;  %v3622_v49 = vsel %vm1950_vm4, %v3619_v2, %v3621_v20  ;;  %v14015_v2 = vld [vmem:[#allocation3 + $0x48] sm:$0xff]   ;;  %v14028_v17 = vld [vmem:[#allocation3 + $0x80] sm:$0xff]  }
 0x21f   : > { %12783 = vmatmul.mubr.msk.bf16.gmra.mrb[12].mxu0 %vm1366_vm2, %v8522_v37  ;;  %v3624_v14 = vsel %vm1950_vm4, %v3621_v20, %v3623_v60  ;;  %v16578_v37 = vld [vmem:[#allocation7_spill] sm:$0xff]  ;;  %v14025_v20 = vld [vmem:[#allocation2 + $0x68] sm:$0xff]  }
 0x220   : > { %12786 = vmatprep.mubr.msk.bf16.mxu0 %vm1366_vm2, %v8524_v35  ;;  %v8545_v35 = vrot.slane %v16578_v37, 1  ;;  %v14030_v37 = vld [vmem:[#allocation2 + $0x80] sm:$0xff]  }
 0x222   : > { %v8546_v28 = vsel %vm1950_vm4, %v8543_v1, %v8545_v35  ;;  %v14027_v1 = vld [vmem:[#allocation3 + $0x78] sm:$0xff]  }
 0x223   : > { %12329 = vmatmul.mubr.msk.bf16.gmra.mrb[8].mxu1 %vm1366_vm2, %v3602_v0  ;;  %v8547_v0 = vrot.slane %v15612_v48, 1 }
 0x224   : > { %12332 = vmatprep.mubr.msk.bf16.mxu1 %vm1366_vm2, %v3604_v5  ;;  %v16579_v5 = vld [vmem:[#allocation8_spill] sm:$0xff] }
 0x225   : > { %v3625_v33 = vrot.slane %v16579_v5, 1  ;;  %v14039_v5 = vld [vmem:[#allocation3 + $0xa8] sm:$0xff]  }
 0x227   : > { %12787 = vmatmul.mubr.msk.bf16.gmra.mrb[16].mxu0 %vm1366_vm2, %v8526_v53  ;;  %v8548_v53 = vsel %vm1950_vm4, %v8545_v35, %v8547_v0  ;;  %v14033_v35 = vld [vmem:[#allocation2 + $0x88] sm:$0xff]  }
 0x228   : > { %12790 = vmatprep.mubr.msk.bf16.mxu0 %vm1366_vm2, %v8528_v61  ;;  %v3626_v61 = vsel %vm1950_vm4, %v3623_v60, %v3625_v33  ;;  %v14031_v60 = vld [vmem:[#allocation3 + $0x88] sm:$0xff]  }
 0x22b   : > { %12333 = vmatmul.mubr.msk.bf16.gmra.mrb[12].mxu1 %vm1366_vm2, %v3606_v51  ;;  %v3628_v51 = vsel %vm1950_vm4, %v3625_v33, %v3627_v12  ;;  %v14034_v33 = vld [vmem:[#allocation2 + $0x90] sm:$0xff]  }
 0x22c   : > { %12336 = vmatprep.mubr.msk.bf16.mxu1 %vm1366_vm2, %v3608_v23  ;;  %v16581_v23 = vld [vmem:[#allocation10_spill] sm:$0xff] }
 0x22d   : > { %v8549_v48 = vrot.slane %v16581_v23, 1 }
 0x22f   : > { %12791 = vmatmul.mubr.msk.bf16.gmra.mrb[20].mxu0 %vm1366_vm2, %v8530_v47  ;;  %v8550_v47 = vsel %vm1950_vm4, %v8547_v0, %v8549_v48  ;;  %v14036_v0 = vld [vmem:[#allocation3 + $0xa0] sm:$0xff]  }
 0x230   : > { %12794 = vmatprep.mubr.msk.bf16.mxu0 %vm1366_vm2, %v8532_v62  ;;  %v8552_v62 = vsel %vm1950_vm4, %v8549_v48, %v8551_v54  ;;  %v14041_v48 = vld [vmem:[#allocation2 + $0xa8] sm:$0xff]  }
 0x231   : > { %v15925_v54 = vld [vmem:[#allocation3 + $0x20] sm:$0xff]  }
 0x232   : > { %v9603_v21 = vshll.u32 %v15925_v54, 16 }
 0x233   : > { %12337 = vmatmul.mubr.msk.bf16.gmra.mrb[16].mxu1 %vm1366_vm2, %v3610_v16  ;;  %v3630_v16 = vsel %vm1950_vm4, %v3627_v12, %v3629_v10  ;;  %v9421_v12 = vld [vmem:[#allocation3 + $0x18] sm:$0xf] }
 0x234   : > { %12340 = vmatprep.mubr.msk.bf16.mxu1 %vm1366_vm2, %v3612_v30  ;;  %v3632_v30 = vsel %vm1950_vm4, %v3629_v10, %v3631_v6  ;;  %v14044_v10 = vld [vmem:[#allocation3 + $0xc0] sm:$0xff]  }
 0x237   : > { %12795 = vmatmul.mubr.msk.bf16.gmra.mrb[24].mxu0 %vm1366_vm2, %v8534_v39  ;;  %v3634_v39 = vsel %vm1950_vm4, %v3631_v6, %v3633_v34  ;;  %v14047_v6 = vld [vmem:[#allocation3 + $0xc8] sm:$0xff]  }
 0x238   : > { %12798 = vmatprep.mubr.msk.bf16.mxu0 %vm1366_vm2, %v8536_v3  ;;  %v3636_v3 = vsel %vm1950_vm4, %v3633_v34, %v3635_v8  ;;  %v14045_v34 = vld [vmem:[#allocation2 + $0xb8] sm:$0xff]  }
 0x23b   : > { %12341 = vmatmul.mubr.msk.bf16.gmra.mrb[20].mxu1 %vm1366_vm2, %v3614_v13  ;;  %v3638_v13 = vsel %vm1950_vm4, %v3635_v8, %v3637_v32  ;;  %v15932_v8 = vld [vmem:[#allocation3 + $0x28] sm:$0xff]   ;;  %v14048_v32 = vld [vmem:[#allocation3 + $0xd0] sm:$0xff]  }
 0x23c   : > { %12344 = vmatprep.mubr.msk.bf16.mxu1 %vm1366_vm2, %v3616_v27  ;;  %v14009_v27 = vld [vmem:[#allocation2 + $0x28] sm:$0xff]  }
 0x23f   : > { %12799 = vmatmul.mubr.msk.bf16.gmra.mrb[28].mxu0 %vm1366_vm2, %v8538_v42  ;;  %v14013_v42 = vld [vmem:[#allocation2 + $0x38] sm:$0xff]  }
 0x240   : > { %12802 = vmatprep.mubr.msk.bf16.mxu0 %vm1366_vm2, %v8540_v45  ;;  %v14016_v45 = vld [vmem:[#allocation3 + $0x50] sm:$0xff]  }
 0x243   : > { %12345 = vmatmul.mubr.msk.bf16.gmra.mrb[24].mxu1 %vm1366_vm2, %v3618_v7  ;;  %v14017_v7 = vld [vmem:[#allocation2 + $0x48] sm:$0xff]  }
 0x244   : > { %12348 = vmatprep.mubr.msk.bf16.mxu1 %vm1366_vm2, %v3620_v15  ;;  %v14018_v15 = vld [vmem:[#allocation2 + $0x50] sm:$0xff]  }
 0x247   : > { %12803 = vmatmul.mubr.msk.bf16.gmra.mrb[32].mxu0 %vm1366_vm2, %v8542_v25  ;;  %v14026_v25 = vld [vmem:[#allocation2 + $0x70] sm:$0xff]  }
 0x248   : > { %12806 = vmatprep.mubr.msk.bf16.mxu0 %vm1366_vm2, %v8544_v52  ;;  %v14029_v52 = vld [vmem:[#allocation2 + $0x78] sm:$0xff]  }
 0x24b   : > { %12349 = vmatmul.mubr.msk.bf16.gmra.mrb[28].mxu1 %vm1366_vm2, %v3622_v49  ;;  %v14032_v49 = vld [vmem:[#allocation3 + $0x90] sm:$0xff]  }
 0x24c   : > { %12352 = vmatprep.mubr.msk.bf16.mxu1 %vm1366_vm2, %v3624_v14  ;;  %v14035_v14 = vld [vmem:[#allocation3 + $0x98] sm:$0xff]  }
 0x24f   : > { %12807 = vmatmul.mubr.msk.bf16.gmra.mrb[36].mxu0 %vm1366_vm2, %v8546_v28  ;;  %v15919_v28 = vld [vmem:[#allocation3 + $0x1c] sm:$0xf] }
 0x250   : > { %12810 = vmatprep.mubr.msk.bf16.mxu0 %vm1366_vm2, %v8548_v53  ;;  %v14040_v53 = vld [vmem:[#allocation3 + $0xb0] sm:$0xff]   ;;  %v11532_v23 = vcombine.low %v9421_v12, %v15919_v28 }
 0x251   : > { %v15978_v12 = vld [vmem:[#allocation2 + $0x38] sm:$0xff]  }
 0x252   : > { %v9598_v44 = vshll.u32 %v11532_v23, 16 }
 0x253   : > { %12353 = vmatmul.mubr.msk.bf16.gmra.mrb[32].mxu1 %vm1366_vm2, %v3626_v61  ;;  %v14043_v61 = vld [vmem:[#allocation3 + $0xb8] sm:$0xff]  }
 0x254   : > { %12356 = vmatprep.mubr.msk.bf16.mxu1 %vm1366_vm2, %v3628_v51  ;;  %v14038_v51 = vld [vmem:[#allocation2 + $0xa0] sm:$0xff]   ;;  %v9600_v38 = vrot.slane %v9598_v44, 1 }
 0x257   : > { %12811 = vmatmul.mubr.msk.bf16.gmra.mrb[40].mxu0 %vm1366_vm2, %v8550_v47  ;;  %v4505_v47 = vld [vmem:[#allocation2 + $0x18] sm:$0xf] }
 0x258   : > { %12814 = vmatprep.mubr.msk.bf16.mxu0 %vm1366_vm2, %v8552_v62  ;;  %v15928_v62 = vld [vmem:[#allocation2 + $0x1c] sm:$0xf] }
 0x25b   : > { %12357 = vmatmul.mubr.msk.bf16.gmra.mrb[36].mxu1 %vm1366_vm2, %v3630_v16  ;;  %v14042_v16 = vld [vmem:[#allocation2 + $0xb0] sm:$0xff]  }
 0x25c   : > { %12360 = vmatprep.mubr.msk.bf16.mxu1 %vm1366_vm2, %v3632_v30  ;;  %v9596_v30 = vshrl.u32 %v11532_v23, 16 }
 0x25f   : > { %12815 = vmatmul.mubr.msk.bf16.gmra.mrb[44].mxu0 %vm1366_vm2, %v8554_v4  ;;  %v11158_v4 = vcombine.low %v4505_v47, %v15928_v62 }
 0x260   : > { %12820 = vmatprep.mubr.msk.bf16.mxu0 %vm1366_vm2, %v14003_v40  ;;  %v9601_v40 = vor.u32 %v9600_v38, %v9596_v30  ;;  %v4711_v30 = vshll.u32 %v15978_v12, 16 }
 0x263   : > { %12361 = vmatmul.mubr.msk.bf16.gmra.mrb[40].mxu1 %vm1366_vm2, %v3634_v39  ;;  %v9605_v39 = vrot.slane %v9603_v21, 1 }
 0x264   : > { %12364 = vmatprep.mubr.msk.bf16.mxu1 %vm1366_vm2, %v3636_v3  ;;  %v15937_v3 = vld [vmem:[#allocation3 + $0x30] sm:$0xff]  }
 0x267   : > { %12821 = vmatmul.mubr.msk.bf16.vlgmr.msra.gmra.mrb[0].mxu0 %vm1366_vm2, %v14004_v50  ;;  %v9611_v50 = vshll.u32 %v15932_v8, 16 }
 0x268   : > { %12824 = vmatprep.mubr.msk.bf16.mxu0 %vm1366_vm2, %v14007_v43  ;;  %12869 = vmatpush3.bf16.msra.mxu0 %v9864_v26  ;;  %v15941_v43 = vld [vmem:[#allocation2 + $0x20] sm:$0xff]   ;;  %v4682_v26 = vshll.u32 %v11158_v4, 16 }
 0x269   : > { %13801 = vmatprep.subr.msk.bf16.mxu0 %vm1439_vm0, %v15870_v58 }
 0x26b   : > { %12365 = vmatmul.mubr.msk.bf16.gmra.mrb[44].mxu1 %vm1366_vm2, %v3638_v13  ;;  %v9607_v13 = vshrl.u32 %v15925_v54, 16 }
 0x26c   : > { %12370 = vmatprep.mubr.msk.bf16.mxu1 %vm1366_vm2, %v14005_v55  ;;  %v14046_v55 = vld [vmem:[#allocation2 + $0xc0] sm:$0xff]  }
 0x26f   : > { %12825 = vmatmul.mubr.msk.bf16.gmra.mrb[4].mxu0 %vm1366_vm2, %v14008_v22  ;;  %v9606_v22 = vsel %vm1169_vm3, %v9601_v40, %v9605_v39  ;;  %v5351_v40 = vsel %vm1439_vm0, %v15885_v46, 0 }
 0x270   : > { %12828 = vmatprep.mubr.msk.bf16.mxu0 %vm1366_vm2, %v14011_v63  ;;  %v9615_v63 = vshrl.u32 %v15932_v8, 16 }
 0x273   : > { %12371 = vmatmul.mubr.msk.bf16.vlgmr.msra.gmra.mrb[0].mxu1 %vm1366_vm2, %v14006_v56  ;;  %v9619_v56 = vshll.u32 %v15937_v3, 16 }
 0x274   : > { %12419 = vmatpush3.bf16.msra.mxu1 %v4948_v24  ;;  %12374 = vmatprep.mubr.msk.bf16.mxu1 %vm1366_vm2, %v14009_v27  ;;  %v14049_v27 = vld [vmem:[#allocation2 + $0xc8] sm:$0xff]   ;;  %v9613_v24 = vrot.slane %v9611_v50, 1 }
 0x275   : > { %13792 = vmatprep.subr.msk.bf16.mxu1 %vm1439_vm0, %v15885_v46  ;;  %v16004_v46 = vld [vmem:[#allocation2 + $0x48] sm:$0xff]  }
 0x277   : > { %12829 = vmatmul.mubr.msk.bf16.gmra.mrb[8].mxu0 %vm1366_vm2, %v14012_v9  ;;  %v4680_v9 = vshrl.u32 %v11158_v4, 16 }
 0x278   : > { %12832 = vmatprep.mubr.msk.bf16.mxu0 %vm1366_vm2, %v14015_v2  ;;  %v4684_v2 = vrot.slane %v4682_v26, 1  ;;  %v4715_v26 = vshrl.u32 %v15978_v12, 16 }
 0x27b   : > { %12375 = vmatmul.mubr.msk.bf16.gmra.mrb[4].mxu1 %vm1366_vm2, %v14010_v36  ;;  %v4687_v36 = vshll.u32 %v15941_v43, 16 }
 0x27c   : > { %12378 = vmatprep.mubr.msk.bf16.mxu1 %vm1366_vm2, %v14013_v42  ;;  %v15949_v42 = vld [vmem:[#allocation3 + $0x38] sm:$0xff]  }
 0x27f   : > { %12833 = vmatmul.mubr.msk.bf16.gmra.mrb[12].mxu0 %vm1366_vm2, %v14016_v45  ;;  %v9609_v45 = vor.u32 %v9607_v13, %v9605_v39 }
 0x280   : > { %12836 = vmatprep.mubr.msk.bf16.mxu0 %vm1366_vm2, %v14019_v29  ;;  %v15952_v29 = vld [vmem:[#allocation2 + $0x28] sm:$0xff]  }
 0x283   : > { %12379 = vmatmul.mubr.msk.bf16.gmra.mrb[8].mxu1 %vm1366_vm2, %v14014_v11  ;;  %v9617_v11 = vor.u32 %v9615_v63, %v9613_v24  ;;  %v4713_v63 = vrot.slane %v4711_v30, 1 }
 0x284   : > { %12382 = vmatprep.mubr.msk.bf16.mxu1 %vm1366_vm2, %v14017_v7  ;;  %v9621_v7 = vrot.slane %v9619_v56, 1 }
 0x287   : > { %12837 = vmatmul.mubr.msk.bf16.gmra.mrb[16].mxu0 %vm1366_vm2, %v14020_v59  ;;  %v15955_v59 = vld [vmem:[#allocation3 + $0x40] sm:$0xff]  }
 0x288   : > { %12840 = vmatprep.mubr.msk.bf16.mxu0 %vm1366_vm2, %v14023_v41  ;;  %v4685_v41 = vor.u32 %v4684_v2, %v4680_v9  ;;  %v4717_v2 = vor.u32 %v4715_v26, %v4713_v63  ;;  %v16048_v26 = vld [vmem:[#allocation3 + $0x78] sm:$0xff]  }
 0x28b   : > { %12383 = vmatmul.mubr.msk.bf16.gmra.mrb[12].mxu1 %vm1366_vm2, %v14018_v15  ;;  %v4689_v15 = vrot.slane %v4687_v36, 1 }
 0x28c   : > { %12386 = vmatprep.mubr.msk.bf16.mxu1 %vm1366_vm2, %v14021_v18  ;;  %v9627_v18 = vshll.u32 %v15949_v42, 16 }
 0x28f   : > { %12841 = vmatmul.mubr.msk.bf16.gmra.mrb[20].mxu0 %vm1366_vm2, %v14024_v57  ;;  %v15959_v57 = vld [vmem:[#allocation2 + $0x30] sm:$0xff]  }
 0x290   : > { %12844 = vmatprep.mubr.msk.bf16.mxu0 %vm1366_vm2, %v14027_v1  ;;  %v9614_v1 = vsel %vm1169_vm3, %v9609_v45, %v9613_v24  ;;  %v4707_v39 = vshrl.u32 %v15959_v57, 16  ;;  %v16006_v24 = vld [vmem:[#allocation3 + $0x60] sm:$0xff]  }
 0x293   : > { %12387 = vmatmul.mubr.msk.bf16.gmra.mrb[16].mxu1 %vm1366_vm2, %v14022_v19  ;;  %v4695_v19 = vshll.u32 %v15952_v29, 16 }
 0x294   : > { %12390 = vmatprep.mubr.msk.bf16.mxu1 %vm1366_vm2, %v14025_v20  ;;  %v9623_v20 = vshrl.u32 %v15937_v3, 16 }
 0x297   : > { %12845 = vmatmul.mubr.msk.bf16.gmra.mrb[24].mxu0 %vm1366_vm2, %v14028_v17  ;;  %v14050_v17 = vld [vmem:[#allocation2 + $0xd0] sm:$0xff]  }
 0x298   : > { %12848 = vmatprep.mubr.msk.bf16.mxu0 %vm1366_vm2, %v14031_v60  ;;  %v9622_v60 = vsel %vm1169_vm3, %v9617_v11, %v9621_v7  ;;  %v16010_v11 = vld [vmem:[#allocation2 + $0x50] sm:$0xff]  }
 0x29b   : > { %12391 = vmatmul.mubr.msk.bf16.gmra.mrb[20].mxu1 %vm1366_vm2, %v14026_v25  ;;  %v10267_v25 = vsel %vm1439_vm0, %v15870_v58, 0  ;;  %v9625_v58 = vor.u32 %v9623_v20, %v9621_v7 }
 0x29c   : > { %12394 = vmatprep.mubr.msk.bf16.mxu1 %vm1366_vm2, %v14029_v52  ;;  %v9631_v52 = vshrl.u32 %v15949_v42, 16 }
 0x29f   : > { %12849 = vmatmul.mubr.msk.bf16.gmra.mrb[28].mxu0 %vm1366_vm2, %v14032_v49  ;;  %v9635_v49 = vshll.u32 %v15955_v59, 16 }
 0x2a0   : > { %12852 = vmatprep.mubr.msk.bf16.mxu0 %vm1366_vm2, %v14035_v14  ;;  %v4691_v14 = vshrl.u32 %v15941_v43, 16 }
 0x2a2   : > { %v4693_v23 = vor.u32 %v4691_v14, %v4689_v15  ;;  %v16024_v14 = vld [vmem:[#allocation3 + $0x68] sm:$0xff]  }
 0x2a3   : > { %12395 = vmatmul.mubr.msk.bf16.gmra.mrb[24].mxu1 %vm1366_vm2, %v14030_v37  ;;  %v4690_v37 = vsel %vm1169_vm3, %v4685_v41, %v4689_v15  ;;  %v4727_v15 = vshll.u32 %v16004_v46, 16 }
 0x2a4   : > { %12398 = vmatprep.mubr.msk.bf16.mxu1 %vm1366_vm2, %v14033_v35  ;;  %v9629_v35 = vrot.slane %v9627_v18, 1 }
 0x2a6   : > { %v9630_v47 = vsel %vm1169_vm3, %v9625_v58, %v9629_v35 }
 0x2a7   : > { %12853 = vmatmul.mubr.msk.bf16.gmra.mrb[32].mxu0 %vm1366_vm2, %v14036_v0  ;;  %v4699_v0 = vshrl.u32 %v15952_v29, 16 }
 0x2a8   : > { %12856 = vmatprep.mubr.msk.bf16.mxu0 %vm1366_vm2, %v14039_v5  ;;  %v4703_v5 = vshll.u32 %v15959_v57, 16 }
 0x2aa   : > { %v4705_v44 = vrot.slane %v4703_v5, 1 }
 0x2ab   : > { %12399 = vmatmul.mubr.msk.bf16.gmra.mrb[28].mxu1 %vm1366_vm2, %v14034_v33  ;;  %v15974_v33 = vld [vmem:[#allocation3 + $0x48] sm:$0xff]  }
 0x2ac   : > { %12402 = vmatprep.mubr.msk.bf16.mxu1 %vm1366_vm2, %v14037_v31  ;;  %v4697_v31 = vrot.slane %v4695_v19, 1  ;;  %v9647_v21 = vshrl.u32 %v15974_v33, 16  ;;  %v4709_v9 = vor.u32 %v4707_v39, %v4705_v44  ;;  %v9667_v19 = vshll.u32 %v16006_v24, 16 }
 0x2ae   : > { %v4698_v4 = vsel %vm1169_vm3, %v4693_v23, %v4697_v31  ;;  %v4714_v20 = vsel %vm1169_vm3, %v4709_v9, %v4713_v63  ;;  %v9669_v58 = vrot.slane %v9667_v19, 1  ;;  %v16052_v63 = vld [vmem:[#allocation2 + $0x68] sm:$0xff]  }
 0x2af   : > { %12857 = vmatmul.mubr.msk.bf16.gmra.mrb[36].mxu0 %vm1366_vm2, %v14040_v53  ;;  %v9633_v53 = vor.u32 %v9631_v52, %v9629_v35  ;;  %v4731_v52 = vshrl.u32 %v16004_v46, 16  ;;  %v4729_v35 = vrot.slane %v4727_v15, 1  ;;  %v16054_v9 = vld [vmem:[#allocation3 + $0x80] sm:$0xff]  }
 0x2b0   : > { %12860 = vmatprep.mubr.msk.bf16.mxu0 %vm1366_vm2, %v14043_v61  ;;  %v9637_v61 = vrot.slane %v9635_v49, 1  ;;  %v4735_v49 = vshll.u32 %v16010_v11, 16 }
 0x2b2   : > { %v9638_v38 = vsel %vm1169_vm3, %v9633_v53, %v9637_v61  ;;  %v4737_v23 = vrot.slane %v4735_v49, 1 }
 0x2b3   : > { %12403 = vmatmul.mubr.msk.bf16.gmra.mrb[32].mxu1 %vm1366_vm2, %v14038_v51  ;;  %v15980_v51 = vld [vmem:[#allocation3 + $0x50] sm:$0xff]  }
 0x2b4   : > { %12406 = vmatprep.mubr.msk.bf16.mxu1 %vm1366_vm2, %v14041_v48  ;;  %v4701_v48 = vor.u32 %v4699_v0, %v4697_v31  ;;  %v9655_v41 = vshrl.u32 %v15980_v51, 16  ;;  %v16028_v0 = vld [vmem:[#allocation2 + $0x58] sm:$0xff]  }
 0x2b5   : > { %v16030_v31 = vld [vmem:[#allocation3 + $0x70] sm:$0xff]  }
 0x2b7   : > { %12861 = vmatmul.mubr.msk.bf16.gmra.mrb[40].mxu0 %vm1366_vm2, %v14044_v10  ;;  %v9643_v10 = vshll.u32 %v15974_v33, 16 }
 0x2b8   : > { %12864 = vmatprep.mubr.msk.bf16.mxu0 %vm1366_vm2, %v14047_v6  ;;  %v15984_v6 = vld [vmem:[#allocation2 + $0x40] sm:$0xff]  }
 0x2b9   : > { %v9645_v50 = vrot.slane %v9643_v10, 1  ;;  %v4719_v13 = vshll.u32 %v15984_v6, 16 }
 0x2bb   : > { %12407 = vmatmul.mubr.msk.bf16.gmra.mrb[36].mxu1 %vm1366_vm2, %v14042_v16  ;;  %v9639_v16 = vshrl.u32 %v15955_v59, 16  ;;  %v9649_v56 = vor.u32 %v9647_v21, %v9645_v50  ;;  %v4721_v36 = vrot.slane %v4719_v13, 1  ;;  %v9683_v21 = vshll.u32 %v16030_v31, 16 }
 0x2bc   : > { %12410 = vmatprep.mubr.msk.bf16.mxu1 %vm1366_vm2, %v14045_v34  ;;  %v9651_v34 = vshll.u32 %v15980_v51, 16 }
 0x2bf   : > { %12865 = vmatmul.mubr.msk.bf16.gmra.mrb[44].mxu0 %vm1366_vm2, %v14048_v32  ;;  %v4706_v32 = vsel %vm1169_vm3, %v4701_v48, %v4705_v44  ;;  %v9675_v48 = vshll.u32 %v16024_v14, 16  ;;  %v16034_v44 = vld [vmem:[#allocation2 + $0x60] sm:$0xff]  }
 0x2c0   : > { %12870 = vmatprep.mubr.msk.bf16.mxu0 %vm1366_vm2, %v9606_v22  ;;  %v9641_v22 = vor.u32 %v9639_v16, %v9637_v61  ;;  %v4733_v61 = vor.u32 %v4731_v52, %v4729_v35  ;;  %v4743_v16 = vshll.u32 %v16028_v0, 16 }
 0x2c1   : > { %v9677_v39 = vrot.slane %v9675_v48, 1 }
 0x2c2   : > { %v9646_v7 = vsel %vm1169_vm3, %v9641_v22, %v9645_v50  ;;  %v4751_v50 = vshll.u32 %v16034_v44, 16  ;;  %v4745_v22 = vrot.slane %v4743_v16, 1 }
 0x2c3   : > { %12411 = vmatmul.mubr.msk.bf16.gmra.mrb[40].mxu1 %vm1366_vm2, %v14046_v55  ;;  %v16000_v55 = vld [vmem:[#allocation3 + $0x58] sm:$0xff]  }
 0x2c4   : > { %12414 = vmatprep.mubr.msk.bf16.mxu1 %vm1366_vm2, %v14049_v27  ;;  %v9653_v27 = vrot.slane %v9651_v34, 1  ;;  %v9659_v45 = vshll.u32 %v16000_v55, 16 }
 0x2c6   : > { %v9654_v18 = vsel %vm1169_vm3, %v9649_v56, %v9653_v27 }
 0x2c7   : > { %12871 = vmatmul.mubr.msk.bf16.vlgmr.msra.gmra.mrb[0].mxu0 %vm1366_vm2, %v9614_v1  ;;  %v9663_v1 = vshrl.u32 %v16000_v55, 16 }
 0x2c8   : > { %12874 = vmatprep.mubr.msk.bf16.mxu0 %vm1366_vm2, %v9622_v60  ;;  %12919 = vmatpush3.bf16.msra.mxu0 %v10267_v25  ;;  %v4722_v60 = vsel %vm1169_vm3, %v4717_v2, %v4721_v36  ;;  %v9661_v25 = vrot.slane %v9659_v45, 1  ;;  %v4753_v45 = vrot.slane %v4751_v50, 1 }
 0x2ca   : > { %v9665_v5 = vor.u32 %v9663_v1, %v9661_v25  ;;  %v4759_v1 = vshll.u32 %v16052_v63, 16 }
 0x2cb   : > { %12415 = vmatmul.mubr.msk.bf16.gmra.mrb[44].mxu1 %vm1366_vm2, %v14050_v17  ;;  %v4723_v17 = vshrl.u32 %v15984_v6, 16 }
 0x2cc   : > { %12420 = vmatprep.mubr.msk.bf16.mxu1 %vm1366_vm2, %v4690_v37  ;;  %v9657_v37 = vor.u32 %v9655_v41, %v9653_v27  ;;  %v9670_v30 = vsel %vm1169_vm3, %v9665_v5, %v9669_v58  ;;  %v9685_v27 = vrot.slane %v9683_v21, 1  ;;  %v16058_v41 = vld [vmem:[#allocation2 + $0x70] sm:$0xff]   ;;  %v16082_v21 = vld [vmem:[#allocation2 + $0x80] sm:$0xff]  }
 0x2cd   : > { %v4725_v53 = vor.u32 %v4723_v17, %v4721_v36  ;;  %v9699_v17 = vshll.u32 %v16054_v9, 16  ;;  %v16072_v5 = vld [vmem:[#allocation3 + $0x88] sm:$0xff]  }
 0x2ce   : > { %v9662_v10 = vsel %vm1169_vm3, %v9657_v37, %v9661_v25  ;;  %v4755_v25 = vshrl.u32 %v16034_v44, 16  ;;  %v4763_v37 = vshrl.u32 %v16052_v63, 16 }
 0x2cf   : > { %12875 = vmatmul.mubr.msk.bf16.gmra.mrb[4].mxu0 %vm1366_vm2, %v9630_v47  ;;  %v9671_v47 = vshrl.u32 %v16006_v24, 16  ;;  %v4730_v34 = vsel %vm1169_vm3, %v4725_v53, %v4729_v35  ;;  %v4767_v35 = vshll.u32 %v16058_v41, 16  ;;  %v4761_v53 = vrot.slane %v4759_v1, 1 }
 0x2d0   : > { %12878 = vmatprep.mubr.msk.bf16.mxu0 %vm1366_vm2, %v9638_v38  ;;  %v9679_v38 = vshrl.u32 %v16024_v14, 16  ;;  %v9701_v48 = vrot.slane %v9699_v17, 1 }
 0x2d1   : > { %v9673_v13 = vor.u32 %v9671_v47, %v9669_v58  ;;  %v4757_v47 = vor.u32 %v4755_v25, %v4753_v45  ;;  %v4765_v16 = vor.u32 %v4763_v37, %v4761_v53 }
 0x2d2   : > { %v9681_v56 = vor.u32 %v9679_v38, %v9677_v39  ;;  %v9707_v38 = vshll.u32 %v16072_v5, 16 }
 0x2d3   : > { %12421 = vmatmul.mubr.msk.bf16.vlgmr.msra.gmra.mrb[0].mxu1 %vm1366_vm2, %v4698_v4  ;;  %v4739_v4 = vshrl.u32 %v16010_v11, 16  ;;  %v9678_v15 = vsel %vm1169_vm3, %v9673_v13, %v9677_v39  ;;  %v4762_v13 = vsel %vm1169_vm3, %v4757_v47, %v4761_v53 }
 0x2d4   : > { %12469 = vmatpush3.bf16.msra.mxu1 %v5351_v40  ;;  %12424 = vmatprep.mubr.msk.bf16.mxu1 %vm1366_vm2, %v4706_v32  ;;  %v4738_v40 = vsel %vm1169_vm3, %v4733_v61, %v4737_v23  ;;  %v4747_v32 = vshrl.u32 %v16028_v0, 16  ;;  %v9686_v19 = vsel %vm1169_vm3, %v9681_v56, %v9685_v27  ;;  %v16076_v61 = vld [vmem:[#allocation2 + $0x78] sm:$0xff]  }
 0x2d5   : > { %v4741_v2 = vor.u32 %v4739_v4, %v4737_v23  ;;  %v9703_v4 = vshrl.u32 %v16054_v9, 16 }
 0x2d6   : > { %v4749_v36 = vor.u32 %v4747_v32, %v4745_v22  ;;  %v9711_v32 = vshrl.u32 %v16072_v5, 16 }
 0x2d7   : > { %12879 = vmatmul.mubr.msk.bf16.gmra.mrb[8].mxu0 %vm1366_vm2, %v9646_v7  ;;  %v9691_v7 = vshll.u32 %v16048_v26, 16 }
 0x2d8   : > { %12882 = vmatprep.mubr.msk.bf16.mxu0 %vm1366_vm2, %v9654_v18  ;;  %v9687_v18 = vshrl.u32 %v16030_v31, 16  ;;  %v4754_v52 = vsel %vm1169_vm3, %v4749_v36, %v4753_v45  ;;  %v4783_v36 = vshll.u32 %v16082_v21, 16  ;;  %v16096_v45 = vld [vmem:[#allocation3 + $0x98] sm:$0xff]  }
 0x2d9   : > { %v9693_v49 = vrot.slane %v9691_v7, 1  ;;  %v9705_v7 = vor.u32 %v9703_v4, %v9701_v48 }
 0x2da   : > { %v9689_v58 = vor.u32 %v9687_v18, %v9685_v27  ;;  %v9709_v27 = vrot.slane %v9707_v38, 1  ;;  %v16100_v18 = vld [vmem:[#allocation2 + $0x88] sm:$0xff]   ;;  %v4785_v25 = vrot.slane %v4783_v36, 1 }
 0x2db   : > { %12425 = vmatmul.mubr.msk.bf16.gmra.mrb[4].mxu1 %vm1366_vm2, %v4714_v20  ;;  %v9695_v20 = vshrl.u32 %v16048_v26, 16 }
 0x2dc   : > { %12428 = vmatprep.mubr.msk.bf16.mxu1 %vm1366_vm2, %v4722_v60  ;;  %v4746_v60 = vsel %vm1169_vm3, %v4741_v2, %v4745_v22  ;;  %v4771_v22 = vshrl.u32 %v16058_v41, 16  ;;  %v4779_v2 = vshrl.u32 %v16076_v61, 16  ;;  %v9713_v1 = vor.u32 %v9711_v32, %v9709_v27 }
 0x2dd   : > { %v9697_v23 = vor.u32 %v9695_v20, %v9693_v49  ;;  %v16102_v20 = vld [vmem:[#allocation3 + $0xa0] sm:$0xff]   ;;  %v9710_v37 = vsel %vm1169_vm3, %v9705_v7, %v9709_v27 }
 0x2df   : > { %12883 = vmatmul.mubr.msk.bf16.gmra.mrb[12].mxu0 %vm1366_vm2, %v9662_v10  ;;  %v16078_v10 = vld [vmem:[#allocation3 + $0x90] sm:$0xff]   ;;  %v9702_v39 = vsel %vm1169_vm3, %v9697_v23, %v9701_v48  ;;  %v9727_v23 = vshrl.u32 %v16096_v45, 16  ;;  %v9731_v48 = vshll.u32 %v16102_v20, 16 }
 0x2e0   : > { %12886 = vmatprep.mubr.msk.bf16.mxu0 %vm1366_vm2, %v9670_v30  ;;  %v4769_v30 = vrot.slane %v4767_v35, 1  ;;  %v9715_v50 = vshll.u32 %v16078_v10, 16  ;;  %v9719_v35 = vshrl.u32 %v16078_v10, 16 }
 0x2e2   : > { %v4770_v56 = vsel %vm1169_vm3, %v4765_v16, %v4769_v30  ;;  %v4773_v17 = vor.u32 %v4771_v22, %v4769_v30  ;;  %v4787_v16 = vshrl.u32 %v16082_v21, 16  ;;  %v9733_v22 = vrot.slane %v9731_v48, 1 }
 0x2e3   : > { %12429 = vmatmul.mubr.msk.bf16.gmra.mrb[8].mxu1 %vm1366_vm2, %v4730_v34  ;;  %v9694_v34 = vsel %vm1169_vm3, %v9689_v58, %v9693_v49  ;;  %v16106_v49 = vld [vmem:[#allocation2 + $0x90] sm:$0xff]   ;;  %v4791_v58 = vshll.u32 %v16100_v18, 16 }
 0x2e4   : > { %12432 = vmatprep.mubr.msk.bf16.mxu1 %vm1366_vm2, %v4738_v40  ;;  %v4775_v40 = vshll.u32 %v16076_v61, 16  ;;  %v4799_v4 = vshll.u32 %v16106_v49, 16  ;;  %v4789_v27 = vor.u32 %v4787_v16, %v4785_v25 }
 0x2e5   : > { %v4793_v32 = vrot.slane %v4791_v58, 1 }
 0x2e6   : > { %v4801_v36 = vrot.slane %v4799_v4, 1 }
 0x2e7   : > { %12887 = vmatmul.mubr.msk.bf16.gmra.mrb[16].mxu0 %vm1366_vm2, %v9678_v15  ;;  %v4777_v15 = vrot.slane %v4775_v40, 1  ;;  %v16120_v40 = vld [vmem:[#allocation3 + $0xa8] sm:$0xff]  }
 0x2e8   : > { %12890 = vmatprep.mubr.msk.bf16.mxu0 %vm1366_vm2, %v9686_v19  ;;  %v9717_v19 = vrot.slane %v9715_v50, 1  ;;  %v16124_v50 = vld [vmem:[#allocation2 + $0x98] sm:$0xff]   ;;  %v9739_v7 = vshll.u32 %v16120_v40, 16 }
 0x2e9   : > { %v4778_v47 = vsel %vm1169_vm3, %v4773_v17, %v4777_v15  ;;  %v4807_v17 = vshll.u32 %v16124_v50, 16 }
 0x2ea   : > { %v9718_v53 = vsel %vm1169_vm3, %v9713_v1, %v9717_v19 }
 0x2eb   : > { %12433 = vmatmul.mubr.msk.bf16.gmra.mrb[12].mxu1 %vm1366_vm2, %v4746_v60  ;;  %v4781_v60 = vor.u32 %v4779_v2, %v4777_v15  ;;  %v16130_v15 = vld [vmem:[#allocation2 + $0xa0] sm:$0xff]  }
 0x2ec   : > { %12436 = vmatprep.mubr.msk.bf16.mxu1 %vm1366_vm2, %v4754_v52  ;;  %v9723_v52 = vshll.u32 %v16096_v45, 16  ;;  %16584 = vst [vmem:[#allocation5_spill] sm:$0xff] %v16130_v15  ;;  %v4815_v48 = vshll.u32 %v16130_v15, 16 }
 0x2ed   : > { %v4786_v30 = vsel %vm1169_vm3, %v4781_v60, %v4785_v25  ;;  %v4794_v25 = vsel %vm1169_vm3, %v4789_v27, %v4793_v32 }
 0x2ee   : > { %v9725_v38 = vrot.slane %v9723_v52, 1  ;;  %v9743_v52 = vshrl.u32 %v16120_v40, 16  ;;  %v4817_v27 = vrot.slane %v4815_v48, 1 }
 0x2ef   : > { %12891 = vmatmul.mubr.msk.bf16.gmra.mrb[20].mxu0 %vm1366_vm2, %v9694_v34  ;;  %v4795_v34 = vshrl.u32 %v16100_v18, 16 }
 0x2f0   : > { %12894 = vmatprep.mubr.msk.bf16.mxu0 %vm1366_vm2, %v9702_v39  ;;  %v9721_v39 = vor.u32 %v9719_v35, %v9717_v19  ;;  %v9735_v19 = vshrl.u32 %v16102_v20, 16  ;;  %v4803_v35 = vshrl.u32 %v16106_v49, 16 }
 0x2f1   : > { %v4797_v2 = vor.u32 %v4795_v34, %v4793_v32 }
 0x2f2   : > { %v9726_v1 = vsel %vm1169_vm3, %v9721_v39, %v9725_v38  ;;  %v9737_v16 = vor.u32 %v9735_v19, %v9733_v22  ;;  %v16150_v39 = vld [vmem:[#allocation3 + $0xc0] sm:$0xff]   ;;  %v4805_v32 = vor.u32 %v4803_v35, %v4801_v36 }
 0x2f3   : > { %12437 = vmatmul.mubr.msk.bf16.gmra.mrb[16].mxu1 %vm1366_vm2, %v4762_v13  ;;  %v9729_v13 = vor.u32 %v9727_v23, %v9725_v38  ;;  %v4802_v58 = vsel %vm1169_vm3, %v4797_v2, %v4801_v36  ;;  %v4811_v23 = vshrl.u32 %v16124_v50, 16  ;;  %v16148_v38 = vld [vmem:[#allocation2 + $0xa8] sm:$0xff]  }
 0x2f4   : > { %12440 = vmatprep.mubr.msk.bf16.mxu1 %vm1366_vm2, %v4770_v56  ;;  %v16126_v56 = vld [vmem:[#allocation3 + $0xb0] sm:$0xff]   ;;  %16586 = vst [vmem:[#allocation6_spill] sm:$0xff] %v16148_v38  ;;  %v4823_v19 = vshll.u32 %v16148_v38, 16 }
 0x2f5   : > { %v9734_v60 = vsel %vm1169_vm3, %v9729_v13, %v9733_v22 }
 0x2f7   : > { %12895 = vmatmul.mubr.msk.bf16.gmra.mrb[24].mxu0 %vm1366_vm2, %v9710_v37  ;;  %v9747_v37 = vshll.u32 %v16126_v56, 16 }
 0x2f8   : > { %12898 = vmatprep.mubr.msk.bf16.mxu0 %vm1366_vm2, %v9718_v53  ;;  %v9741_v53 = vrot.slane %v9739_v7, 1  ;;  %v16154_v7 = vld [vmem:[#allocation2 + $0xb0] sm:$0xff]  }
 0x2f9   : > { %v9749_v4 = vrot.slane %v9747_v37, 1  ;;  %16587 = vst [vmem:[#allocation7_spill] sm:$0xff] %v16154_v7  ;;  %v4819_v37 = vshrl.u32 %v16130_v15, 16  ;;  %v16178_v15 = vld [vmem:[#allocation2 + $0xc0] sm:$0xff]  }
 0x2fa   : > { %v9745_v34 = vor.u32 %v9743_v52, %v9741_v53  ;;  %v9742_v22 = vsel %vm1169_vm3, %v9737_v16, %v9741_v53  ;;  %v9763_v52 = vshll.u32 %v16150_v39, 16  ;;  %v4831_v53 = vshll.u32 %v16154_v7, 16 }
 0x2fb   : > { %12441 = vmatmul.mubr.msk.bf16.gmra.mrb[20].mxu1 %vm1366_vm2, %v4778_v47  ;;  %v16144_v47 = vld [vmem:[#allocation3 + $0xb8] sm:$0xff]   ;;  %v4825_v16 = vrot.slane %v4823_v19, 1 }
 0x2fc   : > { %12444 = vmatprep.mubr.msk.bf16.mxu1 %vm1366_vm2, %v4786_v30  ;;  %16585 = vst [vmem:[#allocation4_spill] sm:$0xff] %v16144_v47  ;;  %v4809_v30 = vrot.slane %v4807_v17, 1  ;;  %v9755_v2 = vshll.u32 %v16144_v47, 16  ;;  %v9750_v17 = vsel %vm1169_vm3, %v9745_v34, %v9749_v4 }
 0x2fe   : > { %v4813_v13 = vor.u32 %v4811_v23, %v4809_v30  ;;  %v4810_v36 = vsel %vm1169_vm3, %v4805_v32, %v4809_v30  ;;  %v9757_v35 = vrot.slane %v9755_v2, 1  ;;  %v16168_v23 = vld [vmem:[#allocation3 + $0xc8] sm:$0xff]   ;;  %v16172_v30 = vld [vmem:[#allocation2 + $0xb8] sm:$0xff]   ;;  %v9765_v32 = vrot.slane %v9763_v52, 1 }
 0x2ff   : > { %12899 = vmatmul.mubr.msk.bf16.gmra.mrb[28].mxu0 %vm1366_vm2, %v9726_v1  ;;  %v9751_v1 = vshrl.u32 %v16126_v56, 16  ;;  %16588 = vst [vmem:[#allocation8_spill] sm:$0xff] %v16168_v23  ;;  %16589 = vst [vmem:[#allocation9_spill] sm:$0xff] %v16172_v30  ;;  %v4839_v19 = vshll.u32 %v16172_v30, 16 }
 0x300   : > { %12902 = vmatprep.mubr.msk.bf16.mxu0 %vm1366_vm2, %v9734_v60  ;;  %v9759_v60 = vshrl.u32 %v16144_v47, 16  ;;  %v9771_v47 = vshll.u32 %v16168_v23, 16 }
 0x301   : > { %v9753_v48 = vor.u32 %v9751_v1, %v9749_v4  ;;  %v9767_v1 = vshrl.u32 %v16150_v39, 16 }
 0x302   : > { %v9761_v34 = vor.u32 %v9759_v60, %v9757_v35  ;;  %v9775_v60 = vshrl.u32 %v16168_v23, 16 }
 0x303   : > { %12445 = vmatmul.mubr.msk.bf16.gmra.mrb[24].mxu1 %vm1366_vm2, %v4794_v25  ;;  %v4818_v25 = vsel %vm1169_vm3, %v4813_v13, %v4817_v27  ;;  %v4821_v13 = vor.u32 %v4819_v37, %v4817_v27  ;;  %v9758_v4 = vsel %vm1169_vm3, %v9753_v48, %v9757_v35  ;;  %v4843_v35 = vshrl.u32 %v16172_v30, 16  ;;  %v16193_v48 = vld [vmem:[#allocation3 + $0xd8] ss:$0 sps:$4 sm:$0x11]  }
 0x304   : > { %12448 = vmatprep.mubr.msk.bf16.mxu1 %vm1366_vm2, %v4802_v58  ;;  %v4827_v58 = vshrl.u32 %v16148_v38, 16  ;;  %v4833_v38 = vrot.slane %v4831_v53, 1  ;;  %v9769_v53 = vor.u32 %v9767_v1, %v9765_v32  ;;  %v9787_v1 = vshll.u32 %v16193_v48, 16 }
 0x305   : > { %v4826_v27 = vsel %vm1169_vm3, %v4821_v13, %v4825_v16 }
 0x306   : > { %v4829_v2 = vor.u32 %v4827_v58, %v4825_v16  ;;  %v4847_v58 = vshll.u32 %v16178_v15, 16  ;;  %v16196_v16 = vld [vmem:[#allocation2 + $0xc8] sm:$0xff]  }
 0x307   : > { %12903 = vmatmul.mubr.msk.bf16.gmra.mrb[32].mxu0 %vm1366_vm2, %v9742_v22  ;;  %v16174_v22 = vld [vmem:[#allocation3 + $0xd0] sm:$0xff]   ;;  %16590 = vst [vmem:[#allocation10_spill] sm:$0xff] %v16196_v16 }
 0x308   : > { %12906 = vmatprep.mubr.msk.bf16.mxu0 %vm1366_vm2, %v9750_v17  ;;  %v9766_v17 = vsel %vm1169_vm3, %v9761_v34, %v9765_v32  ;;  %v9779_v52 = vshll.u32 %v16174_v22, 16  ;;  %v4834_v37 = vsel %vm1169_vm3, %v4829_v2, %v4833_v38  ;;  %v4841_v34 = vrot.slane %v4839_v19, 1 }
 0x309   : > { %v4849_v30 = vrot.slane %v4847_v58, 1  ;;  %v9783_v32 = vshrl.u32 %v16174_v22, 16  ;;  %v4855_v19 = vshll.u32 %v16196_v16, 16  ;;  %v9789_v58 = vrot.slane %v9787_v1, 1 }
 0x30a   : > { %v9781_v23 = vrot.slane %v9779_v52, 1 }
 0x30b   : > { %12449 = vmatmul.mubr.msk.bf16.gmra.mrb[28].mxu1 %vm1366_vm2, %v4810_v36  ;;  %v4835_v36 = vshrl.u32 %v16154_v7, 16  ;;  %v16199_v7 = vld [vmem:[#allocation2 + $0xd0] sm:$0xff]  }
 0x30c   : > { %12452 = vmatprep.mubr.msk.bf16.mxu1 %vm1366_vm2, %v4818_v25  ;;  %v9773_v25 = vrot.slane %v9771_v47, 1  ;;  %v10139_v47 = vld [vmem:[#allocation3 + $0x18] sm:$0xe] }
 0x30d   : > { %v4837_v2 = vor.u32 %v4835_v36, %v4833_v38  ;;  %v4851_v38 = vshrl.u32 %v16178_v15, 16 }
 0x30e   : > { %v9777_v13 = vor.u32 %v9775_v60, %v9773_v25  ;;  %v11582_v60 = vcombine.low %v10139_v47, %v15919_v28 }
 0x30f   : > { %12907 = vmatmul.mubr.msk.bf16.gmra.mrb[36].mxu0 %vm1366_vm2, %v9758_v4  ;;  %v4845_v4 = vor.u32 %v4843_v35, %v4841_v34  ;;  %v4842_v52 = vsel %vm1169_vm3, %v4837_v2, %v4841_v34  ;;  %v9785_v35 = vor.u32 %v9783_v32, %v9781_v23  ;;  %v10146_v34 = vrot.slane %v15925_v54, 1  ;;  %v16217_v2 = vld [vmem:[#allocation2 + $0xd8] ss:$0 sps:$4 sm:$0x11]  }
 0x310   : > { %12910 = vmatprep.mubr.msk.bf16.mxu0 %vm1366_vm2, %v9766_v17  ;;  %v9774_v17 = vsel %vm1169_vm3, %v9769_v53, %v9773_v25  ;;  %v4863_v25 = vshll.u32 %v16199_v7, 16  ;;  %v4857_v53 = vrot.slane %v4855_v19, 1  ;;  %v10145_v28 = vrot.slane %v11582_v60, 1 }
 0x311   : > { %v4850_v36 = vsel %vm1169_vm3, %v4845_v4, %v4849_v30  ;;  %v4867_v32 = vshrl.u32 %v16199_v7, 16  ;;  %v4871_v1 = vshll.u32 %v16217_v2, 16  ;;  %v10148_v19 = vrot.slane %v15932_v8, 1 }
 0x312   : > { %v4865_v4 = vrot.slane %v4863_v25, 1  ;;  %v10150_v60 = vrot.slane %v15937_v3, 1  ;;  %v10152_v3 = vrot.slane %v15949_v42, 1 }
 0x313   : > { %12453 = vmatmul.mubr.msk.bf16.gmra.mrb[32].mxu1 %vm1366_vm2, %v4826_v27  ;;  %v9782_v27 = vsel %vm1169_vm3, %v9777_v13, %v9781_v23  ;;  %v4853_v13 = vor.u32 %v4851_v38, %v4849_v30  ;;  %v4873_v38 = vrot.slane %v4871_v1, 1  ;;  %v10149_v25 = vsel %vm1950_vm4, %v10146_v34, %v10148_v19 }
 0x314   : > { %12456 = vmatprep.mubr.msk.bf16.mxu1 %vm1366_vm2, %v4834_v37  ;;  %v4859_v37 = vshrl.u32 %v16196_v16, 16  ;;  %v5223_v16 = vld [vmem:[#allocation2 + $0x18] sm:$0xe] }
 0x315   : > { %v4858_v23 = vsel %vm1169_vm3, %v4853_v13, %v4857_v53  ;;  %v11208_v30 = vcombine.low %v5223_v16, %v15928_v62  ;;  %v10154_v16 = vrot.slane %v15955_v59, 1  ;;  %v10156_v59 = vrot.slane %v15974_v33, 1 }
 0x316   : > { %v4861_v47 = vor.u32 %v4859_v37, %v4857_v53  ;;  %v5230_v37 = vrot.slane %v15941_v43, 1  ;;  %v5232_v43 = vrot.slane %v15952_v29, 1  ;;  %v10153_v53 = vsel %vm1950_vm4, %v10150_v60, %v10152_v3 }
 0x317   : > { %12911 = vmatmul.mubr.msk.bf16.gmra.mrb[40].mxu0 %vm1366_vm2, %v9774_v17  ;;  %v9790_v17 = vsel %vm1169_vm3, %v9785_v35, %v9789_v58  ;;  %v10151_v35 = vsel %vm1950_vm4, %v10148_v19, %v10150_v60  ;;  %v5234_v58 = vrot.slane %v15959_v57, 1  ;;  %v10158_v29 = vrot.slane %v15980_v51, 1 }
 0x318   : > { %12914 = vmatprep.mubr.msk.bf16.mxu0 %vm1366_vm2, %v9782_v27  ;;  %v10147_v27 = vsel %vm1950_vm4, %v10145_v28, %v10146_v34  ;;  %v4866_v54 = vsel %vm1169_vm3, %v4861_v47, %v4865_v4  ;;  %v10155_v28 = vsel %vm1950_vm4, %v10152_v3, %v10154_v16  ;;  %v5233_v34 = vsel %vm1950_vm4, %v5230_v37, %v5232_v43 }
 0x319   : > { %v5235_v42 = vsel %vm1950_vm4, %v5232_v43, %v5234_v58  ;;  %v5236_v57 = vrot.slane %v15978_v12, 1  ;;  %v5238_v13 = vrot.slane %v15984_v6, 1  ;;  %v10157_v47 = vsel %vm1950_vm4, %v10154_v16, %v10156_v59 }
 0x31a   : > { %v10160_v51 = vrot.slane %v16000_v55, 1  ;;  %v10162_v12 = vrot.slane %v16006_v24, 1  ;;  %v5240_v6 = vrot.slane %v16004_v46, 1  ;;  %v10164_v24 = vrot.slane %v16024_v14, 1 }
 0x31b   : > { %12457 = vmatmul.mubr.msk.bf16.gmra.mrb[36].mxu1 %vm1366_vm2, %v4842_v52  ;;  %v4869_v52 = vor.u32 %v4867_v32, %v4865_v4  ;;  %v10159_v4 = vsel %vm1950_vm4, %v10156_v59, %v10158_v29  ;;  %v5239_v33 = vsel %vm1950_vm4, %v5236_v57, %v5238_v13  ;;  %v10166_v46 = vrot.slane %v16030_v31, 1 }
 0x31c   : > { %12460 = vmatprep.mubr.msk.bf16.mxu1 %vm1366_vm2, %v4850_v36  ;;  %v5229_v36 = vrot.slane %v11208_v30, 1  ;;  %v10163_v32 = vsel %vm1950_vm4, %v10160_v51, %v10162_v12  ;;  %v5241_v1 = vsel %vm1950_vm4, %v5238_v13, %v5240_v6  ;;  %v10165_v30 = vsel %vm1950_vm4, %v10162_v12, %v10164_v24 }
 0x31d   : > { %v4874_v62 = vsel %vm1169_vm3, %v4869_v52, %v4873_v38  ;;  %v10167_v19 = vsel %vm1950_vm4, %v10164_v24, %v10166_v46  ;;  %v10168_v31 = vrot.slane %v16048_v26, 1  ;;  %v5250_v52 = vrot.slane %v16058_v41, 1 }
 0x31e   : > { %v5231_v8 = vsel %vm1950_vm4, %v5229_v36, %v5230_v37  ;;  %v5252_v41 = vrot.slane %v16076_v61, 1  ;;  %v10178_v61 = vrot.slane %v16102_v20, 1  ;;  %v5258_v3 = vrot.slane %v16106_v49, 1 }
 0x31f   : > { %12915 = vmatmul.mubr.msk.bf16.gmra.mrb[44].mxu0 %vm1366_vm2, %v9790_v17  ;;  %v5237_v17 = vsel %vm1950_vm4, %v5234_v58, %v5236_v57  ;;  %v10169_v38 = vsel %vm1950_vm4, %v10166_v46, %v10168_v31  ;;  %v10180_v20 = vrot.slane %v16120_v40, 1  ;;  %v5260_v49 = vrot.slane %v16124_v50, 1  ;;  %v16593_v57 = vld [vmem:[#allocation6_spill] sm:$0xff] }
 0x320   : > { %12920 = vmatprep.mubr.msk.bf16.mxu0 %vm1366_vm2, %v10147_v27  ;;  %v5242_v27 = vrot.slane %v16010_v11, 1  ;;  %v5244_v11 = vrot.slane %v16028_v0, 1  ;;  %v10170_v0 = vrot.slane %v16054_v9, 1  ;;  %v10172_v9 = vrot.slane %v16072_v5, 1 }
 0x321   : > { %v5261_v59 = vsel %vm1950_vm4, %v5258_v3, %v5260_v49  ;;  %v10186_v50 = vrot.slane %v16150_v39, 1  ;;  %v5264_v13 = vrot.slane %v16593_v57, 1 }
 0x322   : > { %v5243_v55 = vsel %vm1950_vm4, %v5240_v6, %v5242_v27  ;;  %v5245_v60 = vsel %vm1950_vm4, %v5242_v27, %v5244_v11  ;;  %v10171_v36 = vsel %vm1950_vm4, %v10168_v31, %v10170_v0  ;;  %v16595_v6 = vld [vmem:[#allocation8_spill] sm:$0xff]  ;;  %v10190_v27 = vrot.slane %v16174_v22, 1 }
 0x323   : > { %12461 = vmatmul.mubr.msk.bf16.gmra.mrb[40].mxu1 %vm1366_vm2, %v4858_v23  ;;  %v10161_v23 = vsel %vm1950_vm4, %v10158_v29, %v10160_v51  ;;  %v16592_v29 = vld [vmem:[#allocation4_spill] sm:$0xff]  ;;  %v10188_v39 = vrot.slane %v16595_v6, 1  ;;  %v10192_v22 = vrot.slane %v16193_v48, 1  ;;  %v5276_v48 = vrot.slane %v16217_v2, 1 }
 0x324   : > { %12464 = vmatprep.mubr.msk.bf16.mxu1 %vm1366_vm2, %v4866_v54  ;;  %v5246_v54 = vrot.slane %v16034_v44, 1  ;;  %v5248_v44 = vrot.slane %v16052_v63, 1  ;;  %v10174_v63 = vrot.slane %v16078_v10, 1  ;;  %v10176_v10 = vrot.slane %v16096_v45, 1 }
 0x325   : > { %v10191_v24 = vsel %vm1950_vm4, %v10188_v39, %v10190_v27 }
 0x326   : > { %v5247_v14 = vsel %vm1950_vm4, %v5244_v11, %v5246_v54  ;;  %v5249_v37 = vsel %vm1950_vm4, %v5246_v54, %v5248_v44  ;;  %v5251_v26 = vsel %vm1950_vm4, %v5248_v44, %v5250_v52  ;;  %v10177_v16 = vsel %vm1950_vm4, %v10174_v63, %v10176_v10  ;;  %v16597_v54 = vld [vmem:[#allocation10_spill] sm:$0xff] }
 0x327   : > { %12921 = vmatmul.mubr.msk.bf16.vlgmr.msra.gmra.mrb[0].mxu0 %vm1366_vm2, %v10149_v25  ;;  %v5254_v25 = vrot.slane %v16082_v21, 1  ;;  %v5256_v21 = vrot.slane %v16100_v18, 1  ;;  %v10179_v43 = vsel %vm1950_vm4, %v10176_v10, %v10178_v61  ;;  %v10182_v18 = vrot.slane %v16126_v56, 1 }
 0x328   : > { %12924 = vmatprep.mubr.msk.bf16.mxu0 %vm1366_vm2, %v10151_v35  ;;  %v10173_v35 = vsel %vm1950_vm4, %v10170_v0, %v10172_v9  ;;  %v10184_v56 = vrot.slane %v16592_v29, 1 }
 0x329   : > { %v5255_v5 = vsel %vm1950_vm4, %v5252_v41, %v5254_v25  ;;  %v5257_v58 = vsel %vm1950_vm4, %v5254_v25, %v5256_v21  ;;  %v5259_v45 = vsel %vm1950_vm4, %v5256_v21, %v5258_v3 }
 0x32b   : > { %12465 = vmatmul.mubr.msk.bf16.gmra.mrb[44].mxu1 %vm1366_vm2, %v4874_v62  ;;  %v10175_v62 = vsel %vm1950_vm4, %v10172_v9, %v10174_v63 }
 0x32c   : > { %12470 = vmatprep.mubr.msk.bf16.mxu1 %vm1366_vm2, %v5231_v8  ;;  %v5253_v8 = vsel %vm1950_vm4, %v5250_v52, %v5252_v41 }
 0x32f   : > { %12925 = vmatmul.mubr.msk.bf16.gmra.mrb[4].mxu0 %vm1366_vm2, %v10153_v53  ;;  %v16591_v53 = vld [vmem:[#allocation5_spill] sm:$0xff] }
 0x330   : > { %12928 = vmatprep.mubr.msk.bf16.mxu0 %vm1366_vm2, %v10155_v28  ;;  %v5262_v28 = vrot.slane %v16591_v53, 1 }
 0x332   : > { %v5263_v40 = vsel %vm1950_vm4, %v5260_v49, %v5262_v28  ;;  %v5265_v51 = vsel %vm1950_vm4, %v5262_v28, %v5264_v13 }
 0x333   : > { %12471 = vmatmul.mubr.msk.bf16.vlgmr.msra.gmra.mrb[0].mxu1 %vm1366_vm2, %v5233_v34  ;;  %v10181_v34 = vsel %vm1950_vm4, %v10178_v61, %v10180_v20 }
 0x334   : > { %12474 = vmatprep.mubr.msk.bf16.mxu1 %vm1366_vm2, %v5235_v42  ;;  %v10183_v42 = vsel %vm1950_vm4, %v10180_v20, %v10182_v18 }
 0x337   : > { %12929 = vmatmul.mubr.msk.bf16.gmra.mrb[8].mxu0 %vm1366_vm2, %v10157_v47  ;;  %v16594_v47 = vld [vmem:[#allocation7_spill] sm:$0xff] }
 0x338   : > { %12932 = vmatprep.mubr.msk.bf16.mxu0 %vm1366_vm2, %v10159_v4  ;;  %v5266_v4 = vrot.slane %v16594_v47, 1 }
 0x33a   : > { %v5267_v12 = vsel %vm1950_vm4, %v5264_v13, %v5266_v4 }
 0x33b   : > { %12475 = vmatmul.mubr.msk.bf16.gmra.mrb[4].mxu1 %vm1366_vm2, %v5237_v17  ;;  %v10185_v17 = vsel %vm1950_vm4, %v10182_v18, %v10184_v56 }
 0x33c   : > { %12478 = vmatprep.mubr.msk.bf16.mxu1 %vm1366_vm2, %v5239_v33  ;;  %v10187_v33 = vsel %vm1950_vm4, %v10184_v56, %v10186_v50 }
 0x33f   : > { %12933 = vmatmul.mubr.msk.bf16.gmra.mrb[12].mxu0 %vm1366_vm2, %v10161_v23  ;;  %v16596_v23 = vld [vmem:[#allocation9_spill] sm:$0xff] }
 0x340   : > { %12936 = vmatprep.mubr.msk.bf16.mxu0 %vm1366_vm2, %v10163_v32  ;;  %v5268_v32 = vrot.slane %v16596_v23, 1 }
 0x342   : > { %v5269_v46 = vsel %vm1950_vm4, %v5266_v4, %v5268_v32 }
 0x343   : > { %12479 = vmatmul.mubr.msk.bf16.gmra.mrb[8].mxu1 %vm1366_vm2, %v5241_v1  ;;  %v5270_v1 = vrot.slane %v16178_v15, 1  ;;  %v5272_v15 = vrot.slane %v16597_v54, 1 }
 0x344   : > { %12482 = vmatprep.mubr.msk.bf16.mxu1 %vm1366_vm2, %v5243_v55  ;;  %v10189_v55 = vsel %vm1950_vm4, %v10186_v50, %v10188_v39 }
 0x345   : > { %v5271_v11 = vsel %vm1950_vm4, %v5268_v32, %v5270_v1 }
 0x347   : > { %12937 = vmatmul.mubr.msk.bf16.gmra.mrb[16].mxu0 %vm1366_vm2, %v10165_v30  ;;  %v5274_v30 = vrot.slane %v16199_v7, 1 }
 0x348   : > { %12940 = vmatprep.mubr.msk.bf16.mxu0 %vm1366_vm2, %v10167_v19  ;;  %v10193_v19 = vsel %vm1950_vm4, %v10190_v27, %v10192_v22 }
 0x349   : > { %v5277_v31 = vsel %vm1950_vm4, %v5274_v30, %v5276_v48 }
 0x34b   : > { %12483 = vmatmul.mubr.msk.bf16.gmra.mrb[12].mxu1 %vm1366_vm2, %v5245_v60  ;;  %v5273_v60 = vsel %vm1950_vm4, %v5270_v1, %v5272_v15 }
 0x34c   : > { %12486 = vmatprep.mubr.msk.bf16.mxu1 %vm1366_vm2, %v5247_v14  ;;  %v5275_v14 = vsel %vm1950_vm4, %v5272_v15, %v5274_v30 }
 0x34f   : > { %12941 = vmatmul.mubr.msk.bf16.gmra.mrb[20].mxu0 %vm1366_vm2, %v10169_v38 }
 0x350   : > { %12944 = vmatprep.mubr.msk.bf16.mxu0 %vm1366_vm2, %v10171_v36 }
 0x353   : > { %12487 = vmatmul.mubr.msk.bf16.gmra.mrb[16].mxu1 %vm1366_vm2, %v5249_v37 }
 0x354   : > { %12490 = vmatprep.mubr.msk.bf16.mxu1 %vm1366_vm2, %v5251_v26  ;;  %v16376_v26 = vld [vmem:[%s16545_s8] ss:$0 sm:$0xff] }
 0x357   : > { %12945 = vmatmul.mubr.msk.bf16.gmra.mrb[24].mxu0 %vm1366_vm2, %v10173_v35 }
 0x358   : > { %12948 = vmatprep.mubr.msk.bf16.mxu0 %vm1366_vm2, %v10175_v62 }
 0x35b   : > { %12491 = vmatmul.mubr.msk.bf16.gmra.mrb[20].mxu1 %vm1366_vm2, %v5253_v8 }
 0x35c   : > { %12494 = vmatprep.mubr.msk.bf16.mxu1 %vm1366_vm2, %v5255_v5 }
 0x35f   : > { %12949 = vmatmul.mubr.msk.bf16.gmra.mrb[28].mxu0 %vm1366_vm2, %v10177_v16 }
 0x360   : > { %12952 = vmatprep.mubr.msk.bf16.mxu0 %vm1366_vm2, %v10179_v43 }
 0x363   : > { %12495 = vmatmul.mubr.msk.bf16.gmra.mrb[24].mxu1 %vm1366_vm2, %v5257_v58 }
 0x364   : > { %12498 = vmatprep.mubr.msk.bf16.mxu1 %vm1366_vm2, %v5259_v45 }
 0x367   : > { %12953 = vmatmul.mubr.msk.bf16.gmra.mrb[32].mxu0 %vm1366_vm2, %v10181_v34 }
 0x368   : > { %12956 = vmatprep.mubr.msk.bf16.mxu0 %vm1366_vm2, %v10183_v42 }
 0x36b   : > { %12499 = vmatmul.mubr.msk.bf16.gmra.mrb[28].mxu1 %vm1366_vm2, %v5261_v59 }
 0x36c   : > { %12502 = vmatprep.mubr.msk.bf16.mxu1 %vm1366_vm2, %v5263_v40 }
 0x36f   : > { %12957 = vmatmul.mubr.msk.bf16.gmra.mrb[36].mxu0 %vm1366_vm2, %v10185_v17 }
 0x370   : > { %12960 = vmatprep.mubr.msk.bf16.mxu0 %vm1366_vm2, %v10187_v33 }
 0x373   : > { %12503 = vmatmul.mubr.msk.bf16.gmra.mrb[32].mxu1 %vm1366_vm2, %v5265_v51 }
 0x374   : > { %12506 = vmatprep.mubr.msk.bf16.mxu1 %vm1366_vm2, %v5267_v12 }
 0x377   : > { %12961 = vmatmul.mubr.msk.bf16.gmra.mrb[40].mxu0 %vm1366_vm2, %v10189_v55 }
 0x378   : > { %12964 = vmatprep.mubr.msk.bf16.mxu0 %vm1366_vm2, %v10191_v24 }
 0x37b   : > { %12507 = vmatmul.mubr.msk.bf16.gmra.mrb[36].mxu1 %vm1366_vm2, %v5269_v46 }
 0x37c   : > { %12510 = vmatprep.mubr.msk.bf16.mxu1 %vm1366_vm2, %v5271_v11 }
 0x37f   : > { %12965 = vmatmul.mubr.msk.bf16.gmra.mrb[44].mxu0 %vm1366_vm2, %v10193_v19 }
 0x383   : > { %12511 = vmatmul.mubr.msk.bf16.gmra.mrb[40].mxu1 %vm1366_vm2, %v5273_v60 }
 0x384   : > { %12514 = vmatprep.mubr.msk.bf16.mxu1 %vm1366_vm2, %v5275_v14 }
 0x38b   : > { %12515 = vmatmul.mubr.msk.bf16.gmra.mrb[44].mxu1 %vm1366_vm2, %v5277_v31 }
 0x3fa   : > { %v12922_v0 = vpop.f32.mrb[0].mxu0 }
 0x3fb   : > { %v10303_v7 = vpop.f32.mrb[1].mxu0 }
 0x3fc   : > { %v12923_v44 = vpop.f32.mrb[2].mxu0 }
 0x3fd   : > { %v10306_v52 = vpop.f32.mrb[3].mxu0 }
 0x402   : > { %v12926_v38 = vpop.f32.mrb[4].mxu0 }
 0x403   : > { %v10319_v36 = vpop.f32.mrb[5].mxu0 }
 0x404   : > { %v12927_v9 = vpop.f32.mrb[6].mxu0 }
 0x405   : > { %v10322_v2 = vpop.f32.mrb[7].mxu0 }
 0x406   : > { %v12472_v37 = vpop.f32.mrb[0].mxu1 }
 0x407   : > { %v12968_v63 = vadd.f32 %v12922_v0, %v12472_v37  ;;  %v5387_v41 = vpop.f32.mrb[1].mxu1 }
 0x408   : > { %v12969_v25 = vadd.f32 %v10303_v7, %v5387_v41  ;;  %v12473_v35 = vpop.f32.mrb[2].mxu1 }
 0x409   : > { %v10551_v62 = vadd.f32 %v12968_v63, %v16376_v26  ;;  %v12970_v8 = vadd.f32 %v12923_v44, %v12473_v35  ;;  %v5390_v5 = vpop.f32.mrb[3].mxu1 }
 0x40a   : > { %v10549_v10 = vadd.f32 %v12969_v25, %v16376_v26  ;;  %v12971_v61 = vadd.f32 %v10306_v52, %v5390_v5  ;;  %v12930_v16 = vpop.f32.mrb[8].mxu0 }
 0x40b   : > { %14103 = vtanh.f32 %v10551_v62  ;;  %v10552_v21 = vadd.f32 %v12970_v8, %v16376_v26  ;;  %v10335_v43 = vpop.f32.mrb[9].mxu0 }
 0x40c   : > { %14105 = vtanh.f32 %v10549_v10  ;;  %v10550_v3 = vadd.f32 %v12971_v61, %v16376_v26  ;;  %v12931_v45 = vpop.f32.mrb[10].mxu0 }
 0x40d   : > { %14107 = vtanh.f32 %v10552_v21  ;;  %v10338_v49 = vpop.f32.mrb[11].mxu0 }
 0x40e   : > { %14109 = vtanh.f32 %v10550_v3  ;;  %v12476_v58 = vpop.f32.mrb[4].mxu1 }
 0x40f   : > { %v12972_v20 = vadd.f32 %v12926_v38, %v12476_v58  ;;  %v5403_v18 = vpop.f32.mrb[5].mxu1 }
 0x410   : > { %v12973_v53 = vadd.f32 %v10319_v36, %v5403_v18  ;;  %v12477_v28 = vpop.f32.mrb[6].mxu1 }
 0x411   : > { %v10555_v34 = vadd.f32 %v12972_v20, %v16376_v26  ;;  %v12974_v42 = vadd.f32 %v12927_v9, %v12477_v28  ;;  %v5406_v59 = vpop.f32.mrb[7].mxu1 }
 0x412   : > { %v10553_v40 = vadd.f32 %v12973_v53, %v16376_v26  ;;  %v12975_v29 = vadd.f32 %v10322_v2, %v5406_v59  ;;  %v12934_v57 = vpop.f32.mrb[12].mxu0 }
 0x413   : > { %14111 = vtanh.f32 %v10555_v34  ;;  %v10556_v56 = vadd.f32 %v12974_v42, %v16376_v26  ;;  %v10351_v47 = vpop.f32.mrb[13].mxu0 }
 0x414   : > { %14113 = vtanh.f32 %v10553_v40  ;;  %v10554_v50 = vadd.f32 %v12975_v29, %v16376_v26  ;;  %v12935_v33 = vpop.f32.mrb[14].mxu0 }
 0x415   : > { %v14104_v13 = vpop.eup %14103  ;;  %14115 = vtanh.f32 %v10556_v56  ;;  %v10354_v39 = vpop.f32.mrb[15].mxu0 }
 0x416   : > { %v14106_v4 = vpop.eup %14105  ;;  %10648 = vst.msk [vmem:[%s16388_s29 + $0x10] sm:$0xff] %vm10645_vm5, %v14104_v13  ;;  %14117 = vtanh.f32 %v10554_v50  ;;  %v12480_v17 = vpop.f32.mrb[8].mxu1 }
 0x417   : > { %v14108_v51 = vpop.eup %14107  ;;  %10646 = vst.msk [vmem:[%s16388_s29] sm:$0xff] %vm10645_vm5, %v14106_v4  ;;  %v12976_v12 = vadd.f32 %v12930_v16, %v12480_v17  ;;  %v5419_v6 = vpop.f32.mrb[9].mxu1 }
 0x418   : > { %v14110_v27 = vpop.eup %14109  ;;  %10649 = vst.msk [vmem:[%s16388_s29 + $0x18] sm:$0xff] %vm10645_vm5, %v14108_v51  ;;  %v12977_v23 = vadd.f32 %v10335_v43, %v5419_v6  ;;  %v12481_v32 = vpop.f32.mrb[10].mxu1 }
 0x419   : > { %10647 = vst.msk [vmem:[%s16388_s29 + $0x8] sm:$0xff] %vm10645_vm5, %v14110_v27  ;;  %v10559_v1 = vadd.f32 %v12976_v12, %v16376_v26  ;;  %v12978_v55 = vadd.f32 %v12931_v45, %v12481_v32  ;;  %v5422_v24 = vpop.f32.mrb[11].mxu1 }
 0x41a   : > { %v10557_v46 = vadd.f32 %v12977_v23, %v16376_v26  ;;  %v12979_v11 = vadd.f32 %v10338_v49, %v5422_v24  ;;  %v12938_v15 = vpop.f32.mrb[16].mxu0 }
 0x41b   : > { %14119 = vtanh.f32 %v10559_v1  ;;  %v10560_v22 = vadd.f32 %v12978_v55, %v16376_v26  ;;  %v10367_v19 = vpop.f32.mrb[17].mxu0 }
 0x41c   : > { %14121 = vtanh.f32 %v10557_v46  ;;  %v10558_v54 = vadd.f32 %v12979_v11, %v16376_v26  ;;  %v12939_v48 = vpop.f32.mrb[18].mxu0 }
 0x41d   : > { %v14112_v30 = vpop.eup %14111  ;;  %14123 = vtanh.f32 %v10560_v22  ;;  %v10370_v44 = vpop.f32.mrb[19].mxu0 }
 0x41e   : > { %v14114_v60 = vpop.eup %14113  ;;  %10652 = vst.msk [vmem:[%s16388_s29 + $0x30] sm:$0xff] %vm10645_vm5, %v14112_v30  ;;  %14125 = vtanh.f32 %v10558_v54  ;;  %v12484_v14 = vpop.f32.mrb[12].mxu1 }
 0x41f   : > { %v14116_v31 = vpop.eup %14115  ;;  %10650 = vst.msk [vmem:[%s16388_s29 + $0x20] sm:$0xff] %vm10645_vm5, %v14114_v60  ;;  %v12980_v0 = vadd.f32 %v12934_v57, %v12484_v14  ;;  %v5435_v7 = vpop.f32.mrb[13].mxu1 }
 0x420   : > { %v14118_v52 = vpop.eup %14117  ;;  %10653 = vst.msk [vmem:[%s16388_s29 + $0x38] sm:$0xff] %vm10645_vm5, %v14116_v31  ;;  %v12981_v38 = vadd.f32 %v10351_v47, %v5435_v7  ;;  %v12485_v36 = vpop.f32.mrb[14].mxu1 }
 0x421   : > { %10651 = vst.msk [vmem:[%s16388_s29 + $0x28] sm:$0xff] %vm10645_vm5, %v14118_v52  ;;  %v10563_v37 = vadd.f32 %v12980_v0, %v16376_v26  ;;  %v12982_v9 = vadd.f32 %v12935_v33, %v12485_v36  ;;  %v5438_v63 = vpop.f32.mrb[15].mxu1 }
 0x422   : > { %v10561_v41 = vadd.f32 %v12981_v38, %v16376_v26  ;;  %v12983_v2 = vadd.f32 %v10354_v39, %v5438_v63  ;;  %v12942_v62 = vpop.f32.mrb[20].mxu0 }
 0x423   : > { %14127 = vtanh.f32 %v10563_v37  ;;  %v10564_v25 = vadd.f32 %v12982_v9, %v16376_v26  ;;  %v10383_v5 = vpop.f32.mrb[21].mxu0 }
 0x424   : > { %14129 = vtanh.f32 %v10561_v41  ;;  %v10562_v35 = vadd.f32 %v12983_v2, %v16376_v26  ;;  %v12943_v21 = vpop.f32.mrb[22].mxu0 }
 0x425   : > { %v14120_v8 = vpop.eup %14119  ;;  %14131 = vtanh.f32 %v10564_v25  ;;  %v10386_v58 = vpop.f32.mrb[23].mxu0 }
 0x426   : > { %v14122_v10 = vpop.eup %14121  ;;  %10656 = vst.msk [vmem:[%s16388_s29 + $0x50] sm:$0xff] %vm10645_vm5, %v14120_v8  ;;  %14133 = vtanh.f32 %v10562_v35  ;;  %v12488_v61 = vpop.f32.mrb[16].mxu1 }
 0x427   : > { %v14124_v3 = vpop.eup %14123  ;;  %10654 = vst.msk [vmem:[%s16388_s29 + $0x40] sm:$0xff] %vm10645_vm5, %v14122_v10  ;;  %v12984_v16 = vadd.f32 %v12938_v15, %v12488_v61  ;;  %v5451_v43 = vpop.f32.mrb[17].mxu1 }
 0x428   : > { %v14126_v45 = vpop.eup %14125  ;;  %10657 = vst.msk [vmem:[%s16388_s29 + $0x58] sm:$0xff] %vm10645_vm5, %v14124_v3  ;;  %v12985_v20 = vadd.f32 %v10367_v19, %v5451_v43  ;;  %v12489_v18 = vpop.f32.mrb[18].mxu1 }
 0x429   : > { %10655 = vst.msk [vmem:[%s16388_s29 + $0x48] sm:$0xff] %vm10645_vm5, %v14126_v45  ;;  %v10567_v49 = vadd.f32 %v12984_v16, %v16376_v26  ;;  %v12986_v53 = vadd.f32 %v12939_v48, %v12489_v18  ;;  %v5454_v28 = vpop.f32.mrb[19].mxu1 }
 0x42a   : > { %v10565_v34 = vadd.f32 %v12985_v20, %v16376_v26  ;;  %v12987_v42 = vadd.f32 %v10370_v44, %v5454_v28  ;;  %v12946_v29 = vpop.f32.mrb[24].mxu0 }
 0x42b   : > { %14135 = vtanh.f32 %v10567_v49  ;;  %v10568_v59 = vadd.f32 %v12986_v53, %v16376_v26  ;;  %v10399_v50 = vpop.f32.mrb[25].mxu0 }
 0x42c   : > { %14137 = vtanh.f32 %v10565_v34  ;;  %v10566_v40 = vadd.f32 %v12987_v42, %v16376_v26  ;;  %v12947_v47 = vpop.f32.mrb[26].mxu0 }
 0x42d   : > { %v14128_v56 = vpop.eup %14127  ;;  %14139 = vtanh.f32 %v10568_v59  ;;  %v10402_v51 = vpop.f32.mrb[27].mxu0 }
 0x42e   : > { %v14130_v57 = vpop.eup %14129  ;;  %10660 = vst.msk [vmem:[%s16388_s29 + $0x70] sm:$0xff] %vm10645_vm5, %v14128_v56  ;;  %14141 = vtanh.f32 %v10566_v40  ;;  %v12492_v13 = vpop.f32.mrb[20].mxu1 }
 0x42f   : > { %v14132_v4 = vpop.eup %14131  ;;  %10658 = vst.msk [vmem:[%s16388_s29 + $0x60] sm:$0xff] %vm10645_vm5, %v14130_v57  ;;  %v12988_v17 = vadd.f32 %v12942_v62, %v12492_v13  ;;  %v5467_v33 = vpop.f32.mrb[21].mxu1 }
 0x430   : > { %v14134_v12 = vpop.eup %14133  ;;  %10661 = vst.msk [vmem:[%s16388_s29 + $0x78] sm:$0xff] %vm10645_vm5, %v14132_v4  ;;  %v12989_v6 = vadd.f32 %v10383_v5, %v5467_v33  ;;  %v12493_v39 = vpop.f32.mrb[22].mxu1 }
 0x431   : > { %10659 = vst.msk [vmem:[%s16388_s29 + $0x68] sm:$0xff] %vm10645_vm5, %v14134_v12  ;;  %v10571_v27 = vadd.f32 %v12988_v17, %v16376_v26  ;;  %v12990_v23 = vadd.f32 %v12943_v21, %v12493_v39  ;;  %v5470_v32 = vpop.f32.mrb[23].mxu1 }
 0x432   : > { %v10569_v1 = vadd.f32 %v12989_v6, %v16376_v26  ;;  %v12991_v55 = vadd.f32 %v10386_v58, %v5470_v32  ;;  %v12950_v11 = vpop.f32.mrb[28].mxu0 }
 0x433   : > { %14143 = vtanh.f32 %v10571_v27  ;;  %v10572_v24 = vadd.f32 %v12990_v23, %v16376_v26  ;;  %v10415_v54 = vpop.f32.mrb[29].mxu0 }
 0x434   : > { %14145 = vtanh.f32 %v10569_v1  ;;  %v10570_v46 = vadd.f32 %v12991_v55, %v16376_v26  ;;  %v12951_v19 = vpop.f32.mrb[30].mxu0 }
 0x435   : > { %v14136_v22 = vpop.eup %14135  ;;  %14147 = vtanh.f32 %v10572_v24  ;;  %v10418_v31 = vpop.f32.mrb[31].mxu0 }
 0x436   : > { %v14138_v15 = vpop.eup %14137  ;;  %10664 = vst.msk [vmem:[%s16388_s29 + $0x90] sm:$0xff] %vm10645_vm5, %v14136_v22  ;;  %14149 = vtanh.f32 %v10570_v46  ;;  %v12496_v30 = vpop.f32.mrb[24].mxu1 }
 0x437   : > { %v14140_v60 = vpop.eup %14139  ;;  %10662 = vst.msk [vmem:[%s16388_s29 + $0x80] sm:$0xff] %vm10645_vm5, %v14138_v15  ;;  %v12992_v14 = vadd.f32 %v12946_v29, %v12496_v30  ;;  %v5483_v48 = vpop.f32.mrb[25].mxu1 }
 0x438   : > { %v14142_v0 = vpop.eup %14141  ;;  %10665 = vst.msk [vmem:[%s16388_s29 + $0x98] sm:$0xff] %vm10645_vm5, %v14140_v60  ;;  %v12993_v7 = vadd.f32 %v10399_v50, %v5483_v48  ;;  %v12497_v44 = vpop.f32.mrb[26].mxu1 }
 0x439   : > { %10663 = vst.msk [vmem:[%s16388_s29 + $0x88] sm:$0xff] %vm10645_vm5, %v14142_v0  ;;  %v10575_v52 = vadd.f32 %v12992_v14, %v16376_v26  ;;  %v12994_v38 = vadd.f32 %v12947_v47, %v12497_v44  ;;  %v5486_v36 = vpop.f32.mrb[27].mxu1 }
 0x43a   : > { %v10573_v37 = vadd.f32 %v12993_v7, %v16376_v26  ;;  %v12995_v9 = vadd.f32 %v10402_v51, %v5486_v36  ;;  %v12954_v2 = vpop.f32.mrb[32].mxu0 }
 0x43b   : > { %14151 = vtanh.f32 %v10575_v52  ;;  %v10576_v63 = vadd.f32 %v12994_v38, %v16376_v26  ;;  %v10431_v35 = vpop.f32.mrb[33].mxu0 }
 0x43c   : > { %14153 = vtanh.f32 %v10573_v37  ;;  %v10574_v41 = vadd.f32 %v12995_v9, %v16376_v26  ;;  %v12955_v5 = vpop.f32.mrb[34].mxu0 }
 0x43d   : > { %v14144_v25 = vpop.eup %14143  ;;  %14155 = vtanh.f32 %v10576_v63  ;;  %v10434_v3 = vpop.f32.mrb[35].mxu0 }
 0x43e   : > { %v14146_v62 = vpop.eup %14145  ;;  %10668 = vst.msk [vmem:[%s16388_s29 + $0xb0] sm:$0xff] %vm10645_vm5, %v14144_v25  ;;  %14157 = vtanh.f32 %v10574_v41  ;;  %v12500_v8 = vpop.f32.mrb[28].mxu1 }
 0x43f   : > { %v14148_v10 = vpop.eup %14147  ;;  %10666 = vst.msk [vmem:[%s16388_s29 + $0xa0] sm:$0xff] %vm10645_vm5, %v14146_v62  ;;  %v12996_v61 = vadd.f32 %v12950_v11, %v12500_v8  ;;  %v5499_v21 = vpop.f32.mrb[29].mxu1 }
 0x440   : > { %v14150_v16 = vpop.eup %14149  ;;  %10669 = vst.msk [vmem:[%s16388_s29 + $0xb8] sm:$0xff] %vm10645_vm5, %v14148_v10  ;;  %v12997_v43 = vadd.f32 %v10415_v54, %v5499_v21  ;;  %v12501_v58 = vpop.f32.mrb[30].mxu1 }
 0x441   : > { %10667 = vst.msk [vmem:[%s16388_s29 + $0xa8] sm:$0xff] %vm10645_vm5, %v14150_v16  ;;  %v10579_v45 = vadd.f32 %v12996_v61, %v16376_v26  ;;  %v12998_v20 = vadd.f32 %v12951_v19, %v12501_v58  ;;  %v5502_v18 = vpop.f32.mrb[31].mxu1 }
 0x442   : > { %v10577_v49 = vadd.f32 %v12997_v43, %v16376_v26  ;;  %v12999_v53 = vadd.f32 %v10418_v31, %v5502_v18  ;;  %v12958_v42 = vpop.f32.mrb[36].mxu0 }
 0x443   : > { %14159 = vtanh.f32 %v10579_v45  ;;  %v10580_v28 = vadd.f32 %v12998_v20, %v16376_v26  ;;  %v10447_v40 = vpop.f32.mrb[37].mxu0 }
 0x444   : > { %14161 = vtanh.f32 %v10577_v49  ;;  %v10578_v34 = vadd.f32 %v12999_v53, %v16376_v26  ;;  %v12959_v50 = vpop.f32.mrb[38].mxu0 }
 0x445   : > { %v14152_v59 = vpop.eup %14151  ;;  %14163 = vtanh.f32 %v10580_v28  ;;  %v10450_v4 = vpop.f32.mrb[39].mxu0 }
 0x446   : > { %v14154_v29 = vpop.eup %14153  ;;  %10672 = vst.msk [vmem:[%s16388_s29 + $0xd0] sm:$0xff] %vm10645_vm5, %v14152_v59  ;;  %14165 = vtanh.f32 %v10578_v34  ;;  %v12504_v56 = vpop.f32.mrb[32].mxu1 }
 0x447   : > { %v14156_v57 = vpop.eup %14155  ;;  %10670 = vst.msk [vmem:[%s16388_s29 + $0xc0] sm:$0xff] %vm10645_vm5, %v14154_v29  ;;  %v13000_v13 = vadd.f32 %v12954_v2, %v12504_v56  ;;  %v5515_v47 = vpop.f32.mrb[33].mxu1 }
 0x448   : > { %v14158_v17 = vpop.eup %14157  ;;  %10673 = vst.msk [vmem:[%s16388_s29 + $0xd8] sm:$0xff] %vm10645_vm5, %v14156_v57  ;;  %v13001_v33 = vadd.f32 %v10431_v35, %v5515_v47  ;;  %v12505_v51 = vpop.f32.mrb[34].mxu1 }
 0x449   : > { %10671 = vst.msk [vmem:[%s16388_s29 + $0xc8] sm:$0xff] %vm10645_vm5, %v14158_v17  ;;  %v10583_v12 = vadd.f32 %v13000_v13, %v16376_v26  ;;  %v13002_v6 = vadd.f32 %v12955_v5, %v12505_v51  ;;  %v5518_v39 = vpop.f32.mrb[35].mxu1 }
 0x44a   : > { %v10581_v27 = vadd.f32 %v13001_v33, %v16376_v26  ;;  %v13003_v23 = vadd.f32 %v10434_v3, %v5518_v39  ;;  %v12962_v55 = vpop.f32.mrb[40].mxu0 }
 0x44b   : > { %14167 = vtanh.f32 %v10583_v12  ;;  %v10584_v32 = vadd.f32 %v13002_v6, %v16376_v26  ;;  %v10463_v46 = vpop.f32.mrb[41].mxu0 }
 0x44c   : > { %14169 = vtanh.f32 %v10581_v27  ;;  %v10582_v1 = vadd.f32 %v13003_v23, %v16376_v26  ;;  %v12963_v54 = vpop.f32.mrb[42].mxu0 }
 0x44d   : > { %v14160_v24 = vpop.eup %14159  ;;  %14171 = vtanh.f32 %v10584_v32  ;;  %v10466_v60 = vpop.f32.mrb[43].mxu0 }
 0x44e   : > { %v14162_v11 = vpop.eup %14161  ;;  %10676 = vst.msk [vmem:[%s16388_s29 + $0xf0] sm:$0xff] %vm10645_vm5, %v14160_v24  ;;  %14173 = vtanh.f32 %v10582_v1  ;;  %v12508_v22 = vpop.f32.mrb[36].mxu1 }
 0x44f   : > { %v14164_v15 = vpop.eup %14163  ;;  %10674 = vst.msk [vmem:[%s16388_s29 + $0xe0] sm:$0xff] %vm10645_vm5, %v14162_v11  ;;  %v13004_v30 = vadd.f32 %v12958_v42, %v12508_v22  ;;  %v5531_v19 = vpop.f32.mrb[37].mxu1 }
 0x450   : > { %v14166_v14 = vpop.eup %14165  ;;  %10677 = vst.msk [vmem:[%s16388_s29 + $0xf8] sm:$0xff] %vm10645_vm5, %v14164_v15  ;;  %v13005_v48 = vadd.f32 %v10447_v40, %v5531_v19  ;;  %v12509_v31 = vpop.f32.mrb[38].mxu1 }
 0x451   : > { %10675 = vst.msk [vmem:[%s16388_s29 + $0xe8] sm:$0xff] %vm10645_vm5, %v14166_v14  ;;  %v10587_v0 = vadd.f32 %v13004_v30, %v16376_v26  ;;  %v13006_v7 = vadd.f32 %v12959_v50, %v12509_v31  ;;  %v5534_v44 = vpop.f32.mrb[39].mxu1 }
 0x452   : > { %v10585_v52 = vadd.f32 %v13005_v48, %v16376_v26  ;;  %v13007_v38 = vadd.f32 %v10450_v4, %v5534_v44  ;;  %v12966_v9 = vpop.f32.mrb[44].mxu0 }
 0x453   : > { %14175 = vtanh.f32 %v10587_v0  ;;  %v10588_v36 = vadd.f32 %v13006_v7, %v16376_v26  ;;  %v10479_v41 = vpop.f32.mrb[45].mxu0 }
 0x454   : > { %14177 = vtanh.f32 %v10585_v52  ;;  %v10586_v37 = vadd.f32 %v13007_v38, %v16376_v26  ;;  %v12967_v35 = vpop.f32.mrb[46].mxu0 }
 0x455   : > { %v14168_v63 = vpop.eup %14167  ;;  %14179 = vtanh.f32 %v10588_v36  ;;  %v10482_v10 = vpop.f32.mrb[47].mxu0 }
 0x456   : > { %v14170_v2 = vpop.eup %14169  ;;  %10680 = vst.msk [vmem:[%s16388_s29 + $0x110] sm:$0xff] %vm10645_vm5, %v14168_v63  ;;  %14181 = vtanh.f32 %v10586_v37  ;;  %v12512_v25 = vpop.f32.mrb[40].mxu1 }
 0x457   : > { %v14172_v62 = vpop.eup %14171  ;;  %10678 = vst.msk [vmem:[%s16388_s29 + $0x100] sm:$0xff] %vm10645_vm5, %v14170_v2  ;;  %v13008_v8 = vadd.f32 %v12962_v55, %v12512_v25  ;;  %v5547_v5 = vpop.f32.mrb[41].mxu1 }
 0x458   : > { %v14174_v61 = vpop.eup %14173  ;;  %10681 = vst.msk [vmem:[%s16388_s29 + $0x118] sm:$0xff] %vm10645_vm5, %v14172_v62  ;;  %v13009_v21 = vadd.f32 %v10463_v46, %v5547_v5  ;;  %v12513_v3 = vpop.f32.mrb[42].mxu1 }
 0x459   : > { %10679 = vst.msk [vmem:[%s16388_s29 + $0x108] sm:$0xff] %vm10645_vm5, %v14174_v61  ;;  %v10591_v16 = vadd.f32 %v13008_v8, %v16376_v26  ;;  %v13010_v43 = vadd.f32 %v12963_v54, %v12513_v3  ;;  %v5550_v58 = vpop.f32.mrb[43].mxu1 }
 0x45a   : > { %v10589_v45 = vadd.f32 %v13009_v21, %v16376_v26  ;;  %v13011_v20 = vadd.f32 %v10466_v60, %v5550_v58 }
 0x45b   : > { %14183 = vtanh.f32 %v10591_v16  ;;  %v10592_v18 = vadd.f32 %v13010_v43, %v16376_v26 }
 0x45c   : > { %14185 = vtanh.f32 %v10589_v45  ;;  %v10590_v49 = vadd.f32 %v13011_v20, %v16376_v26 }
 0x45d   : > { %v14176_v53 = vpop.eup %14175  ;;  %14187 = vtanh.f32 %v10592_v18 }
 0x45e   : > { %v14178_v28 = vpop.eup %14177  ;;  %10684 = vst.msk [vmem:[%s16388_s29 + $0x130] sm:$0xff] %vm10645_vm5, %v14176_v53  ;;  %14189 = vtanh.f32 %v10590_v49  ;;  %v12516_v34 = vpop.f32.mrb[44].mxu1 }
 0x45f   : > { %v14180_v42 = vpop.eup %14179  ;;  %10682 = vst.msk [vmem:[%s16388_s29 + $0x120] sm:$0xff] %vm10645_vm5, %v14178_v28  ;;  %v13012_v59 = vadd.f32 %v12966_v9, %v12516_v34  ;;  %v5563_v40 = vpop.f32.mrb[45].mxu1 }
 0x460   : > { %v14182_v29 = vpop.eup %14181  ;;  %10685 = vst.msk [vmem:[%s16388_s29 + $0x138] sm:$0xff] %vm10645_vm5, %v14180_v42  ;;  %v13013_v56 = vadd.f32 %v10479_v41, %v5563_v40  ;;  %v12517_v50 = vpop.f32.mrb[46].mxu1 }
 0x461   : > { %10683 = vst.msk [vmem:[%s16388_s29 + $0x128] sm:$0xff] %vm10645_vm5, %v14182_v29  ;;  %v10595_v57 = vadd.f32 %v13012_v59, %v16376_v26  ;;  %v13014_v13 = vadd.f32 %v12967_v35, %v12517_v50  ;;  %v5566_v47 = vpop.f32.mrb[47].mxu1 }
 0x462   : > { %v10593_v4 = vadd.f32 %v13013_v56, %v16376_v26  ;;  %v13015_v17 = vadd.f32 %v10482_v10, %v5566_v47 }
 0x463   : > { %14191 = vtanh.f32 %v10595_v57  ;;  %v10596_v33 = vadd.f32 %v13014_v13, %v16376_v26 }
 0x464   : > { %14193 = vtanh.f32 %v10593_v4  ;;  %v10594_v51 = vadd.f32 %v13015_v17, %v16376_v26 }
 0x465   : > { %v14184_v12 = vpop.eup %14183  ;;  %14195 = vtanh.f32 %v10596_v33 }
 0x466   : > { %v14186_v6 = vpop.eup %14185  ;;  %10688 = vst.msk [vmem:[%s16388_s29 + $0x150] sm:$0xff] %vm10645_vm5, %v14184_v12  ;;  %14197 = vtanh.f32 %v10594_v51 }
 0x467   : > { %v14188_v39 = vpop.eup %14187  ;;  %10686 = vst.msk [vmem:[%s16388_s29 + $0x140] sm:$0xff] %vm10645_vm5, %v14186_v6 }
 0x468   : > { %v14190_v27 = vpop.eup %14189  ;;  %10689 = vst.msk [vmem:[%s16388_s29 + $0x158] sm:$0xff] %vm10645_vm5, %v14188_v39 }
 0x469   : > { %10687 = vst.msk [vmem:[%s16388_s29 + $0x148] sm:$0xff] %vm10645_vm5, %v14190_v27 }
 0x46d   : > { %v14192_v23 = vpop.eup %14191 }
 0x46e   : > { %v14194_v32 = vpop.eup %14193  ;;  %10692 = vst.msk [vmem:[%s16388_s29 + $0x170] sm:$0xff] %vm10645_vm5, %v14192_v23 }
 0x46f   : > { %v14196_v26 = vpop.eup %14195  ;;  %10690 = vst.msk [vmem:[%s16388_s29 + $0x160] sm:$0xff] %vm10645_vm5, %v14194_v32 }
 0x470   : > { %v14198_v1 = vpop.eup %14197  ;;  %10693 = vst.msk [vmem:[%s16388_s29 + $0x178] sm:$0xff] %vm10645_vm5, %v14196_v26 }
 0x471   : > { %10691 = vst.msk [vmem:[%s16388_s29 + $0x168] sm:$0xff] %vm10645_vm5, %v14198_v1 }
 0x472 PF: > { %s19_s11 = sadd.s32 1, %s14248_s11   ;;  %s16598_s30 = smov %s14244_s10 }
 0x473   : > { %p16_p5 = scmp.ge.s32.totalorder %s19_s11, 4   ;;  %s16599_s10 = smov %s16601_s12 }
 0x475   :  { %18 = sbr.rel (!%p16_p5) target bundleno = 2 (0x2), region = 117 }

</bundles_post_ra>
